<compile_context>
chip_gen: v7x
topology: tpu7x:2x2x1
jax: 0.10.0
libtpu: 0.0.40
codegen_flags: <defaults>
</compile_context>

<pallas_src>
import functools

import jax
import jax.numpy as jnp
from jax.experimental import pallas as pl
from jax.experimental.pallas import tpu as pltpu


# ----------------------------- helpers --------------------------------------

def _apply_act(y, act):
    if act is None:
        return y
    if act == 'relu':
        return jnp.maximum(y, 0.0)
    if act == 'hard_swish':
        # x * relu6(x + 3) / 6
        return y * jnp.clip(y + 3.0, 0.0, 6.0) * (1.0 / 6.0)
    raise ValueError(f"unsupported act: {act}")


def _conv_out_size(n, k, stride, pad):
    return (n + 2 * pad - k) // stride + 1


def _tap(ref, r0, c0, ho, wo, stride):
    """Read conv tap starting at (r0, c0) with shape (ho, wo, C) from a padded
    3-D VMEM ref, directly at the strided output positions (in-kernel stride)."""
    ih = slice(r0, r0 + ho) if (stride == 1 or ho == 1) else pl.ds(r0, ho, stride)
    iw = slice(c0, c0 + wo) if (stride == 1 or wo == 1) else pl.ds(c0, wo, stride)
    return ref[ih, iw, :]


@functools.lru_cache(maxsize=None)
def _vmem_limit_bytes():
    """Per-generation scoped-VMEM budget (~3/4 of physical VMEM, <= 100 MiB):
    ~96 MiB on v5e/v6e (128 MiB physical), ~48 MiB on v7x (64 MiB physical)."""
    try:
        cap = int(pltpu.get_tpu_info().vmem_capacity_bytes)
    except Exception:
        cap = 64 * 1024 * 1024              # conservative (v7x-sized) fallback
    return min(100 * 1024 * 1024, (cap * 3) // 4)


def _compiler_params():
    return pltpu.CompilerParams(
        dimension_semantics=("parallel",),   # split the batch across TCs (v7x)
        vmem_limit_bytes=_vmem_limit_bytes(),
    )


def _zero_halo_and_store(pref, interior, h, w, pad, lpad):
    """Write `interior` (h, w, C) into the padded scratch `pref` at row offset
    `pad` / sublane-aligned column offset `lpad`, zeroing ONLY the halo strips
    the k*k taps read (no full-scratch zero fill)."""
    hp, wp, c = pref.shape
    zdt = pref.dtype
    pref[0:pad, :, :] = jnp.zeros((pad, wp, c), zdt)                         # top
    pref[pad + h:, :, :] = jnp.zeros((hp - pad - h, wp, c), zdt)             # bottom
    pref[pad:pad + h, lpad - pad:lpad, :] = jnp.zeros((h, pad, c), zdt)      # left
    pref[pad:pad + h, lpad + w:lpad + w + pad, :] = jnp.zeros((h, pad, c), zdt)  # right
    pref[pad:pad + h, lpad:lpad + w, :] = interior.astype(zdt)


# ----------------------------- per-block bodies (run inside ONE kernel) -----

def _res_block_body(xin_ref, xout_ref, midp_ref, prm, *, k, stride, act, add, lpad):
    """ResidualUnit: 1x1 expand + BN + act -> depthwise kxk (strided) + BN + act
       -> 1x1 project + BN -> optional residual add.  The expanded 'mid' tensor
       lives only in the VMEM scratch `midp_ref`."""
    h, w, cin = xin_ref.shape
    ho, wo, cout = xout_ref.shape
    cmid = midp_ref.shape[-1]
    pad = (k - 1) // 2
    w0, s0, b0, w1, s1, b1, w2, s2, b2 = prm

    x = xin_ref[...]                                        # (h, w, cin)
    xm = x.reshape(h * w, cin)

    # -- expand 1x1 (MXU, bf16 x bf16 -> f32 acc) + BN + act ------------------
    y = jnp.dot(xm.astype(jnp.bfloat16), w0[...],
                preferred_element_type=jnp.float32)
    y = _apply_act(y * s0[...] + b0[...], act)              # (h*w, cmid) f32

    # -- padded 'mid': interior store + halo-strip zero only ------------------
    _zero_halo_and_store(midp_ref, y.reshape(h, w, cmid), h, w, pad, lpad)

    # -- depthwise kxk at strided output positions (VPU, f32 accumulation) ----
    w1v = w1[...]                                           # hoisted (k*k, cmid)
    acc = jnp.zeros((ho, wo, cmid), jnp.float32)
    for dy in range(k):
        for dx in range(k):
            tap = _tap(midp_ref, dy, lpad - pad + dx, ho, wo, stride)
            acc = acc + tap.astype(jnp.float32) * w1v[dy * k + dx]
    z = _apply_act(acc * s1[0] + b1[0], act)                # (ho, wo, cmid)

    # -- project 1x1 (MXU) + BN (no act), optional residual -------------------
    zm = jnp.dot(z.reshape(ho * wo, cmid).astype(jnp.bfloat16), w2[...],
                 preferred_element_type=jnp.float32)
    zm = zm * s2[...] + b2[...]
    if add:                                                 # stride==1, cin==cout
        zm = zm + xm.astype(jnp.float32)
    xout_ref[...] = zm.reshape(ho, wo, cout).astype(xout_ref.dtype)


def _stem_block_body(xin_ref, xout_ref, xp_ref, col_ref, prm, *, k, stride, act, lpad):
    """Dense kxk conv + BN + act via in-VMEM im2col: the k*k taps are laid side
       by side on the lane axis so the stem is ONE matmul with K = k*k*Cin."""
    h, w, cin = xin_ref.shape
    ho, wo, cout = xout_ref.shape
    pad = (k - 1) // 2
    wgt, s, b = prm

    _zero_halo_and_store(xp_ref, xin_ref[...], h, w, pad, lpad)

    for dy in range(k):
        for dx in range(k):
            t = dy * k + dx
            col_ref[:, :, t * cin:(t + 1) * cin] = _tap(
                xp_ref, dy, lpad - pad + dx, ho, wo, stride).astype(col_ref.dtype)

    patch = col_ref[...].reshape(ho * wo, k * k * cin)      # bf16
    y = jnp.dot(patch, wgt[...], preferred_element_type=jnp.float32)
    y = _apply_act(y * s[...] + b[...], act)
    xout_ref[...] = y.reshape(ho, wo, cout).astype(xout_ref.dtype)


def _pw_block_body(xin_ref, xout_ref, prm, *, act):
    """Standalone 1x1 conv + BN + act (trailing ConvBNACT of the last stage)."""
    h, w, cin = xin_ref.shape
    cout = xout_ref.shape[-1]
    wgt, s, b = prm
    y = jnp.dot(xin_ref[...].reshape(h * w, cin).astype(jnp.bfloat16), wgt[...],
                preferred_element_type=jnp.float32)
    y = _apply_act(y * s[...] + b[...], act)
    xout_ref[...] = y.reshape(h, w, cout).astype(xout_ref.dtype)


# ----------------------------- fused-stage pallas_call ----------------------

def run_fused_stage(x, blocks):
    """One output stage (stem + ResidualUnits [+ trailing 1x1 conv]) fused into
    a single pallas_call over grid=(N,).  Inter-block activations live only in
    VMEM scratch; the only HBM write is the stage output.  x is NHWC bf16."""
    n, h0, w0_, c0 = x.shape

    inputs = [x]
    in_specs = [pl.BlockSpec((None, h0, w0_, c0), lambda b: (b, 0, 0, 0))]
    scratch_shapes = []
    plan = []
    const2 = lambda b: (0, 0)

    h, w, c = h0, w0_, c0
    nb = len(blocks)
    for bi, blk in enumerate(blocks):
        entry = {'type': blk['type']}
        if blk['type'] == 'res':
            k, s = blk['k'], blk['stride']
            pad = (k - 1) // 2
            cmid = blk['conv0']['w'].shape[1]
            cout = blk['conv2']['w'].shape[1]
            ho, wo = _conv_out_size(h, k, s, pad), _conv_out_size(w, k, s, pad)
            assert ho >= 1 and wo >= 1, (h, w, k, s)
            # bf16 scratch for stride-1 (contiguous taps); stride-2 keeps f32 so
            # the strided sublane reads stay on the 32-bit path.
            sdt = jnp.bfloat16 if s == 1 else jnp.float32
            lpad = 16 if sdt == jnp.bfloat16 else 8       # sublane-aligned interior
            entry.update(k=k, stride=s, act=blk['act'], add=blk['add'], lpad=lpad,
                         mid_scratch=len(scratch_shapes))
            scratch_shapes.append(
                pltpu.VMEM((h + 2 * pad, lpad + w + pad, cmid), sdt))
            params = [blk['conv0']['w'], blk['conv0']['scale'], blk['conv0']['bias'],
                      blk['conv1']['w'], blk['conv1']['scale'], blk['conv1']['bias'],
                      blk['conv2']['w'], blk['conv2']['scale'], blk['conv2']['bias']]
        elif blk['type'] == 'stem':
            k, s = blk['k'], blk['stride']
            pad = (k - 1) // 2
            cout = blk['conv']['w'].shape[1]
            ho, wo = _conv_out_size(h, k, s, pad), _conv_out_size(w, k, s, pad)
            assert ho >= 1 and wo >= 1, (h, w, k, s)
            lpad = 8
            entry.update(k=k, stride=s, act=blk['act'], lpad=lpad,
                         pad_scratch=len(scratch_shapes))
            scratch_shapes.append(
                pltpu.VMEM((h + 2 * pad, lpad + w + pad, c), jnp.float32))
            entry['col_scratch'] = len(scratch_shapes)
            scratch_shapes.append(pltpu.VMEM((ho, wo, k * k * c), jnp.bfloat16))
            params = [blk['conv']['w'], blk['conv']['scale'], blk['conv']['bias']]
        else:                                             # 'pw'
            cout = blk['conv']['w'].shape[1]
            ho, wo = h, w
            entry.update(act=blk['act'])
            params = [blk['conv']['w'], blk['conv']['scale'], blk['conv']['bias']]

        entry['n_params'] = len(params)
        inputs.extend(params)
        in_specs.extend(pl.BlockSpec(p.shape, const2) for p in params)

        if bi != nb - 1:            # inter-block activation stays in VMEM (f32)
            entry['x_scratch'] = len(scratch_shapes)
            scratch_shapes.append(pltpu.VMEM((ho, wo, cout), jnp.float32))
        else:
            entry['x_scratch'] = None                     # last block writes o_ref
        plan.append(entry)
        h, w, c = ho, wo, cout

    n_in = len(inputs)
    out_h, out_w, out_c = h, w, c

    def stage_kernel(*refs):
        in_refs = refs[:n_in]
        o_ref = refs[n_in]
        scratch = refs[n_in + 1:]
        cur = in_refs[0]
        pi = 1
        for entry in plan:
            prm = in_refs[pi:pi + entry['n_params']]
            pi += entry['n_params']
            dst = o_ref if entry['x_scratch'] is None else scratch[entry['x_scratch']]
            if entry['type'] == 'res':
                _res_block_body(cur, dst, scratch[entry['mid_scratch']], prm,
                                k=entry['k'], stride=entry['stride'],
                                act=entry['act'], add=entry['add'],
                                lpad=entry['lpad'])
            elif entry['type'] == 'stem':
                _stem_block_body(cur, dst, scratch[entry['pad_scratch']],
                                 scratch[entry['col_scratch']], prm,
                                 k=entry['k'], stride=entry['stride'],
                                 act=entry['act'], lpad=entry['lpad'])
            else:
                _pw_block_body(cur, dst, prm, act=entry['act'])
            cur = dst

    return pl.pallas_call(
        stage_kernel,
        out_shape=jax.ShapeDtypeStruct((n, out_h, out_w, out_c), x.dtype),
        grid=(n,),
        in_specs=in_specs,
        out_specs=pl.BlockSpec((None, out_h, out_w, out_c), lambda b: (b, 0, 0, 0)),
        scratch_shapes=scratch_shapes,
        compiler_params=_compiler_params(),
    )(*inputs)


# ----------------------------- model construction ---------------------------

CFG_LARGE = [
    # k, exp, out, se, act, stride
    [3, 16, 16, False, 'relu', 1],
    [3, 64, 24, False, 'relu', 2],
    [3, 72, 24, False, 'relu', 1],
    [5, 72, 40, True, 'relu', 2],
    [5, 120, 40, True, 'relu', 1],
    [5, 120, 40, True, 'relu', 1],
    [3, 240, 80, False, 'hard_swish', 2],
    [3, 200, 80, False, 'hard_swish', 1],
    [3, 184, 80, False, 'hard_swish', 1],
    [3, 184, 80, False, 'hard_swish', 1],
    [3, 480, 112, True, 'hard_swish', 1],
    [3, 672, 112, True, 'hard_swish', 1],
    [5, 672, 160, True, 'hard_swish', 2],
    [5, 960, 160, True, 'hard_swish', 1],
    [5, 960, 160, True, 'hard_swish', 1],
]


def make_divisible(v, divisor=8, min_value=None):
    if min_value is None:
        min_value = divisor
    new_v = max(min_value, int(v + divisor / 2) // divisor * divisor)
    if new_v < 0.9 * v:
        new_v += divisor
    return new_v


def init_convbnact(key, cin, cout, k, conv_type):
    """Deterministic synthetic conv weights + folded BatchNorm (eval, eps=1e-5).
    'pw'     : 1x1 conv           -> (cin, cout)       bf16 (MXU operand)
    'dw'     : depthwise kxk conv -> (k*k, cout)       f32  (VPU operand)
    'im2col' : dense kxk conv     -> (k*k*cin, cout)   bf16, taps ordered (dy, dx, cin)
    """
    kw, kg, kb, km, kv = jax.random.split(key, 5)
    if conv_type == 'pw':
        w = (jax.random.normal(kw, (cin, cout), jnp.float32) * 0.1
             ).astype(jnp.bfloat16)
    elif conv_type == 'dw':
        w = jax.random.normal(kw, (k * k, cout), jnp.float32) * 0.1
    else:
        w = (jax.random.normal(kw, (k * k * cin, cout), jnp.float32) * 0.1
             ).astype(jnp.bfloat16)
    gamma = jax.random.uniform(kg, (cout,), jnp.float32, 0.5, 1.5)
    beta = jax.random.normal(kb, (cout,), jnp.float32) * 0.1
    mean = jax.random.normal(km, (cout,), jnp.float32) * 0.1
    var = jax.random.uniform(kv, (cout,), jnp.float32, 0.5, 1.5)
    scale = gamma * jax.lax.rsqrt(var + 1e-5)
    bias = beta - mean * scale
    return {'w': w, 'scale': scale.reshape(1, cout), 'bias': bias.reshape(1, cout)}


def build_mobilenetv3(key, in_channels, scale=0.5):
    """Mirror the PyTorch MobileNetV3(in_channels, model_name='large',
    scale=0.5, disable_se=True) constructor with synthetic weights."""
    kidx = [0]

    def next_key():
        kidx[0] += 1
        return jax.random.fold_in(key, kidx[0])

    inplanes = make_divisible(16 * scale)
    net = {
        'conv1': init_convbnact(next_key(), in_channels, inplanes, 3, 'im2col'),
        'stages': [],
        'out_channels': [],
    }

    # TODO(synk): SEBlock is never constructed (disable_se=True default) and
    # pretrained-checkpoint loading is replaced by deterministic synthetic init.
    stages, block_list, out_channels = [], [], []
    i = 0
    for (k, exp, c, _se, act, s) in CFG_LARGE:
        if s == 2 and i > 2:
            out_channels.append(inplanes)
            stages.append(block_list)
            block_list = []
        mid = make_divisible(scale * exp)
        out = make_divisible(scale * c)
        blk = {
            'type': 'res',
            'k': k,
            'stride': s,
            'act': act,
            'add': (inplanes == out and s == 1),
            'conv0': init_convbnact(next_key(), inplanes, mid, 1, 'pw'),
            'conv1': init_convbnact(next_key(), mid, mid, k, 'dw'),
            'conv2': init_convbnact(next_key(), mid, out, 1, 'pw'),
        }
        block_list.append(blk)
        inplanes = out
        i += 1

    cls_ch_squeeze = make_divisible(scale * 960)
    block_list.append({
        'type': 'pw',
        'act': 'hard_swish',
        'conv': init_convbnact(next_key(), inplanes, cls_ch_squeeze, 1, 'pw'),
    })
    stages.append(block_list)
    out_channels.append(cls_ch_squeeze)

    net['stages'] = stages
    net['out_channels'] = out_channels
    return net


def mobilenetv3_forward(net, x_nchw):
    """Forward pass; input NCHW f32, returns list of 4 NCHW f32 feature maps.
    One fused pallas_call per output stage (the stem is fused into stage 0)."""
    x = jnp.transpose(x_nchw, (0, 2, 3, 1)).astype(jnp.bfloat16)   # -> NHWC bf16
    stem = {'type': 'stem', 'k': 3, 'stride': 2, 'act': 'hard_swish',
            'conv': net['conv1']}
    outs = []
    for si, stage in enumerate(net['stages']):
        blocks = ([stem] + stage) if si == 0 else stage
        x = run_fused_stage(x, blocks)
        outs.append(jnp.transpose(x, (0, 3, 1, 2)).astype(jnp.float32))  # NCHW
    return outs


# ----------------------------- demo ----------------------------------------

if __name__ == "__main__":
    root = jax.random.PRNGKey(0)
    kx, kp = jax.random.split(root)

    in_channels = 3
    x = jax.random.normal(kx, (2, in_channels, 32, 32), jnp.float32)  # NCHW

    net = build_mobilenetv3(kp, in_channels, scale=0.5)
    outs = mobilenetv3_forward(net, x)
    outs = jax.block_until_ready(outs)

    # sanity: 4 stage outputs with channels [16, 24, 56, 480], strides 4/8/16/32
    expected = [(2, 16, 8, 8), (2, 24, 4, 4), (2, 56, 2, 2), (2, 480, 1, 1)]
    assert len(outs) == 4
    for o, e, c in zip(outs, expected, net['out_channels']):
        assert o.shape == e, (o.shape, e)
        assert o.shape[1] == c
        assert bool(jnp.all(jnp.isfinite(o)))

    print("KERNEL_OK")
</pallas_src>

<mosaic_0001>
module attributes {stable_mosaic.version = 11 : i64} {
  func.func @stage_kernel(%arg0: i32, %arg1: memref<1x32x32x3xbf16, #tpu.memory_space<vmem>>, %arg2: memref<27x8xbf16, #tpu.memory_space<vmem>>, %arg3: memref<1x8xf32, #tpu.memory_space<vmem>>, %arg4: memref<1x8xf32, #tpu.memory_space<vmem>>, %arg5: memref<8x8xbf16, #tpu.memory_space<vmem>>, %arg6: memref<1x8xf32, #tpu.memory_space<vmem>>, %arg7: memref<1x8xf32, #tpu.memory_space<vmem>>, %arg8: memref<9x8xf32, #tpu.memory_space<vmem>>, %arg9: memref<1x8xf32, #tpu.memory_space<vmem>>, %arg10: memref<1x8xf32, #tpu.memory_space<vmem>>, %arg11: memref<8x8xbf16, #tpu.memory_space<vmem>>, %arg12: memref<1x8xf32, #tpu.memory_space<vmem>>, %arg13: memref<1x8xf32, #tpu.memory_space<vmem>>, %arg14: memref<8x32xbf16, #tpu.memory_space<vmem>>, %arg15: memref<1x32xf32, #tpu.memory_space<vmem>>, %arg16: memref<1x32xf32, #tpu.memory_space<vmem>>, %arg17: memref<9x32xf32, #tpu.memory_space<vmem>>, %arg18: memref<1x32xf32, #tpu.memory_space<vmem>>, %arg19: memref<1x32xf32, #tpu.memory_space<vmem>>, %arg20: memref<32x16xbf16, #tpu.memory_space<vmem>>, %arg21: memref<1x16xf32, #tpu.memory_space<vmem>>, %arg22: memref<1x16xf32, #tpu.memory_space<vmem>>, %arg23: memref<16x40xbf16, #tpu.memory_space<vmem>>, %arg24: memref<1x40xf32, #tpu.memory_space<vmem>>, %arg25: memref<1x40xf32, #tpu.memory_space<vmem>>, %arg26: memref<9x40xf32, #tpu.memory_space<vmem>>, %arg27: memref<1x40xf32, #tpu.memory_space<vmem>>, %arg28: memref<1x40xf32, #tpu.memory_space<vmem>>, %arg29: memref<40x16xbf16, #tpu.memory_space<vmem>>, %arg30: memref<1x16xf32, #tpu.memory_space<vmem>>, %arg31: memref<1x16xf32, #tpu.memory_space<vmem>>, %arg32: memref<1x8x8x16xbf16, #tpu.memory_space<vmem>>, %arg33: memref<34x41x3xf32, #tpu.memory_space<vmem>>, %arg34: memref<16x16x27xbf16, #tpu.memory_space<vmem>>, %arg35: memref<16x16x8xf32, #tpu.memory_space<vmem>>, %arg36: memref<18x33x8xbf16, #tpu.memory_space<vmem>>, %arg37: memref<16x16x8xf32, #tpu.memory_space<vmem>>, %arg38: memref<18x25x32xf32, #tpu.memory_space<vmem>>, %arg39: memref<8x8x16xf32, #tpu.memory_space<vmem>>, %arg40: memref<10x25x40xbf16, #tpu.memory_space<vmem>>) attributes {dimension_semantics = [#tpu.dimension_semantics<parallel>], iteration_bounds = array<i64: 2>, scalar_prefetch = 0 : i64, scratch_operands = 8 : i64, tpu.core_type = #tpu.core_type<tc>, window_params = [{transform_indices = @transform_0, window_bounds = array<i64: 1, 32, 32, 3>}, {pipeline_mode = #tpu.pipeline_mode<synchronous>, transform_indices = @transform_1, window_bounds = array<i64: 27, 8>}, {pipeline_mode = #tpu.pipeline_mode<synchronous>, transform_indices = @transform_2, window_bounds = array<i64: 1, 8>}, {pipeline_mode = #tpu.pipeline_mode<synchronous>, transform_indices = @transform_3, window_bounds = array<i64: 1, 8>}, {pipeline_mode = #tpu.pipeline_mode<synchronous>, transform_indices = @transform_4, window_bounds = array<i64: 8, 8>}, {pipeline_mode = #tpu.pipeline_mode<synchronous>, transform_indices = @transform_5, window_bounds = array<i64: 1, 8>}, {pipeline_mode = #tpu.pipeline_mode<synchronous>, transform_indices = @transform_6, window_bounds = array<i64: 1, 8>}, {pipeline_mode = #tpu.pipeline_mode<synchronous>, transform_indices = @transform_7, window_bounds = array<i64: 9, 8>}, {pipeline_mode = #tpu.pipeline_mode<synchronous>, transform_indices = @transform_8, window_bounds = array<i64: 1, 8>}, {pipeline_mode = #tpu.pipeline_mode<synchronous>, transform_indices = @transform_9, window_bounds = array<i64: 1, 8>}, {pipeline_mode = #tpu.pipeline_mode<synchronous>, transform_indices = @transform_10, window_bounds = array<i64: 8, 8>}, {pipeline_mode = #tpu.pipeline_mode<synchronous>, transform_indices = @transform_11, window_bounds = array<i64: 1, 8>}, {pipeline_mode = #tpu.pipeline_mode<synchronous>, transform_indices = @transform_12, window_bounds = array<i64: 1, 8>}, {pipeline_mode = #tpu.pipeline_mode<synchronous>, transform_indices = @transform_13, window_bounds = array<i64: 8, 32>}, {pipeline_mode = #tpu.pipeline_mode<synchronous>, transform_indices = @transform_14, window_bounds = array<i64: 1, 32>}, {pipeline_mode = #tpu.pipeline_mode<synchronous>, transform_indices = @transform_15, window_bounds = array<i64: 1, 32>}, {pipeline_mode = #tpu.pipeline_mode<synchronous>, transform_indices = @transform_16, window_bounds = array<i64: 9, 32>}, {pipeline_mode = #tpu.pipeline_mode<synchronous>, transform_indices = @transform_17, window_bounds = array<i64: 1, 32>}, {pipeline_mode = #tpu.pipeline_mode<synchronous>, transform_indices = @transform_18, window_bounds = array<i64: 1, 32>}, {pipeline_mode = #tpu.pipeline_mode<synchronous>, transform_indices = @transform_19, window_bounds = array<i64: 32, 16>}, {pipeline_mode = #tpu.pipeline_mode<synchronous>, transform_indices = @transform_20, window_bounds = array<i64: 1, 16>}, {pipeline_mode = #tpu.pipeline_mode<synchronous>, transform_indices = @transform_21, window_bounds = array<i64: 1, 16>}, {pipeline_mode = #tpu.pipeline_mode<synchronous>, transform_indices = @transform_22, window_bounds = array<i64: 16, 40>}, {pipeline_mode = #tpu.pipeline_mode<synchronous>, transform_indices = @transform_23, window_bounds = array<i64: 1, 40>}, {pipeline_mode = #tpu.pipeline_mode<synchronous>, transform_indices = @transform_24, window_bounds = array<i64: 1, 40>}, {pipeline_mode = #tpu.pipeline_mode<synchronous>, transform_indices = @transform_25, window_bounds = array<i64: 9, 40>}, {pipeline_mode = #tpu.pipeline_mode<synchronous>, transform_indices = @transform_26, window_bounds = array<i64: 1, 40>}, {pipeline_mode = #tpu.pipeline_mode<synchronous>, transform_indices = @transform_27, window_bounds = array<i64: 1, 40>}, {pipeline_mode = #tpu.pipeline_mode<synchronous>, transform_indices = @transform_28, window_bounds = array<i64: 40, 16>}, {pipeline_mode = #tpu.pipeline_mode<synchronous>, transform_indices = @transform_29, window_bounds = array<i64: 1, 16>}, {pipeline_mode = #tpu.pipeline_mode<synchronous>, transform_indices = @transform_30, window_bounds = array<i64: 1, 16>}, {transform_indices = @transform_31, window_bounds = array<i64: 1, 8, 8, 16>}]} {
    %c0 = arith.constant 0 : index
    %c0_0 = arith.constant 0 : index
    %c0_1 = arith.constant 0 : index
    %c0_2 = arith.constant 0 : index
    %0 = vector.load %arg1[%c0, %c0_0, %c0_1, %c0_2] : memref<1x32x32x3xbf16, #tpu.memory_space<vmem>>, vector<1x32x32x3xbf16>
    %1 = vector.shape_cast %0 : vector<1x32x32x3xbf16> to vector<32x32x3xbf16>
    %cst = arith.constant 0.000000e+00 : f32
    %2 = vector.broadcast %cst : f32 to vector<1x41x3xf32>
    %c0_3 = arith.constant 0 : index
    %c0_4 = arith.constant 0 : index
    %c0_5 = arith.constant 0 : index
    %3 = vector.load %arg33[%c0_3, %c0_4, %c0_5] : memref<34x41x3xf32, #tpu.memory_space<vmem>>, vector<1x41x3xf32>
    tpu.vector_store %arg33[%c0_3, %c0_4, %c0_5], %2 {strides = array<i32>} : memref<34x41x3xf32, #tpu.memory_space<vmem>>, vector<1x41x3xf32>,
    %cst_6 = arith.constant 0.000000e+00 : f32
    %4 = vector.broadcast %cst_6 : f32 to vector<1x41x3xf32>
    %c33 = arith.constant 33 : index
    %c0_7 = arith.constant 0 : index
    %c0_8 = arith.constant 0 : index
    %5 = vector.load %arg33[%c33, %c0_7, %c0_8] : memref<34x41x3xf32, #tpu.memory_space<vmem>>, vector<1x41x3xf32>
    tpu.vector_store %arg33[%c33, %c0_7, %c0_8], %4 {strides = array<i32>} : memref<34x41x3xf32, #tpu.memory_space<vmem>>, vector<1x41x3xf32>,
    %cst_9 = arith.constant 0.000000e+00 : f32
    %6 = vector.broadcast %cst_9 : f32 to vector<32x1x3xf32>
    %c1 = arith.constant 1 : index
    %c7 = arith.constant 7 : index
    %c0_10 = arith.constant 0 : index
    %7 = vector.load %arg33[%c1, %c7, %c0_10] : memref<34x41x3xf32, #tpu.memory_space<vmem>>, vector<32x1x3xf32>
    tpu.vector_store %arg33[%c1, %c7, %c0_10], %6 {strides = array<i32>} : memref<34x41x3xf32, #tpu.memory_space<vmem>>, vector<32x1x3xf32>,
    %cst_11 = arith.constant 0.000000e+00 : f32
    %8 = vector.broadcast %cst_11 : f32 to vector<32x1x3xf32>
    %c1_12 = arith.constant 1 : index
    %c40 = arith.constant 40 : index
    %c0_13 = arith.constant 0 : index
    %9 = vector.load %arg33[%c1_12, %c40, %c0_13] : memref<34x41x3xf32, #tpu.memory_space<vmem>>, vector<32x1x3xf32>
    tpu.vector_store %arg33[%c1_12, %c40, %c0_13], %8 {strides = array<i32>} : memref<34x41x3xf32, #tpu.memory_space<vmem>>, vector<32x1x3xf32>,
    %10 = arith.extf %1 : vector<32x32x3xbf16> to vector<32x32x3xf32>
    %c1_14 = arith.constant 1 : index
    %c8 = arith.constant 8 : index
    %c0_15 = arith.constant 0 : index
    %11 = vector.load %arg33[%c1_14, %c8, %c0_15] : memref<34x41x3xf32, #tpu.memory_space<vmem>>, vector<32x32x3xf32>
    tpu.vector_store %arg33[%c1_14, %c8, %c0_15], %10 {strides = array<i32>} : memref<34x41x3xf32, #tpu.memory_space<vmem>>, vector<32x32x3xf32>,
    %c0_16 = arith.constant 0 : index
    %c7_17 = arith.constant 7 : index
    %c0_18 = arith.constant 0 : index
    %12 = tpu.strided_load %arg33[%c0_16, %c7_17, %c0_18] {strides = array<i32: 2, 2, 1>} : memref<34x41x3xf32, #tpu.memory_space<vmem>>, vector<16x16x3xf32>
    %13 = arith.truncf %12 : vector<16x16x3xf32> to vector<16x16x3xbf16>
    %c0_19 = arith.constant 0 : index
    %c0_20 = arith.constant 0 : index
    %c0_21 = arith.constant 0 : index
    %14 = vector.load %arg34[%c0_19, %c0_20, %c0_21] : memref<16x16x27xbf16, #tpu.memory_space<vmem>>, vector<16x16x3xbf16>
    tpu.vector_store %arg34[%c0_19, %c0_20, %c0_21], %13 {strides = array<i32>} : memref<16x16x27xbf16, #tpu.memory_space<vmem>>, vector<16x16x3xbf16>,
    %c0_22 = arith.constant 0 : index
    %c8_23 = arith.constant 8 : index
    %c0_24 = arith.constant 0 : index
    %15 = tpu.strided_load %arg33[%c0_22, %c8_23, %c0_24] {strides = array<i32: 2, 2, 1>} : memref<34x41x3xf32, #tpu.memory_space<vmem>>, vector<16x16x3xf32>
    %16 = arith.truncf %15 : vector<16x16x3xf32> to vector<16x16x3xbf16>
    %c0_25 = arith.constant 0 : index
    %c0_26 = arith.constant 0 : index
    %c3 = arith.constant 3 : index
    %17 = vector.load %arg34[%c0_25, %c0_26, %c3] : memref<16x16x27xbf16, #tpu.memory_space<vmem>>, vector<16x16x3xbf16>
    tpu.vector_store %arg34[%c0_25, %c0_26, %c3], %16 {strides = array<i32>} : memref<16x16x27xbf16, #tpu.memory_space<vmem>>, vector<16x16x3xbf16>,
    %c0_27 = arith.constant 0 : index
    %c9 = arith.constant 9 : index
    %c0_28 = arith.constant 0 : index
    %18 = tpu.strided_load %arg33[%c0_27, %c9, %c0_28] {strides = array<i32: 2, 2, 1>} : memref<34x41x3xf32, #tpu.memory_space<vmem>>, vector<16x16x3xf32>
    %19 = arith.truncf %18 : vector<16x16x3xf32> to vector<16x16x3xbf16>
    %c0_29 = arith.constant 0 : index
    %c0_30 = arith.constant 0 : index
    %c6 = arith.constant 6 : index
    %20 = vector.load %arg34[%c0_29, %c0_30, %c6] : memref<16x16x27xbf16, #tpu.memory_space<vmem>>, vector<16x16x3xbf16>
    tpu.vector_store %arg34[%c0_29, %c0_30, %c6], %19 {strides = array<i32>} : memref<16x16x27xbf16, #tpu.memory_space<vmem>>, vector<16x16x3xbf16>,
    %c1_31 = arith.constant 1 : index
    %c7_32 = arith.constant 7 : index
    %c0_33 = arith.constant 0 : index
    %21 = tpu.strided_load %arg33[%c1_31, %c7_32, %c0_33] {strides = array<i32: 2, 2, 1>} : memref<34x41x3xf32, #tpu.memory_space<vmem>>, vector<16x16x3xf32>
    %22 = arith.truncf %21 : vector<16x16x3xf32> to vector<16x16x3xbf16>
    %c0_34 = arith.constant 0 : index
    %c0_35 = arith.constant 0 : index
    %c9_36 = arith.constant 9 : index
    %23 = vector.load %arg34[%c0_34, %c0_35, %c9_36] : memref<16x16x27xbf16, #tpu.memory_space<vmem>>, vector<16x16x3xbf16>
    tpu.vector_store %arg34[%c0_34, %c0_35, %c9_36], %22 {strides = array<i32>} : memref<16x16x27xbf16, #tpu.memory_space<vmem>>, vector<16x16x3xbf16>,
    %c1_37 = arith.constant 1 : index
    %c8_38 = arith.constant 8 : index
    %c0_39 = arith.constant 0 : index
    %24 = tpu.strided_load %arg33[%c1_37, %c8_38, %c0_39] {strides = array<i32: 2, 2, 1>} : memref<34x41x3xf32, #tpu.memory_space<vmem>>, vector<16x16x3xf32>
    %25 = arith.truncf %24 : vector<16x16x3xf32> to vector<16x16x3xbf16>
    %c0_40 = arith.constant 0 : index
    %c0_41 = arith.constant 0 : index
    %c12 = arith.constant 12 : index
    %26 = vector.load %arg34[%c0_40, %c0_41, %c12] : memref<16x16x27xbf16, #tpu.memory_space<vmem>>, vector<16x16x3xbf16>
    tpu.vector_store %arg34[%c0_40, %c0_41, %c12], %25 {strides = array<i32>} : memref<16x16x27xbf16, #tpu.memory_space<vmem>>, vector<16x16x3xbf16>,
    %c1_42 = arith.constant 1 : index
    %c9_43 = arith.constant 9 : index
    %c0_44 = arith.constant 0 : index
    %27 = tpu.strided_load %arg33[%c1_42, %c9_43, %c0_44] {strides = array<i32: 2, 2, 1>} : memref<34x41x3xf32, #tpu.memory_space<vmem>>, vector<16x16x3xf32>
    %28 = arith.truncf %27 : vector<16x16x3xf32> to vector<16x16x3xbf16>
    %c0_45 = arith.constant 0 : index
    %c0_46 = arith.constant 0 : index
    %c15 = arith.constant 15 : index
    %29 = vector.load %arg34[%c0_45, %c0_46, %c15] : memref<16x16x27xbf16, #tpu.memory_space<vmem>>, vector<16x16x3xbf16>
    tpu.vector_store %arg34[%c0_45, %c0_46, %c15], %28 {strides = array<i32>} : memref<16x16x27xbf16, #tpu.memory_space<vmem>>, vector<16x16x3xbf16>,
    %c2 = arith.constant 2 : index
    %c7_47 = arith.constant 7 : index
    %c0_48 = arith.constant 0 : index
    %30 = tpu.strided_load %arg33[%c2, %c7_47, %c0_48] {strides = array<i32: 2, 2, 1>} : memref<34x41x3xf32, #tpu.memory_space<vmem>>, vector<16x16x3xf32>
    %31 = arith.truncf %30 : vector<16x16x3xf32> to vector<16x16x3xbf16>
    %c0_49 = arith.constant 0 : index
    %c0_50 = arith.constant 0 : index
    %c18 = arith.constant 18 : index
    %32 = vector.load %arg34[%c0_49, %c0_50, %c18] : memref<16x16x27xbf16, #tpu.memory_space<vmem>>, vector<16x16x3xbf16>
    tpu.vector_store %arg34[%c0_49, %c0_50, %c18], %31 {strides = array<i32>} : memref<16x16x27xbf16, #tpu.memory_space<vmem>>, vector<16x16x3xbf16>,
    %c2_51 = arith.constant 2 : index
    %c8_52 = arith.constant 8 : index
    %c0_53 = arith.constant 0 : index
    %33 = tpu.strided_load %arg33[%c2_51, %c8_52, %c0_53] {strides = array<i32: 2, 2, 1>} : memref<34x41x3xf32, #tpu.memory_space<vmem>>, vector<16x16x3xf32>
    %34 = arith.truncf %33 : vector<16x16x3xf32> to vector<16x16x3xbf16>
    %c0_54 = arith.constant 0 : index
    %c0_55 = arith.constant 0 : index
    %c21 = arith.constant 21 : index
    %35 = vector.load %arg34[%c0_54, %c0_55, %c21] : memref<16x16x27xbf16, #tpu.memory_space<vmem>>, vector<16x16x3xbf16>
    tpu.vector_store %arg34[%c0_54, %c0_55, %c21], %34 {strides = array<i32>} : memref<16x16x27xbf16, #tpu.memory_space<vmem>>, vector<16x16x3xbf16>,
    %c2_56 = arith.constant 2 : index
    %c9_57 = arith.constant 9 : index
    %c0_58 = arith.constant 0 : index
    %36 = tpu.strided_load %arg33[%c2_56, %c9_57, %c0_58] {strides = array<i32: 2, 2, 1>} : memref<34x41x3xf32, #tpu.memory_space<vmem>>, vector<16x16x3xf32>
    %37 = arith.truncf %36 : vector<16x16x3xf32> to vector<16x16x3xbf16>
    %c0_59 = arith.constant 0 : index
    %c0_60 = arith.constant 0 : index
    %c24 = arith.constant 24 : index
    %38 = vector.load %arg34[%c0_59, %c0_60, %c24] : memref<16x16x27xbf16, #tpu.memory_space<vmem>>, vector<16x16x3xbf16>
    tpu.vector_store %arg34[%c0_59, %c0_60, %c24], %37 {strides = array<i32>} : memref<16x16x27xbf16, #tpu.memory_space<vmem>>, vector<16x16x3xbf16>,
    %c0_61 = arith.constant 0 : index
    %c0_62 = arith.constant 0 : index
    %c0_63 = arith.constant 0 : index
    %39 = vector.load %arg34[%c0_61, %c0_62, %c0_63] : memref<16x16x27xbf16, #tpu.memory_space<vmem>>, vector<16x16x27xbf16>
    %40 = vector.shape_cast %39 : vector<16x16x27xbf16> to vector<256x27xbf16>
    %c0_64 = arith.constant 0 : index
    %c0_65 = arith.constant 0 : index
    %41 = vector.load %arg2[%c0_64, %c0_65] : memref<27x8xbf16, #tpu.memory_space<vmem>>, vector<27x8xbf16>
    %cst_66 = arith.constant dense<0.000000e+00> : vector<256x8xf32>
    %42 = tpu.matmul %40, %41, %cst_66 {dimension_numbers = #tpu.dot_dimension_numbers<[1], [0], [0], [1], [0, 0, 1, 1], [], []>} : vector<256x27xbf16>, vector<27x8xbf16>, vector<256x8xf32> -> vector<256x8xf32>
    %c0_67 = arith.constant 0 : index
    %c0_68 = arith.constant 0 : index
    %43 = vector.load %arg3[%c0_67, %c0_68] : memref<1x8xf32, #tpu.memory_space<vmem>>, vector<1x8xf32>
    %44 = vector.broadcast %43 : vector<1x8xf32> to vector<256x8xf32>
    %45 = arith.mulf %42, %44 : vector<256x8xf32>
    %c0_69 = arith.constant 0 : index
    %c0_70 = arith.constant 0 : index
    %46 = vector.load %arg4[%c0_69, %c0_70] : memref<1x8xf32, #tpu.memory_space<vmem>>, vector<1x8xf32>
    %47 = vector.broadcast %46 : vector<1x8xf32> to vector<256x8xf32>
    %48 = arith.addf %45, %47 : vector<256x8xf32>
    %cst_71 = arith.constant 3.000000e+00 : f32
    %49 = vector.broadcast %cst_71 : f32 to vector<256x8xf32>
    %50 = arith.addf %48, %49 : vector<256x8xf32>
    %cst_72 = arith.constant 0.000000e+00 : f32
    %cst_73 = arith.constant 6.000000e+00 : f32
    %51 = vector.broadcast %cst_72 : f32 to vector<256x8xf32>
    %52 = arith.maximumf %51, %50 : vector<256x8xf32>
    %53 = vector.broadcast %cst_73 : f32 to vector<256x8xf32>
    %54 = arith.minimumf %53, %52 : vector<256x8xf32>
    %55 = arith.mulf %48, %54 : vector<256x8xf32>
    %cst_74 = arith.constant 0.166666672 : f32
    %56 = vector.broadcast %cst_74 : f32 to vector<256x8xf32>
    %57 = arith.mulf %55, %56 : vector<256x8xf32>
    %58 = vector.shape_cast %57 : vector<256x8xf32> to vector<16x16x8xf32>
    %c0_75 = arith.constant 0 : index
    %c0_76 = arith.constant 0 : index
    %c0_77 = arith.constant 0 : index
    %59 = vector.load %arg35[%c0_75, %c0_76, %c0_77] : memref<16x16x8xf32, #tpu.memory_space<vmem>>, vector<16x16x8xf32>
    tpu.vector_store %arg35[%c0_75, %c0_76, %c0_77], %58 {strides = array<i32>} : memref<16x16x8xf32, #tpu.memory_space<vmem>>, vector<16x16x8xf32>,
    %c0_78 = arith.constant 0 : index
    %c0_79 = arith.constant 0 : index
    %c0_80 = arith.constant 0 : index
    %60 = vector.load %arg35[%c0_78, %c0_79, %c0_80] : memref<16x16x8xf32, #tpu.memory_space<vmem>>, vector<16x16x8xf32>
    %61 = vector.shape_cast %60 : vector<16x16x8xf32> to vector<256x8xf32>
    %62 = arith.truncf %61 : vector<256x8xf32> to vector<256x8xbf16>
    %c0_81 = arith.constant 0 : index
    %c0_82 = arith.constant 0 : index
    %63 = vector.load %arg5[%c0_81, %c0_82] : memref<8x8xbf16, #tpu.memory_space<vmem>>, vector<8x8xbf16>
    %cst_83 = arith.constant dense<0.000000e+00> : vector<256x8xf32>
    %64 = tpu.matmul %62, %63, %cst_83 {dimension_numbers = #tpu.dot_dimension_numbers<[1], [0], [0], [1], [0, 0, 1, 1], [], []>} : vector<256x8xbf16>, vector<8x8xbf16>, vector<256x8xf32> -> vector<256x8xf32>
    %c0_84 = arith.constant 0 : index
    %c0_85 = arith.constant 0 : index
    %65 = vector.load %arg6[%c0_84, %c0_85] : memref<1x8xf32, #tpu.memory_space<vmem>>, vector<1x8xf32>
    %66 = vector.broadcast %65 : vector<1x8xf32> to vector<256x8xf32>
    %67 = arith.mulf %64, %66 : vector<256x8xf32>
    %c0_86 = arith.constant 0 : index
    %c0_87 = arith.constant 0 : index
    %68 = vector.load %arg7[%c0_86, %c0_87] : memref<1x8xf32, #tpu.memory_space<vmem>>, vector<1x8xf32>
    %69 = vector.broadcast %68 : vector<1x8xf32> to vector<256x8xf32>
    %70 = arith.addf %67, %69 : vector<256x8xf32>
    %cst_88 = arith.constant 0.000000e+00 : f32
    %71 = vector.broadcast %cst_88 : f32 to vector<256x8xf32>
    %72 = arith.maximumf %70, %71 : vector<256x8xf32>
    %73 = vector.shape_cast %72 : vector<256x8xf32> to vector<16x16x8xf32>
    %cst_89 = arith.constant 0.000000e+00 : bf16
    %74 = vector.broadcast %cst_89 : bf16 to vector<1x33x8xbf16>
    %c0_90 = arith.constant 0 : index
    %c0_91 = arith.constant 0 : index
    %c0_92 = arith.constant 0 : index
    %75 = vector.load %arg36[%c0_90, %c0_91, %c0_92] : memref<18x33x8xbf16, #tpu.memory_space<vmem>>, vector<1x33x8xbf16>
    tpu.vector_store %arg36[%c0_90, %c0_91, %c0_92], %74 {strides = array<i32>} : memref<18x33x8xbf16, #tpu.memory_space<vmem>>, vector<1x33x8xbf16>,
    %cst_93 = arith.constant 0.000000e+00 : bf16
    %76 = vector.broadcast %cst_93 : bf16 to vector<1x33x8xbf16>
    %c17 = arith.constant 17 : index
    %c0_94 = arith.constant 0 : index
    %c0_95 = arith.constant 0 : index
    %77 = vector.load %arg36[%c17, %c0_94, %c0_95] : memref<18x33x8xbf16, #tpu.memory_space<vmem>>, vector<1x33x8xbf16>
    tpu.vector_store %arg36[%c17, %c0_94, %c0_95], %76 {strides = array<i32>} : memref<18x33x8xbf16, #tpu.memory_space<vmem>>, vector<1x33x8xbf16>,
    %cst_96 = arith.constant 0.000000e+00 : bf16
    %78 = vector.broadcast %cst_96 : bf16 to vector<16x1x8xbf16>
    %c1_97 = arith.constant 1 : index
    %c15_98 = arith.constant 15 : index
    %c0_99 = arith.constant 0 : index
    %79 = vector.load %arg36[%c1_97, %c15_98, %c0_99] : memref<18x33x8xbf16, #tpu.memory_space<vmem>>, vector<16x1x8xbf16>
    tpu.vector_store %arg36[%c1_97, %c15_98, %c0_99], %78 {strides = array<i32>} : memref<18x33x8xbf16, #tpu.memory_space<vmem>>, vector<16x1x8xbf16>,
    %cst_100 = arith.constant 0.000000e+00 : bf16
    %80 = vector.broadcast %cst_100 : bf16 to vector<16x1x8xbf16>
    %c1_101 = arith.constant 1 : index
    %c32 = arith.constant 32 : index
    %c0_102 = arith.constant 0 : index
    %81 = vector.load %arg36[%c1_101, %c32, %c0_102] : memref<18x33x8xbf16, #tpu.memory_space<vmem>>, vector<16x1x8xbf16>
    tpu.vector_store %arg36[%c1_101, %c32, %c0_102], %80 {strides = array<i32>} : memref<18x33x8xbf16, #tpu.memory_space<vmem>>, vector<16x1x8xbf16>,
    %82 = arith.truncf %73 : vector<16x16x8xf32> to vector<16x16x8xbf16>
    %c1_103 = arith.constant 1 : index
    %c16 = arith.constant 16 : index
    %c0_104 = arith.constant 0 : index
    %83 = vector.load %arg36[%c1_103, %c16, %c0_104] : memref<18x33x8xbf16, #tpu.memory_space<vmem>>, vector<16x16x8xbf16>
    tpu.vector_store %arg36[%c1_103, %c16, %c0_104], %82 {strides = array<i32>} : memref<18x33x8xbf16, #tpu.memory_space<vmem>>, vector<16x16x8xbf16>,
    %c0_105 = arith.constant 0 : index
    %c0_106 = arith.constant 0 : index
    %84 = vector.load %arg8[%c0_105, %c0_106] : memref<9x8xf32, #tpu.memory_space<vmem>>, vector<9x8xf32>
    %cst_107 = arith.constant 0.000000e+00 : f32
    %85 = vector.broadcast %cst_107 : f32 to vector<16x16x8xf32>
    %c0_108 = arith.constant 0 : index
    %c15_109 = arith.constant 15 : index
    %c0_110 = arith.constant 0 : index
    %86 = vector.load %arg36[%c0_108, %c15_109, %c0_110] : memref<18x33x8xbf16, #tpu.memory_space<vmem>>, vector<16x16x8xbf16>
    %87 = arith.extf %86 : vector<16x16x8xbf16> to vector<16x16x8xf32>
    %88 = vector.extract_strided_slice %84 {offsets = [0, 0], sizes = [1, 8], strides = [1, 1]} : vector<9x8xf32> to vector<1x8xf32>
    %89 = vector.shape_cast %88 : vector<1x8xf32> to vector<8xf32>
    %90 = vector.shape_cast %89 : vector<8xf32> to vector<1x1x8xf32>
    %91 = vector.broadcast %90 : vector<1x1x8xf32> to vector<16x16x8xf32>
    %92 = arith.mulf %87, %91 : vector<16x16x8xf32>
    %93 = arith.addf %85, %92 : vector<16x16x8xf32>
    %c0_111 = arith.constant 0 : index
    %c16_112 = arith.constant 16 : index
    %c0_113 = arith.constant 0 : index
    %94 = vector.load %arg36[%c0_111, %c16_112, %c0_113] : memref<18x33x8xbf16, #tpu.memory_space<vmem>>, vector<16x16x8xbf16>
    %95 = arith.extf %94 : vector<16x16x8xbf16> to vector<16x16x8xf32>
    %96 = vector.extract_strided_slice %84 {offsets = [1, 0], sizes = [1, 8], strides = [1, 1]} : vector<9x8xf32> to vector<1x8xf32>
    %97 = vector.shape_cast %96 : vector<1x8xf32> to vector<8xf32>
    %98 = vector.shape_cast %97 : vector<8xf32> to vector<1x1x8xf32>
    %99 = vector.broadcast %98 : vector<1x1x8xf32> to vector<16x16x8xf32>
    %100 = arith.mulf %95, %99 : vector<16x16x8xf32>
    %101 = arith.addf %93, %100 : vector<16x16x8xf32>
    %c0_114 = arith.constant 0 : index
    %c17_115 = arith.constant 17 : index
    %c0_116 = arith.constant 0 : index
    %102 = vector.load %arg36[%c0_114, %c17_115, %c0_116] : memref<18x33x8xbf16, #tpu.memory_space<vmem>>, vector<16x16x8xbf16>
    %103 = arith.extf %102 : vector<16x16x8xbf16> to vector<16x16x8xf32>
    %104 = vector.extract_strided_slice %84 {offsets = [2, 0], sizes = [1, 8], strides = [1, 1]} : vector<9x8xf32> to vector<1x8xf32>
    %105 = vector.shape_cast %104 : vector<1x8xf32> to vector<8xf32>
    %106 = vector.shape_cast %105 : vector<8xf32> to vector<1x1x8xf32>
    %107 = vector.broadcast %106 : vector<1x1x8xf32> to vector<16x16x8xf32>
    %108 = arith.mulf %103, %107 : vector<16x16x8xf32>
    %109 = arith.addf %101, %108 : vector<16x16x8xf32>
    %c1_117 = arith.constant 1 : index
    %c15_118 = arith.constant 15 : index
    %c0_119 = arith.constant 0 : index
    %110 = vector.load %arg36[%c1_117, %c15_118, %c0_119] : memref<18x33x8xbf16, #tpu.memory_space<vmem>>, vector<16x16x8xbf16>
    %111 = arith.extf %110 : vector<16x16x8xbf16> to vector<16x16x8xf32>
    %112 = vector.extract_strided_slice %84 {offsets = [3, 0], sizes = [1, 8], strides = [1, 1]} : vector<9x8xf32> to vector<1x8xf32>
    %113 = vector.shape_cast %112 : vector<1x8xf32> to vector<8xf32>
    %114 = vector.shape_cast %113 : vector<8xf32> to vector<1x1x8xf32>
    %115 = vector.broadcast %114 : vector<1x1x8xf32> to vector<16x16x8xf32>
    %116 = arith.mulf %111, %115 : vector<16x16x8xf32>
    %117 = arith.addf %109, %116 : vector<16x16x8xf32>
    %c1_120 = arith.constant 1 : index
    %c16_121 = arith.constant 16 : index
    %c0_122 = arith.constant 0 : index
    %118 = vector.load %arg36[%c1_120, %c16_121, %c0_122] : memref<18x33x8xbf16, #tpu.memory_space<vmem>>, vector<16x16x8xbf16>
    %119 = arith.extf %118 : vector<16x16x8xbf16> to vector<16x16x8xf32>
    %120 = vector.extract_strided_slice %84 {offsets = [4, 0], sizes = [1, 8], strides = [1, 1]} : vector<9x8xf32> to vector<1x8xf32>
    %121 = vector.shape_cast %120 : vector<1x8xf32> to vector<8xf32>
    %122 = vector.shape_cast %121 : vector<8xf32> to vector<1x1x8xf32>
    %123 = vector.broadcast %122 : vector<1x1x8xf32> to vector<16x16x8xf32>
    %124 = arith.mulf %119, %123 : vector<16x16x8xf32>
    %125 = arith.addf %117, %124 : vector<16x16x8xf32>
    %c1_123 = arith.constant 1 : index
    %c17_124 = arith.constant 17 : index
    %c0_125 = arith.constant 0 : index
    %126 = vector.load %arg36[%c1_123, %c17_124, %c0_125] : memref<18x33x8xbf16, #tpu.memory_space<vmem>>, vector<16x16x8xbf16>
    %127 = arith.extf %126 : vector<16x16x8xbf16> to vector<16x16x8xf32>
    %128 = vector.extract_strided_slice %84 {offsets = [5, 0], sizes = [1, 8], strides = [1, 1]} : vector<9x8xf32> to vector<1x8xf32>
    %129 = vector.shape_cast %128 : vector<1x8xf32> to vector<8xf32>
    %130 = vector.shape_cast %129 : vector<8xf32> to vector<1x1x8xf32>
    %131 = vector.broadcast %130 : vector<1x1x8xf32> to vector<16x16x8xf32>
    %132 = arith.mulf %127, %131 : vector<16x16x8xf32>
    %133 = arith.addf %125, %132 : vector<16x16x8xf32>
    %c2_126 = arith.constant 2 : index
    %c15_127 = arith.constant 15 : index
    %c0_128 = arith.constant 0 : index
    %134 = vector.load %arg36[%c2_126, %c15_127, %c0_128] : memref<18x33x8xbf16, #tpu.memory_space<vmem>>, vector<16x16x8xbf16>
    %135 = arith.extf %134 : vector<16x16x8xbf16> to vector<16x16x8xf32>
    %136 = vector.extract_strided_slice %84 {offsets = [6, 0], sizes = [1, 8], strides = [1, 1]} : vector<9x8xf32> to vector<1x8xf32>
    %137 = vector.shape_cast %136 : vector<1x8xf32> to vector<8xf32>
    %138 = vector.shape_cast %137 : vector<8xf32> to vector<1x1x8xf32>
    %139 = vector.broadcast %138 : vector<1x1x8xf32> to vector<16x16x8xf32>
    %140 = arith.mulf %135, %139 : vector<16x16x8xf32>
    %141 = arith.addf %133, %140 : vector<16x16x8xf32>
    %c2_129 = arith.constant 2 : index
    %c16_130 = arith.constant 16 : index
    %c0_131 = arith.constant 0 : index
    %142 = vector.load %arg36[%c2_129, %c16_130, %c0_131] : memref<18x33x8xbf16, #tpu.memory_space<vmem>>, vector<16x16x8xbf16>
    %143 = arith.extf %142 : vector<16x16x8xbf16> to vector<16x16x8xf32>
    %144 = vector.extract_strided_slice %84 {offsets = [7, 0], sizes = [1, 8], strides = [1, 1]} : vector<9x8xf32> to vector<1x8xf32>
    %145 = vector.shape_cast %144 : vector<1x8xf32> to vector<8xf32>
    %146 = vector.shape_cast %145 : vector<8xf32> to vector<1x1x8xf32>
    %147 = vector.broadcast %146 : vector<1x1x8xf32> to vector<16x16x8xf32>
    %148 = arith.mulf %143, %147 : vector<16x16x8xf32>
    %149 = arith.addf %141, %148 : vector<16x16x8xf32>
    %c2_132 = arith.constant 2 : index
    %c17_133 = arith.constant 17 : index
    %c0_134 = arith.constant 0 : index
    %150 = vector.load %arg36[%c2_132, %c17_133, %c0_134] : memref<18x33x8xbf16, #tpu.memory_space<vmem>>, vector<16x16x8xbf16>
    %151 = arith.extf %150 : vector<16x16x8xbf16> to vector<16x16x8xf32>
    %152 = vector.extract_strided_slice %84 {offsets = [8, 0], sizes = [1, 8], strides = [1, 1]} : vector<9x8xf32> to vector<1x8xf32>
    %153 = vector.shape_cast %152 : vector<1x8xf32> to vector<8xf32>
    %154 = vector.shape_cast %153 : vector<8xf32> to vector<1x1x8xf32>
    %155 = vector.broadcast %154 : vector<1x1x8xf32> to vector<16x16x8xf32>
    %156 = arith.mulf %151, %155 : vector<16x16x8xf32>
    %157 = arith.addf %149, %156 : vector<16x16x8xf32>
    %c0_135 = arith.constant 0 : index
    %c0_136 = arith.constant 0 : index
    %158 = vector.load %arg9[%c0_135, %c0_136] : memref<1x8xf32, #tpu.memory_space<vmem>>, vector<1x8xf32>
    %159 = vector.shape_cast %158 : vector<1x8xf32> to vector<8xf32>
    %160 = vector.shape_cast %159 : vector<8xf32> to vector<1x1x8xf32>
    %161 = vector.broadcast %160 : vector<1x1x8xf32> to vector<16x16x8xf32>
    %162 = arith.mulf %157, %161 : vector<16x16x8xf32>
    %c0_137 = arith.constant 0 : index
    %c0_138 = arith.constant 0 : index
    %163 = vector.load %arg10[%c0_137, %c0_138] : memref<1x8xf32, #tpu.memory_space<vmem>>, vector<1x8xf32>
    %164 = vector.shape_cast %163 : vector<1x8xf32> to vector<8xf32>
    %165 = vector.shape_cast %164 : vector<8xf32> to vector<1x1x8xf32>
    %166 = vector.broadcast %165 : vector<1x1x8xf32> to vector<16x16x8xf32>
    %167 = arith.addf %162, %166 : vector<16x16x8xf32>
    %cst_139 = arith.constant 0.000000e+00 : f32
    %168 = vector.broadcast %cst_139 : f32 to vector<16x16x8xf32>
    %169 = arith.maximumf %167, %168 : vector<16x16x8xf32>
    %170 = vector.shape_cast %169 : vector<16x16x8xf32> to vector<256x8xf32>
    %171 = arith.truncf %170 : vector<256x8xf32> to vector<256x8xbf16>
    %c0_140 = arith.constant 0 : index
    %c0_141 = arith.constant 0 : index
    %172 = vector.load %arg11[%c0_140, %c0_141] : memref<8x8xbf16, #tpu.memory_space<vmem>>, vector<8x8xbf16>
    %cst_142 = arith.constant dense<0.000000e+00> : vector<256x8xf32>
    %173 = tpu.matmul %171, %172, %cst_142 {dimension_numbers = #tpu.dot_dimension_numbers<[1], [0], [0], [1], [0, 0, 1, 1], [], []>} : vector<256x8xbf16>, vector<8x8xbf16>, vector<256x8xf32> -> vector<256x8xf32>
    %c0_143 = arith.constant 0 : index
    %c0_144 = arith.constant 0 : index
    %174 = vector.load %arg12[%c0_143, %c0_144] : memref<1x8xf32, #tpu.memory_space<vmem>>, vector<1x8xf32>
    %175 = vector.broadcast %174 : vector<1x8xf32> to vector<256x8xf32>
    %176 = arith.mulf %173, %175 : vector<256x8xf32>
    %c0_145 = arith.constant 0 : index
    %c0_146 = arith.constant 0 : index
    %177 = vector.load %arg13[%c0_145, %c0_146] : memref<1x8xf32, #tpu.memory_space<vmem>>, vector<1x8xf32>
    %178 = vector.broadcast %177 : vector<1x8xf32> to vector<256x8xf32>
    %179 = arith.addf %176, %178 : vector<256x8xf32>
    %180 = arith.addf %179, %61 : vector<256x8xf32>
    %181 = vector.shape_cast %180 : vector<256x8xf32> to vector<16x16x8xf32>
    %c0_147 = arith.constant 0 : index
    %c0_148 = arith.constant 0 : index
    %c0_149 = arith.constant 0 : index
    %182 = vector.load %arg37[%c0_147, %c0_148, %c0_149] : memref<16x16x8xf32, #tpu.memory_space<vmem>>, vector<16x16x8xf32>
    tpu.vector_store %arg37[%c0_147, %c0_148, %c0_149], %181 {strides = array<i32>} : memref<16x16x8xf32, #tpu.memory_space<vmem>>, vector<16x16x8xf32>,
    %c0_150 = arith.constant 0 : index
    %c0_151 = arith.constant 0 : index
    %c0_152 = arith.constant 0 : index
    %183 = vector.load %arg37[%c0_150, %c0_151, %c0_152] : memref<16x16x8xf32, #tpu.memory_space<vmem>>, vector<16x16x8xf32>
    %184 = vector.shape_cast %183 : vector<16x16x8xf32> to vector<256x8xf32>
    %185 = arith.truncf %184 : vector<256x8xf32> to vector<256x8xbf16>
    %c0_153 = arith.constant 0 : index
    %c0_154 = arith.constant 0 : index
    %186 = vector.load %arg14[%c0_153, %c0_154] : memref<8x32xbf16, #tpu.memory_space<vmem>>, vector<8x32xbf16>
    %cst_155 = arith.constant dense<0.000000e+00> : vector<256x32xf32>
    %187 = tpu.matmul %185, %186, %cst_155 {dimension_numbers = #tpu.dot_dimension_numbers<[1], [0], [0], [1], [0, 0, 1, 1], [], []>} : vector<256x8xbf16>, vector<8x32xbf16>, vector<256x32xf32> -> vector<256x32xf32>
    %c0_156 = arith.constant 0 : index
    %c0_157 = arith.constant 0 : index
    %188 = vector.load %arg15[%c0_156, %c0_157] : memref<1x32xf32, #tpu.memory_space<vmem>>, vector<1x32xf32>
    %189 = vector.broadcast %188 : vector<1x32xf32> to vector<256x32xf32>
    %190 = arith.mulf %187, %189 : vector<256x32xf32>
    %c0_158 = arith.constant 0 : index
    %c0_159 = arith.constant 0 : index
    %191 = vector.load %arg16[%c0_158, %c0_159] : memref<1x32xf32, #tpu.memory_space<vmem>>, vector<1x32xf32>
    %192 = vector.broadcast %191 : vector<1x32xf32> to vector<256x32xf32>
    %193 = arith.addf %190, %192 : vector<256x32xf32>
    %cst_160 = arith.constant 0.000000e+00 : f32
    %194 = vector.broadcast %cst_160 : f32 to vector<256x32xf32>
    %195 = arith.maximumf %193, %194 : vector<256x32xf32>
    %196 = vector.shape_cast %195 : vector<256x32xf32> to vector<16x16x32xf32>
    %cst_161 = arith.constant 0.000000e+00 : f32
    %197 = vector.broadcast %cst_161 : f32 to vector<1x25x32xf32>
    %c0_162 = arith.constant 0 : index
    %c0_163 = arith.constant 0 : index
    %c0_164 = arith.constant 0 : index
    %198 = vector.load %arg38[%c0_162, %c0_163, %c0_164] : memref<18x25x32xf32, #tpu.memory_space<vmem>>, vector<1x25x32xf32>
    tpu.vector_store %arg38[%c0_162, %c0_163, %c0_164], %197 {strides = array<i32>} : memref<18x25x32xf32, #tpu.memory_space<vmem>>, vector<1x25x32xf32>,
    %cst_165 = arith.constant 0.000000e+00 : f32
    %199 = vector.broadcast %cst_165 : f32 to vector<1x25x32xf32>
    %c17_166 = arith.constant 17 : index
    %c0_167 = arith.constant 0 : index
    %c0_168 = arith.constant 0 : index
    %200 = vector.load %arg38[%c17_166, %c0_167, %c0_168] : memref<18x25x32xf32, #tpu.memory_space<vmem>>, vector<1x25x32xf32>
    tpu.vector_store %arg38[%c17_166, %c0_167, %c0_168], %199 {strides = array<i32>} : memref<18x25x32xf32, #tpu.memory_space<vmem>>, vector<1x25x32xf32>,
    %cst_169 = arith.constant 0.000000e+00 : f32
    %201 = vector.broadcast %cst_169 : f32 to vector<16x1x32xf32>
    %c1_170 = arith.constant 1 : index
    %c7_171 = arith.constant 7 : index
    %c0_172 = arith.constant 0 : index
    %202 = vector.load %arg38[%c1_170, %c7_171, %c0_172] : memref<18x25x32xf32, #tpu.memory_space<vmem>>, vector<16x1x32xf32>
    tpu.vector_store %arg38[%c1_170, %c7_171, %c0_172], %201 {strides = array<i32>} : memref<18x25x32xf32, #tpu.memory_space<vmem>>, vector<16x1x32xf32>,
    %cst_173 = arith.constant 0.000000e+00 : f32
    %203 = vector.broadcast %cst_173 : f32 to vector<16x1x32xf32>
    %c1_174 = arith.constant 1 : index
    %c24_175 = arith.constant 24 : index
    %c0_176 = arith.constant 0 : index
    %204 = vector.load %arg38[%c1_174, %c24_175, %c0_176] : memref<18x25x32xf32, #tpu.memory_space<vmem>>, vector<16x1x32xf32>
    tpu.vector_store %arg38[%c1_174, %c24_175, %c0_176], %203 {strides = array<i32>} : memref<18x25x32xf32, #tpu.memory_space<vmem>>, vector<16x1x32xf32>,
    %c1_177 = arith.constant 1 : index
    %c8_178 = arith.constant 8 : index
    %c0_179 = arith.constant 0 : index
    %205 = vector.load %arg38[%c1_177, %c8_178, %c0_179] : memref<18x25x32xf32, #tpu.memory_space<vmem>>, vector<16x16x32xf32>
    tpu.vector_store %arg38[%c1_177, %c8_178, %c0_179], %196 {strides = array<i32>} : memref<18x25x32xf32, #tpu.memory_space<vmem>>, vector<16x16x32xf32>,
    %c0_180 = arith.constant 0 : index
    %c0_181 = arith.constant 0 : index
    %206 = vector.load %arg17[%c0_180, %c0_181] : memref<9x32xf32, #tpu.memory_space<vmem>>, vector<9x32xf32>
    %cst_182 = arith.constant 0.000000e+00 : f32
    %207 = vector.broadcast %cst_182 : f32 to vector<8x8x32xf32>
    %c0_183 = arith.constant 0 : index
    %c7_184 = arith.constant 7 : index
    %c0_185 = arith.constant 0 : index
    %208 = tpu.strided_load %arg38[%c0_183, %c7_184, %c0_185] {strides = array<i32: 2, 2, 1>} : memref<18x25x32xf32, #tpu.memory_space<vmem>>, vector<8x8x32xf32>
    %209 = vector.extract_strided_slice %206 {offsets = [0, 0], sizes = [1, 32], strides = [1, 1]} : vector<9x32xf32> to vector<1x32xf32>
    %210 = vector.shape_cast %209 : vector<1x32xf32> to vector<32xf32>
    %211 = vector.shape_cast %210 : vector<32xf32> to vector<1x1x32xf32>
    %212 = vector.broadcast %211 : vector<1x1x32xf32> to vector<8x8x32xf32>
    %213 = arith.mulf %208, %212 : vector<8x8x32xf32>
    %214 = arith.addf %207, %213 : vector<8x8x32xf32>
    %c0_186 = arith.constant 0 : index
    %c8_187 = arith.constant 8 : index
    %c0_188 = arith.constant 0 : index
    %215 = tpu.strided_load %arg38[%c0_186, %c8_187, %c0_188] {strides = array<i32: 2, 2, 1>} : memref<18x25x32xf32, #tpu.memory_space<vmem>>, vector<8x8x32xf32>
    %216 = vector.extract_strided_slice %206 {offsets = [1, 0], sizes = [1, 32], strides = [1, 1]} : vector<9x32xf32> to vector<1x32xf32>
    %217 = vector.shape_cast %216 : vector<1x32xf32> to vector<32xf32>
    %218 = vector.shape_cast %217 : vector<32xf32> to vector<1x1x32xf32>
    %219 = vector.broadcast %218 : vector<1x1x32xf32> to vector<8x8x32xf32>
    %220 = arith.mulf %215, %219 : vector<8x8x32xf32>
    %221 = arith.addf %214, %220 : vector<8x8x32xf32>
    %c0_189 = arith.constant 0 : index
    %c9_190 = arith.constant 9 : index
    %c0_191 = arith.constant 0 : index
    %222 = tpu.strided_load %arg38[%c0_189, %c9_190, %c0_191] {strides = array<i32: 2, 2, 1>} : memref<18x25x32xf32, #tpu.memory_space<vmem>>, vector<8x8x32xf32>
    %223 = vector.extract_strided_slice %206 {offsets = [2, 0], sizes = [1, 32], strides = [1, 1]} : vector<9x32xf32> to vector<1x32xf32>
    %224 = vector.shape_cast %223 : vector<1x32xf32> to vector<32xf32>
    %225 = vector.shape_cast %224 : vector<32xf32> to vector<1x1x32xf32>
    %226 = vector.broadcast %225 : vector<1x1x32xf32> to vector<8x8x32xf32>
    %227 = arith.mulf %222, %226 : vector<8x8x32xf32>
    %228 = arith.addf %221, %227 : vector<8x8x32xf32>
    %c1_192 = arith.constant 1 : index
    %c7_193 = arith.constant 7 : index
    %c0_194 = arith.constant 0 : index
    %229 = tpu.strided_load %arg38[%c1_192, %c7_193, %c0_194] {strides = array<i32: 2, 2, 1>} : memref<18x25x32xf32, #tpu.memory_space<vmem>>, vector<8x8x32xf32>
    %230 = vector.extract_strided_slice %206 {offsets = [3, 0], sizes = [1, 32], strides = [1, 1]} : vector<9x32xf32> to vector<1x32xf32>
    %231 = vector.shape_cast %230 : vector<1x32xf32> to vector<32xf32>
    %232 = vector.shape_cast %231 : vector<32xf32> to vector<1x1x32xf32>
    %233 = vector.broadcast %232 : vector<1x1x32xf32> to vector<8x8x32xf32>
    %234 = arith.mulf %229, %233 : vector<8x8x32xf32>
    %235 = arith.addf %228, %234 : vector<8x8x32xf32>
    %c1_195 = arith.constant 1 : index
    %c8_196 = arith.constant 8 : index
    %c0_197 = arith.constant 0 : index
    %236 = tpu.strided_load %arg38[%c1_195, %c8_196, %c0_197] {strides = array<i32: 2, 2, 1>} : memref<18x25x32xf32, #tpu.memory_space<vmem>>, vector<8x8x32xf32>
    %237 = vector.extract_strided_slice %206 {offsets = [4, 0], sizes = [1, 32], strides = [1, 1]} : vector<9x32xf32> to vector<1x32xf32>
    %238 = vector.shape_cast %237 : vector<1x32xf32> to vector<32xf32>
    %239 = vector.shape_cast %238 : vector<32xf32> to vector<1x1x32xf32>
    %240 = vector.broadcast %239 : vector<1x1x32xf32> to vector<8x8x32xf32>
    %241 = arith.mulf %236, %240 : vector<8x8x32xf32>
    %242 = arith.addf %235, %241 : vector<8x8x32xf32>
    %c1_198 = arith.constant 1 : index
    %c9_199 = arith.constant 9 : index
    %c0_200 = arith.constant 0 : index
    %243 = tpu.strided_load %arg38[%c1_198, %c9_199, %c0_200] {strides = array<i32: 2, 2, 1>} : memref<18x25x32xf32, #tpu.memory_space<vmem>>, vector<8x8x32xf32>
    %244 = vector.extract_strided_slice %206 {offsets = [5, 0], sizes = [1, 32], strides = [1, 1]} : vector<9x32xf32> to vector<1x32xf32>
    %245 = vector.shape_cast %244 : vector<1x32xf32> to vector<32xf32>
    %246 = vector.shape_cast %245 : vector<32xf32> to vector<1x1x32xf32>
    %247 = vector.broadcast %246 : vector<1x1x32xf32> to vector<8x8x32xf32>
    %248 = arith.mulf %243, %247 : vector<8x8x32xf32>
    %249 = arith.addf %242, %248 : vector<8x8x32xf32>
    %c2_201 = arith.constant 2 : index
    %c7_202 = arith.constant 7 : index
    %c0_203 = arith.constant 0 : index
    %250 = tpu.strided_load %arg38[%c2_201, %c7_202, %c0_203] {strides = array<i32: 2, 2, 1>} : memref<18x25x32xf32, #tpu.memory_space<vmem>>, vector<8x8x32xf32>
    %251 = vector.extract_strided_slice %206 {offsets = [6, 0], sizes = [1, 32], strides = [1, 1]} : vector<9x32xf32> to vector<1x32xf32>
    %252 = vector.shape_cast %251 : vector<1x32xf32> to vector<32xf32>
    %253 = vector.shape_cast %252 : vector<32xf32> to vector<1x1x32xf32>
    %254 = vector.broadcast %253 : vector<1x1x32xf32> to vector<8x8x32xf32>
    %255 = arith.mulf %250, %254 : vector<8x8x32xf32>
    %256 = arith.addf %249, %255 : vector<8x8x32xf32>
    %c2_204 = arith.constant 2 : index
    %c8_205 = arith.constant 8 : index
    %c0_206 = arith.constant 0 : index
    %257 = tpu.strided_load %arg38[%c2_204, %c8_205, %c0_206] {strides = array<i32: 2, 2, 1>} : memref<18x25x32xf32, #tpu.memory_space<vmem>>, vector<8x8x32xf32>
    %258 = vector.extract_strided_slice %206 {offsets = [7, 0], sizes = [1, 32], strides = [1, 1]} : vector<9x32xf32> to vector<1x32xf32>
    %259 = vector.shape_cast %258 : vector<1x32xf32> to vector<32xf32>
    %260 = vector.shape_cast %259 : vector<32xf32> to vector<1x1x32xf32>
    %261 = vector.broadcast %260 : vector<1x1x32xf32> to vector<8x8x32xf32>
    %262 = arith.mulf %257, %261 : vector<8x8x32xf32>
    %263 = arith.addf %256, %262 : vector<8x8x32xf32>
    %c2_207 = arith.constant 2 : index
    %c9_208 = arith.constant 9 : index
    %c0_209 = arith.constant 0 : index
    %264 = tpu.strided_load %arg38[%c2_207, %c9_208, %c0_209] {strides = array<i32: 2, 2, 1>} : memref<18x25x32xf32, #tpu.memory_space<vmem>>, vector<8x8x32xf32>
    %265 = vector.extract_strided_slice %206 {offsets = [8, 0], sizes = [1, 32], strides = [1, 1]} : vector<9x32xf32> to vector<1x32xf32>
    %266 = vector.shape_cast %265 : vector<1x32xf32> to vector<32xf32>
    %267 = vector.shape_cast %266 : vector<32xf32> to vector<1x1x32xf32>
    %268 = vector.broadcast %267 : vector<1x1x32xf32> to vector<8x8x32xf32>
    %269 = arith.mulf %264, %268 : vector<8x8x32xf32>
    %270 = arith.addf %263, %269 : vector<8x8x32xf32>
    %c0_210 = arith.constant 0 : index
    %c0_211 = arith.constant 0 : index
    %271 = vector.load %arg18[%c0_210, %c0_211] : memref<1x32xf32, #tpu.memory_space<vmem>>, vector<1x32xf32>
    %272 = vector.shape_cast %271 : vector<1x32xf32> to vector<32xf32>
    %273 = vector.shape_cast %272 : vector<32xf32> to vector<1x1x32xf32>
    %274 = vector.broadcast %273 : vector<1x1x32xf32> to vector<8x8x32xf32>
    %275 = arith.mulf %270, %274 : vector<8x8x32xf32>
    %c0_212 = arith.constant 0 : index
    %c0_213 = arith.constant 0 : index
    %276 = vector.load %arg19[%c0_212, %c0_213] : memref<1x32xf32, #tpu.memory_space<vmem>>, vector<1x32xf32>
    %277 = vector.shape_cast %276 : vector<1x32xf32> to vector<32xf32>
    %278 = vector.shape_cast %277 : vector<32xf32> to vector<1x1x32xf32>
    %279 = vector.broadcast %278 : vector<1x1x32xf32> to vector<8x8x32xf32>
    %280 = arith.addf %275, %279 : vector<8x8x32xf32>
    %cst_214 = arith.constant 0.000000e+00 : f32
    %281 = vector.broadcast %cst_214 : f32 to vector<8x8x32xf32>
    %282 = arith.maximumf %280, %281 : vector<8x8x32xf32>
    %283 = vector.shape_cast %282 : vector<8x8x32xf32> to vector<64x32xf32>
    %284 = arith.truncf %283 : vector<64x32xf32> to vector<64x32xbf16>
    %c0_215 = arith.constant 0 : index
    %c0_216 = arith.constant 0 : index
    %285 = vector.load %arg20[%c0_215, %c0_216] : memref<32x16xbf16, #tpu.memory_space<vmem>>, vector<32x16xbf16>
    %cst_217 = arith.constant dense<0.000000e+00> : vector<64x16xf32>
    %286 = tpu.matmul %284, %285, %cst_217 {dimension_numbers = #tpu.dot_dimension_numbers<[1], [0], [0], [1], [0, 0, 1, 1], [], []>} : vector<64x32xbf16>, vector<32x16xbf16>, vector<64x16xf32> -> vector<64x16xf32>
    %c0_218 = arith.constant 0 : index
    %c0_219 = arith.constant 0 : index
    %287 = vector.load %arg21[%c0_218, %c0_219] : memref<1x16xf32, #tpu.memory_space<vmem>>, vector<1x16xf32>
    %288 = vector.broadcast %287 : vector<1x16xf32> to vector<64x16xf32>
    %289 = arith.mulf %286, %288 : vector<64x16xf32>
    %c0_220 = arith.constant 0 : index
    %c0_221 = arith.constant 0 : index
    %290 = vector.load %arg22[%c0_220, %c0_221] : memref<1x16xf32, #tpu.memory_space<vmem>>, vector<1x16xf32>
    %291 = vector.broadcast %290 : vector<1x16xf32> to vector<64x16xf32>
    %292 = arith.addf %289, %291 : vector<64x16xf32>
    %293 = vector.shape_cast %292 : vector<64x16xf32> to vector<8x8x16xf32>
    %c0_222 = arith.constant 0 : index
    %c0_223 = arith.constant 0 : index
    %c0_224 = arith.constant 0 : index
    %294 = vector.load %arg39[%c0_222, %c0_223, %c0_224] : memref<8x8x16xf32, #tpu.memory_space<vmem>>, vector<8x8x16xf32>
    tpu.vector_store %arg39[%c0_222, %c0_223, %c0_224], %293 {strides = array<i32>} : memref<8x8x16xf32, #tpu.memory_space<vmem>>, vector<8x8x16xf32>,
    %c0_225 = arith.constant 0 : index
    %c0_226 = arith.constant 0 : index
    %c0_227 = arith.constant 0 : index
    %295 = vector.load %arg39[%c0_225, %c0_226, %c0_227] : memref<8x8x16xf32, #tpu.memory_space<vmem>>, vector<8x8x16xf32>
    %296 = vector.shape_cast %295 : vector<8x8x16xf32> to vector<64x16xf32>
    %297 = arith.truncf %296 : vector<64x16xf32> to vector<64x16xbf16>
    %c0_228 = arith.constant 0 : index
    %c0_229 = arith.constant 0 : index
    %298 = vector.load %arg23[%c0_228, %c0_229] : memref<16x40xbf16, #tpu.memory_space<vmem>>, vector<16x40xbf16>
    %cst_230 = arith.constant dense<0.000000e+00> : vector<64x40xf32>
    %299 = tpu.matmul %297, %298, %cst_230 {dimension_numbers = #tpu.dot_dimension_numbers<[1], [0], [0], [1], [0, 0, 1, 1], [], []>} : vector<64x16xbf16>, vector<16x40xbf16>, vector<64x40xf32> -> vector<64x40xf32>
    %c0_231 = arith.constant 0 : index
    %c0_232 = arith.constant 0 : index
    %300 = vector.load %arg24[%c0_231, %c0_232] : memref<1x40xf32, #tpu.memory_space<vmem>>, vector<1x40xf32>
    %301 = vector.broadcast %300 : vector<1x40xf32> to vector<64x40xf32>
    %302 = arith.mulf %299, %301 : vector<64x40xf32>
    %c0_233 = arith.constant 0 : index
    %c0_234 = arith.constant 0 : index
    %303 = vector.load %arg25[%c0_233, %c0_234] : memref<1x40xf32, #tpu.memory_space<vmem>>, vector<1x40xf32>
    %304 = vector.broadcast %303 : vector<1x40xf32> to vector<64x40xf32>
    %305 = arith.addf %302, %304 : vector<64x40xf32>
    %cst_235 = arith.constant 0.000000e+00 : f32
    %306 = vector.broadcast %cst_235 : f32 to vector<64x40xf32>
    %307 = arith.maximumf %305, %306 : vector<64x40xf32>
    %308 = vector.shape_cast %307 : vector<64x40xf32> to vector<8x8x40xf32>
    %cst_236 = arith.constant 0.000000e+00 : bf16
    %309 = vector.broadcast %cst_236 : bf16 to vector<1x25x40xbf16>
    %c0_237 = arith.constant 0 : index
    %c0_238 = arith.constant 0 : index
    %c0_239 = arith.constant 0 : index
    %310 = vector.load %arg40[%c0_237, %c0_238, %c0_239] : memref<10x25x40xbf16, #tpu.memory_space<vmem>>, vector<1x25x40xbf16>
    tpu.vector_store %arg40[%c0_237, %c0_238, %c0_239], %309 {strides = array<i32>} : memref<10x25x40xbf16, #tpu.memory_space<vmem>>, vector<1x25x40xbf16>,
    %cst_240 = arith.constant 0.000000e+00 : bf16
    %311 = vector.broadcast %cst_240 : bf16 to vector<1x25x40xbf16>
    %c9_241 = arith.constant 9 : index
    %c0_242 = arith.constant 0 : index
    %c0_243 = arith.constant 0 : index
    %312 = vector.load %arg40[%c9_241, %c0_242, %c0_243] : memref<10x25x40xbf16, #tpu.memory_space<vmem>>, vector<1x25x40xbf16>
    tpu.vector_store %arg40[%c9_241, %c0_242, %c0_243], %311 {strides = array<i32>} : memref<10x25x40xbf16, #tpu.memory_space<vmem>>, vector<1x25x40xbf16>,
    %cst_244 = arith.constant 0.000000e+00 : bf16
    %313 = vector.broadcast %cst_244 : bf16 to vector<8x1x40xbf16>
    %c1_245 = arith.constant 1 : index
    %c15_246 = arith.constant 15 : index
    %c0_247 = arith.constant 0 : index
    %314 = vector.load %arg40[%c1_245, %c15_246, %c0_247] : memref<10x25x40xbf16, #tpu.memory_space<vmem>>, vector<8x1x40xbf16>
    tpu.vector_store %arg40[%c1_245, %c15_246, %c0_247], %313 {strides = array<i32>} : memref<10x25x40xbf16, #tpu.memory_space<vmem>>, vector<8x1x40xbf16>,
    %cst_248 = arith.constant 0.000000e+00 : bf16
    %315 = vector.broadcast %cst_248 : bf16 to vector<8x1x40xbf16>
    %c1_249 = arith.constant 1 : index
    %c24_250 = arith.constant 24 : index
    %c0_251 = arith.constant 0 : index
    %316 = vector.load %arg40[%c1_249, %c24_250, %c0_251] : memref<10x25x40xbf16, #tpu.memory_space<vmem>>, vector<8x1x40xbf16>
    tpu.vector_store %arg40[%c1_249, %c24_250, %c0_251], %315 {strides = array<i32>} : memref<10x25x40xbf16, #tpu.memory_space<vmem>>, vector<8x1x40xbf16>,
    %317 = arith.truncf %308 : vector<8x8x40xf32> to vector<8x8x40xbf16>
    %c1_252 = arith.constant 1 : index
    %c16_253 = arith.constant 16 : index
    %c0_254 = arith.constant 0 : index
    %318 = vector.load %arg40[%c1_252, %c16_253, %c0_254] : memref<10x25x40xbf16, #tpu.memory_space<vmem>>, vector<8x8x40xbf16>
    tpu.vector_store %arg40[%c1_252, %c16_253, %c0_254], %317 {strides = array<i32>} : memref<10x25x40xbf16, #tpu.memory_space<vmem>>, vector<8x8x40xbf16>,
    %c0_255 = arith.constant 0 : index
    %c0_256 = arith.constant 0 : index
    %319 = vector.load %arg26[%c0_255, %c0_256] : memref<9x40xf32, #tpu.memory_space<vmem>>, vector<9x40xf32>
    %cst_257 = arith.constant 0.000000e+00 : f32
    %320 = vector.broadcast %cst_257 : f32 to vector<8x8x40xf32>
    %c0_258 = arith.constant 0 : index
    %c15_259 = arith.constant 15 : index
    %c0_260 = arith.constant 0 : index
    %321 = vector.load %arg40[%c0_258, %c15_259, %c0_260] : memref<10x25x40xbf16, #tpu.memory_space<vmem>>, vector<8x8x40xbf16>
    %322 = arith.extf %321 : vector<8x8x40xbf16> to vector<8x8x40xf32>
    %323 = vector.extract_strided_slice %319 {offsets = [0, 0], sizes = [1, 40], strides = [1, 1]} : vector<9x40xf32> to vector<1x40xf32>
    %324 = vector.shape_cast %323 : vector<1x40xf32> to vector<40xf32>
    %325 = vector.shape_cast %324 : vector<40xf32> to vector<1x1x40xf32>
    %326 = vector.broadcast %325 : vector<1x1x40xf32> to vector<8x8x40xf32>
    %327 = arith.mulf %322, %326 : vector<8x8x40xf32>
    %328 = arith.addf %320, %327 : vector<8x8x40xf32>
    %c0_261 = arith.constant 0 : index
    %c16_262 = arith.constant 16 : index
    %c0_263 = arith.constant 0 : index
    %329 = vector.load %arg40[%c0_261, %c16_262, %c0_263] : memref<10x25x40xbf16, #tpu.memory_space<vmem>>, vector<8x8x40xbf16>
    %330 = arith.extf %329 : vector<8x8x40xbf16> to vector<8x8x40xf32>
    %331 = vector.extract_strided_slice %319 {offsets = [1, 0], sizes = [1, 40], strides = [1, 1]} : vector<9x40xf32> to vector<1x40xf32>
    %332 = vector.shape_cast %331 : vector<1x40xf32> to vector<40xf32>
    %333 = vector.shape_cast %332 : vector<40xf32> to vector<1x1x40xf32>
    %334 = vector.broadcast %333 : vector<1x1x40xf32> to vector<8x8x40xf32>
    %335 = arith.mulf %330, %334 : vector<8x8x40xf32>
    %336 = arith.addf %328, %335 : vector<8x8x40xf32>
    %c0_264 = arith.constant 0 : index
    %c17_265 = arith.constant 17 : index
    %c0_266 = arith.constant 0 : index
    %337 = vector.load %arg40[%c0_264, %c17_265, %c0_266] : memref<10x25x40xbf16, #tpu.memory_space<vmem>>, vector<8x8x40xbf16>
    %338 = arith.extf %337 : vector<8x8x40xbf16> to vector<8x8x40xf32>
    %339 = vector.extract_strided_slice %319 {offsets = [2, 0], sizes = [1, 40], strides = [1, 1]} : vector<9x40xf32> to vector<1x40xf32>
    %340 = vector.shape_cast %339 : vector<1x40xf32> to vector<40xf32>
    %341 = vector.shape_cast %340 : vector<40xf32> to vector<1x1x40xf32>
    %342 = vector.broadcast %341 : vector<1x1x40xf32> to vector<8x8x40xf32>
    %343 = arith.mulf %338, %342 : vector<8x8x40xf32>
    %344 = arith.addf %336, %343 : vector<8x8x40xf32>
    %c1_267 = arith.constant 1 : index
    %c15_268 = arith.constant 15 : index
    %c0_269 = arith.constant 0 : index
    %345 = vector.load %arg40[%c1_267, %c15_268, %c0_269] : memref<10x25x40xbf16, #tpu.memory_space<vmem>>, vector<8x8x40xbf16>
    %346 = arith.extf %345 : vector<8x8x40xbf16> to vector<8x8x40xf32>
    %347 = vector.extract_strided_slice %319 {offsets = [3, 0], sizes = [1, 40], strides = [1, 1]} : vector<9x40xf32> to vector<1x40xf32>
    %348 = vector.shape_cast %347 : vector<1x40xf32> to vector<40xf32>
    %349 = vector.shape_cast %348 : vector<40xf32> to vector<1x1x40xf32>
    %350 = vector.broadcast %349 : vector<1x1x40xf32> to vector<8x8x40xf32>
    %351 = arith.mulf %346, %350 : vector<8x8x40xf32>
    %352 = arith.addf %344, %351 : vector<8x8x40xf32>
    %c1_270 = arith.constant 1 : index
    %c16_271 = arith.constant 16 : index
    %c0_272 = arith.constant 0 : index
    %353 = vector.load %arg40[%c1_270, %c16_271, %c0_272] : memref<10x25x40xbf16, #tpu.memory_space<vmem>>, vector<8x8x40xbf16>
    %354 = arith.extf %353 : vector<8x8x40xbf16> to vector<8x8x40xf32>
    %355 = vector.extract_strided_slice %319 {offsets = [4, 0], sizes = [1, 40], strides = [1, 1]} : vector<9x40xf32> to vector<1x40xf32>
    %356 = vector.shape_cast %355 : vector<1x40xf32> to vector<40xf32>
    %357 = vector.shape_cast %356 : vector<40xf32> to vector<1x1x40xf32>
    %358 = vector.broadcast %357 : vector<1x1x40xf32> to vector<8x8x40xf32>
    %359 = arith.mulf %354, %358 : vector<8x8x40xf32>
    %360 = arith.addf %352, %359 : vector<8x8x40xf32>
    %c1_273 = arith.constant 1 : index
    %c17_274 = arith.constant 17 : index
    %c0_275 = arith.constant 0 : index
    %361 = vector.load %arg40[%c1_273, %c17_274, %c0_275] : memref<10x25x40xbf16, #tpu.memory_space<vmem>>, vector<8x8x40xbf16>
    %362 = arith.extf %361 : vector<8x8x40xbf16> to vector<8x8x40xf32>
    %363 = vector.extract_strided_slice %319 {offsets = [5, 0], sizes = [1, 40], strides = [1, 1]} : vector<9x40xf32> to vector<1x40xf32>
    %364 = vector.shape_cast %363 : vector<1x40xf32> to vector<40xf32>
    %365 = vector.shape_cast %364 : vector<40xf32> to vector<1x1x40xf32>
    %366 = vector.broadcast %365 : vector<1x1x40xf32> to vector<8x8x40xf32>
    %367 = arith.mulf %362, %366 : vector<8x8x40xf32>
    %368 = arith.addf %360, %367 : vector<8x8x40xf32>
    %c2_276 = arith.constant 2 : index
    %c15_277 = arith.constant 15 : index
    %c0_278 = arith.constant 0 : index
    %369 = vector.load %arg40[%c2_276, %c15_277, %c0_278] : memref<10x25x40xbf16, #tpu.memory_space<vmem>>, vector<8x8x40xbf16>
    %370 = arith.extf %369 : vector<8x8x40xbf16> to vector<8x8x40xf32>
    %371 = vector.extract_strided_slice %319 {offsets = [6, 0], sizes = [1, 40], strides = [1, 1]} : vector<9x40xf32> to vector<1x40xf32>
    %372 = vector.shape_cast %371 : vector<1x40xf32> to vector<40xf32>
    %373 = vector.shape_cast %372 : vector<40xf32> to vector<1x1x40xf32>
    %374 = vector.broadcast %373 : vector<1x1x40xf32> to vector<8x8x40xf32>
    %375 = arith.mulf %370, %374 : vector<8x8x40xf32>
    %376 = arith.addf %368, %375 : vector<8x8x40xf32>
    %c2_279 = arith.constant 2 : index
    %c16_280 = arith.constant 16 : index
    %c0_281 = arith.constant 0 : index
    %377 = vector.load %arg40[%c2_279, %c16_280, %c0_281] : memref<10x25x40xbf16, #tpu.memory_space<vmem>>, vector<8x8x40xbf16>
    %378 = arith.extf %377 : vector<8x8x40xbf16> to vector<8x8x40xf32>
    %379 = vector.extract_strided_slice %319 {offsets = [7, 0], sizes = [1, 40], strides = [1, 1]} : vector<9x40xf32> to vector<1x40xf32>
    %380 = vector.shape_cast %379 : vector<1x40xf32> to vector<40xf32>
    %381 = vector.shape_cast %380 : vector<40xf32> to vector<1x1x40xf32>
    %382 = vector.broadcast %381 : vector<1x1x40xf32> to vector<8x8x40xf32>
    %383 = arith.mulf %378, %382 : vector<8x8x40xf32>
    %384 = arith.addf %376, %383 : vector<8x8x40xf32>
    %c2_282 = arith.constant 2 : index
    %c17_283 = arith.constant 17 : index
    %c0_284 = arith.constant 0 : index
    %385 = vector.load %arg40[%c2_282, %c17_283, %c0_284] : memref<10x25x40xbf16, #tpu.memory_space<vmem>>, vector<8x8x40xbf16>
    %386 = arith.extf %385 : vector<8x8x40xbf16> to vector<8x8x40xf32>
    %387 = vector.extract_strided_slice %319 {offsets = [8, 0], sizes = [1, 40], strides = [1, 1]} : vector<9x40xf32> to vector<1x40xf32>
    %388 = vector.shape_cast %387 : vector<1x40xf32> to vector<40xf32>
    %389 = vector.shape_cast %388 : vector<40xf32> to vector<1x1x40xf32>
    %390 = vector.broadcast %389 : vector<1x1x40xf32> to vector<8x8x40xf32>
    %391 = arith.mulf %386, %390 : vector<8x8x40xf32>
    %392 = arith.addf %384, %391 : vector<8x8x40xf32>
    %c0_285 = arith.constant 0 : index
    %c0_286 = arith.constant 0 : index
    %393 = vector.load %arg27[%c0_285, %c0_286] : memref<1x40xf32, #tpu.memory_space<vmem>>, vector<1x40xf32>
    %394 = vector.shape_cast %393 : vector<1x40xf32> to vector<40xf32>
    %395 = vector.shape_cast %394 : vector<40xf32> to vector<1x1x40xf32>
    %396 = vector.broadcast %395 : vector<1x1x40xf32> to vector<8x8x40xf32>
    %397 = arith.mulf %392, %396 : vector<8x8x40xf32>
    %c0_287 = arith.constant 0 : index
    %c0_288 = arith.constant 0 : index
    %398 = vector.load %arg28[%c0_287, %c0_288] : memref<1x40xf32, #tpu.memory_space<vmem>>, vector<1x40xf32>
    %399 = vector.shape_cast %398 : vector<1x40xf32> to vector<40xf32>
    %400 = vector.shape_cast %399 : vector<40xf32> to vector<1x1x40xf32>
    %401 = vector.broadcast %400 : vector<1x1x40xf32> to vector<8x8x40xf32>
    %402 = arith.addf %397, %401 : vector<8x8x40xf32>
    %cst_289 = arith.constant 0.000000e+00 : f32
    %403 = vector.broadcast %cst_289 : f32 to vector<8x8x40xf32>
    %404 = arith.maximumf %402, %403 : vector<8x8x40xf32>
    %405 = vector.shape_cast %404 : vector<8x8x40xf32> to vector<64x40xf32>
    %406 = arith.truncf %405 : vector<64x40xf32> to vector<64x40xbf16>
    %c0_290 = arith.constant 0 : index
    %c0_291 = arith.constant 0 : index
    %407 = vector.load %arg29[%c0_290, %c0_291] : memref<40x16xbf16, #tpu.memory_space<vmem>>, vector<40x16xbf16>
    %cst_292 = arith.constant dense<0.000000e+00> : vector<64x16xf32>
    %408 = tpu.matmul %406, %407, %cst_292 {dimension_numbers = #tpu.dot_dimension_numbers<[1], [0], [0], [1], [0, 0, 1, 1], [], []>} : vector<64x40xbf16>, vector<40x16xbf16>, vector<64x16xf32> -> vector<64x16xf32>
    %c0_293 = arith.constant 0 : index
    %c0_294 = arith.constant 0 : index
    %409 = vector.load %arg30[%c0_293, %c0_294] : memref<1x16xf32, #tpu.memory_space<vmem>>, vector<1x16xf32>
    %410 = vector.broadcast %409 : vector<1x16xf32> to vector<64x16xf32>
    %411 = arith.mulf %408, %410 : vector<64x16xf32>
    %c0_295 = arith.constant 0 : index
    %c0_296 = arith.constant 0 : index
    %412 = vector.load %arg31[%c0_295, %c0_296] : memref<1x16xf32, #tpu.memory_space<vmem>>, vector<1x16xf32>
    %413 = vector.broadcast %412 : vector<1x16xf32> to vector<64x16xf32>
    %414 = arith.addf %411, %413 : vector<64x16xf32>
    %415 = arith.addf %414, %296 : vector<64x16xf32>
    %416 = vector.shape_cast %415 : vector<64x16xf32> to vector<8x8x16xf32>
    %417 = arith.truncf %416 : vector<8x8x16xf32> to vector<8x8x16xbf16>
    %c0_297 = arith.constant 0 : index
    %c0_298 = arith.constant 0 : index
    %c0_299 = arith.constant 0 : index
    %c0_300 = arith.constant 0 : index
    %418 = vector.load %arg32[%c0_297, %c0_298, %c0_299, %c0_300] : memref<1x8x8x16xbf16, #tpu.memory_space<vmem>>, vector<1x8x8x16xbf16>
    %419 = vector.shape_cast %418 : vector<1x8x8x16xbf16> to vector<8x8x16xbf16>
    %420 = vector.shape_cast %417 : vector<8x8x16xbf16> to vector<1x8x8x16xbf16>
    tpu.vector_store %arg32[%c0_297, %c0_298, %c0_299, %c0_300], %420 {strides = array<i32>} : memref<1x8x8x16xbf16, #tpu.memory_space<vmem>>, vector<1x8x8x16xbf16>,
    return
  }
  func.func @transform_0(%arg0: i32) -> (i32, i32, i32, i32) {
    %c0_i32 = arith.constant 0 : i32
    %c0_i32_0 = arith.constant 0 : i32
    %c0_i32_1 = arith.constant 0 : i32
    %c0_i32_2 = arith.constant 0 : i32
    return %arg0, %c0_i32, %c0_i32_0, %c0_i32_1 : i32, i32, i32, i32
  }
  func.func @transform_1(%arg0: i32) -> (i32, i32) {
    %c0_i32 = arith.constant 0 : i32
    %c0_i32_0 = arith.constant 0 : i32
    %c0_i32_1 = arith.constant 0 : i32
    return %c0_i32, %c0_i32_0 : i32, i32
  }
  func.func @transform_2(%arg0: i32) -> (i32, i32) {
    %c0_i32 = arith.constant 0 : i32
    %c0_i32_0 = arith.constant 0 : i32
    %c0_i32_1 = arith.constant 0 : i32
    return %c0_i32, %c0_i32_0 : i32, i32
  }
  func.func @transform_3(%arg0: i32) -> (i32, i32) {
    %c0_i32 = arith.constant 0 : i32
    %c0_i32_0 = arith.constant 0 : i32
    %c0_i32_1 = arith.constant 0 : i32
    return %c0_i32, %c0_i32_0 : i32, i32
  }
  func.func @transform_4(%arg0: i32) -> (i32, i32) {
    %c0_i32 = arith.constant 0 : i32
    %c0_i32_0 = arith.constant 0 : i32
    %c0_i32_1 = arith.constant 0 : i32
    return %c0_i32, %c0_i32_0 : i32, i32
  }
  func.func @transform_5(%arg0: i32) -> (i32, i32) {
    %c0_i32 = arith.constant 0 : i32
    %c0_i32_0 = arith.constant 0 : i32
    %c0_i32_1 = arith.constant 0 : i32
    return %c0_i32, %c0_i32_0 : i32, i32
  }
  func.func @transform_6(%arg0: i32) -> (i32, i32) {
    %c0_i32 = arith.constant 0 : i32
    %c0_i32_0 = arith.constant 0 : i32
    %c0_i32_1 = arith.constant 0 : i32
    return %c0_i32, %c0_i32_0 : i32, i32
  }
  func.func @transform_7(%arg0: i32) -> (i32, i32) {
    %c0_i32 = arith.constant 0 : i32
    %c0_i32_0 = arith.constant 0 : i32
    %c0_i32_1 = arith.constant 0 : i32
    return %c0_i32, %c0_i32_0 : i32, i32
  }
  func.func @transform_8(%arg0: i32) -> (i32, i32) {
    %c0_i32 = arith.constant 0 : i32
    %c0_i32_0 = arith.constant 0 : i32
    %c0_i32_1 = arith.constant 0 : i32
    return %c0_i32, %c0_i32_0 : i32, i32
  }
  func.func @transform_9(%arg0: i32) -> (i32, i32) {
    %c0_i32 = arith.constant 0 : i32
    %c0_i32_0 = arith.constant 0 : i32
    %c0_i32_1 = arith.constant 0 : i32
    return %c0_i32, %c0_i32_0 : i32, i32
  }
  func.func @transform_10(%arg0: i32) -> (i32, i32) {
    %c0_i32 = arith.constant 0 : i32
    %c0_i32_0 = arith.constant 0 : i32
    %c0_i32_1 = arith.constant 0 : i32
    return %c0_i32, %c0_i32_0 : i32, i32
  }
  func.func @transform_11(%arg0: i32) -> (i32, i32) {
    %c0_i32 = arith.constant 0 : i32
    %c0_i32_0 = arith.constant 0 : i32
    %c0_i32_1 = arith.constant 0 : i32
    return %c0_i32, %c0_i32_0 : i32, i32
  }
  func.func @transform_12(%arg0: i32) -> (i32, i32) {
    %c0_i32 = arith.constant 0 : i32
    %c0_i32_0 = arith.constant 0 : i32
    %c0_i32_1 = arith.constant 0 : i32
    return %c0_i32, %c0_i32_0 : i32, i32
  }
  func.func @transform_13(%arg0: i32) -> (i32, i32) {
    %c0_i32 = arith.constant 0 : i32
    %c0_i32_0 = arith.constant 0 : i32
    %c0_i32_1 = arith.constant 0 : i32
    return %c0_i32, %c0_i32_0 : i32, i32
  }
  func.func @transform_14(%arg0: i32) -> (i32, i32) {
    %c0_i32 = arith.constant 0 : i32
    %c0_i32_0 = arith.constant 0 : i32
    %c0_i32_1 = arith.constant 0 : i32
    return %c0_i32, %c0_i32_0 : i32, i32
  }
  func.func @transform_15(%arg0: i32) -> (i32, i32) {
    %c0_i32 = arith.constant 0 : i32
    %c0_i32_0 = arith.constant 0 : i32
    %c0_i32_1 = arith.constant 0 : i32
    return %c0_i32, %c0_i32_0 : i32, i32
  }
  func.func @transform_16(%arg0: i32) -> (i32, i32) {
    %c0_i32 = arith.constant 0 : i32
    %c0_i32_0 = arith.constant 0 : i32
    %c0_i32_1 = arith.constant 0 : i32
    return %c0_i32, %c0_i32_0 : i32, i32
  }
  func.func @transform_17(%arg0: i32) -> (i32, i32) {
    %c0_i32 = arith.constant 0 : i32
    %c0_i32_0 = arith.constant 0 : i32
    %c0_i32_1 = arith.constant 0 : i32
    return %c0_i32, %c0_i32_0 : i32, i32
  }
  func.func @transform_18(%arg0: i32) -> (i32, i32) {
    %c0_i32 = arith.constant 0 : i32
    %c0_i32_0 = arith.constant 0 : i32
    %c0_i32_1 = arith.constant 0 : i32
    return %c0_i32, %c0_i32_0 : i32, i32
  }
  func.func @transform_19(%arg0: i32) -> (i32, i32) {
    %c0_i32 = arith.constant 0 : i32
    %c0_i32_0 = arith.constant 0 : i32
    %c0_i32_1 = arith.constant 0 : i32
    return %c0_i32, %c0_i32_0 : i32, i32
  }
  func.func @transform_20(%arg0: i32) -> (i32, i32) {
    %c0_i32 = arith.constant 0 : i32
    %c0_i32_0 = arith.constant 0 : i32
    %c0_i32_1 = arith.constant 0 : i32
    return %c0_i32, %c0_i32_0 : i32, i32
  }
  func.func @transform_21(%arg0: i32) -> (i32, i32) {
    %c0_i32 = arith.constant 0 : i32
    %c0_i32_0 = arith.constant 0 : i32
    %c0_i32_1 = arith.constant 0 : i32
    return %c0_i32, %c0_i32_0 : i32, i32
  }
  func.func @transform_22(%arg0: i32) -> (i32, i32) {
    %c0_i32 = arith.constant 0 : i32
    %c0_i32_0 = arith.constant 0 : i32
    %c0_i32_1 = arith.constant 0 : i32
    return %c0_i32, %c0_i32_0 : i32, i32
  }
  func.func @transform_23(%arg0: i32) -> (i32, i32) {
    %c0_i32 = arith.constant 0 : i32
    %c0_i32_0 = arith.constant 0 : i32
    %c0_i32_1 = arith.constant 0 : i32
    return %c0_i32, %c0_i32_0 : i32, i32
  }
  func.func @transform_24(%arg0: i32) -> (i32, i32) {
    %c0_i32 = arith.constant 0 : i32
    %c0_i32_0 = arith.constant 0 : i32
    %c0_i32_1 = arith.constant 0 : i32
    return %c0_i32, %c0_i32_0 : i32, i32
  }
  func.func @transform_25(%arg0: i32) -> (i32, i32) {
    %c0_i32 = arith.constant 0 : i32
    %c0_i32_0 = arith.constant 0 : i32
    %c0_i32_1 = arith.constant 0 : i32
    return %c0_i32, %c0_i32_0 : i32, i32
  }
  func.func @transform_26(%arg0: i32) -> (i32, i32) {
    %c0_i32 = arith.constant 0 : i32
    %c0_i32_0 = arith.constant 0 : i32
    %c0_i32_1 = arith.constant 0 : i32
    return %c0_i32, %c0_i32_0 : i32, i32
  }
  func.func @transform_27(%arg0: i32) -> (i32, i32) {
    %c0_i32 = arith.constant 0 : i32
    %c0_i32_0 = arith.constant 0 : i32
    %c0_i32_1 = arith.constant 0 : i32
    return %c0_i32, %c0_i32_0 : i32, i32
  }
  func.func @transform_28(%arg0: i32) -> (i32, i32) {
    %c0_i32 = arith.constant 0 : i32
    %c0_i32_0 = arith.constant 0 : i32
    %c0_i32_1 = arith.constant 0 : i32
    return %c0_i32, %c0_i32_0 : i32, i32
  }
  func.func @transform_29(%arg0: i32) -> (i32, i32) {
    %c0_i32 = arith.constant 0 : i32
    %c0_i32_0 = arith.constant 0 : i32
    %c0_i32_1 = arith.constant 0 : i32
    return %c0_i32, %c0_i32_0 : i32, i32
  }
  func.func @transform_30(%arg0: i32) -> (i32, i32) {
    %c0_i32 = arith.constant 0 : i32
    %c0_i32_0 = arith.constant 0 : i32
    %c0_i32_1 = arith.constant 0 : i32
    return %c0_i32, %c0_i32_0 : i32, i32
  }
  func.func @transform_31(%arg0: i32) -> (i32, i32, i32, i32) {
    %c0_i32 = arith.constant 0 : i32
    %c0_i32_0 = arith.constant 0 : i32
    %c0_i32_1 = arith.constant 0 : i32
    %c0_i32_2 = arith.constant 0 : i32
    return %arg0, %c0_i32, %c0_i32_0, %c0_i32_1 : i32, i32, i32, i32
  }
}

</mosaic_0001>

<bundles_post_ra>
// kernel: tpu_custom_call.1
= control target key start
LH: loop header
LB: loop body
LE: loop exit
PB: predicated region body
PF: predicated region fallthrough
CT: control target
= control target key end

     0   :  { %s10395_s6 = smov 1   ;;  %s10396_s10 = smov 2   ;;  %s14001_s0 = inlined_call_operand.smem [shape: u32[32], index: -1, kind: input, shape index: {}] }
   0x1   :  { %s10448_s5 = sld [smem:[%s14001_s0]]   ;;  %s10397_s14 = smov 3  }
   0x2   :  { %s10453_s9 = sld [smem:[%s14001_s0 + %s10395_s6]]   ;;  %s10398_s18 = smov 4  }
   0x3   :  { %s10458_s13 = sld [smem:[%s14001_s0 + %s10396_s10]]   ;;  %s10399_s22 = smov 5  }
   0x4   :  { %s10463_s17 = sld [smem:[%s14001_s0 + %s10397_s14]]   ;;  %s10400_s26 = smov 6  }
   0x5   :  { %s10468_s21 = sld [smem:[%s14001_s0 + %s10398_s18]]   ;;  %s10401_s30 = smov 7  }
   0x6   :  { %s10473_s25 = sld [smem:[%s14001_s0 + %s10399_s22]]   ;;  %s10402_s4 = smov 8  }
   0x7   :  { %14062 = sst [smem:[#allocation13_spill]] %s10448_s5  ;;  %s10403_s10 = smov 9  }
   0x8   :  { %s10478_s29 = sld [smem:[%s14001_s0 + %s10400_s26]]   ;;  %s10404_s15 = smov 10  }
   0x9   :  { %s10483_s3 = sld [smem:[%s14001_s0 + %s10401_s30]]   ;;  %s10405_s20 = smov 11  }
   0xa   :  { %s10488_s8 = sld [smem:[%s14001_s0 + %s10402_s4]]   ;;  %s10406_s26 = smov 12  }
   0xb   :  { %s10493_s14 = sld [smem:[%s14001_s0 + %s10403_s10]]   ;;  %s10407_s1 = smov 13  }
   0xc   :  { %s10498_s19 = sld [smem:[%s14001_s0 + %s10404_s15]]   ;;  %s10408_s7 = smov 14  }
   0xd   :  { %s10503_s24 = sld [smem:[%s14001_s0 + %s10405_s20]]   ;;  %s10409_s15 = smov 15  }
   0xe   :  { %s10508_s30 = sld [smem:[%s14001_s0 + %s10406_s26]]   ;;  %s10410_s22 = smov 16  }
   0xf   :  { %14063 = sst [smem:[#allocation14_spill]] %s10483_s3  ;;  %s10411_s28 = smov 17  }
  0x10   :  { %s10513_s6 = sld [smem:[%s14001_s0 + %s10407_s1]]  }
  0x11   :  { %s10518_s12 = sld [smem:[%s14001_s0 + %s10408_s7]]   ;;  %s10412_s7 = smov 18  }
  0x12   :  { %s10523_s20 = sld [smem:[%s14001_s0 + %s10409_s15]]   ;;  %s10413_s15 = smov 19  }
  0x13   :  { %s10528_s27 = sld [smem:[%s14001_s0 + %s10410_s22]]   ;;  %s10414_s22 = smov 20  }
  0x14   :  { %s10533_s4 = sld [smem:[%s14001_s0 + %s10411_s28]]   ;;  %s10415_s28 = smov 21  }
  0x17   :  { %14064 = sst [smem:[#allocation15_spill]] %s10518_s12 }
  0x18   :  { %14065 = sst [smem:[#allocation16_spill]] %s10523_s20 }
  0x19   :  { %14066 = sst [smem:[#allocation17_spill]] %s10528_s27 }
  0x1a   :  { %14067 = sst [smem:[#allocation18_spill]] %s10533_s4 }
  0x1b   :  { %s10538_s12 = sld [smem:[%s14001_s0 + %s10412_s7]]   ;;  %s10416_s7 = smov 22  }
  0x1c   :  { %s10543_s20 = sld [smem:[%s14001_s0 + %s10413_s15]]   ;;  %s10417_s15 = smov 23  }
  0x1d   :  { %s10548_s27 = sld [smem:[%s14001_s0 + %s10414_s22]]   ;;  %s10418_s22 = smov 24  }
  0x1e   :  { %s10553_s4 = sld [smem:[%s14001_s0 + %s10415_s28]]   ;;  %s10419_s28 = smov 25  }
  0x21   :  { %14068 = sst [smem:[#allocation19_spill]] %s10538_s12 }
  0x22   :  { %14069 = sst [smem:[#allocation20_spill]] %s10543_s20 }
  0x23   :  { %14070 = sst [smem:[#allocation21_spill]] %s10548_s27 }
  0x24   :  { %14071 = sst [smem:[#allocation22_spill]] %s10553_s4 }
  0x25   :  { %s10558_s12 = sld [smem:[%s14001_s0 + %s10416_s7]]   ;;  %s10420_s7 = smov 26  }
  0x26   :  { %s10563_s20 = sld [smem:[%s14001_s0 + %s10417_s15]]   ;;  %s10421_s15 = smov 27  }
  0x27   :  { %s10568_s27 = sld [smem:[%s14001_s0 + %s10418_s22]]   ;;  %s10422_s22 = smov 28  }
  0x28   :  { %s10573_s4 = sld [smem:[%s14001_s0 + %s10419_s28]]   ;;  %s10423_s28 = smov 29  }
  0x2b   :  { %14072 = sst [smem:[#allocation23_spill]] %s10558_s12 }
  0x2c   :  { %14073 = sst [smem:[#allocation24_spill]] %s10563_s20 }
  0x2d   :  { %14074 = sst [smem:[#allocation25_spill]] %s10568_s27 }
  0x2e   :  { %14075 = sst [smem:[#allocation26_spill]] %s10573_s4 }
  0x2f   :  { %s10578_s12 = sld [smem:[%s14001_s0 + %s10420_s7]]   ;;  %s10424_s7 = smov 30  }
  0x30   :  { %s10583_s20 = sld [smem:[%s14001_s0 + %s10421_s15]]   ;;  %s10425_s15 = smov 31  }
  0x31   :  { %s10588_s27 = sld [smem:[%s14001_s0 + %s10422_s22]]  }
  0x32   :  { %s10593_s4 = sld [smem:[%s14001_s0 + %s10423_s28]]  }
  0x35   :  { %14076 = sst [smem:[#allocation27_spill]] %s10578_s12 }
  0x36   :  { %14077 = sst [smem:[#allocation28_spill]] %s10583_s20 }
  0x37   :  { %s10598_s12 = sld [smem:[%s14001_s0 + %s10424_s7]]  }
  0x38   :  { %14078 = sst [smem:[#allocation29_spill]] %s10593_s4 }
  0x39   :  { %s10603_s20 = sld [smem:[%s14001_s0 + %s10425_s15]]  }
  0x3a   :  { %68 = vsyncpa [#allocation11], 0 }
  0x3b   :  { %70 = vsyncpa [#allocation11 + $0x1], 0  ;;  %s10605_s22 = smov 0   ;;  %s10607_s23 = smov 0  }
  0x3c   :  { %s10609_s26 = smov 0   ;;  %s10611_s28 = smov 0  }
  0x3d LB: > { %s14079_s3 = sld [smem:[#allocation14_spill]]  ;;  %s10626_s0 = sadd.s32 4294967295, %s10393_s28   ;;  %s10381_s22 = sphi %s10605_s22, %s14215_s22   ;;  %s10393_s28 = sphi %s10611_s28, %s14212_s28   ;;  %s10389_s26 = sphi %s10609_s26, %s14217_s26   ;;  %s10385_s23 = sphi %s10607_s23, %s14216_s23  }
  0x3e   : > { %14080 = sst [smem:[#allocation30_spill]] %s10389_s26  ;;  %s9289_s1 = sadd.s32 4294967294, %s10393_s28  }
  0x3f   : > { %s10630_s2 = sadd.s32 1, %s10393_s28   ;;  %s739_s7 = sadd.s32 1, %s10389_s26 }
  0x40   : > { %14081 = sst [smem:[#allocation31_spill]] %s10630_s2  ;;  %s736_s10 = ssub.s32 %s10393_s28, %s10630_s2 }
  0x41   : > { %p749_p0 = scmp.ne.s32.totalorder %s10389_s26, %s10385_s23  ;;  %p737_p1 = scmp.eq.s32.totalorder %s736_s10, 0 }
  0x42   : > { %p750_p2 = scmp.eq.s32.totalorder %s10626_s0, 1  ;;  %p755_p3 = scmp.ne.s32.totalorder %s10385_s23, %s10381_s22 }
  0x43   : > { %p756_p4 = scmp.eq.s32.totalorder %s9289_s1, 1  ;;  %p9292_p7 = scmp.ge.s32.totalorder %s10393_s28, 1 }
  0x44   : > { %s10641_s11 = scalar_select %p737_p1, %s10389_s26, %s739_s7  }
  0x45   : > { %p10643_p5 = por %p750_p2, %p749_p0  ;;  %p10647_p6 = por %p756_p4, %p755_p3 }
  0x46   : > { %14082 = sst [smem:[#allocation32_spill]] %s10641_s11  ;;  %p872_p8 = scmp.lt.s32.totalorder %s10393_s28, 3 }
  0x47   : > { %s14084_s16 = scalar_select %p10647_p6, 1, 0 }
  0x48   : > { %p873_p9 = pnand %p9292_p7, %p872_p8 }
  0x49   : > { %14085 = sst [smem:[#allocation33_spill]] %s14084_s16 }
  0x4a   : > { %876 = sbr.rel (%p873_p9) target bundleno = 2396 (0x95c), region = 144 }
  0x51   : > { %vm1086_vm0 = vcmask 23552   ;;  %vm1092_vm1 = vcmask 16384   ;;  %v14027_v0 = vmov 0.0   ;;  %p952_p10 = scmp.lt.s32.totalorder %s10626_s0, 1  ;;  %s14086_s5 = sld [smem:[#allocation13_spill]]  ;;  %vm2887_vm2 = vcmask 1044480  }
  0x52   : > { %1088 = vst.msk [vmem:[#allocation2 + $0x8] sm:$0xff] %vm1086_vm0, %v14027_v0  ;;  %1089 = vst.msk [vmem:[#allocation2 + $0x10] sm:$0xff] %vm1086_vm0, %v14027_v0  ;;  %s14009_s10 = smov 3   ;;  %s14091_s11 = smov 15   ;;  %vm2888_vm3 = vcmask 1045504   ;;  %vm1662_vm4 = vcmask 48152  }
  0x53   : > { %1090 = vst.msk [vmem:[#allocation2 + $0x18] sm:$0xff] %vm1086_vm0, %v14027_v0  ;;  %1091 = vst.msk [vmem:[#allocation2 + $0x20] sm:$0xff] %vm1086_vm0, %v14027_v0  ;;  %s953_s18 = scalar_select %p952_p10, %s10626_s0, 1  ;;  %vm1823_vm5 = vcmask 72752   ;;  %vm1984_vm6 = vcmask 97352   ;;  %vm2145_vm7 = vcmask 121952  }
  0x54   : > { %1087 = vst.msk [vmem:[#allocation2] sm:$0xff] %vm1086_vm0, %v14027_v0  ;;  %s14092_s26 = smov 18   ;;  %s14093_s2 = smov 21   ;;  %vm2306_vm8 = vcmask 146552   ;;  %vm2468_vm9 = vcmask 171152   ;;  %vm2629_vm10 = vcmask 195752  }
  0x55   : > { %1102 = vst.msk [vmem:[#allocation2 + $0x37] sm:$0x1] %vm1092_vm1, %v14027_v0  ;;  %1103 = vst.msk [vmem:[#allocation2 + $0x67] sm:$0x1] %vm1092_vm1, %v14027_v0  ;;  %s9440_s1 = sshll.u32 %s953_s18, 9  ;;  %s14005_s18 = smov 6  }
  0x56   : > { %1104 = vst.msk [vmem:[#allocation2 + $0x97] sm:$0x1] %vm1092_vm1, %v14027_v0  ;;  %1105 = vst.msk [vmem:[#allocation2 + $0xc7] sm:$0x1] %vm1092_vm1, %v14027_v0  ;;  %s14094_s16 = smov 24   ;;  %vm2790_vm11 = vcmask 220352  }
  0x57   : > { %1106 = vst.msk [vmem:[#allocation2 + $0xf7] sm:$0x1] %vm1092_vm1, %v14027_v0  ;;  %1107 = vst.msk [vmem:[#allocation2 + $0x127] sm:$0x1] %vm1092_vm1, %v14027_v0  ;;  %s10732_s7 = scalar_lea.vmem %s14086_s5, %s9440_s1  ;;  %s14007_s1 = smov 9   ;;  %vm2838_vm12 = vcmask 220160  }
  0x58   : > { %1108 = vst.msk [vmem:[#allocation2 + $0x157] sm:$0x1] %vm1092_vm1, %v14027_v0  ;;  %1109 = vst.msk [vmem:[#allocation2 + $0x187] sm:$0x1] %vm1092_vm1, %v14027_v0  ;;  %v9827_v1 = vld [vmem:[%s10732_s7 + $0x10] sm:$0xff]   ;;  %v9828_v2 = vld [vmem:[%s10732_s7 + $0x18] sm:$0xff]  }
  0x59   : > { %1110 = vst.msk [vmem:[#allocation2 + $0x1b7] sm:$0x1] %vm1092_vm1, %v14027_v0  ;;  %1111 = vst.msk [vmem:[#allocation2 + $0x1e7] sm:$0x1] %vm1092_vm1, %v14027_v0  ;;  %v9475_v3 = vld [vmem:[%s10732_s7] sm:$0xff]   ;;  %v9484_v7 = vunpack.c.l.bf16 %v9827_v1  ;;  %v9485_v8 = vunpack.c.h.bf16 %v9827_v1  ;;  %v9488_v9 = vunpack.c.l.bf16 %v9828_v2  ;;  %v9489_v10 = vunpack.c.h.bf16 %v9828_v2  ;;  %v9826_v15 = vld [vmem:[%s10732_s7 + $0x8] sm:$0xff]  }
  0x5a   : > { %1112 = vst.msk [vmem:[#allocation2 + $0x217] sm:$0x1] %vm1092_vm1, %v14027_v0  ;;  %1113 = vst.msk [vmem:[#allocation2 + $0x247] sm:$0x1] %vm1092_vm1, %v14027_v0  ;;  %v1519_v4 = vld [vmem:[#allocation2 + $0x8] ss:$2 sm:$0xff]  ;;  %v9476_v13 = vunpack.c.l.bf16 %v9475_v3  ;;  %v9477_v14 = vunpack.c.h.bf16 %v9475_v3  ;;  %v9480_v18 = vunpack.c.l.bf16 %v9826_v15  ;;  %v9481_v19 = vunpack.c.h.bf16 %v9826_v15 }
  0x5b   : > { %1114 = vst.msk [vmem:[#allocation2 + $0x277] sm:$0x1] %vm1092_vm1, %v14027_v0  ;;  %1115 = vst.msk [vmem:[#allocation2 + $0x2a7] sm:$0x1] %vm1092_vm1, %v14027_v0  ;;  %v1521_v5 = vld [vmem:[#allocation2 + $0x18] ss:$2 sm:$0xff] }
  0x5c   : > { %1116 = vst.msk [vmem:[#allocation2 + $0x2d7] sm:$0x1] %vm1092_vm1, %v14027_v0  ;;  %1117 = vst.msk [vmem:[#allocation2 + $0x307] sm:$0x1] %vm1092_vm1, %v14027_v0  ;;  %v1680_v6 = vld [vmem:[#allocation2 + $0x9] ss:$2 sm:$0xff]  ;;  %v1582_v11 = vpack.c.bf16 %v1521_v5, %v1519_v4 }
  0x5d   : > { %1118 = vst.msk [vmem:[#allocation2 + $0x337] sm:$0x1] %vm1092_vm1, %v14027_v0  ;;  %1119 = vst.msk [vmem:[#allocation2 + $0x367] sm:$0x1] %vm1092_vm1, %v14027_v0  ;;  %v1682_v12 = vld [vmem:[#allocation2 + $0x19] ss:$2 sm:$0xff] }
  0x5e   : > { %1120 = vst.msk [vmem:[#allocation2 + $0x397] sm:$0x1] %vm1092_vm1, %v14027_v0  ;;  %1121 = vst.msk [vmem:[#allocation2 + $0x3c7] sm:$0x1] %vm1092_vm1, %v14027_v0  ;;  %v9829_v16 = vld [vmem:[%s10732_s7 + $0x20] sm:$0xff]   ;;  %v1743_v17 = vpack.c.bf16 %v1682_v12, %v1680_v6  ;;  %v9830_v21 = vld [vmem:[%s10732_s7 + $0x28] sm:$0xff]   ;;  %1614 = vrot.lane.b32.xlu0 %v1582_v11, %s14009_s10 }
  0x5f   : > { %1122 = vst.msk [vmem:[#allocation2 + $0x3f7] sm:$0x1] %vm1092_vm1, %v14027_v0  ;;  %1123 = vst.msk [vmem:[#allocation2 + $0x427] sm:$0x1] %vm1092_vm1, %v14027_v0  ;;  %v9492_v20 = vunpack.c.l.bf16 %v9829_v16  ;;  %v9831_v22 = vld [vmem:[%s10732_s7 + $0x30] sm:$0xff]   ;;  %v9832_v23 = vld [vmem:[%s10732_s7 + $0x38] sm:$0xff]   ;;  %v9493_v24 = vunpack.c.h.bf16 %v9829_v16  ;;  %v9496_v25 = vunpack.c.l.bf16 %v9830_v21  ;;  %v9497_v26 = vunpack.c.h.bf16 %v9830_v21 }
  0x60   : > { %1124 = vst.msk [vmem:[#allocation2 + $0x457] sm:$0x1] %vm1092_vm1, %v14027_v0  ;;  %1125 = vst.msk [vmem:[#allocation2 + $0x487] sm:$0x1] %vm1092_vm1, %v14027_v0  ;;  %v9500_v27 = vunpack.c.l.bf16 %v9831_v22  ;;  %v9835_v28 = vld [vmem:[%s10732_s7 + $0x50] sm:$0xff]   ;;  %v9836_v29 = vld [vmem:[%s10732_s7 + $0x58] sm:$0xff]   ;;  %1775 = vrot.lane.b32.xlu1 %v1743_v17, %s14005_s18  ;;  %v9501_v31 = vunpack.c.h.bf16 %v9831_v22  ;;  %v9504_v32 = vunpack.c.l.bf16 %v9832_v23  ;;  %v9505_v33 = vunpack.c.h.bf16 %v9832_v23 }
  0x61   : > { %1126 = vst.msk [vmem:[#allocation2 + $0x4b7] sm:$0x1] %vm1092_vm1, %v14027_v0  ;;  %1127 = vst.msk [vmem:[#allocation2 + $0x4e7] sm:$0x1] %vm1092_vm1, %v14027_v0  ;;  %v9833_v30 = vld [vmem:[%s10732_s7 + $0x40] sm:$0xff]   ;;  %v9516_v34 = vunpack.c.l.bf16 %v9835_v28  ;;  %v9834_v35 = vld [vmem:[%s10732_s7 + $0x48] sm:$0xff]   ;;  %v9517_v38 = vunpack.c.h.bf16 %v9835_v28  ;;  %v9520_v39 = vunpack.c.l.bf16 %v9836_v29  ;;  %v9521_v40 = vunpack.c.h.bf16 %v9836_v29 }
  0x62   : > { %1128 = vst.msk [vmem:[#allocation2 + $0x517] sm:$0x1] %vm1092_vm1, %v14027_v0  ;;  %1129 = vst.msk [vmem:[#allocation2 + $0x547] sm:$0x1] %vm1092_vm1, %v14027_v0  ;;  %v9837_v36 = vld [vmem:[%s10732_s7 + $0x60] sm:$0xff]   ;;  %v9838_v37 = vld [vmem:[%s10732_s7 + $0x68] sm:$0xff]   ;;  %v9508_v41 = vunpack.c.l.bf16 %v9833_v30  ;;  %v9509_v45 = vunpack.c.h.bf16 %v9833_v30  ;;  %v9512_v46 = vunpack.c.l.bf16 %v9834_v35  ;;  %v9513_v47 = vunpack.c.h.bf16 %v9834_v35 }
  0x63   : > { %1130 = vst.msk [vmem:[#allocation2 + $0x577] sm:$0x1] %vm1092_vm1, %v14027_v0  ;;  %1131 = vst.msk [vmem:[#allocation2 + $0x5a7] sm:$0x1] %vm1092_vm1, %v14027_v0  ;;  %v9839_v42 = vld [vmem:[%s10732_s7 + $0x70] sm:$0xff]   ;;  %v9840_v43 = vld [vmem:[%s10732_s7 + $0x78] sm:$0xff]   ;;  %v9524_v48 = vunpack.c.l.bf16 %v9837_v36  ;;  %v9525_v51 = vunpack.c.h.bf16 %v9837_v36  ;;  %v9528_v52 = vunpack.c.l.bf16 %v9838_v37  ;;  %v9529_v53 = vunpack.c.h.bf16 %v9838_v37 }
  0x64   : > { %1132 = vst.msk [vmem:[#allocation2 + $0x5d7] sm:$0x1] %vm1092_vm1, %v14027_v0  ;;  %1133 = vst.msk [vmem:[#allocation2 + $0x607] sm:$0x1] %vm1092_vm1, %v14027_v0  ;;  %v9843_v44 = vld [vmem:[%s10732_s7 + $0x90] sm:$0xff]   ;;  %v9844_v49 = vld [vmem:[%s10732_s7 + $0x98] sm:$0xff]   ;;  %v9532_v54 = vunpack.c.l.bf16 %v9839_v42  ;;  %v9533_v56 = vunpack.c.h.bf16 %v9839_v42  ;;  %v9536_v57 = vunpack.c.l.bf16 %v9840_v43  ;;  %v9537_v58 = vunpack.c.h.bf16 %v9840_v43 }
  0x65   : > { %1298 = vst.msk [vmem:[#allocation2 + $0x68] sm:$0xff] %vm1086_vm0, %v9484_v7  ;;  %1299 = vst.msk [vmem:[#allocation2 + $0x70] sm:$0xff] %vm1086_vm0, %v9485_v8  ;;  %v9841_v50 = vld [vmem:[%s10732_s7 + $0x80] sm:$0xff]   ;;  %v9842_v55 = vld [vmem:[%s10732_s7 + $0x88] sm:$0xff]   ;;  %v9548_v59 = vunpack.c.l.bf16 %v9843_v44  ;;  %v9549_v3 = vunpack.c.h.bf16 %v9843_v44  ;;  %v9552_v4 = vunpack.c.l.bf16 %v9844_v49  ;;  %v9553_v5 = vunpack.c.h.bf16 %v9844_v49  ;;  %s14090_s5 = smov 12   ;;  %s14210_s4 = sld [smem:[#allocation29_spill]] }
  0x66   : > { %1300 = vst.msk [vmem:[#allocation2 + $0x78] sm:$0xff] %vm1086_vm0, %v9488_v9  ;;  %1301 = vst.msk [vmem:[#allocation2 + $0x80] sm:$0xff] %vm1086_vm0, %v9489_v10  ;;  %v9845_v60 = vld [vmem:[%s10732_s7 + $0xa0] sm:$0xff]   ;;  %v9846_v61 = vld [vmem:[%s10732_s7 + $0xa8] sm:$0xff]   ;;  %v9540_v6 = vunpack.c.l.bf16 %v9841_v50  ;;  %v9541_v10 = vunpack.c.h.bf16 %v9841_v50  ;;  %v9544_v11 = vunpack.c.l.bf16 %v9842_v55  ;;  %v9545_v12 = vunpack.c.h.bf16 %v9842_v55 }
  0x67   : > { %1294 = vst.msk [vmem:[#allocation2 + $0x38] sm:$0xff] %vm1086_vm0, %v9476_v13  ;;  %1295 = vst.msk [vmem:[#allocation2 + $0x40] sm:$0xff] %vm1086_vm0, %v9477_v14  ;;  %v9847_v62 = vld [vmem:[%s10732_s7 + $0xb0] sm:$0xff]   ;;  %v9848_v13 = vld [vmem:[%s10732_s7 + $0xb8] sm:$0xff]   ;;  %v9556_v16 = vunpack.c.l.bf16 %v9845_v60  ;;  %v9557_v17 = vunpack.c.h.bf16 %v9845_v60  ;;  %v9561_v23 = vunpack.c.h.bf16 %v9846_v61  ;;  %vm3423_vm13 = vcmask 1043456  }
  0x68   : > { %1296 = vst.msk [vmem:[#allocation2 + $0x48] sm:$0xff] %vm1086_vm0, %v9480_v18  ;;  %1297 = vst.msk [vmem:[#allocation2 + $0x50] sm:$0xff] %vm1086_vm0, %v9481_v19  ;;  %v9560_v18 = vunpack.c.l.bf16 %v9846_v61  ;;  %v9851_v19 = vld [vmem:[%s10732_s7 + $0xd0] sm:$0xff]   ;;  %v9565_v29 = vunpack.c.h.bf16 %v9847_v62  ;;  %v9568_v30 = vunpack.c.l.bf16 %v9848_v13  ;;  %vm3293_vm14 = vcmask 64512  }
  0x69   : > { %1302 = vst.msk [vmem:[#allocation2 + $0x98] sm:$0xff] %vm1086_vm0, %v9492_v20  ;;  %1303 = vst.msk [vmem:[#allocation2 + $0xa0] sm:$0xff] %vm1086_vm0, %v9493_v24  ;;  %v9564_v24 = vunpack.c.l.bf16 %v9847_v62  ;;  %v9581_v35 = vunpack.c.h.bf16 %v9851_v19  ;;  %vm3698_vm15 = vcmask 60416   ;;  %vm3704_vm1 = vsmask.f32 256 }
  0x6a   : > { %1304 = vst.msk [vmem:[#allocation2 + $0xa8] sm:$0xff] %vm1086_vm0, %v9496_v25  ;;  %1305 = vst.msk [vmem:[#allocation2 + $0xb0] sm:$0xff] %vm1086_vm0, %v9497_v26  ;;  %v9852_v25 = vld [vmem:[%s10732_s7 + $0xd8] sm:$0xff]  }
  0x6b   : > { %1306 = vst.msk [vmem:[#allocation2 + $0xc8] sm:$0xff] %vm1086_vm0, %v9500_v27  ;;  %1307 = vst.msk [vmem:[#allocation2 + $0xd0] sm:$0xff] %vm1086_vm0, %v9501_v31  ;;  %v9569_v31 = vunpack.c.h.bf16 %v9848_v13  ;;  %v9584_v36 = vunpack.c.l.bf16 %v9852_v25  ;;  %v9585_v37 = vunpack.c.h.bf16 %v9852_v25  ;;  %v9853_v25 = vld [vmem:[%s10732_s7 + $0xe0] sm:$0xff]  }
  0x6c   : > { %1308 = vst.msk [vmem:[#allocation2 + $0xd8] sm:$0xff] %vm1086_vm0, %v9504_v32  ;;  %1309 = vst.msk [vmem:[#allocation2 + $0xe0] sm:$0xff] %vm1086_vm0, %v9505_v33  ;;  %v1523_v63 = vld [vmem:[#allocation2 + $0x68] ss:$2 sm:$0xff]  ;;  %v1684_v2 = vld [vmem:[#allocation2 + $0x69] ss:$2 sm:$0xff] }
  0x6d   : > { %1314 = vst.msk [vmem:[#allocation2 + $0x128] sm:$0xff] %vm1086_vm0, %v9516_v34  ;;  %1315 = vst.msk [vmem:[#allocation2 + $0x130] sm:$0xff] %vm1086_vm0, %v9517_v38  ;;  %v1525_v1 = vld [vmem:[#allocation2 + $0x78] ss:$2 sm:$0xff]  ;;  %v1686_v8 = vld [vmem:[#allocation2 + $0x79] ss:$2 sm:$0xff]  ;;  %v9580_v34 = vunpack.c.l.bf16 %v9851_v19 }
  0x6e   : > { %1316 = vst.msk [vmem:[#allocation2 + $0x138] sm:$0xff] %vm1086_vm0, %v9520_v39  ;;  %1317 = vst.msk [vmem:[#allocation2 + $0x140] sm:$0xff] %vm1086_vm0, %v9521_v40  ;;  %v1583_v7 = vpack.c.bf16 %v1525_v1, %v1523_v63  ;;  %v1841_v9 = vld [vmem:[#allocation2 + $0x37] ss:$2 sm:$0xff]  ;;  %v1744_v14 = vpack.c.bf16 %v1686_v8, %v1684_v2  ;;  %v2002_v27 = vld [vmem:[#allocation2 + $0x38] ss:$2 sm:$0xff] }
  0x6f   : > { %1310 = vst.msk [vmem:[#allocation2 + $0xf8] sm:$0xff] %vm1086_vm0, %v9508_v41  ;;  %1311 = vst.msk [vmem:[#allocation2 + $0x100] sm:$0xff] %vm1086_vm0, %v9509_v45  ;;  %v1843_v15 = vld [vmem:[#allocation2 + $0x47] ss:$2 sm:$0xff]  ;;  %v2004_v28 = vld [vmem:[#allocation2 + $0x48] ss:$2 sm:$0xff] }
  0x70   : > { %1312 = vst.msk [vmem:[#allocation2 + $0x108] sm:$0xff] %vm1086_vm0, %v9512_v46  ;;  %1313 = vst.msk [vmem:[#allocation2 + $0x110] sm:$0xff] %vm1086_vm0, %v9513_v47  ;;  %1616 = vrot.lane.b32.xlu0 %v1583_v7, %s14009_s10  ;;  %v1904_v20 = vpack.c.bf16 %v1843_v15, %v1841_v9  ;;  %v1845_v21 = vld [vmem:[#allocation2 + $0x97] ss:$2 sm:$0xff]  ;;  %1777 = vrot.lane.b32.xlu1 %v1744_v14, %s14005_s18  ;;  %v2006_v32 = vld [vmem:[#allocation2 + $0x98] ss:$2 sm:$0xff]  ;;  %v2065_v38 = vpack.c.bf16 %v2004_v28, %v2002_v27 }
  0x71   : > { %1318 = vst.msk [vmem:[#allocation2 + $0x158] sm:$0xff] %vm1086_vm0, %v9524_v48  ;;  %1319 = vst.msk [vmem:[#allocation2 + $0x160] sm:$0xff] %vm1086_vm0, %v9525_v51  ;;  %v1847_v22 = vld [vmem:[#allocation2 + $0xa7] ss:$2 sm:$0xff]  ;;  %v2008_v33 = vld [vmem:[#allocation2 + $0xa8] ss:$2 sm:$0xff] }
  0x72   : > { %1320 = vst.msk [vmem:[#allocation2 + $0x168] sm:$0xff] %vm1086_vm0, %v9528_v52  ;;  %1321 = vst.msk [vmem:[#allocation2 + $0x170] sm:$0xff] %vm1086_vm0, %v9529_v53  ;;  %v1905_v26 = vpack.c.bf16 %v1847_v22, %v1845_v21  ;;  %v2066_v39 = vpack.c.bf16 %v2008_v33, %v2006_v32  ;;  %v2163_v40 = vld [vmem:[#allocation2 + $0x39] ss:$2 sm:$0xff]  ;;  %v2165_v41 = vld [vmem:[#allocation2 + $0x49] ss:$2 sm:$0xff]  ;;  %v9589_v32 = vunpack.c.h.bf16 %v9853_v25 }
  0x73   : > { %1322 = vst.msk [vmem:[#allocation2 + $0x188] sm:$0xff] %vm1086_vm0, %v9532_v54  ;;  %1323 = vst.msk [vmem:[#allocation2 + $0x190] sm:$0xff] %vm1086_vm0, %v9533_v56  ;;  %v2167_v42 = vld [vmem:[#allocation2 + $0x99] ss:$2 sm:$0xff]  ;;  %v2169_v43 = vld [vmem:[#allocation2 + $0xa9] ss:$2 sm:$0xff]  ;;  %v2226_v44 = vpack.c.bf16 %v2165_v41, %v2163_v40 }
  0x74   : > { %1324 = vst.msk [vmem:[#allocation2 + $0x198] sm:$0xff] %vm1086_vm0, %v9536_v57  ;;  %1325 = vst.msk [vmem:[#allocation2 + $0x1a0] sm:$0xff] %vm1086_vm0, %v9537_v58  ;;  %1936 = vrot.lane.b32.xlu0 %v1904_v20, %s14007_s1  ;;  %1938 = vrot.lane.b32.xlu1 %v1905_v26, %s14007_s1  ;;  %s14011_s18 = smov 12   ;;  %v2227_v45 = vpack.c.bf16 %v2169_v43, %v2167_v42  ;;  %v2325_v46 = vld [vmem:[#allocation2 + $0x67] ss:$2 sm:$0xff]  ;;  %s14013_s1 = smov 15  }
  0x75   : > { %1330 = vst.msk [vmem:[#allocation2 + $0x1e8] sm:$0xff] %vm1086_vm0, %v9548_v59  ;;  %1331 = vst.msk [vmem:[#allocation2 + $0x1f0] sm:$0xff] %vm1086_vm0, %v9549_v3  ;;  %v2327_v47 = vld [vmem:[#allocation2 + $0x77] ss:$2 sm:$0xff]  ;;  %v2329_v48 = vld [vmem:[#allocation2 + $0xc7] ss:$2 sm:$0xff] }
  0x76   : > { %1332 = vst.msk [vmem:[#allocation2 + $0x1f8] sm:$0xff] %vm1086_vm0, %v9552_v4  ;;  %1333 = vst.msk [vmem:[#allocation2 + $0x200] sm:$0xff] %vm1086_vm0, %v9553_v5  ;;  %v2331_v49 = vld [vmem:[#allocation2 + $0xd7] ss:$2 sm:$0xff]  ;;  %v2388_v50 = vpack.c.bf16 %v2327_v47, %v2325_v46  ;;  %v2486_v52 = vld [vmem:[#allocation2 + $0x68] ss:$2 sm:$0xff] }
  0x77   : > { %1326 = vst.msk [vmem:[#allocation2 + $0x1b8] sm:$0xff] %vm1086_vm0, %v9540_v6  ;;  %1327 = vst.msk [vmem:[#allocation2 + $0x1c0] sm:$0xff] %vm1086_vm0, %v9541_v10  ;;  %v2389_v51 = vpack.c.bf16 %v2331_v49, %v2329_v48  ;;  %v2488_v53 = vld [vmem:[#allocation2 + $0x78] ss:$2 sm:$0xff]  ;;  %v2490_v54 = vld [vmem:[#allocation2 + $0xc8] ss:$2 sm:$0xff] }
  0x78   : > { %1328 = vst.msk [vmem:[#allocation2 + $0x1c8] sm:$0xff] %vm1086_vm0, %v9544_v11  ;;  %1329 = vst.msk [vmem:[#allocation2 + $0x1d0] sm:$0xff] %vm1086_vm0, %v9545_v12  ;;  %2097 = vrot.lane.b32.xlu0 %v2065_v38, %s14011_s18  ;;  %2099 = vrot.lane.b32.xlu1 %v2066_v39, %s14011_s18  ;;  %v2492_v55 = vld [vmem:[#allocation2 + $0xd8] ss:$2 sm:$0xff]  ;;  %s14015_s10 = smov 18   ;;  %v2549_v56 = vpack.c.bf16 %v2488_v53, %v2486_v52  ;;  %s14019_s18 = smov 21  }
  0x79   : > { %1334 = vst.msk [vmem:[#allocation2 + $0x218] sm:$0xff] %vm1086_vm0, %v9556_v16  ;;  %1335 = vst.msk [vmem:[#allocation2 + $0x220] sm:$0xff] %vm1086_vm0, %v9557_v17  ;;  %v2550_v57 = vpack.c.bf16 %v2492_v55, %v2490_v54  ;;  %v2647_v58 = vld [vmem:[#allocation2 + $0x69] ss:$2 sm:$0xff]  ;;  %v2649_v59 = vld [vmem:[#allocation2 + $0x79] ss:$2 sm:$0xff] }
  0x7a   : > { %1336 = vst.msk [vmem:[#allocation2 + $0x228] sm:$0xff] %vm1086_vm0, %v9560_v18  ;;  %1337 = vst.msk [vmem:[#allocation2 + $0x230] sm:$0xff] %vm1086_vm0, %v9561_v23  ;;  %v1527_v60 = vld [vmem:[#allocation2 + $0xc8] ss:$2 sm:$0xff]  ;;  %v1529_v61 = vld [vmem:[#allocation2 + $0xd8] ss:$2 sm:$0xff]  ;;  %v2710_v62 = vpack.c.bf16 %v2649_v59, %v2647_v58 }
  0x7b   : > { %1338 = vst.msk [vmem:[#allocation2 + $0x248] sm:$0xff] %vm1086_vm0, %v9564_v24  ;;  %1339 = vst.msk [vmem:[#allocation2 + $0x250] sm:$0xff] %vm1086_vm0, %v9565_v29  ;;  %v1584_v63 = vpack.c.bf16 %v1529_v61, %v1527_v60  ;;  %v2651_v1 = vld [vmem:[#allocation2 + $0xc9] ss:$2 sm:$0xff]  ;;  %v2653_v2 = vld [vmem:[#allocation2 + $0xd9] ss:$2 sm:$0xff] }
  0x7c   : > { %1340 = vst.msk [vmem:[#allocation2 + $0x258] sm:$0xff] %vm1086_vm0, %v9568_v30  ;;  %1341 = vst.msk [vmem:[#allocation2 + $0x260] sm:$0xff] %vm1086_vm0, %v9569_v31  ;;  %2258 = vrot.lane.b32.xlu0 %v2226_v44, %s14013_s1  ;;  %2260 = vrot.lane.b32.xlu1 %v2227_v45, %s14013_s1  ;;  %v1531_v3 = vld [vmem:[#allocation2 + $0x128] ss:$2 sm:$0xff]  ;;  %v1533_v4 = vld [vmem:[#allocation2 + $0x138] ss:$2 sm:$0xff]  ;;  %v2711_v5 = vpack.c.bf16 %v2653_v2, %v2651_v1  ;;  %v9588_v31 = vunpack.c.l.bf16 %v9853_v25 }
  0x7d   : > { %1346 = vst.msk [vmem:[#allocation2 + $0x2a8] sm:$0xff] %vm1086_vm0, %v9580_v34  ;;  %1347 = vst.msk [vmem:[#allocation2 + $0x2b0] sm:$0xff] %vm1086_vm0, %v9581_v35  ;;  %s14017_s1 = smov 24   ;;  %v1585_v6 = vpack.c.bf16 %v1533_v4, %v1531_v3  ;;  %v1688_v7 = vld [vmem:[#allocation2 + $0xc9] ss:$2 sm:$0xff]  ;;  %v9849_v17 = vld [vmem:[%s10732_s7 + $0xc0] sm:$0xff]  }
  0x7e   : > { %1348 = vst.msk [vmem:[#allocation2 + $0x2b8] sm:$0xff] %vm1086_vm0, %v9584_v36  ;;  %1349 = vst.msk [vmem:[#allocation2 + $0x2c0] sm:$0xff] %vm1086_vm0, %v9585_v37  ;;  %v1690_v8 = vld [vmem:[#allocation2 + $0xd9] ss:$2 sm:$0xff]  ;;  %v1692_v9 = vld [vmem:[#allocation2 + $0x129] ss:$2 sm:$0xff]  ;;  %v9572_v22 = vunpack.c.l.bf16 %v9849_v17  ;;  %v9573_v23 = vunpack.c.h.bf16 %v9849_v17 }
  0x7f   : > { %v1694_v10 = vld [vmem:[#allocation2 + $0x139] ss:$2 sm:$0xff]  ;;  %v1745_v11 = vpack.c.bf16 %v1690_v8, %v1688_v7  ;;  %v9850_v18 = vld [vmem:[%s10732_s7 + $0xc8] sm:$0xff]   ;;  %v10832_v20 = vld [vmem:[#allocation2 + $0xf8] ss:$2 sm:$0xff]  ;;  %1350 = vst.msk [vmem:[#allocation2 + $0x2d8] sm:$0xff] %vm1086_vm0, %v9588_v31 }
  0x80   : > { %2420 = vrot.lane.b32.xlu0 %v2388_v50, %s14015_s10  ;;  %2422 = vrot.lane.b32.xlu1 %v2389_v51, %s14015_s10  ;;  %s14087_s10 = smov 3   ;;  %v1849_v12 = vld [vmem:[#allocation2 + $0xf7] ss:$2 sm:$0xff]  ;;  %v1851_v13 = vld [vmem:[#allocation2 + $0x107] ss:$2 sm:$0xff]  ;;  %v1746_v14 = vpack.c.bf16 %v1694_v10, %v1692_v9  ;;  %v9576_v24 = vunpack.c.l.bf16 %v9850_v18  ;;  %v9577_v30 = vunpack.c.h.bf16 %v9850_v18  ;;  %1342 = vst.msk [vmem:[#allocation2 + $0x278] sm:$0xff] %vm1086_vm0, %v9572_v22 }
  0x81   : > { %v1853_v15 = vld [vmem:[#allocation2 + $0x157] ss:$2 sm:$0xff]  ;;  %v1855_v16 = vld [vmem:[#allocation2 + $0x167] ss:$2 sm:$0xff]  ;;  %v1906_v19 = vpack.c.bf16 %v1851_v13, %v1849_v12  ;;  %v10834_v21 = vld [vmem:[#allocation2 + $0x108] ss:$2 sm:$0xff] }
  0x82   : > { %v9854_v26 = vld [vmem:[%s10732_s7 + $0xe8] sm:$0xff]   ;;  %v1425_v27 = vld [vmem:[#allocation2 + $0x17] ss:$2 sm:$0xff]  ;;  %v10839_v28 = vld [vmem:[#allocation2 + $0x158] ss:$2 sm:$0xff]  ;;  %v1907_v35 = vpack.c.bf16 %v1855_v16, %v1853_v15  ;;  %1343 = vst.msk [vmem:[#allocation2 + $0x280] sm:$0xff] %vm1086_vm0, %v9573_v23  ;;  %v2067_v50 = vpack.c.bf16 %v10834_v21, %v10832_v20 }
  0x83   : > { %v10841_v29 = vld [vmem:[#allocation2 + $0x168] ss:$2 sm:$0xff]  ;;  %v9592_v33 = vunpack.c.l.bf16 %v9854_v26  ;;  %v1423_v34 = vld [vmem:[#allocation2 + $0x7] ss:$2 sm:$0xff]  ;;  %1344 = vst.msk [vmem:[#allocation2 + $0x288] sm:$0xff] %vm1086_vm0, %v9576_v24  ;;  %v9593_v36 = vunpack.c.h.bf16 %v9854_v26  ;;  %v9856_v39 = vld [vmem:[%s10732_s7 + $0xf8] sm:$0xff]  }
  0x84   : > { %2581 = vrot.lane.b32.xlu0 %v2549_v56, %s14019_s18  ;;  %2583 = vrot.lane.b32.xlu1 %v2550_v57, %s14019_s18  ;;  %v1486_v37 = vpack.c.bf16 %v1425_v27, %v1423_v34  ;;  %v9855_v38 = vld [vmem:[%s10732_s7 + $0xf0] sm:$0xff]   ;;  %1345 = vst.msk [vmem:[#allocation2 + $0x290] sm:$0xff] %vm1086_vm0, %v9577_v30  ;;  %1351 = vst.msk [vmem:[#allocation2 + $0x2e0] sm:$0xff] %vm1086_vm0, %v9589_v32  ;;  %v9600_v43 = vunpack.c.l.bf16 %v9856_v39  ;;  %v9601_v44 = vunpack.c.h.bf16 %v9856_v39  ;;  %v10853_v46 = vld [vmem:[#allocation2 + $0xf9] ss:$2 sm:$0xff]  ;;  %s14089_s18 = smov 9  }
  0x85   : > { %v1429_v40 = vld [vmem:[#allocation2 + $0x77] ss:$2 sm:$0xff]  ;;  %1352 = vst.msk [vmem:[#allocation2 + $0x2e8] sm:$0xff] %vm1086_vm0, %v9592_v33  ;;  %v9596_v41 = vunpack.c.l.bf16 %v9855_v38  ;;  %v9597_v42 = vunpack.c.h.bf16 %v9855_v38  ;;  %v1427_v45 = vld [vmem:[#allocation2 + $0x67] ss:$2 sm:$0xff]  ;;  %1353 = vst.msk [vmem:[#allocation2 + $0x2f0] sm:$0xff] %vm1086_vm0, %v9593_v36  ;;  %v2068_v51 = vpack.c.bf16 %v10841_v29, %v10839_v28 }
  0x86   : > { %v10855_v47 = vld [vmem:[#allocation2 + $0x109] ss:$2 sm:$0xff]  ;;  %1502 = vst.msk [vmem:[#allocation3] sm:$0xff] %vm1086_vm0, %v1486_v37  ;;  %v1487_v48 = vpack.c.bf16 %v1429_v40, %v1427_v45  ;;  %v10865_v52 = vld [vmem:[#allocation2 + $0x159] ss:$2 sm:$0xff]  ;;  %1356 = vst.msk [vmem:[#allocation2 + $0x318] sm:$0xff] %vm1086_vm0, %v9600_v43 }
  0x87   : > { %v9859_v49 = vld [vmem:[%s10732_s7 + $0x110] sm:$0xff]   ;;  %1354 = vst.msk [vmem:[#allocation2 + $0x308] sm:$0xff] %vm1086_vm0, %v9596_v41  ;;  %1355 = vst.msk [vmem:[#allocation2 + $0x310] sm:$0xff] %vm1086_vm0, %v9597_v42  ;;  %v9860_v56 = vld [vmem:[%s10732_s7 + $0x118] sm:$0xff]   ;;  %v2228_v10 = vpack.c.bf16 %v10855_v47, %v10853_v46  ;;  %v10435_v47 = vmov 65535  }
  0x88   : > { %2742 = vrot.lane.b32.xlu0 %v2710_v62, %s14017_s1  ;;  %1618 = vrot.lane.b32.xlu1 %v1584_v63, %s14087_s10  ;;  %v10867_v53 = vld [vmem:[#allocation2 + $0x169] ss:$2 sm:$0xff]  ;;  %1357 = vst.msk [vmem:[#allocation2 + $0x320] sm:$0xff] %vm1086_vm0, %v9601_v44  ;;  %v9612_v54 = vunpack.c.l.bf16 %v9859_v49  ;;  %v9613_v55 = vunpack.c.h.bf16 %v9859_v49  ;;  %v9857_v57 = vld [vmem:[%s10732_s7 + $0x100] sm:$0xff]   ;;  %1503 = vst.msk [vmem:[#allocation3 + $0x8] sm:$0xff] %vm1086_vm0, %v1487_v48  ;;  %v9616_v59 = vunpack.c.l.bf16 %v9860_v56  ;;  %v9617_v60 = vunpack.c.h.bf16 %v9860_v56 }
  0x89   : > { %v9858_v58 = vld [vmem:[%s10732_s7 + $0x108] sm:$0xff]   ;;  %v9604_v61 = vunpack.c.l.bf16 %v9857_v57  ;;  %v9605_v62 = vunpack.c.h.bf16 %v9857_v57  ;;  %v9861_v63 = vld [vmem:[%s10732_s7 + $0x120] sm:$0xff]   ;;  %v9863_v15 = vld [vmem:[%s10732_s7 + $0x130] sm:$0xff]   ;;  %v2229_v21 = vpack.c.bf16 %v10867_v53, %v10865_v52  ;;  %v2889_v48 = vsel %vm2887_vm2, 4294967295, %v10435_v47 }
  0x8a   : > { %v9862_v1 = vld [vmem:[%s10732_s7 + $0x128] sm:$0xff]   ;;  %1362 = vst.msk [vmem:[#allocation2 + $0x368] sm:$0xff] %vm1086_vm0, %v9612_v54  ;;  %1363 = vst.msk [vmem:[#allocation2 + $0x370] sm:$0xff] %vm1086_vm0, %v9613_v55  ;;  %v9608_v3 = vunpack.c.l.bf16 %v9858_v58  ;;  %v9609_v4 = vunpack.c.h.bf16 %v9858_v58  ;;  %v1433_v7 = vld [vmem:[#allocation2 + $0xd7] ss:$2 sm:$0xff]  ;;  %v9628_v18 = vunpack.c.l.bf16 %v9863_v15  ;;  %v2890_v52 = vsel %vm2888_vm3, %v2889_v48, 0 }
  0x8b   : > { %v1431_v2 = vld [vmem:[#allocation2 + $0xc7] ss:$2 sm:$0xff]  ;;  %1364 = vst.msk [vmem:[#allocation2 + $0x378] sm:$0xff] %vm1086_vm0, %v9616_v59  ;;  %1365 = vst.msk [vmem:[#allocation2 + $0x380] sm:$0xff] %vm1086_vm0, %v9617_v60  ;;  %v9625_v12 = vunpack.c.h.bf16 %v9862_v1  ;;  %v9864_v16 = vld [vmem:[%s10732_s7 + $0x138] sm:$0xff]  }
  0x8c   : > { %2744 = vrot.lane.b32.xlu0 %v2711_v5, %s14017_s1  ;;  %1620 = vrot.lane.b32.xlu1 %v1585_v6, %s14087_s10  ;;  %s14088_s1 = smov 6   ;;  %v9620_v5 = vunpack.c.l.bf16 %v9861_v63  ;;  %v9621_v6 = vunpack.c.h.bf16 %v9861_v63  ;;  %v10268_v8 = vld [vmem:[%s10453_s9] sm:$0xff]   ;;  %1358 = vst.msk [vmem:[#allocation2 + $0x338] sm:$0xff] %vm1086_vm0, %v9604_v61  ;;  %1359 = vst.msk [vmem:[#allocation2 + $0x340] sm:$0xff] %vm1086_vm0, %v9605_v62  ;;  %v1488_v13 = vpack.c.bf16 %v1433_v7, %v1431_v2  ;;  %v9632_v20 = vunpack.c.l.bf16 %v9864_v16  ;;  %v2494_v29 = vld [vmem:[#allocation2 + $0x128] ss:$2 sm:$0xff] }
  0x8d   : > { %v1435_v9 = vld [vmem:[#allocation2 + $0x127] ss:$2 sm:$0xff]  ;;  %1360 = vst.msk [vmem:[#allocation2 + $0x348] sm:$0xff] %vm1086_vm0, %v9608_v3  ;;  %1361 = vst.msk [vmem:[#allocation2 + $0x350] sm:$0xff] %vm1086_vm0, %v9609_v4  ;;  %10000 = vmatprep.subr.bf16.mxu0 %v10268_v8  ;;  %v2335_v23 = vld [vmem:[#allocation2 + $0x137] ss:$2 sm:$0xff]  ;;  %v9633_v24 = vunpack.c.h.bf16 %v9864_v16 }
  0x8e   : > { %1366 = vst.msk [vmem:[#allocation2 + $0x398] sm:$0xff] %vm1086_vm0, %v9620_v5  ;;  %1367 = vst.msk [vmem:[#allocation2 + $0x3a0] sm:$0xff] %vm1086_vm0, %v9621_v6  ;;  %v2333_v22 = vld [vmem:[#allocation2 + $0x127] ss:$2 sm:$0xff]  ;;  %10001 = vmatpush3.bf16.msra.mxu0 %v10268_v8  ;;  %v2339_v26 = vld [vmem:[#allocation2 + $0x197] ss:$2 sm:$0xff] }
  0x8f   : > { %1369 = vst.msk [vmem:[#allocation2 + $0x3b0] sm:$0xff] %vm1086_vm0, %v9625_v12  ;;  %1504 = vst.msk [vmem:[#allocation3 + $0x10] sm:$0xff] %vm1086_vm0, %v1488_v13  ;;  %v2337_v25 = vld [vmem:[#allocation2 + $0x187] ss:$2 sm:$0xff]  ;;  %v2390_v27 = vpack.c.bf16 %v2335_v23, %v2333_v22  ;;  %v2496_v30 = vld [vmem:[#allocation2 + $0x138] ss:$2 sm:$0xff] }
  0x90   : > { %1779 = vrot.lane.b32.xlu0 %v1745_v11, %s14088_s1  ;;  %1781 = vrot.lane.b32.xlu1 %v1746_v14, %s14088_s1  ;;  %v9624_v11 = vunpack.c.l.bf16 %v9862_v1  ;;  %v1437_v14 = vld [vmem:[#allocation2 + $0x137] ss:$2 sm:$0xff]  ;;  %1370 = vst.msk [vmem:[#allocation2 + $0x3c8] sm:$0xff] %vm1086_vm0, %v9628_v18  ;;  %1372 = vst.msk [vmem:[#allocation2 + $0x3d8] sm:$0xff] %vm1086_vm0, %v9632_v20  ;;  %v2391_v28 = vpack.c.bf16 %v2339_v26, %v2337_v25  ;;  %v2498_v31 = vld [vmem:[#allocation2 + $0x188] ss:$2 sm:$0xff]  ;;  %v2551_v33 = vpack.c.bf16 %v2496_v30, %v2494_v29 }
  0x91   : > { %v1489_v17 = vpack.c.bf16 %v1437_v14, %v1435_v9  ;;  %1373 = vst.msk [vmem:[#allocation2 + $0x3e0] sm:$0xff] %vm1086_vm0, %v9633_v24  ;;  %v2500_v32 = vld [vmem:[#allocation2 + $0x198] ss:$2 sm:$0xff]  ;;  %v2657_v36 = vld [vmem:[#allocation2 + $0x139] ss:$2 sm:$0xff]  ;;  %v9867_v53 = vld [vmem:[%s10732_s7 + $0x150] sm:$0xff]  }
  0x92   : > { %1368 = vst.msk [vmem:[#allocation2 + $0x3a8] sm:$0xff] %vm1086_vm0, %v9624_v11  ;;  %v2552_v34 = vpack.c.bf16 %v2500_v32, %v2498_v31  ;;  %v1535_v37 = vld [vmem:[#allocation2 + $0x188] ss:$2 sm:$0xff]  ;;  %v1537_v38 = vld [vmem:[#allocation2 + $0x198] ss:$2 sm:$0xff]  ;;  %v9644_v59 = vunpack.c.l.bf16 %v9867_v53  ;;  %v9645_v60 = vunpack.c.h.bf16 %v9867_v53 }
  0x93   : > { %1505 = vst.msk [vmem:[#allocation3 + $0x18] sm:$0xff] %vm1086_vm0, %v1489_v17  ;;  %v1586_v40 = vpack.c.bf16 %v1537_v38, %v1535_v37  ;;  %v2659_v41 = vld [vmem:[#allocation2 + $0x189] ss:$2 sm:$0xff]  ;;  %v2661_v42 = vld [vmem:[#allocation2 + $0x199] ss:$2 sm:$0xff] }
  0x94   : > { %1940 = vrot.lane.b32.xlu0 %v1906_v19, %s14089_s18  ;;  %1942 = vrot.lane.b32.xlu1 %v1907_v35, %s14089_s18  ;;  %v9629_v19 = vunpack.c.h.bf16 %v9863_v15  ;;  %v2655_v35 = vld [vmem:[#allocation2 + $0x129] ss:$2 sm:$0xff]  ;;  %v1539_v43 = vld [vmem:[#allocation2 + $0x1e8] ss:$2 sm:$0xff]  ;;  %v1541_v44 = vld [vmem:[#allocation2 + $0x1f8] ss:$2 sm:$0xff]  ;;  %v2713_v49 = vpack.c.bf16 %v2661_v42, %v2659_v41 }
  0x95   : > { %v2712_v39 = vpack.c.bf16 %v2657_v36, %v2655_v35  ;;  %v10269_v45 = vld [vmem:[%s10453_s9 + $0x8] sm:$0x3f]   ;;  %v1587_v54 = vpack.c.bf16 %v1541_v44, %v1539_v43  ;;  %v10924_v55 = vld [vmem:[#allocation2 + $0x1f9] ss:$2 sm:$0xff]  ;;  %1378 = vst.msk [vmem:[#allocation2 + $0x428] sm:$0xff] %vm1086_vm0, %v9644_v59  ;;  %1379 = vst.msk [vmem:[#allocation2 + $0x430] sm:$0xff] %vm1086_vm0, %v9645_v60 }
  0x96   : > { %1371 = vst.msk [vmem:[#allocation2 + $0x3d0] sm:$0xff] %vm1086_vm0, %v9629_v19  ;;  %v10914_v46 = vld [vmem:[#allocation2 + $0x189] ss:$2 sm:$0xff]  ;;  %v2892_v58 = vand.u32 %v10269_v45, %v2890_v52  ;;  %v9868_v61 = vld [vmem:[%s10732_s7 + $0x158] sm:$0xff]   ;;  %v9865_v4 = vld [vmem:[%s10732_s7 + $0x140] sm:$0xff]  }
  0x97   : > { %v10926_v56 = vld [vmem:[#allocation2 + $0x1b7] ss:$2 sm:$0xff]  ;;  %v10928_v57 = vld [vmem:[#allocation2 + $0x1c7] ss:$2 sm:$0xff]  ;;  %v9648_v2 = vunpack.c.l.bf16 %v9868_v61  ;;  %v9649_v3 = vunpack.c.h.bf16 %v9868_v61  ;;  %v9636_v7 = vunpack.c.l.bf16 %v9865_v4  ;;  %v9637_v8 = vunpack.c.h.bf16 %v9865_v4  ;;  %v2018_v26 = vld [vmem:[#allocation2 + $0x1b8] ss:$2 sm:$0xff] }
  0x98   : > { %2101 = vrot.lane.b32.xlu0 %v2067_v50, %s14090_s5  ;;  %2103 = vrot.lane.b32.xlu1 %v2068_v51, %s14090_s5  ;;  %v10917_v50 = vld [vmem:[#allocation2 + $0x199] ss:$2 sm:$0xff]  ;;  %v10919_v51 = vld [vmem:[#allocation2 + $0x1e9] ss:$2 sm:$0xff]  ;;  %v1908_v6 = vpack.c.bf16 %v10928_v57, %v10926_v56  ;;  %v2024_v47 = vld [vmem:[#allocation2 + $0x228] ss:$2 sm:$0xff] }
  0x99   : > { %v1747_v62 = vpack.c.bf16 %v10917_v50, %v10914_v46  ;;  %v10933_v63 = vld [vmem:[#allocation2 + $0x217] ss:$2 sm:$0xff]  ;;  %v10935_v1 = vld [vmem:[#allocation2 + $0x227] ss:$2 sm:$0xff]  ;;  %10002 = vmatprep.subr.bf16.mxu0 %v2892_v58  ;;  %v1748_v5 = vpack.c.bf16 %v10924_v55, %v10919_v51  ;;  %1380 = vst.msk [vmem:[#allocation2 + $0x438] sm:$0xff] %vm1086_vm0, %v9648_v2  ;;  %1381 = vst.msk [vmem:[#allocation2 + $0x440] sm:$0xff] %vm1086_vm0, %v9649_v3 }
  0x9a   : > { %10003 = vmatpush3.bf16.msra.mxu0 %v2892_v58  ;;  %v9866_v9 = vld [vmem:[%s10732_s7 + $0x148] sm:$0xff]   ;;  %v1441_v17 = vld [vmem:[#allocation2 + $0x197] ss:$2 sm:$0xff]  ;;  %v1909_v19 = vpack.c.bf16 %v10935_v1, %v10933_v63  ;;  %1374 = vst.msk [vmem:[#allocation2 + $0x3f8] sm:$0xff] %vm1086_vm0, %v9636_v7  ;;  %1375 = vst.msk [vmem:[#allocation2 + $0x400] sm:$0xff] %vm1086_vm0, %v9637_v8 }
  0x9b   : > { %v9870_v11 = vld [vmem:[%s10732_s7 + $0x168] sm:$0xff]   ;;  %v9640_v12 = vunpack.c.l.bf16 %v9866_v9  ;;  %v9641_v13 = vunpack.c.h.bf16 %v9866_v9  ;;  %v1445_v23 = vld [vmem:[#allocation2 + $0x1f7] ss:$2 sm:$0xff]  ;;  %v2022_v46 = vld [vmem:[#allocation2 + $0x218] ss:$2 sm:$0xff] }
  0x9c   : > { %2262 = vrot.lane.b32.xlu0 %v2228_v10, %s14091_s11  ;;  %2264 = vrot.lane.b32.xlu1 %v2229_v21, %s14091_s11  ;;  %v9869_v10 = vld [vmem:[%s10732_s7 + $0x160] sm:$0xff]   ;;  %v9656_v20 = vunpack.c.l.bf16 %v9870_v11  ;;  %v9657_v21 = vunpack.c.h.bf16 %v9870_v11  ;;  %v9871_v24 = vld [vmem:[%s10732_s7 + $0x170] sm:$0xff]  }
  0x9d   : > { %v9652_v14 = vunpack.c.l.bf16 %v9869_v10  ;;  %v9653_v15 = vunpack.c.h.bf16 %v9869_v10  ;;  %v1439_v16 = vld [vmem:[#allocation2 + $0x187] ss:$2 sm:$0xff]  ;;  %v9872_v25 = vld [vmem:[%s10732_s7 + $0x178] sm:$0xff]   ;;  %1376 = vst.msk [vmem:[#allocation2 + $0x408] sm:$0xff] %vm1086_vm0, %v9640_v12  ;;  %1377 = vst.msk [vmem:[#allocation2 + $0x410] sm:$0xff] %vm1086_vm0, %v9641_v13  ;;  %v9660_v29 = vunpack.c.l.bf16 %v9871_v24  ;;  %v9661_v30 = vunpack.c.h.bf16 %v9871_v24 }
  0x9e   : > { %v1443_v18 = vld [vmem:[#allocation2 + $0x1e7] ss:$2 sm:$0xff]  ;;  %v1490_v22 = vpack.c.bf16 %v1441_v17, %v1439_v16  ;;  %v9664_v31 = vunpack.c.l.bf16 %v9872_v25  ;;  %1384 = vst.msk [vmem:[#allocation2 + $0x468] sm:$0xff] %vm1086_vm0, %v9656_v20  ;;  %1385 = vst.msk [vmem:[#allocation2 + $0x470] sm:$0xff] %vm1086_vm0, %v9657_v21  ;;  %v9665_v35 = vunpack.c.h.bf16 %v9872_v25  ;;  %v2347_v3 = vld [vmem:[#allocation2 + $0x257] ss:$2 sm:$0xff] }
  0x9f   : > { %1382 = vst.msk [vmem:[#allocation2 + $0x458] sm:$0xff] %vm1086_vm0, %v9652_v14  ;;  %1383 = vst.msk [vmem:[#allocation2 + $0x460] sm:$0xff] %vm1086_vm0, %v9653_v15  ;;  %v9875_v32 = vld [vmem:[%s10732_s7 + $0x190] sm:$0xff]   ;;  %v9878_v41 = vld [vmem:[%s10732_s7 + $0x1a8] sm:$0xff]  }
  0xa0   : > { %2424 = vrot.lane.b32.xlu0 %v2390_v27, %s14092_s26  ;;  %2426 = vrot.lane.b32.xlu1 %v2391_v28, %s14092_s26  ;;  %v2020_v27 = vld [vmem:[#allocation2 + $0x1c8] ss:$2 sm:$0xff]  ;;  %v1491_v28 = vpack.c.bf16 %v1445_v23, %v1443_v18  ;;  %1506 = vst.msk [vmem:[#allocation3 + $0x20] sm:$0xff] %vm1086_vm0, %v1490_v22  ;;  %v9676_v36 = vunpack.c.l.bf16 %v9875_v32  ;;  %v9677_v37 = vunpack.c.h.bf16 %v9875_v32  ;;  %1386 = vst.msk [vmem:[#allocation2 + $0x488] sm:$0xff] %vm1086_vm0, %v9660_v29  ;;  %v9688_v51 = vunpack.c.l.bf16 %v9878_v41  ;;  %v2179_v55 = vld [vmem:[#allocation2 + $0x1b9] ss:$2 sm:$0xff] }
  0xa1   : > { %1387 = vst.msk [vmem:[#allocation2 + $0x490] sm:$0xff] %vm1086_vm0, %v9661_v30  ;;  %1388 = vst.msk [vmem:[#allocation2 + $0x498] sm:$0xff] %vm1086_vm0, %v9664_v31  ;;  %v9689_v52 = vunpack.c.h.bf16 %v9878_v41  ;;  %v2069_v53 = vpack.c.bf16 %v2020_v27, %v2018_v26  ;;  %v2181_v58 = vld [vmem:[#allocation2 + $0x1c9] ss:$2 sm:$0xff]  ;;  %v2183_v56 = vld [vmem:[#allocation2 + $0x219] ss:$2 sm:$0xff] }
  0xa2   : > { %1507 = vst.msk [vmem:[#allocation3 + $0x28] sm:$0xff] %vm1086_vm0, %v1491_v28  ;;  %1389 = vst.msk [vmem:[#allocation2 + $0x4a0] sm:$0xff] %vm1086_vm0, %v9665_v35  ;;  %v2185_v57 = vld [vmem:[#allocation2 + $0x229] ss:$2 sm:$0xff]  ;;  %v2230_v59 = vpack.c.bf16 %v2181_v58, %v2179_v55  ;;  %v2502_v4 = vld [vmem:[#allocation2 + $0x1e8] ss:$2 sm:$0xff] }
  0xa3   : > { %1394 = vst.msk [vmem:[#allocation2 + $0x4e8] sm:$0xff] %vm1086_vm0, %v9676_v36  ;;  %1395 = vst.msk [vmem:[#allocation2 + $0x4f0] sm:$0xff] %vm1086_vm0, %v9677_v37  ;;  %v2231_v60 = vpack.c.bf16 %v2185_v57, %v2183_v56  ;;  %v2341_v61 = vld [vmem:[#allocation2 + $0x1e7] ss:$2 sm:$0xff]  ;;  %v2508_v7 = vld [vmem:[#allocation2 + $0x258] ss:$2 sm:$0xff] }
  0xa4   : > { %2585 = vrot.lane.b32.xlu0 %v2551_v33, %s14093_s2  ;;  %2587 = vrot.lane.b32.xlu1 %v2552_v34, %s14093_s2  ;;  %v9876_v33 = vld [vmem:[%s10732_s7 + $0x198] sm:$0xff]   ;;  %v9873_v34 = vld [vmem:[%s10732_s7 + $0x180] sm:$0xff]   ;;  %1400 = vst.msk [vmem:[#allocation2 + $0x528] sm:$0xff] %vm1086_vm0, %v9688_v51  ;;  %1401 = vst.msk [vmem:[#allocation2 + $0x530] sm:$0xff] %vm1086_vm0, %v9689_v52 }
  0xa5   : > { %v9680_v38 = vunpack.c.l.bf16 %v9876_v33  ;;  %v9681_v42 = vunpack.c.h.bf16 %v9876_v33  ;;  %v9668_v43 = vunpack.c.l.bf16 %v9873_v34  ;;  %v9669_v44 = vunpack.c.h.bf16 %v9873_v34  ;;  %v2345_v2 = vld [vmem:[#allocation2 + $0x247] ss:$2 sm:$0xff]  ;;  %v1543_v12 = vld [vmem:[#allocation2 + $0x248] ss:$2 sm:$0xff]  ;;  %v1449_v14 = vld [vmem:[#allocation2 + $0x257] ss:$2 sm:$0xff] }
  0xa6   : > { %v2393_v1 = vpack.c.bf16 %v2347_v3, %v2345_v2  ;;  %v2663_v9 = vld [vmem:[#allocation2 + $0x1e9] ss:$2 sm:$0xff]  ;;  %v2665_v10 = vld [vmem:[#allocation2 + $0x1f9] ss:$2 sm:$0xff]  ;;  %v1545_v15 = vld [vmem:[#allocation2 + $0x258] ss:$2 sm:$0xff] }
  0xa7   : > { %1396 = vst.msk [vmem:[#allocation2 + $0x4f8] sm:$0xff] %vm1086_vm0, %v9680_v38  ;;  %1397 = vst.msk [vmem:[#allocation2 + $0x500] sm:$0xff] %vm1086_vm0, %v9681_v42  ;;  %v1447_v13 = vld [vmem:[#allocation2 + $0x247] ss:$2 sm:$0xff]  ;;  %v1453_v21 = vld [vmem:[#allocation2 + $0x2b7] ss:$2 sm:$0xff]  ;;  %v2714_v22 = vpack.c.bf16 %v2665_v10, %v2663_v9  ;;  %v1588_v27 = vpack.c.bf16 %v1545_v15, %v1543_v12 }
  0xa8   : > { %2746 = vrot.lane.b32.xlu0 %v2712_v39, %s14094_s16  ;;  %1622 = vrot.lane.b32.xlu1 %v1586_v40, %s14087_s10  ;;  %v9874_v39 = vld [vmem:[%s10732_s7 + $0x188] sm:$0xff]   ;;  %v9877_v40 = vld [vmem:[%s10732_s7 + $0x1a0] sm:$0xff]   ;;  %1390 = vst.msk [vmem:[#allocation2 + $0x4b8] sm:$0xff] %vm1086_vm0, %v9668_v43  ;;  %1391 = vst.msk [vmem:[#allocation2 + $0x4c0] sm:$0xff] %vm1086_vm0, %v9669_v44  ;;  %v1492_v18 = vpack.c.bf16 %v1449_v14, %v1447_v13 }
  0xa9   : > { %v9672_v45 = vunpack.c.l.bf16 %v9874_v39  ;;  %v9673_v48 = vunpack.c.h.bf16 %v9874_v39  ;;  %v9685_v50 = vunpack.c.h.bf16 %v9877_v40  ;;  %v2667_v16 = vld [vmem:[#allocation2 + $0x249] ss:$2 sm:$0xff]  ;;  %v2669_v17 = vld [vmem:[#allocation2 + $0x259] ss:$2 sm:$0xff]  ;;  %v1549_v23 = vld [vmem:[#allocation2 + $0x2b8] ss:$2 sm:$0xff] }
  0xaa   : > { %v1451_v20 = vld [vmem:[#allocation2 + $0x2a7] ss:$2 sm:$0xff]  ;;  %1508 = vst.msk [vmem:[#allocation3 + $0x30] sm:$0xff] %vm1086_vm0, %v1492_v18  ;;  %v9880_v26 = vld [vmem:[%s10732_s7 + $0x1b8] sm:$0xff]   ;;  %v2715_v31 = vpack.c.bf16 %v2669_v17, %v2667_v16 }
  0xab   : > { %1392 = vst.msk [vmem:[#allocation2 + $0x4c8] sm:$0xff] %vm1086_vm0, %v9672_v45  ;;  %1393 = vst.msk [vmem:[#allocation2 + $0x4d0] sm:$0xff] %vm1086_vm0, %v9673_v48  ;;  %v1493_v24 = vpack.c.bf16 %v1453_v21, %v1451_v20  ;;  %v9879_v25 = vld [vmem:[%s10732_s7 + $0x1b0] sm:$0xff]   ;;  %v9696_v30 = vunpack.c.l.bf16 %v9880_v26  ;;  %v9697_v32 = vunpack.c.h.bf16 %v9880_v26  ;;  %v9884_v34 = vld [vmem:[%s10732_s7 + $0x1d8] sm:$0xff]  }
  0xac   : > { %2748 = vrot.lane.b32.xlu0 %v2713_v49, %s14094_s16  ;;  %1624 = vrot.lane.b32.xlu1 %v1587_v54, %s14087_s10  ;;  %v9684_v49 = vunpack.c.l.bf16 %v9877_v40  ;;  %1399 = vst.msk [vmem:[#allocation2 + $0x520] sm:$0xff] %vm1086_vm0, %v9685_v50  ;;  %v2070_v54 = vpack.c.bf16 %v2024_v47, %v2022_v46  ;;  %v9692_v28 = vunpack.c.l.bf16 %v9879_v25  ;;  %v9693_v29 = vunpack.c.h.bf16 %v9879_v25  ;;  %v9883_v33 = vld [vmem:[%s10732_s7 + $0x1d0] sm:$0xff]   ;;  %v9881_v39 = vld [vmem:[%s10732_s7 + $0x1c0] sm:$0xff]  }
  0xad   : > { %1509 = vst.msk [vmem:[#allocation3 + $0x38] sm:$0xff] %vm1086_vm0, %v1493_v24  ;;  %1404 = vst.msk [vmem:[#allocation2 + $0x558] sm:$0xff] %vm1086_vm0, %v9696_v30  ;;  %v9708_v36 = vunpack.c.l.bf16 %v9883_v33  ;;  %v9709_v37 = vunpack.c.h.bf16 %v9883_v33  ;;  %v9712_v38 = vunpack.c.l.bf16 %v9884_v34  ;;  %v9882_v40 = vld [vmem:[%s10732_s7 + $0x1c8] sm:$0xff]   ;;  %v9713_v41 = vunpack.c.h.bf16 %v9884_v34  ;;  %v9885_v45 = vld [vmem:[%s10732_s7 + $0x1e0] sm:$0xff]  }
  0xae   : > { %1398 = vst.msk [vmem:[#allocation2 + $0x518] sm:$0xff] %vm1086_vm0, %v9684_v49  ;;  %1402 = vst.msk [vmem:[#allocation2 + $0x548] sm:$0xff] %vm1086_vm0, %v9692_v28  ;;  %v9700_v42 = vunpack.c.l.bf16 %v9881_v39  ;;  %v9701_v43 = vunpack.c.h.bf16 %v9881_v39  ;;  %v9704_v44 = vunpack.c.l.bf16 %v9882_v40  ;;  %v9886_v46 = vld [vmem:[%s10732_s7 + $0x1e8] sm:$0xff]   ;;  %v1706_v48 = vld [vmem:[#allocation2 + $0x259] ss:$2 sm:$0xff]  ;;  %v9705_v49 = vunpack.c.h.bf16 %v9882_v40 }
  0xaf   : > { %1403 = vst.msk [vmem:[#allocation2 + $0x550] sm:$0xff] %vm1086_vm0, %v9693_v29  ;;  %1405 = vst.msk [vmem:[#allocation2 + $0x560] sm:$0xff] %vm1086_vm0, %v9697_v32  ;;  %v1704_v47 = vld [vmem:[#allocation2 + $0x249] ss:$2 sm:$0xff]  ;;  %v9716_v50 = vunpack.c.l.bf16 %v9885_v45  ;;  %v9717_v51 = vunpack.c.h.bf16 %v9885_v45  ;;  %v9720_v52 = vunpack.c.l.bf16 %v9886_v46  ;;  %v9721_v55 = vunpack.c.h.bf16 %v9886_v46  ;;  %v2026_v2 = vld [vmem:[#allocation2 + $0x278] ss:$2 sm:$0xff] }
  0xb0   : > { %1783 = vrot.lane.b32.xlu0 %v1747_v62, %s14088_s1  ;;  %1785 = vrot.lane.b32.xlu1 %v1748_v5, %s14088_s1  ;;  %v2343_v62 = vld [vmem:[#allocation2 + $0x1f7] ss:$2 sm:$0xff]  ;;  %v2504_v5 = vld [vmem:[#allocation2 + $0x1f8] ss:$2 sm:$0xff]  ;;  %1410 = vst.msk [vmem:[#allocation2 + $0x5a8] sm:$0xff] %vm1086_vm0, %v9708_v36  ;;  %1411 = vst.msk [vmem:[#allocation2 + $0x5b0] sm:$0xff] %vm1086_vm0, %v9709_v37  ;;  %v1749_v58 = vpack.c.bf16 %v1706_v48, %v1704_v47 }
  0xb1   : > { %v2392_v63 = vpack.c.bf16 %v2343_v62, %v2341_v61  ;;  %v2553_v8 = vpack.c.bf16 %v2504_v5, %v2502_v4  ;;  %1412 = vst.msk [vmem:[#allocation2 + $0x5b8] sm:$0xff] %vm1086_vm0, %v9712_v38  ;;  %1413 = vst.msk [vmem:[#allocation2 + $0x5c0] sm:$0xff] %vm1086_vm0, %v9713_v41  ;;  %v1865_v57 = vld [vmem:[#allocation2 + $0x277] ss:$2 sm:$0xff]  ;;  %v1871_v61 = vld [vmem:[#allocation2 + $0x2e7] ss:$2 sm:$0xff] }
  0xb2   : > { %1406 = vst.msk [vmem:[#allocation2 + $0x578] sm:$0xff] %vm1086_vm0, %v9700_v42  ;;  %1407 = vst.msk [vmem:[#allocation2 + $0x580] sm:$0xff] %vm1086_vm0, %v9701_v43  ;;  %v2032_v4 = vld [vmem:[#allocation2 + $0x2e8] ss:$2 sm:$0xff]  ;;  %v2187_v9 = vld [vmem:[#allocation2 + $0x279] ss:$2 sm:$0xff] }
  0xb3   : > { %1408 = vst.msk [vmem:[#allocation2 + $0x588] sm:$0xff] %vm1086_vm0, %v9704_v44  ;;  %1409 = vst.msk [vmem:[#allocation2 + $0x590] sm:$0xff] %vm1086_vm0, %v9705_v49  ;;  %v2189_v10 = vld [vmem:[#allocation2 + $0x289] ss:$2 sm:$0xff]  ;;  %v2191_v15 = vld [vmem:[#allocation2 + $0x2d9] ss:$2 sm:$0xff] }
  0xb4   : > { %1944 = vrot.lane.b32.xlu0 %v1908_v6, %s14089_s18  ;;  %1946 = vrot.lane.b32.xlu1 %v1909_v19, %s14089_s18  ;;  %v2506_v6 = vld [vmem:[#allocation2 + $0x248] ss:$2 sm:$0xff]  ;;  %1414 = vst.msk [vmem:[#allocation2 + $0x5d8] sm:$0xff] %vm1086_vm0, %v9716_v50  ;;  %1415 = vst.msk [vmem:[#allocation2 + $0x5e0] sm:$0xff] %vm1086_vm0, %v9717_v51  ;;  %v2193_v16 = vld [vmem:[#allocation2 + $0x2e9] ss:$2 sm:$0xff]  ;;  %v2232_v17 = vpack.c.bf16 %v2189_v10, %v2187_v9 }
  0xb5   : > { %v2554_v11 = vpack.c.bf16 %v2508_v7, %v2506_v6  ;;  %v1547_v19 = vld [vmem:[#allocation2 + $0x2a8] ss:$2 sm:$0xff]  ;;  %1416 = vst.msk [vmem:[#allocation2 + $0x5e8] sm:$0xff] %vm1086_vm0, %v9720_v52  ;;  %1417 = vst.msk [vmem:[#allocation2 + $0x5f0] sm:$0xff] %vm1086_vm0, %v9721_v55  ;;  %v1455_v18 = vld [vmem:[#allocation2 + $0x307] ss:$2 sm:$0xff]  ;;  %v2233_v20 = vpack.c.bf16 %v2193_v16, %v2191_v15 }
  0xb6   : > { %v1589_v35 = vpack.c.bf16 %v1549_v23, %v1547_v19  ;;  %v9887_v7 = vld [vmem:[%s10732_s7 + $0x1f0] sm:$0xff]   ;;  %v2512_v33 = vld [vmem:[#allocation2 + $0x2b8] ss:$2 sm:$0xff]  ;;  %v2673_v40 = vld [vmem:[#allocation2 + $0x2b9] ss:$2 sm:$0xff] }
  0xb7   : > { %v9725_v12 = vunpack.c.h.bf16 %v9887_v7  ;;  %v1457_v19 = vld [vmem:[#allocation2 + $0x317] ss:$2 sm:$0xff]  ;;  %v2353_v26 = vld [vmem:[#allocation2 + $0x307] ss:$2 sm:$0xff]  ;;  %v2510_v32 = vld [vmem:[#allocation2 + $0x2a8] ss:$2 sm:$0xff] }
  0xb8   : > { %2105 = vrot.lane.b32.xlu0 %v2069_v53, %s14090_s5  ;;  %2107 = vrot.lane.b32.xlu1 %v2070_v54, %s14090_s5  ;;  %v1708_v53 = vld [vmem:[#allocation2 + $0x2a9] ss:$2 sm:$0xff]  ;;  %v1710_v54 = vld [vmem:[#allocation2 + $0x2b9] ss:$2 sm:$0xff]  ;;  %v1494_v24 = vpack.c.bf16 %v1457_v19, %v1455_v18  ;;  %v2516_v36 = vld [vmem:[#allocation2 + $0x318] ss:$2 sm:$0xff]  ;;  %v2555_v37 = vpack.c.bf16 %v2512_v33, %v2510_v32 }
  0xb9   : > { %v1750_v56 = vpack.c.bf16 %v1710_v54, %v1708_v53  ;;  %1419 = vst.msk [vmem:[#allocation2 + $0x610] sm:$0xff] %vm1086_vm0, %v9725_v12  ;;  %v2351_v23 = vld [vmem:[#allocation2 + $0x2b7] ss:$2 sm:$0xff]  ;;  %v1459_v29 = vld [vmem:[#allocation2 + $0x367] ss:$2 sm:$0xff] }
  0xba   : > { %1510 = vst.msk [vmem:[#allocation3 + $0x40] sm:$0xff] %vm1086_vm0, %v1494_v24  ;;  %v1461_v30 = vld [vmem:[#allocation2 + $0x377] ss:$2 sm:$0xff]  ;;  %v1551_v42 = vld [vmem:[#allocation2 + $0x308] ss:$2 sm:$0xff] }
  0xbb   : > { %v1495_v34 = vpack.c.bf16 %v1461_v30, %v1459_v29  ;;  %v2671_v39 = vld [vmem:[#allocation2 + $0x2a9] ss:$2 sm:$0xff]  ;;  %v1553_v43 = vld [vmem:[#allocation2 + $0x318] ss:$2 sm:$0xff]  ;;  %v2677_v48 = vld [vmem:[#allocation2 + $0x319] ss:$2 sm:$0xff] }
  0xbc   : > { %2266 = vrot.lane.b32.xlu0 %v2230_v59, %s14091_s11  ;;  %2268 = vrot.lane.b32.xlu1 %v2231_v60, %s14091_s11  ;;  %v1867_v59 = vld [vmem:[#allocation2 + $0x287] ss:$2 sm:$0xff]  ;;  %v1869_v60 = vld [vmem:[#allocation2 + $0x2d7] ss:$2 sm:$0xff]  ;;  %v2716_v45 = vpack.c.bf16 %v2673_v40, %v2671_v39  ;;  %v1590_v46 = vpack.c.bf16 %v1553_v43, %v1551_v42  ;;  %v1555_v50 = vld [vmem:[#allocation2 + $0x368] ss:$2 sm:$0xff] }
  0xbd   : > { %v1910_v62 = vpack.c.bf16 %v1867_v59, %v1865_v57  ;;  %v1911_v3 = vpack.c.bf16 %v1871_v61, %v1869_v60  ;;  %1511 = vst.msk [vmem:[#allocation3 + $0x48] sm:$0xff] %vm1086_vm0, %v1495_v34  ;;  %v2675_v47 = vld [vmem:[#allocation2 + $0x309] ss:$2 sm:$0xff]  ;;  %v1557_v51 = vld [vmem:[#allocation2 + $0x378] ss:$2 sm:$0xff] }
  0xbe   : > { %v2717_v53 = vpack.c.bf16 %v2677_v48, %v2675_v47  ;;  %v1591_v54 = vpack.c.bf16 %v1557_v51, %v1555_v50  ;;  %v1712_v55 = vld [vmem:[#allocation2 + $0x309] ss:$2 sm:$0xff]  ;;  %v1718_v59 = vld [vmem:[#allocation2 + $0x379] ss:$2 sm:$0xff]  ;;  %v2036_v9 = vld [vmem:[#allocation2 + $0x348] ss:$2 sm:$0xff] }
  0xbf   : > { %v1716_v57 = vld [vmem:[#allocation2 + $0x369] ss:$2 sm:$0xff]  ;;  %v2040_v12 = vld [vmem:[#allocation2 + $0x3a8] ss:$2 sm:$0xff]  ;;  %v2195_v16 = vld [vmem:[#allocation2 + $0x339] ss:$2 sm:$0xff] }
  0xc0   : > { %2428 = vrot.lane.b32.xlu0 %v2392_v63, %s14092_s26  ;;  %2430 = vrot.lane.b32.xlu1 %v2393_v1, %s14092_s26  ;;  %v2028_v63 = vld [vmem:[#allocation2 + $0x288] ss:$2 sm:$0xff]  ;;  %v2030_v1 = vld [vmem:[#allocation2 + $0x2d8] ss:$2 sm:$0xff]  ;;  %v2199_v19 = vld [vmem:[#allocation2 + $0x399] ss:$2 sm:$0xff] }
  0xc1   : > { %v2071_v5 = vpack.c.bf16 %v2028_v63, %v2026_v2  ;;  %v2072_v6 = vpack.c.bf16 %v2032_v4, %v2030_v1  ;;  %v1873_v2 = vld [vmem:[#allocation2 + $0x337] ss:$2 sm:$0xff]  ;;  %v1879_v4 = vld [vmem:[#allocation2 + $0x3a7] ss:$2 sm:$0xff]  ;;  %v2524_v42 = vld [vmem:[#allocation2 + $0x3d8] ss:$2 sm:$0xff] }
  0xc2   : > { %v1877_v1 = vld [vmem:[#allocation2 + $0x397] ss:$2 sm:$0xff]  ;;  %v2361_v30 = vld [vmem:[#allocation2 + $0x3c7] ss:$2 sm:$0xff]  ;;  %v1559_v50 = vld [vmem:[#allocation2 + $0x3c8] ss:$2 sm:$0xff] }
  0xc3   : > { %v1465_v24 = vld [vmem:[#allocation2 + $0x3d7] ss:$2 sm:$0xff]  ;;  %v1467_v34 = vld [vmem:[#allocation2 + $0x427] ss:$2 sm:$0xff]  ;;  %v1561_v51 = vld [vmem:[#allocation2 + $0x3d8] ss:$2 sm:$0xff] }
  0xc4   : > { %2589 = vrot.lane.b32.xlu0 %v2553_v8, %s14093_s2  ;;  %2591 = vrot.lane.b32.xlu1 %v2554_v11, %s14093_s2  ;;  %v9888_v8 = vld [vmem:[%s10732_s7 + $0x1f8] sm:$0xff]   ;;  %v9724_v11 = vunpack.c.l.bf16 %v9887_v7  ;;  %v1913_v7 = vpack.c.bf16 %v1879_v4, %v1877_v1  ;;  %v1724_v4 = vld [vmem:[#allocation2 + $0x429] ss:$2 sm:$0xff]  ;;  %s14164_s7 = sld [smem:[#allocation19_spill]] }
  0xc5   : > { %v9728_v13 = vunpack.c.l.bf16 %v9888_v8  ;;  %v9729_v14 = vunpack.c.h.bf16 %v9888_v8  ;;  %v2034_v8 = vld [vmem:[#allocation2 + $0x338] ss:$2 sm:$0xff]  ;;  %v2681_v47 = vld [vmem:[#allocation2 + $0x379] ss:$2 sm:$0xff] }
  0xc6   : > { %1418 = vst.msk [vmem:[#allocation2 + $0x608] sm:$0xff] %vm1086_vm0, %v9724_v11  ;;  %v2038_v11 = vld [vmem:[#allocation2 + $0x398] ss:$2 sm:$0xff] }
  0xc7   : > { %1420 = vst.msk [vmem:[#allocation2 + $0x618] sm:$0xff] %vm1086_vm0, %v9728_v13  ;;  %1421 = vst.msk [vmem:[#allocation2 + $0x620] sm:$0xff] %vm1086_vm0, %v9729_v14  ;;  %v2073_v14 = vpack.c.bf16 %v2036_v9, %v2034_v8  ;;  %v2074_v15 = vpack.c.bf16 %v2040_v12, %v2038_v11  ;;  %v1881_v9 = vld [vmem:[#allocation2 + $0x3f7] ss:$2 sm:$0xff] }
  0xc8   : > { %2750 = vrot.lane.b32.xlu0 %v2714_v22, %s14094_s16  ;;  %1626 = vrot.lane.b32.xlu1 %v1588_v27, %s14087_s10  ;;  %v2349_v22 = vld [vmem:[#allocation2 + $0x2a7] ss:$2 sm:$0xff]  ;;  %v2355_v27 = vld [vmem:[#allocation2 + $0x317] ss:$2 sm:$0xff] }
  0xc9   : > { %v2394_v28 = vpack.c.bf16 %v2351_v23, %v2349_v22  ;;  %v1463_v23 = vld [vmem:[#allocation2 + $0x3c7] ss:$2 sm:$0xff]  ;;  %v1885_v12 = vld [vmem:[#allocation2 + $0x457] ss:$2 sm:$0xff] }
  0xcc   : > { %2752 = vrot.lane.b32.xlu0 %v2715_v31, %s14094_s16  ;;  %1628 = vrot.lane.b32.xlu1 %v1589_v35, %s14087_s10  ;;  %v2395_v31 = vpack.c.bf16 %v2355_v27, %v2353_v26  ;;  %v2514_v35 = vld [vmem:[#allocation2 + $0x308] ss:$2 sm:$0xff]  ;;  %v2357_v26 = vld [vmem:[#allocation2 + $0x367] ss:$2 sm:$0xff]  ;;  %v2359_v27 = vld [vmem:[#allocation2 + $0x377] ss:$2 sm:$0xff] }
  0xcd   : > { %v2556_v38 = vpack.c.bf16 %v2516_v36, %v2514_v35  ;;  %v2396_v33 = vpack.c.bf16 %v2359_v27, %v2357_v26  ;;  %v1469_v35 = vld [vmem:[#allocation2 + $0x437] ss:$2 sm:$0xff] }
  0xce   : > { %v1497_v39 = vpack.c.bf16 %v1469_v35, %v1467_v34  ;;  %v2205_v26 = vld [vmem:[#allocation2 + $0x409] ss:$2 sm:$0xff] }
  0xcf   : > { %v2365_v35 = vld [vmem:[#allocation2 + $0x427] ss:$2 sm:$0xff] }
  0xd0   : > { %1787 = vrot.lane.b32.xlu0 %v1749_v58, %s14088_s1  ;;  %1789 = vrot.lane.b32.xlu1 %v1750_v56, %s14088_s1  ;;  %v1615_v21 = vpop.permute.xlu0 %1614  ;;  %v1714_v58 = vld [vmem:[#allocation2 + $0x319] ss:$2 sm:$0xff]  ;;  %1513 = vst.msk [vmem:[#allocation3 + $0x58] sm:$0xff] %vm1086_vm0, %v1497_v39 }
  0xd1   : > { %1663 = vst.msk [vmem:[#allocation3] sm:$0xff] %vm1662_vm4, %v1615_v21  ;;  %v1751_v61 = vpack.c.bf16 %v1714_v58, %v1712_v55  ;;  %v2683_v55 = vld [vmem:[#allocation2 + $0x3c9] ss:$2 sm:$0xff]  ;;  %v2685_v58 = vld [vmem:[#allocation2 + $0x3d9] ss:$2 sm:$0xff] }
  0xd2   : > { %v1776_v25 = vpop.permute.xlu1 %1775  ;;  %v2369_v39 = vld [vmem:[#allocation2 + $0x487] ss:$2 sm:$0xff] }
  0xd3   : > { %1824 = vst.msk [vmem:[#allocation3] sm:$0xff] %vm1823_vm5, %v1776_v25 }
  0xd4   : > { %1948 = vrot.lane.b32.xlu0 %v1910_v62, %s14089_s18  ;;  %1950 = vrot.lane.b32.xlu1 %v1911_v3, %s14089_s18  ;;  %v1752_v62 = vpack.c.bf16 %v1718_v59, %v1716_v57  ;;  %v1875_v3 = vld [vmem:[#allocation2 + $0x347] ss:$2 sm:$0xff]  ;;  %v1563_v59 = vld [vmem:[#allocation2 + $0x428] ss:$2 sm:$0xff] }
  0xd8   : > { %2109 = vrot.lane.b32.xlu0 %v2071_v5, %s14090_s5  ;;  %2111 = vrot.lane.b32.xlu1 %v2072_v6, %s14090_s5  ;;  %v1912_v6 = vpack.c.bf16 %v1875_v3, %v1873_v2  ;;  %v1720_v3 = vld [vmem:[#allocation2 + $0x3c9] ss:$2 sm:$0xff] }
  0xdc   : > { %2270 = vrot.lane.b32.xlu0 %v2232_v17, %s14091_s11  ;;  %2272 = vrot.lane.b32.xlu1 %v2233_v20, %s14091_s11  ;;  %v2197_v17 = vld [vmem:[#allocation2 + $0x349] ss:$2 sm:$0xff] }
  0xdd   : > { %v2201_v20 = vld [vmem:[#allocation2 + $0x3a9] ss:$2 sm:$0xff]  ;;  %v2234_v22 = vpack.c.bf16 %v2197_v17, %v2195_v16  ;;  %v2042_v17 = vld [vmem:[#allocation2 + $0x3f8] ss:$2 sm:$0xff] }
  0xde   : > { %v2235_v25 = vpack.c.bf16 %v2201_v20, %v2199_v19  ;;  %v2046_v20 = vld [vmem:[#allocation2 + $0x458] ss:$2 sm:$0xff] }
  0xe0   : > { %2432 = vrot.lane.b32.xlu0 %v2394_v28, %s14092_s26  ;;  %2434 = vrot.lane.b32.xlu1 %v2395_v31, %s14092_s26  ;;  %v1496_v28 = vpack.c.bf16 %v1465_v24, %v1463_v23  ;;  %v2363_v31 = vld [vmem:[#allocation2 + $0x3d7] ss:$2 sm:$0xff] }
  0xe1   : > { %v2397_v36 = vpack.c.bf16 %v2363_v31, %v2361_v30 }
  0xe2   : > { %v1617_v41 = vpop.permute.xlu0 %1616  ;;  %v1778_v44 = vpop.permute.xlu1 %1777  ;;  %1512 = vst.msk [vmem:[#allocation3 + $0x50] sm:$0xff] %vm1086_vm0, %v1496_v28  ;;  %v2207_v28 = vld [vmem:[#allocation2 + $0x459] ss:$2 sm:$0xff] }
  0xe3   : > { %1664 = vst.msk [vmem:[#allocation3 + $0x8] sm:$0xff] %vm1662_vm4, %v1617_v41  ;;  %v2522_v41 = vld [vmem:[#allocation2 + $0x3c8] ss:$2 sm:$0xff] }
  0xe4   : > { %1825 = vst.msk [vmem:[#allocation3 + $0x8] sm:$0xff] %vm1823_vm5, %v1778_v44  ;;  %2593 = vrot.lane.b32.xlu0 %v2555_v37, %s14093_s2  ;;  %2595 = vrot.lane.b32.xlu1 %v2556_v38, %s14093_s2  ;;  %v2518_v37 = vld [vmem:[#allocation2 + $0x368] ss:$2 sm:$0xff]  ;;  %v2520_v38 = vld [vmem:[#allocation2 + $0x378] ss:$2 sm:$0xff] }
  0xe5   : > { %v2557_v44 = vpack.c.bf16 %v2520_v38, %v2518_v37 }
  0xe6   : > { %v1937_v49 = vpop.permute.xlu0 %1936  ;;  %v1939_v52 = vpop.permute.xlu1 %1938 }
  0xe7   : > { %1985 = vst.msk [vmem:[#allocation3] sm:$0xff] %vm1984_vm6, %v1937_v49  ;;  %1986 = vst.msk [vmem:[#allocation3 + $0x8] sm:$0xff] %vm1984_vm6, %v1939_v52 }
  0xe8   : > { %2754 = vrot.lane.b32.xlu0 %v2716_v45, %s14094_s16  ;;  %1630 = vrot.lane.b32.xlu1 %v1590_v46, %s14087_s10  ;;  %v2558_v45 = vpack.c.bf16 %v2524_v42, %v2522_v41  ;;  %v2679_v46 = vld [vmem:[#allocation2 + $0x369] ss:$2 sm:$0xff] }
  0xea   : > { %v2098_v56 = vpop.permute.xlu0 %2097  ;;  %v2100_v60 = vpop.permute.xlu1 %2099 }
  0xeb   : > { %2146 = vst.msk [vmem:[#allocation3] sm:$0xff] %vm2145_vm7, %v2098_v56  ;;  %2147 = vst.msk [vmem:[#allocation3 + $0x8] sm:$0xff] %vm2145_vm7, %v2100_v60  ;;  %v1565_v60 = vld [vmem:[#allocation2 + $0x438] ss:$2 sm:$0xff] }
  0xec   : > { %2756 = vrot.lane.b32.xlu0 %v2717_v53, %s14094_s16  ;;  %1632 = vrot.lane.b32.xlu1 %v1591_v54, %s14087_s10  ;;  %v2718_v53 = vpack.c.bf16 %v2681_v47, %v2679_v46  ;;  %v1592_v54 = vpack.c.bf16 %v1561_v51, %v1559_v50  ;;  %v1593_v2 = vpack.c.bf16 %v1565_v60, %v1563_v59  ;;  %v2526_v46 = vld [vmem:[#allocation2 + $0x428] ss:$2 sm:$0xff]  ;;  %v2528_v47 = vld [vmem:[#allocation2 + $0x438] ss:$2 sm:$0xff] }
  0xed   : > { %v2530_v50 = vld [vmem:[#allocation2 + $0x488] ss:$2 sm:$0xff]  ;;  %v2532_v51 = vld [vmem:[#allocation2 + $0x498] ss:$2 sm:$0xff] }
  0xee   : > { %v2259_v63 = vpop.permute.xlu0 %2258  ;;  %v2261_v5 = vpop.permute.xlu1 %2260  ;;  %v1567_v59 = vld [vmem:[#allocation2 + $0x488] ss:$2 sm:$0xff]  ;;  %v1569_v60 = vld [vmem:[#allocation2 + $0x498] ss:$2 sm:$0xff] }
  0xef   : > { %2307 = vst.msk [vmem:[#allocation3] sm:$0xff] %vm2306_vm8, %v2259_v63  ;;  %2308 = vst.msk [vmem:[#allocation3 + $0x8] sm:$0xff] %vm2306_vm8, %v2261_v5  ;;  %v1722_v63 = vld [vmem:[#allocation2 + $0x3d9] ss:$2 sm:$0xff] }
  0xf0   : > { %1791 = vrot.lane.b32.xlu0 %v1751_v61, %s14088_s1  ;;  %1793 = vrot.lane.b32.xlu1 %v1752_v62, %s14088_s1  ;;  %v2719_v62 = vpack.c.bf16 %v2685_v58, %v2683_v55  ;;  %v1726_v5 = vld [vmem:[#allocation2 + $0x439] ss:$2 sm:$0xff]  ;;  %v2687_v55 = vld [vmem:[#allocation2 + $0x429] ss:$2 sm:$0xff] }
  0xf1   : > { %v1754_v8 = vpack.c.bf16 %v1726_v5, %v1724_v4  ;;  %v2689_v58 = vld [vmem:[#allocation2 + $0x439] ss:$2 sm:$0xff]  ;;  %v1571_v5 = vld [vmem:[#allocation2 + $0x4e8] ss:$2 sm:$0xff] }
  0xf2   : > { %v2421_v10 = vpop.permute.xlu0 %2420  ;;  %v2423_v13 = vpop.permute.xlu1 %2422 }
  0xf3   : > { %2469 = vst.msk [vmem:[#allocation3] sm:$0xff] %vm2468_vm9, %v2421_v10  ;;  %2470 = vst.msk [vmem:[#allocation3 + $0x8] sm:$0xff] %vm2468_vm9, %v2423_v13  ;;  %v1883_v10 = vld [vmem:[#allocation2 + $0x407] ss:$2 sm:$0xff] }
  0xf4   : > { %1952 = vrot.lane.b32.xlu0 %v1912_v6, %s14089_s18  ;;  %1954 = vrot.lane.b32.xlu1 %v1913_v7, %s14089_s18  ;;  %v1753_v7 = vpack.c.bf16 %v1722_v63, %v1720_v3  ;;  %v1887_v13 = vld [vmem:[#allocation2 + $0x467] ss:$2 sm:$0xff] }
  0xf5   : > { %v1915_v16 = vpack.c.bf16 %v1887_v13, %v1885_v12  ;;  %v2691_v3 = vld [vmem:[#allocation2 + $0x489] ss:$2 sm:$0xff]  ;;  %v2693_v63 = vld [vmem:[#allocation2 + $0x499] ss:$2 sm:$0xff] }
  0xf6   : > { %v2582_v18 = vpop.permute.xlu0 %2581  ;;  %v2584_v21 = vpop.permute.xlu1 %2583  ;;  %v1732_v13 = vld [vmem:[#allocation2 + $0x4e9] ss:$2 sm:$0xff] }
  0xf7   : > { %2630 = vst.msk [vmem:[#allocation3] sm:$0xff] %vm2629_vm10, %v2582_v18  ;;  %2631 = vst.msk [vmem:[#allocation3 + $0x8] sm:$0xff] %vm2629_vm10, %v2584_v21  ;;  %v2044_v18 = vld [vmem:[#allocation2 + $0x408] ss:$2 sm:$0xff] }
  0xf8   : > { %2113 = vrot.lane.b32.xlu0 %v2073_v14, %s14090_s5  ;;  %2115 = vrot.lane.b32.xlu1 %v2074_v15, %s14090_s5  ;;  %v1914_v15 = vpack.c.bf16 %v1883_v10, %v1881_v9  ;;  %v2048_v21 = vld [vmem:[#allocation2 + $0x468] ss:$2 sm:$0xff]  ;;  %v2075_v23 = vpack.c.bf16 %v2044_v18, %v2042_v17  ;;  %v1728_v10 = vld [vmem:[#allocation2 + $0x489] ss:$2 sm:$0xff] }
  0xf9   : > { %v2076_v24 = vpack.c.bf16 %v2048_v21, %v2046_v20  ;;  %v1889_v18 = vld [vmem:[#allocation2 + $0x4b7] ss:$2 sm:$0xff] }
  0xfa   : > { %v2743_v29 = vpop.permute.xlu0 %2742  ;;  %v1619_v32 = vpop.permute.xlu1 %1618  ;;  %v1893_v21 = vld [vmem:[#allocation2 + $0x517] ss:$2 sm:$0xff] }
  0xfb   : > { %2791 = vst.msk [vmem:[#allocation3] sm:$0xff] %vm2790_vm11, %v2743_v29  ;;  %v2209_v29 = vld [vmem:[#allocation2 + $0x469] ss:$2 sm:$0xff] }
  0xfc   : > { %1665 = vst.msk [vmem:[#allocation3 + $0x10] sm:$0xff] %vm1662_vm4, %v1619_v32  ;;  %2274 = vrot.lane.b32.xlu0 %v2234_v22, %s14091_s11  ;;  %2276 = vrot.lane.b32.xlu1 %v2235_v25, %s14091_s11  ;;  %v2203_v25 = vld [vmem:[#allocation2 + $0x3f9] ss:$2 sm:$0xff]  ;;  %v2237_v34 = vpack.c.bf16 %v2209_v29, %v2207_v28  ;;  %v2054_v29 = vld [vmem:[#allocation2 + $0x518] ss:$2 sm:$0xff] }
  0xfd   : > { %v2236_v31 = vpack.c.bf16 %v2205_v26, %v2203_v25  ;;  %v1471_v32 = vld [vmem:[#allocation2 + $0x487] ss:$2 sm:$0xff]  ;;  %v2050_v26 = vld [vmem:[#allocation2 + $0x4b8] ss:$2 sm:$0xff] }
  0xfe   : > { %v2745_v40 = vpop.permute.xlu0 %2744  ;;  %v1621_v43 = vpop.permute.xlu1 %1620 }
  0xff   : > { %2792 = vst.msk [vmem:[#allocation3 + $0x8] sm:$0xff] %vm2790_vm11, %v2745_v40  ;;  %v2371_v40 = vld [vmem:[#allocation2 + $0x497] ss:$2 sm:$0xff] }
 0x100   : > { %1666 = vst.msk [vmem:[#allocation3 + $0x18] sm:$0xff] %vm1662_vm4, %v1621_v43  ;;  %2436 = vrot.lane.b32.xlu0 %v2396_v33, %s14092_s26  ;;  %2438 = vrot.lane.b32.xlu1 %v2397_v36, %s14092_s26  ;;  %v1473_v33 = vld [vmem:[#allocation2 + $0x497] ss:$2 sm:$0xff]  ;;  %v1475_v43 = vld [vmem:[#allocation2 + $0x4e7] ss:$2 sm:$0xff] }
 0x101   : > { %v2367_v36 = vld [vmem:[#allocation2 + $0x437] ss:$2 sm:$0xff]  ;;  %v1498_v37 = vpack.c.bf16 %v1473_v33, %v1471_v32 }
 0x102   : > { %v1780_v48 = vpop.permute.xlu0 %1779  ;;  %v2807_v49 = vld [vmem:[#allocation3] sm:$0xff]  ;;  %v1782_v52 = vpop.permute.xlu1 %1781  ;;  %v2398_v42 = vpack.c.bf16 %v2367_v36, %v2365_v35  ;;  %v2213_v35 = vld [vmem:[#allocation2 + $0x4c9] ss:$2 sm:$0xff] }
 0x103   : > { %1826 = vst.msk [vmem:[#allocation3 + $0x10] sm:$0xff] %vm1823_vm5, %v1780_v48  ;;  %10004 = vmatprep.mubr.msk.bf16.mxu0 %vm2838_vm12, %v2807_v49  ;;  %1827 = vst.msk [vmem:[#allocation3 + $0x18] sm:$0xff] %vm1823_vm5, %v1782_v52 }
 0x104   : > { %2597 = vrot.lane.b32.xlu0 %v2557_v44, %s14093_s2  ;;  %2599 = vrot.lane.b32.xlu1 %v2558_v45, %s14093_s2  ;;  %1514 = vst.msk [vmem:[#allocation3 + $0x60] sm:$0xff] %vm1086_vm0, %v1498_v37  ;;  %v1477_v44 = vld [vmem:[#allocation2 + $0x4f7] ss:$2 sm:$0xff]  ;;  %v2399_v45 = vpack.c.bf16 %v2371_v40, %v2369_v39 }
 0x105   : > { %v1499_v48 = vpack.c.bf16 %v1477_v44, %v1475_v43  ;;  %v2215_v37 = vld [vmem:[#allocation2 + $0x519] ss:$2 sm:$0xff] }
 0x106   : > { %v1941_v56 = vpop.permute.xlu0 %1940  ;;  %v2808_v57 = vld [vmem:[#allocation3 + $0x8] sm:$0xff]  ;;  %v1943_v61 = vpop.permute.xlu1 %1942 }
 0x107   : > { %1987 = vst.msk [vmem:[#allocation3 + $0x10] sm:$0xff] %vm1984_vm6, %v1941_v56  ;;  %10005 = vmatmul.mubr.msk.bf16.vlgmr.msra.gmra.mrb[0].mxu0 %vm2838_vm12, %v2808_v57  ;;  %1988 = vst.msk [vmem:[#allocation3 + $0x18] sm:$0xff] %vm1984_vm6, %v1943_v61  ;;  %v2373_v44 = vld [vmem:[#allocation2 + $0x4e7] ss:$2 sm:$0xff] }
 0x108   : > { %2758 = vrot.lane.b32.xlu0 %v2718_v53, %s14094_s16  ;;  %1634 = vrot.lane.b32.xlu1 %v1592_v54, %s14087_s10  ;;  %1515 = vst.msk [vmem:[#allocation3 + $0x68] sm:$0xff] %vm1086_vm0, %v1499_v48  ;;  %v2559_v53 = vpack.c.bf16 %v2528_v47, %v2526_v46  ;;  %v2560_v54 = vpack.c.bf16 %v2532_v51, %v2530_v50  ;;  %v2377_v48 = vld [vmem:[#allocation2 + $0x547] ss:$2 sm:$0xff] }
 0x10a   : > { %v2102_v1 = vpop.permute.xlu0 %2101  ;;  %v2104_v6 = vpop.permute.xlu1 %2103 }
 0x10b   : > { %2148 = vst.msk [vmem:[#allocation3 + $0x10] sm:$0xff] %vm2145_vm7, %v2102_v1  ;;  %2149 = vst.msk [vmem:[#allocation3 + $0x18] sm:$0xff] %vm2145_vm7, %v2104_v6  ;;  %v1573_v6 = vld [vmem:[#allocation2 + $0x4f8] ss:$2 sm:$0xff] }
 0x10c   : > { %2760 = vrot.lane.b32.xlu0 %v2719_v62, %s14094_s16  ;;  %1636 = vrot.lane.b32.xlu1 %v1593_v2, %s14087_s10  ;;  %v2720_v62 = vpack.c.bf16 %v2689_v58, %v2687_v55  ;;  %v1594_v2 = vpack.c.bf16 %v1569_v60, %v1567_v59  ;;  %v1595_v9 = vpack.c.bf16 %v1573_v6, %v1571_v5  ;;  %v2534_v55 = vld [vmem:[#allocation2 + $0x4e8] ss:$2 sm:$0xff]  ;;  %v2536_v58 = vld [vmem:[#allocation2 + $0x4f8] ss:$2 sm:$0xff] }
 0x10d   : > { %v2538_v59 = vld [vmem:[#allocation2 + $0x548] ss:$2 sm:$0xff]  ;;  %v2540_v60 = vld [vmem:[#allocation2 + $0x558] ss:$2 sm:$0xff] }
 0x10e   : > { %v2263_v11 = vpop.permute.xlu0 %2262  ;;  %v2265_v14 = vpop.permute.xlu1 %2264  ;;  %v1575_v5 = vld [vmem:[#allocation2 + $0x548] ss:$2 sm:$0xff]  ;;  %v1577_v6 = vld [vmem:[#allocation2 + $0x558] ss:$2 sm:$0xff] }
 0x10f   : > { %2309 = vst.msk [vmem:[#allocation3 + $0x10] sm:$0xff] %vm2306_vm8, %v2263_v11  ;;  %2310 = vst.msk [vmem:[#allocation3 + $0x18] sm:$0xff] %vm2306_vm8, %v2265_v14  ;;  %v1730_v11 = vld [vmem:[#allocation2 + $0x499] ss:$2 sm:$0xff] }
 0x110   : > { %1795 = vrot.lane.b32.xlu0 %v1753_v7, %s14088_s1  ;;  %1797 = vrot.lane.b32.xlu1 %v1754_v8, %s14088_s1  ;;  %v2721_v8 = vpack.c.bf16 %v2693_v63, %v2691_v3  ;;  %v1734_v14 = vld [vmem:[#allocation2 + $0x4f9] ss:$2 sm:$0xff]  ;;  %v2695_v3 = vld [vmem:[#allocation2 + $0x4e9] ss:$2 sm:$0xff] }
 0x111   : > { %v1756_v17 = vpack.c.bf16 %v1734_v14, %v1732_v13  ;;  %v2697_v63 = vld [vmem:[#allocation2 + $0x4f9] ss:$2 sm:$0xff]  ;;  %v1579_v14 = vld [vmem:[#allocation2 + $0x5a8] ss:$2 sm:$0xff] }
 0x112   : > { %v2425_v19 = vpop.permute.xlu0 %2424  ;;  %v2427_v22 = vpop.permute.xlu1 %2426 }
 0x113   : > { %2471 = vst.msk [vmem:[#allocation3 + $0x10] sm:$0xff] %vm2468_vm9, %v2425_v19  ;;  %2472 = vst.msk [vmem:[#allocation3 + $0x18] sm:$0xff] %vm2468_vm9, %v2427_v22  ;;  %v1891_v19 = vld [vmem:[#allocation2 + $0x4c7] ss:$2 sm:$0xff] }
 0x114   : > { %1956 = vrot.lane.b32.xlu0 %v1914_v15, %s14089_s18  ;;  %1958 = vrot.lane.b32.xlu1 %v1915_v16, %s14089_s18  ;;  %v1755_v16 = vpack.c.bf16 %v1730_v11, %v1728_v10  ;;  %v1895_v22 = vld [vmem:[#allocation2 + $0x527] ss:$2 sm:$0xff] }
 0x115   : > { %v1917_v25 = vpack.c.bf16 %v1895_v22, %v1893_v21  ;;  %v2699_v10 = vld [vmem:[#allocation2 + $0x549] ss:$2 sm:$0xff]  ;;  %v2701_v11 = vld [vmem:[#allocation2 + $0x559] ss:$2 sm:$0xff] }
 0x116   : > { %v2586_v27 = vpop.permute.xlu0 %2585  ;;  %v2588_v30 = vpop.permute.xlu1 %2587  ;;  %v1740_v22 = vld [vmem:[#allocation2 + $0x5a9] ss:$2 sm:$0xff] }
 0x117   : > { %2632 = vst.msk [vmem:[#allocation3 + $0x10] sm:$0xff] %vm2629_vm10, %v2586_v27  ;;  %2633 = vst.msk [vmem:[#allocation3 + $0x18] sm:$0xff] %vm2629_vm10, %v2588_v30  ;;  %v2052_v27 = vld [vmem:[#allocation2 + $0x4c8] ss:$2 sm:$0xff] }
 0x118   : > { %2117 = vrot.lane.b32.xlu0 %v2075_v23, %s14090_s5  ;;  %2119 = vrot.lane.b32.xlu1 %v2076_v24, %s14090_s5  ;;  %v1916_v24 = vpack.c.bf16 %v1891_v19, %v1889_v18  ;;  %v2056_v30 = vld [vmem:[#allocation2 + $0x528] ss:$2 sm:$0xff]  ;;  %v2077_v32 = vpack.c.bf16 %v2052_v27, %v2050_v26  ;;  %v1736_v19 = vld [vmem:[#allocation2 + $0x549] ss:$2 sm:$0xff] }
 0x119   : > { %v2078_v33 = vpack.c.bf16 %v2056_v30, %v2054_v29  ;;  %v1897_v27 = vld [vmem:[#allocation2 + $0x577] ss:$2 sm:$0xff] }
 0x11a   : > { %v2747_v38 = vpop.permute.xlu0 %2746  ;;  %v1623_v41 = vpop.permute.xlu1 %1622  ;;  %v1901_v30 = vld [vmem:[#allocation2 + $0x5d7] ss:$2 sm:$0xff] }
 0x11b   : > { %2793 = vst.msk [vmem:[#allocation3 + $0x10] sm:$0xff] %vm2790_vm11, %v2747_v38  ;;  %v2217_v38 = vld [vmem:[#allocation2 + $0x529] ss:$2 sm:$0xff] }
 0x11c   : > { %1667 = vst.msk [vmem:[#allocation3 + $0x20] sm:$0xff] %vm1662_vm4, %v1623_v41  ;;  %2278 = vrot.lane.b32.xlu0 %v2236_v31, %s14091_s11  ;;  %2280 = vrot.lane.b32.xlu1 %v2237_v34, %s14091_s11  ;;  %v2211_v34 = vld [vmem:[#allocation2 + $0x4b9] ss:$2 sm:$0xff]  ;;  %v2239_v43 = vpack.c.bf16 %v2217_v38, %v2215_v37  ;;  %v2062_v38 = vld [vmem:[#allocation2 + $0x5d8] ss:$2 sm:$0xff] }
 0x11d   : > { %v2238_v40 = vpack.c.bf16 %v2213_v35, %v2211_v34  ;;  %v1479_v41 = vld [vmem:[#allocation2 + $0x547] ss:$2 sm:$0xff]  ;;  %v2058_v35 = vld [vmem:[#allocation2 + $0x578] ss:$2 sm:$0xff] }
 0x11e   : > { %v2749_v49 = vpop.permute.xlu0 %2748  ;;  %v1625_v52 = vpop.permute.xlu1 %1624 }
 0x11f   : > { %2794 = vst.msk [vmem:[#allocation3 + $0x18] sm:$0xff] %vm2790_vm11, %v2749_v49  ;;  %v2379_v49 = vld [vmem:[#allocation2 + $0x557] ss:$2 sm:$0xff] }
 0x120   : > { %1668 = vst.msk [vmem:[#allocation3 + $0x28] sm:$0xff] %vm1662_vm4, %v1625_v52  ;;  %2440 = vrot.lane.b32.xlu0 %v2398_v42, %s14092_s26  ;;  %2442 = vrot.lane.b32.xlu1 %v2399_v45, %s14092_s26  ;;  %v1481_v42 = vld [vmem:[#allocation2 + $0x557] ss:$2 sm:$0xff]  ;;  %v1483_v52 = vld [vmem:[#allocation2 + $0x5a7] ss:$2 sm:$0xff] }
 0x121   : > { %v2375_v45 = vld [vmem:[#allocation2 + $0x4f7] ss:$2 sm:$0xff]  ;;  %v1500_v46 = vpack.c.bf16 %v1481_v42, %v1479_v41 }
 0x122   : > { %v1784_v56 = vpop.permute.xlu0 %1783  ;;  %v2809_v57 = vld [vmem:[#allocation3 + $0x10] sm:$0xff]  ;;  %v1786_v61 = vpop.permute.xlu1 %1785  ;;  %v2400_v51 = vpack.c.bf16 %v2375_v45, %v2373_v44 }
 0x123   : > { %1828 = vst.msk [vmem:[#allocation3 + $0x20] sm:$0xff] %vm1823_vm5, %v1784_v56  ;;  %10008 = vmatprep.mubr.msk.bf16.mxu0 %vm2838_vm12, %v2809_v57  ;;  %1829 = vst.msk [vmem:[#allocation3 + $0x28] sm:$0xff] %vm1823_vm5, %v1786_v61  ;;  %v2221_v44 = vld [vmem:[#allocation2 + $0x589] ss:$2 sm:$0xff] }
 0x124   : > { %2601 = vrot.lane.b32.xlu0 %v2559_v53, %s14093_s2  ;;  %2603 = vrot.lane.b32.xlu1 %v2560_v54, %s14093_s2  ;;  %1516 = vst.msk [vmem:[#allocation3 + $0x70] sm:$0xff] %vm1086_vm0, %v1500_v46  ;;  %v1485_v53 = vld [vmem:[#allocation2 + $0x5b7] ss:$2 sm:$0xff]  ;;  %v2401_v54 = vpack.c.bf16 %v2379_v49, %v2377_v48 }
 0x125   : > { %v1501_v56 = vpack.c.bf16 %v1485_v53, %v1483_v52  ;;  %v2223_v46 = vld [vmem:[#allocation2 + $0x5d9] ss:$2 sm:$0xff] }
 0x126   : > { %v1945_v1 = vpop.permute.xlu0 %1944  ;;  %v2810_v4 = vld [vmem:[#allocation3 + $0x18] sm:$0xff]  ;;  %v1947_v7 = vpop.permute.xlu1 %1946 }
 0x127   : > { %1989 = vst.msk [vmem:[#allocation3 + $0x20] sm:$0xff] %vm1984_vm6, %v1945_v1  ;;  %10009 = vmatmul.mubr.msk.bf16.gmra.mrb[4].mxu0 %vm2838_vm12, %v2810_v4  ;;  %1990 = vst.msk [vmem:[#allocation3 + $0x28] sm:$0xff] %vm1984_vm6, %v1947_v7  ;;  %v2383_v52 = vld [vmem:[#allocation2 + $0x5b7] ss:$2 sm:$0xff] }
 0x128   : > { %2762 = vrot.lane.b32.xlu0 %v2720_v62, %s14094_s16  ;;  %1638 = vrot.lane.b32.xlu1 %v1594_v2, %s14087_s10  ;;  %1517 = vst.msk [vmem:[#allocation3 + $0x78] sm:$0xff] %vm1086_vm0, %v1501_v56  ;;  %v2561_v62 = vpack.c.bf16 %v2536_v58, %v2534_v55  ;;  %v2562_v2 = vpack.c.bf16 %v2540_v60, %v2538_v59  ;;  %v2387_v55 = vld [vmem:[#allocation2 + $0x617] ss:$2 sm:$0xff]  ;;  %v2542_v59 = vld [vmem:[#allocation2 + $0x5a8] ss:$2 sm:$0xff]  ;;  %vm3703_vm0 = vcmask 57344  }
 0x129   : > { %v2544_v60 = vld [vmem:[#allocation2 + $0x5b8] ss:$2 sm:$0xff]  ;;  %vm11341_vm2 = vmand %vm3703_vm0, %vm3704_vm1 }
 0x12a   : > { %v2106_v12 = vpop.permute.xlu0 %2105  ;;  %v2108_v15 = vpop.permute.xlu1 %2107 }
 0x12b   : > { %2150 = vst.msk [vmem:[#allocation3 + $0x20] sm:$0xff] %vm2145_vm7, %v2106_v12  ;;  %2151 = vst.msk [vmem:[#allocation3 + $0x28] sm:$0xff] %vm2145_vm7, %v2108_v15  ;;  %v1581_v15 = vld [vmem:[#allocation2 + $0x5b8] ss:$2 sm:$0xff] }
 0x12c   : > { %2764 = vrot.lane.b32.xlu0 %v2721_v8, %s14094_s16  ;;  %1640 = vrot.lane.b32.xlu1 %v1595_v9, %s14087_s10  ;;  %v2722_v8 = vpack.c.bf16 %v2697_v63, %v2695_v3  ;;  %v1596_v9 = vpack.c.bf16 %v1577_v6, %v1575_v5  ;;  %v1597_v18 = vpack.c.bf16 %v1581_v15, %v1579_v14  ;;  %v2705_v5 = vld [vmem:[#allocation2 + $0x5b9] ss:$2 sm:$0xff] }
 0x12d   : > { %v2563_v63 = vpack.c.bf16 %v2544_v60, %v2542_v59 }
 0x12e   : > { %v2267_v20 = vpop.permute.xlu0 %2266  ;;  %v2269_v23 = vpop.permute.xlu1 %2268 }
 0x12f   : > { %2311 = vst.msk [vmem:[#allocation3 + $0x20] sm:$0xff] %vm2306_vm8, %v2267_v20  ;;  %2312 = vst.msk [vmem:[#allocation3 + $0x28] sm:$0xff] %vm2306_vm8, %v2269_v23  ;;  %v1738_v20 = vld [vmem:[#allocation2 + $0x559] ss:$2 sm:$0xff] }
 0x130   : > { %1799 = vrot.lane.b32.xlu0 %v1755_v16, %s14088_s1  ;;  %1801 = vrot.lane.b32.xlu1 %v1756_v17, %s14088_s1  ;;  %v2723_v17 = vpack.c.bf16 %v2701_v11, %v2699_v10  ;;  %v1742_v23 = vld [vmem:[#allocation2 + $0x5b9] ss:$2 sm:$0xff] }
 0x131   : > { %v1758_v26 = vpack.c.bf16 %v1742_v23, %v1740_v22 }
 0x132   : > { %v2429_v28 = vpop.permute.xlu0 %2428  ;;  %v2431_v31 = vpop.permute.xlu1 %2430 }
 0x133   : > { %2473 = vst.msk [vmem:[#allocation3 + $0x20] sm:$0xff] %vm2468_vm9, %v2429_v28  ;;  %2474 = vst.msk [vmem:[#allocation3 + $0x28] sm:$0xff] %vm2468_vm9, %v2431_v31  ;;  %v1899_v28 = vld [vmem:[#allocation2 + $0x587] ss:$2 sm:$0xff] }
 0x134   : > { %1960 = vrot.lane.b32.xlu0 %v1916_v24, %s14089_s18  ;;  %1962 = vrot.lane.b32.xlu1 %v1917_v25, %s14089_s18  ;;  %v1757_v25 = vpack.c.bf16 %v1738_v20, %v1736_v19  ;;  %v1903_v31 = vld [vmem:[#allocation2 + $0x5e7] ss:$2 sm:$0xff] }
 0x135   : > { %v1919_v34 = vpack.c.bf16 %v1903_v31, %v1901_v30 }
 0x136   : > { %v2590_v36 = vpop.permute.xlu0 %2589  ;;  %v2592_v39 = vpop.permute.xlu1 %2591 }
 0x137   : > { %2634 = vst.msk [vmem:[#allocation3 + $0x20] sm:$0xff] %vm2629_vm10, %v2590_v36  ;;  %2635 = vst.msk [vmem:[#allocation3 + $0x28] sm:$0xff] %vm2629_vm10, %v2592_v39  ;;  %v2060_v36 = vld [vmem:[#allocation2 + $0x588] ss:$2 sm:$0xff] }
 0x138   : > { %2121 = vrot.lane.b32.xlu0 %v2077_v32, %s14090_s5  ;;  %2123 = vrot.lane.b32.xlu1 %v2078_v33, %s14090_s5  ;;  %v1918_v33 = vpack.c.bf16 %v1899_v28, %v1897_v27  ;;  %v2064_v39 = vld [vmem:[#allocation2 + $0x5e8] ss:$2 sm:$0xff]  ;;  %v2079_v41 = vpack.c.bf16 %v2060_v36, %v2058_v35 }
 0x139   : > { %v2080_v42 = vpack.c.bf16 %v2064_v39, %v2062_v38 }
 0x13a   : > { %v2751_v47 = vpop.permute.xlu0 %2750  ;;  %v1627_v50 = vpop.permute.xlu1 %1626 }
 0x13b   : > { %2795 = vst.msk [vmem:[#allocation3 + $0x20] sm:$0xff] %vm2790_vm11, %v2751_v47  ;;  %v2225_v47 = vld [vmem:[#allocation2 + $0x5e9] ss:$2 sm:$0xff] }
 0x13c   : > { %1669 = vst.msk [vmem:[#allocation3 + $0x30] sm:$0xff] %vm1662_vm4, %v1627_v50  ;;  %2282 = vrot.lane.b32.xlu0 %v2238_v40, %s14091_s11  ;;  %2284 = vrot.lane.b32.xlu1 %v2239_v43, %s14091_s11  ;;  %v2219_v43 = vld [vmem:[#allocation2 + $0x579] ss:$2 sm:$0xff]  ;;  %v2241_v50 = vpack.c.bf16 %v2225_v47, %v2223_v46 }
 0x13d   : > { %v2240_v49 = vpack.c.bf16 %v2221_v44, %v2219_v43 }
 0x13e   : > { %v2753_v57 = vpop.permute.xlu0 %2752  ;;  %v1629_v61 = vpop.permute.xlu1 %1628 }
 0x13f   : > { %2796 = vst.msk [vmem:[#allocation3 + $0x28] sm:$0xff] %vm2790_vm11, %v2753_v57 }
 0x140   : > { %1670 = vst.msk [vmem:[#allocation3 + $0x38] sm:$0xff] %vm1662_vm4, %v1629_v61  ;;  %2444 = vrot.lane.b32.xlu0 %v2400_v51, %s14092_s26  ;;  %2446 = vrot.lane.b32.xlu1 %v2401_v54, %s14092_s26  ;;  %v2381_v51 = vld [vmem:[#allocation2 + $0x5a7] ss:$2 sm:$0xff] }
 0x141   : > { %v2385_v54 = vld [vmem:[#allocation2 + $0x607] ss:$2 sm:$0xff]  ;;  %v2402_v56 = vpack.c.bf16 %v2383_v52, %v2381_v51 }
 0x142   : > { %v1788_v1 = vpop.permute.xlu0 %1787  ;;  %v2811_v4 = vld [vmem:[#allocation3 + $0x20] sm:$0xff]  ;;  %v1790_v7 = vpop.permute.xlu1 %1789  ;;  %v2403_v57 = vpack.c.bf16 %v2387_v55, %v2385_v54 }
 0x143   : > { %1830 = vst.msk [vmem:[#allocation3 + $0x30] sm:$0xff] %vm1823_vm5, %v1788_v1  ;;  %10012 = vmatprep.mubr.msk.bf16.mxu0 %vm2838_vm12, %v2811_v4  ;;  %1831 = vst.msk [vmem:[#allocation3 + $0x38] sm:$0xff] %vm1823_vm5, %v1790_v7  ;;  %v2703_v4 = vld [vmem:[#allocation2 + $0x5a9] ss:$2 sm:$0xff] }
 0x144   : > { %2605 = vrot.lane.b32.xlu0 %v2561_v62, %s14093_s2  ;;  %2607 = vrot.lane.b32.xlu1 %v2562_v2, %s14093_s2  ;;  %v2546_v62 = vld [vmem:[#allocation2 + $0x608] ss:$2 sm:$0xff]  ;;  %v2548_v2 = vld [vmem:[#allocation2 + $0x618] ss:$2 sm:$0xff]  ;;  %v2724_v11 = vpack.c.bf16 %v2705_v5, %v2703_v4 }
 0x145   : > { %v2564_v1 = vpack.c.bf16 %v2548_v2, %v2546_v62 }
 0x146   : > { %v1949_v12 = vpop.permute.xlu0 %1948  ;;  %v2812_v13 = vld [vmem:[#allocation3 + $0x28] sm:$0xff]  ;;  %v1951_v16 = vpop.permute.xlu1 %1950 }
 0x147   : > { %1991 = vst.msk [vmem:[#allocation3 + $0x30] sm:$0xff] %vm1984_vm6, %v1949_v12  ;;  %10013 = vmatmul.mubr.msk.bf16.gmra.mrb[8].mxu0 %vm2838_vm12, %v2812_v13  ;;  %1992 = vst.msk [vmem:[#allocation3 + $0x38] sm:$0xff] %vm1984_vm6, %v1951_v16 }
 0x148   : > { %2766 = vrot.lane.b32.xlu0 %v2722_v8, %s14094_s16  ;;  %1642 = vrot.lane.b32.xlu1 %v1596_v9, %s14087_s10  ;;  %v2707_v8 = vld [vmem:[#allocation2 + $0x609] ss:$2 sm:$0xff]  ;;  %v2709_v9 = vld [vmem:[#allocation2 + $0x619] ss:$2 sm:$0xff] }
 0x149   : > { %v2725_v12 = vpack.c.bf16 %v2709_v9, %v2707_v8 }
 0x14a   : > { %v2110_v21 = vpop.permute.xlu0 %2109  ;;  %v2112_v24 = vpop.permute.xlu1 %2111 }
 0x14b   : > { %2152 = vst.msk [vmem:[#allocation3 + $0x30] sm:$0xff] %vm2145_vm7, %v2110_v21  ;;  %2153 = vst.msk [vmem:[#allocation3 + $0x38] sm:$0xff] %vm2145_vm7, %v2112_v24 }
 0x14c   : > { %2768 = vrot.lane.b32.xlu0 %v2723_v17, %s14094_s16  ;;  %1644 = vrot.lane.b32.xlu1 %v1597_v18, %s14087_s10  ;;  %v3374_v18 = vld [vmem:[%s10468_s21] sm:$0xf]  ;;  %s14165_s10 = sld [smem:[#allocation23_spill]] }
 0x14d   : > { %10180 = vmatprep.subr.msk.bf16.mxu1 %vm3423_vm13, %v3374_v18  ;;  %v3425_v19 = vsel %vm3423_vm13, %v3374_v18, 0 }
 0x14e   : > { %v2271_v29 = vpop.permute.xlu0 %2270  ;;  %v2273_v32 = vpop.permute.xlu1 %2272  ;;  %10037 = vmatpush3.bf16.msra.mxu1 %v3425_v19  ;;  %v11274_v19 = vld [vmem:[%s10463_s17] ss:$0 sm:$0xff] }
 0x14f   : > { %2313 = vst.msk [vmem:[#allocation3 + $0x30] sm:$0xff] %vm2306_vm8, %v2271_v29  ;;  %2314 = vst.msk [vmem:[#allocation3 + $0x38] sm:$0xff] %vm2306_vm8, %v2273_v32 }
 0x150   : > { %1803 = vrot.lane.b32.xlu0 %v1757_v25, %s14088_s1  ;;  %1805 = vrot.lane.b32.xlu1 %v1758_v26, %s14088_s1  ;;  %s14167_s1 = sld [smem:[#allocation22_spill]] }
 0x152   : > { %v2433_v37 = vpop.permute.xlu0 %2432  ;;  %v2435_v40 = vpop.permute.xlu1 %2434 }
 0x153   : > { %2475 = vst.msk [vmem:[#allocation3 + $0x30] sm:$0xff] %vm2468_vm9, %v2433_v37  ;;  %2476 = vst.msk [vmem:[#allocation3 + $0x38] sm:$0xff] %vm2468_vm9, %v2435_v40 }
 0x154   : > { %1964 = vrot.lane.b32.xlu0 %v1918_v33, %s14089_s18  ;;  %1966 = vrot.lane.b32.xlu1 %v1919_v34, %s14089_s18  ;;  %s14166_s18 = sld [smem:[#allocation21_spill]] }
 0x156   : > { %v2594_v45 = vpop.permute.xlu0 %2593  ;;  %v2596_v48 = vpop.permute.xlu1 %2595 }
 0x157   : > { %2636 = vst.msk [vmem:[#allocation3 + $0x30] sm:$0xff] %vm2629_vm10, %v2594_v45  ;;  %2637 = vst.msk [vmem:[#allocation3 + $0x38] sm:$0xff] %vm2629_vm10, %v2596_v48 }
 0x158   : > { %2125 = vrot.lane.b32.xlu0 %v2079_v41, %s14090_s5  ;;  %2127 = vrot.lane.b32.xlu1 %v2080_v42, %s14090_s5  ;;  %s14151_s5 = sld [smem:[#allocation20_spill]] }
 0x15a   : > { %v2755_v53 = vpop.permute.xlu0 %2754  ;;  %v1631_v58 = vpop.permute.xlu1 %1630 }
 0x15b   : > { %2797 = vst.msk [vmem:[#allocation3 + $0x30] sm:$0xff] %vm2790_vm11, %v2755_v53 }
 0x15c   : > { %1671 = vst.msk [vmem:[#allocation3 + $0x40] sm:$0xff] %vm1662_vm4, %v1631_v58  ;;  %2286 = vrot.lane.b32.xlu0 %v2240_v49, %s14091_s11  ;;  %2288 = vrot.lane.b32.xlu1 %v2241_v50, %s14091_s11  ;;  %s14154_s11 = sld [smem:[#allocation16_spill]] }
 0x15e   : > { %v2757_v61 = vpop.permute.xlu0 %2756  ;;  %v1633_v3 = vpop.permute.xlu1 %1632 }
 0x15f   : > { %2798 = vst.msk [vmem:[#allocation3 + $0x38] sm:$0xff] %vm2790_vm11, %v2757_v61 }
 0x160   : > { %1672 = vst.msk [vmem:[#allocation3 + $0x48] sm:$0xff] %vm1662_vm4, %v1633_v3  ;;  %2448 = vrot.lane.b32.xlu0 %v2402_v56, %s14092_s26  ;;  %2450 = vrot.lane.b32.xlu1 %v2403_v57, %s14092_s26  ;;  %s14152_s26 = sld [smem:[#allocation15_spill]] }
 0x162   : > { %v1792_v6 = vpop.permute.xlu0 %1791  ;;  %v2813_v7 = vld [vmem:[#allocation3 + $0x30] sm:$0xff]  ;;  %v1794_v10 = vpop.permute.xlu1 %1793 }
 0x163   : > { %1832 = vst.msk [vmem:[#allocation3 + $0x40] sm:$0xff] %vm1823_vm5, %v1792_v6  ;;  %10016 = vmatprep.mubr.msk.bf16.mxu0 %vm2838_vm12, %v2813_v7  ;;  %1833 = vst.msk [vmem:[#allocation3 + $0x48] sm:$0xff] %vm1823_vm5, %v1794_v10 }
 0x164   : > { %2609 = vrot.lane.b32.xlu0 %v2563_v63, %s14093_s2  ;;  %2611 = vrot.lane.b32.xlu1 %v2564_v1, %s14093_s2  ;;  %s14153_s2 = sld [smem:[#allocation17_spill]] }
 0x166   : > { %v1953_v13 = vpop.permute.xlu0 %1952  ;;  %v2814_v14 = vld [vmem:[#allocation3 + $0x38] sm:$0xff]  ;;  %v1955_v15 = vpop.permute.xlu1 %1954 }
 0x167   : > { %1993 = vst.msk [vmem:[#allocation3 + $0x40] sm:$0xff] %vm1984_vm6, %v1953_v13  ;;  %10017 = vmatmul.mubr.msk.bf16.gmra.mrb[12].mxu0 %vm2838_vm12, %v2814_v14  ;;  %1994 = vst.msk [vmem:[#allocation3 + $0x48] sm:$0xff] %vm1984_vm6, %v1955_v15 }
 0x168   : > { %2770 = vrot.lane.b32.xlu0 %v2724_v11, %s14094_s16  ;;  %2772 = vrot.lane.b32.xlu1 %v2725_v12, %s14094_s16  ;;  %s14163_s16 = sld [smem:[#allocation18_spill]] }
 0x16a   : > { %v2114_v16 = vpop.permute.xlu0 %2113  ;;  %v2116_v17 = vpop.permute.xlu1 %2115 }
 0x16b   : > { %2154 = vst.msk [vmem:[#allocation3 + $0x40] sm:$0xff] %vm2145_vm7, %v2114_v16  ;;  %2155 = vst.msk [vmem:[#allocation3 + $0x48] sm:$0xff] %vm2145_vm7, %v2116_v17  ;;  %v11271_v17 = vld [vmem:[%s10458_s13] ss:$0 sm:$0xff] }
 0x16e   : > { %v2275_v20 = vpop.permute.xlu0 %2274  ;;  %v2277_v21 = vpop.permute.xlu1 %2276 }
 0x16f   : > { %2315 = vst.msk [vmem:[#allocation3 + $0x40] sm:$0xff] %vm2306_vm8, %v2275_v20  ;;  %2316 = vst.msk [vmem:[#allocation3 + $0x48] sm:$0xff] %vm2306_vm8, %v2277_v21 }
 0x172   : > { %v2437_v22 = vpop.permute.xlu0 %2436  ;;  %v2439_v23 = vpop.permute.xlu1 %2438 }
 0x173   : > { %2477 = vst.msk [vmem:[#allocation3 + $0x40] sm:$0xff] %vm2468_vm9, %v2437_v22  ;;  %2478 = vst.msk [vmem:[#allocation3 + $0x48] sm:$0xff] %vm2468_vm9, %v2439_v23 }
 0x176   : > { %v2598_v24 = vpop.permute.xlu0 %2597  ;;  %v2600_v25 = vpop.permute.xlu1 %2599 }
 0x177   : > { %2638 = vst.msk [vmem:[#allocation3 + $0x40] sm:$0xff] %vm2629_vm10, %v2598_v24  ;;  %2639 = vst.msk [vmem:[#allocation3 + $0x48] sm:$0xff] %vm2629_vm10, %v2600_v25 }
 0x17a   : > { %v2759_v26 = vpop.permute.xlu0 %2758  ;;  %v1635_v27 = vpop.permute.xlu1 %1634 }
 0x17b   : > { %2799 = vst.msk [vmem:[#allocation3 + $0x40] sm:$0xff] %vm2790_vm11, %v2759_v26 }
 0x17c   : > { %1673 = vst.msk [vmem:[#allocation3 + $0x50] sm:$0xff] %vm1662_vm4, %v1635_v27 }
 0x17e   : > { %v2761_v28 = vpop.permute.xlu0 %2760  ;;  %v1637_v29 = vpop.permute.xlu1 %1636 }
 0x17f   : > { %2800 = vst.msk [vmem:[#allocation3 + $0x48] sm:$0xff] %vm2790_vm11, %v2761_v28 }
 0x180   : > { %1674 = vst.msk [vmem:[#allocation3 + $0x58] sm:$0xff] %vm1662_vm4, %v1637_v29 }
 0x182   : > { %v1796_v30 = vpop.permute.xlu0 %1795  ;;  %v2815_v31 = vld [vmem:[#allocation3 + $0x40] sm:$0xff]  ;;  %v1798_v32 = vpop.permute.xlu1 %1797 }
 0x183   : > { %1834 = vst.msk [vmem:[#allocation3 + $0x50] sm:$0xff] %vm1823_vm5, %v1796_v30  ;;  %10020 = vmatprep.mubr.msk.bf16.mxu0 %vm2838_vm12, %v2815_v31  ;;  %1835 = vst.msk [vmem:[#allocation3 + $0x58] sm:$0xff] %vm1823_vm5, %v1798_v32 }
 0x186   : > { %v1957_v33 = vpop.permute.xlu0 %1956  ;;  %v2816_v34 = vld [vmem:[#allocation3 + $0x48] sm:$0xff]  ;;  %v1959_v35 = vpop.permute.xlu1 %1958 }
 0x187   : > { %1995 = vst.msk [vmem:[#allocation3 + $0x50] sm:$0xff] %vm1984_vm6, %v1957_v33  ;;  %10021 = vmatmul.mubr.msk.bf16.gmra.mrb[16].mxu0 %vm2838_vm12, %v2816_v34  ;;  %1996 = vst.msk [vmem:[#allocation3 + $0x58] sm:$0xff] %vm1984_vm6, %v1959_v35 }
 0x18a   : > { %v2118_v36 = vpop.permute.xlu0 %2117  ;;  %v2120_v37 = vpop.permute.xlu1 %2119 }
 0x18b   : > { %2156 = vst.msk [vmem:[#allocation3 + $0x50] sm:$0xff] %vm2145_vm7, %v2118_v36  ;;  %2157 = vst.msk [vmem:[#allocation3 + $0x58] sm:$0xff] %vm2145_vm7, %v2120_v37 }
 0x18e   : > { %v2279_v38 = vpop.permute.xlu0 %2278  ;;  %v2281_v39 = vpop.permute.xlu1 %2280 }
 0x18f   : > { %2317 = vst.msk [vmem:[#allocation3 + $0x50] sm:$0xff] %vm2306_vm8, %v2279_v38  ;;  %2318 = vst.msk [vmem:[#allocation3 + $0x58] sm:$0xff] %vm2306_vm8, %v2281_v39 }
 0x192   : > { %v2441_v40 = vpop.permute.xlu0 %2440  ;;  %v2443_v41 = vpop.permute.xlu1 %2442 }
 0x193   : > { %2479 = vst.msk [vmem:[#allocation3 + $0x50] sm:$0xff] %vm2468_vm9, %v2441_v40  ;;  %2480 = vst.msk [vmem:[#allocation3 + $0x58] sm:$0xff] %vm2468_vm9, %v2443_v41 }
 0x196   : > { %v2602_v42 = vpop.permute.xlu0 %2601  ;;  %v2604_v43 = vpop.permute.xlu1 %2603 }
 0x197   : > { %2640 = vst.msk [vmem:[#allocation3 + $0x50] sm:$0xff] %vm2629_vm10, %v2602_v42  ;;  %2641 = vst.msk [vmem:[#allocation3 + $0x58] sm:$0xff] %vm2629_vm10, %v2604_v43 }
 0x19a   : > { %v2763_v44 = vpop.permute.xlu0 %2762  ;;  %v1639_v45 = vpop.permute.xlu1 %1638 }
 0x19b   : > { %2801 = vst.msk [vmem:[#allocation3 + $0x50] sm:$0xff] %vm2790_vm11, %v2763_v44 }
 0x19c   : > { %1675 = vst.msk [vmem:[#allocation3 + $0x60] sm:$0xff] %vm1662_vm4, %v1639_v45 }
 0x19e   : > { %v2765_v46 = vpop.permute.xlu0 %2764  ;;  %v1641_v47 = vpop.permute.xlu1 %1640 }
 0x19f   : > { %2802 = vst.msk [vmem:[#allocation3 + $0x58] sm:$0xff] %vm2790_vm11, %v2765_v46 }
 0x1a0   : > { %1676 = vst.msk [vmem:[#allocation3 + $0x68] sm:$0xff] %vm1662_vm4, %v1641_v47 }
 0x1a2   : > { %v1800_v48 = vpop.permute.xlu0 %1799  ;;  %v2817_v49 = vld [vmem:[#allocation3 + $0x50] sm:$0xff]  ;;  %v1802_v50 = vpop.permute.xlu1 %1801 }
 0x1a3   : > { %1836 = vst.msk [vmem:[#allocation3 + $0x60] sm:$0xff] %vm1823_vm5, %v1800_v48  ;;  %10024 = vmatprep.mubr.msk.bf16.mxu0 %vm2838_vm12, %v2817_v49  ;;  %1837 = vst.msk [vmem:[#allocation3 + $0x68] sm:$0xff] %vm1823_vm5, %v1802_v50 }
 0x1a6   : > { %v1961_v51 = vpop.permute.xlu0 %1960  ;;  %v2818_v52 = vld [vmem:[#allocation3 + $0x58] sm:$0xff]  ;;  %v1963_v53 = vpop.permute.xlu1 %1962 }
 0x1a7   : > { %1997 = vst.msk [vmem:[#allocation3 + $0x60] sm:$0xff] %vm1984_vm6, %v1961_v51  ;;  %10025 = vmatmul.mubr.msk.bf16.gmra.mrb[20].mxu0 %vm2838_vm12, %v2818_v52  ;;  %1998 = vst.msk [vmem:[#allocation3 + $0x68] sm:$0xff] %vm1984_vm6, %v1963_v53 }
 0x1aa   : > { %v2122_v54 = vpop.permute.xlu0 %2121  ;;  %v2124_v55 = vpop.permute.xlu1 %2123 }
 0x1ab   : > { %2158 = vst.msk [vmem:[#allocation3 + $0x60] sm:$0xff] %vm2145_vm7, %v2122_v54  ;;  %2159 = vst.msk [vmem:[#allocation3 + $0x68] sm:$0xff] %vm2145_vm7, %v2124_v55 }
 0x1ae   : > { %v2283_v58 = vpop.permute.xlu0 %2282  ;;  %v2285_v56 = vpop.permute.xlu1 %2284 }
 0x1af   : > { %2319 = vst.msk [vmem:[#allocation3 + $0x60] sm:$0xff] %vm2306_vm8, %v2283_v58  ;;  %2320 = vst.msk [vmem:[#allocation3 + $0x68] sm:$0xff] %vm2306_vm8, %v2285_v56 }
 0x1b2   : > { %v2445_v57 = vpop.permute.xlu0 %2444  ;;  %v2447_v59 = vpop.permute.xlu1 %2446 }
 0x1b3   : > { %2481 = vst.msk [vmem:[#allocation3 + $0x60] sm:$0xff] %vm2468_vm9, %v2445_v57  ;;  %2482 = vst.msk [vmem:[#allocation3 + $0x68] sm:$0xff] %vm2468_vm9, %v2447_v59 }
 0x1b6   : > { %v2606_v60 = vpop.permute.xlu0 %2605  ;;  %v2608_v61 = vpop.permute.xlu1 %2607 }
 0x1b7   : > { %2642 = vst.msk [vmem:[#allocation3 + $0x60] sm:$0xff] %vm2629_vm10, %v2606_v60  ;;  %2643 = vst.msk [vmem:[#allocation3 + $0x68] sm:$0xff] %vm2629_vm10, %v2608_v61 }
 0x1ba   : > { %v2767_v62 = vpop.permute.xlu0 %2766  ;;  %v1643_v2 = vpop.permute.xlu1 %1642 }
 0x1bb   : > { %2803 = vst.msk [vmem:[#allocation3 + $0x60] sm:$0xff] %vm2790_vm11, %v2767_v62 }
 0x1bc   : > { %1677 = vst.msk [vmem:[#allocation3 + $0x70] sm:$0xff] %vm1662_vm4, %v1643_v2 }
 0x1be   : > { %v2769_v3 = vpop.permute.xlu0 %2768  ;;  %v1645_v63 = vpop.permute.xlu1 %1644 }
 0x1bf   : > { %2804 = vst.msk [vmem:[#allocation3 + $0x68] sm:$0xff] %vm2790_vm11, %v2769_v3 }
 0x1c0   : > { %1678 = vst.msk [vmem:[#allocation3 + $0x78] sm:$0xff] %vm1662_vm4, %v1645_v63  ;;  %vm3718_vm4 = vcmask 60419  }
 0x1c2   : > { %v1804_v1 = vpop.permute.xlu0 %1803  ;;  %v2819_v4 = vld [vmem:[#allocation3 + $0x60] sm:$0xff]  ;;  %v1806_v5 = vpop.permute.xlu1 %1805 }
 0x1c3   : > { %1838 = vst.msk [vmem:[#allocation3 + $0x70] sm:$0xff] %vm1823_vm5, %v1804_v1  ;;  %10028 = vmatprep.mubr.msk.bf16.mxu0 %vm2838_vm12, %v2819_v4  ;;  %1839 = vst.msk [vmem:[#allocation3 + $0x78] sm:$0xff] %vm1823_vm5, %v1806_v5  ;;  %vm3719_vm5 = vsmask.f32 7950 }
 0x1c6   : > { %v1965_v6 = vpop.permute.xlu0 %1964  ;;  %v2820_v7 = vld [vmem:[#allocation3 + $0x68] sm:$0xff]  ;;  %v1967_v8 = vpop.permute.xlu1 %1966 }
 0x1c7   : > { %1999 = vst.msk [vmem:[#allocation3 + $0x70] sm:$0xff] %vm1984_vm6, %v1965_v6  ;;  %10029 = vmatmul.mubr.msk.bf16.gmra.mrb[24].mxu0 %vm2838_vm12, %v2820_v7  ;;  %2000 = vst.msk [vmem:[#allocation3 + $0x78] sm:$0xff] %vm1984_vm6, %v1967_v8 }
 0x1c8   : > { %vm11354_vm6 = vmand %vm3718_vm4, %vm3719_vm5 }
 0x1ca   : > { %v2126_v9 = vpop.permute.xlu0 %2125  ;;  %v2128_v10 = vpop.permute.xlu1 %2127 }
 0x1cb   : > { %2160 = vst.msk [vmem:[#allocation3 + $0x70] sm:$0xff] %vm2145_vm7, %v2126_v9  ;;  %2161 = vst.msk [vmem:[#allocation3 + $0x78] sm:$0xff] %vm2145_vm7, %v2128_v10  ;;  %vm4243_vm7 = vcmask 1046528  }
 0x1ce   : > { %v2287_v11 = vpop.permute.xlu0 %2286  ;;  %v2289_v12 = vpop.permute.xlu1 %2288 }
 0x1cf   : > { %2321 = vst.msk [vmem:[#allocation3 + $0x70] sm:$0xff] %vm2306_vm8, %v2287_v11  ;;  %2322 = vst.msk [vmem:[#allocation3 + $0x78] sm:$0xff] %vm2306_vm8, %v2289_v12  ;;  %vm6335_vm8 = vcmask 1040384  }
 0x1d2   : > { %v2449_v13 = vpop.permute.xlu0 %2448  ;;  %v2451_v14 = vpop.permute.xlu1 %2450 }
 0x1d3   : > { %2483 = vst.msk [vmem:[#allocation3 + $0x70] sm:$0xff] %vm2468_vm9, %v2449_v13  ;;  %2484 = vst.msk [vmem:[#allocation3 + $0x78] sm:$0xff] %vm2468_vm9, %v2451_v14  ;;  %vm7190_vm9 = vcmask 261120  }
 0x1d6   : > { %v2610_v15 = vpop.permute.xlu0 %2609  ;;  %v2612_v16 = vpop.permute.xlu1 %2611 }
 0x1d7   : > { %2644 = vst.msk [vmem:[#allocation3 + $0x70] sm:$0xff] %vm2629_vm10, %v2610_v15  ;;  %2645 = vst.msk [vmem:[#allocation3 + $0x78] sm:$0xff] %vm2629_vm10, %v2612_v16  ;;  %vm7194_vm10 = vcmask 253952  }
 0x1da   : > { %v10006_v18 = vpop.f32.mrb[0].mxu0  ;;  %v2771_v20 = vpop.permute.xlu0 %2770 }
 0x1db   : > { %v3064_v21 = vmul.f32 %v10006_v18, %v11271_v17  ;;  %2805 = vst.msk [vmem:[#allocation3 + $0x70] sm:$0xff] %vm2790_vm11, %v2771_v20  ;;  %v2773_v22 = vpop.permute.xlu1 %2772  ;;  %v2928_v23 = vpop.f32.mrb[1].mxu0 }
 0x1dc   : > { %2806 = vst.msk [vmem:[#allocation3 + $0x78] sm:$0xff] %vm2790_vm11, %v2773_v22  ;;  %v3062_v24 = vmul.f32 %v11271_v17, %v2928_v23  ;;  %v10007_v25 = vpop.f32.mrb[2].mxu0  ;;  %vm7758_vm11 = vcmask 130048  }
 0x1dd   : > { %v3103_v26 = vadd.f32 %v11274_v19, %v3064_v21  ;;  %v3065_v27 = vmul.f32 %v10007_v25, %v11271_v17  ;;  %v2931_v28 = vpop.f32.mrb[3].mxu0 }
 0x1de   : > { %v3101_v29 = vadd.f32 %v11274_v19, %v3062_v24  ;;  %v3063_v30 = vmul.f32 %v11271_v17, %v2931_v28 }
 0x1df   : > { %v3135_v31 = vadd.f32 3.0, %v3103_v26  ;;  %v3104_v32 = vadd.f32 %v11274_v19, %v3065_v27 }
 0x1e0   : > { %v3133_v33 = vadd.f32 3.0, %v3101_v29  ;;  %v3102_v34 = vadd.f32 %v11274_v19, %v3063_v30 }
 0x1e1   : > { %v3167_v35 = vmax.f32 %v3135_v31, 0.0  ;;  %v3136_v36 = vadd.f32 3.0, %v3104_v32 }
 0x1e2   : > { %v3165_v37 = vmax.f32 %v3133_v33, 0.0  ;;  %v3134_v38 = vadd.f32 3.0, %v3102_v34  ;;  %v2821_v39 = vld [vmem:[#allocation3 + $0x70] sm:$0xff] }
 0x1e3   : > { %v3199_v40 = vmin.f32 %v3167_v35, 6.0  ;;  %v3168_v41 = vmax.f32 %v3136_v36, 0.0  ;;  %10032 = vmatprep.mubr.msk.bf16.mxu0 %vm2838_vm12, %v2821_v39  ;;  %v2822_v42 = vld [vmem:[#allocation3 + $0x78] sm:$0xff] }
 0x1e4   : > { %v3197_v43 = vmin.f32 %v3165_v37, 6.0  ;;  %v3166_v44 = vmax.f32 %v3134_v38, 0.0  ;;  %10033 = vmatmul.mubr.msk.bf16.gmra.mrb[28].mxu0 %vm2838_vm12, %v2822_v42  ;;  %vm7902_vm12 = vcmask 322560  }
 0x1e5   : > { %v3231_v45 = vmul.f32 %v3199_v40, %v3103_v26  ;;  %v3200_v46 = vmin.f32 %v3168_v41, 6.0 }
 0x1e6   : > { %v3229_v47 = vmul.f32 %v3197_v43, %v3101_v29  ;;  %v3198_v48 = vmin.f32 %v3166_v44, 6.0 }
 0x1e7   : > { %v3263_v49 = vmul.f32 0.16666667, %v3231_v45  ;;  %v3232_v50 = vmul.f32 %v3200_v46, %v3104_v32 }
 0x1e8   : > { %v3261_v51 = vmul.f32 0.16666667, %v3229_v47  ;;  %v3230_v52 = vmul.f32 %v3198_v48, %v3102_v34 }
 0x1e9   : > { %3296 = vst.msk [vmem:[#allocation4 + $0x10] sm:$0xff] %vm3293_vm14, %v3263_v49  ;;  %v3264_v53 = vmul.f32 0.16666667, %v3232_v50 }
 0x1ea   : > { %3294 = vst.msk [vmem:[#allocation4] sm:$0xff] %vm3293_vm14, %v3261_v51  ;;  %v3262_v54 = vmul.f32 0.16666667, %v3230_v52 }
 0x1eb   : > { %3297 = vst.msk [vmem:[#allocation4 + $0x18] sm:$0xff] %vm3293_vm14, %v3264_v53 }
 0x1ec   : > { %3295 = vst.msk [vmem:[#allocation4 + $0x8] sm:$0xff] %vm3293_vm14, %v3262_v54 }
 0x1f0   : > { %v3328_v59 = vld [vmem:[#allocation4 + $0x10] sm:$0xff] }
 0x1f1   : > { %v3326_v58 = vld [vmem:[#allocation4] sm:$0xff] }
 0x1f2   : > { %v3329_v55 = vld [vmem:[#allocation4 + $0x18] sm:$0xff] }
 0x1f3   : > { %v3327_v56 = vld [vmem:[#allocation4 + $0x8] sm:$0xff]  ;;  %v3359_v60 = vpack.c.bf16 %v3329_v55, %v3328_v59 }
 0x1f4   : > { %v3358_v57 = vpack.c.bf16 %v3327_v56, %v3326_v58 }
 0x1f6   : > { %10038 = vmatprep.mubr.msk.bf16.mxu1 %vm3293_vm14, %v3358_v57 }
 0x1f7   : > { %10039 = vmatmul.mubr.msk.bf16.vlgmr.msra.gmra.mrb[0].mxu1 %vm3293_vm14, %v3359_v60 }
 0x1fa   : > { %v10010_v61 = vpop.f32.mrb[4].mxu0 }
 0x1fb   : > { %v3068_v62 = vmul.f32 %v10010_v61, %v11271_v17  ;;  %v2944_v2 = vpop.f32.mrb[5].mxu0 }
 0x1fc   : > { %v3066_v3 = vmul.f32 %v11271_v17, %v2944_v2  ;;  %v10011_v63 = vpop.f32.mrb[6].mxu0 }
 0x1fd   : > { %v3107_v1 = vadd.f32 %v11274_v19, %v3068_v62  ;;  %v3069_v4 = vmul.f32 %v10011_v63, %v11271_v17  ;;  %v2947_v5 = vpop.f32.mrb[7].mxu0 }
 0x1fe   : > { %v3105_v6 = vadd.f32 %v11274_v19, %v3066_v3  ;;  %v3067_v7 = vmul.f32 %v11271_v17, %v2947_v5 }
 0x1ff   : > { %v3139_v8 = vadd.f32 3.0, %v3107_v1  ;;  %v3108_v9 = vadd.f32 %v11274_v19, %v3069_v4 }
 0x200   : > { %v3137_v10 = vadd.f32 3.0, %v3105_v6  ;;  %v3106_v11 = vadd.f32 %v11274_v19, %v3067_v7 }
 0x201   : > { %v3171_v12 = vmax.f32 %v3139_v8, 0.0  ;;  %v3140_v13 = vadd.f32 3.0, %v3108_v9 }
 0x202   : > { %v3169_v14 = vmax.f32 %v3137_v10, 0.0  ;;  %v3138_v15 = vadd.f32 3.0, %v3106_v11 }
 0x203   : > { %v3203_v16 = vmin.f32 %v3171_v12, 6.0  ;;  %v3172_v18 = vmax.f32 %v3140_v13, 0.0 }
 0x204   : > { %v3201_v20 = vmin.f32 %v3169_v14, 6.0  ;;  %v3170_v21 = vmax.f32 %v3138_v15, 0.0 }
 0x205   : > { %v3235_v22 = vmul.f32 %v3203_v16, %v3107_v1  ;;  %v3204_v23 = vmin.f32 %v3172_v18, 6.0 }
 0x206   : > { %v3233_v24 = vmul.f32 %v3201_v20, %v3105_v6  ;;  %v3202_v25 = vmin.f32 %v3170_v21, 6.0 }
 0x207   : > { %v3267_v26 = vmul.f32 0.16666667, %v3235_v22  ;;  %v3236_v27 = vmul.f32 %v3204_v23, %v3108_v9 }
 0x208   : > { %v3265_v28 = vmul.f32 0.16666667, %v3233_v24  ;;  %v3234_v29 = vmul.f32 %v3202_v25, %v3106_v11 }
 0x209   : > { %3300 = vst.msk [vmem:[#allocation4 + $0x30] sm:$0xff] %vm3293_vm14, %v3267_v26  ;;  %v3268_v30 = vmul.f32 0.16666667, %v3236_v27 }
 0x20a   : > { %3298 = vst.msk [vmem:[#allocation4 + $0x20] sm:$0xff] %vm3293_vm14, %v3265_v28  ;;  %v3266_v31 = vmul.f32 0.16666667, %v3234_v29 }
 0x20b   : > { %3301 = vst.msk [vmem:[#allocation4 + $0x38] sm:$0xff] %vm3293_vm14, %v3268_v30 }
 0x20c   : > { %3299 = vst.msk [vmem:[#allocation4 + $0x28] sm:$0xff] %vm3293_vm14, %v3266_v31 }
 0x210   : > { %v3332_v36 = vld [vmem:[#allocation4 + $0x30] sm:$0xff] }
 0x211   : > { %v3330_v33 = vld [vmem:[#allocation4 + $0x20] sm:$0xff] }
 0x212   : > { %v3333_v32 = vld [vmem:[#allocation4 + $0x38] sm:$0xff] }
 0x213   : > { %v3331_v34 = vld [vmem:[#allocation4 + $0x28] sm:$0xff]  ;;  %v3361_v37 = vpack.c.bf16 %v3333_v32, %v3332_v36 }
 0x214   : > { %v3360_v35 = vpack.c.bf16 %v3331_v34, %v3330_v33 }
 0x216   : > { %10042 = vmatprep.mubr.msk.bf16.mxu1 %vm3293_vm14, %v3360_v35 }
 0x217   : > { %10043 = vmatmul.mubr.msk.bf16.gmra.mrb[4].mxu1 %vm3293_vm14, %v3361_v37 }
 0x21a   : > { %v10014_v38 = vpop.f32.mrb[8].mxu0 }
 0x21b   : > { %v3072_v39 = vmul.f32 %v10014_v38, %v11271_v17  ;;  %v2960_v40 = vpop.f32.mrb[9].mxu0 }
 0x21c   : > { %v3070_v41 = vmul.f32 %v11271_v17, %v2960_v40  ;;  %v10015_v42 = vpop.f32.mrb[10].mxu0 }
 0x21d   : > { %v3111_v43 = vadd.f32 %v11274_v19, %v3072_v39  ;;  %v3073_v44 = vmul.f32 %v10015_v42, %v11271_v17  ;;  %v2963_v45 = vpop.f32.mrb[11].mxu0 }
 0x21e   : > { %v3109_v46 = vadd.f32 %v11274_v19, %v3070_v41  ;;  %v3071_v47 = vmul.f32 %v11271_v17, %v2963_v45 }
 0x21f   : > { %v3143_v48 = vadd.f32 3.0, %v3111_v43  ;;  %v3112_v49 = vadd.f32 %v11274_v19, %v3073_v44 }
 0x220   : > { %v3141_v50 = vadd.f32 3.0, %v3109_v46  ;;  %v3110_v51 = vadd.f32 %v11274_v19, %v3071_v47  ;;  %v14025_v47 = vmov 0  }
 0x221   : > { %v3175_v52 = vmax.f32 %v3143_v48, 0.0  ;;  %v3144_v53 = vadd.f32 3.0, %v3112_v49  ;;  %3700 = vst.msk [vmem:[#allocation5 + $0x4] sm:$0xf] %vm3698_vm15, %v14025_v47  ;;  %3701 = vst.msk [vmem:[#allocation5 + $0x8] sm:$0xf] %vm3698_vm15, %v14025_v47 }
 0x222   : > { %v3173_v54 = vmax.f32 %v3141_v50, 0.0  ;;  %v3142_v55 = vadd.f32 3.0, %v3110_v51  ;;  %3702 = vst.msk [vmem:[#allocation5 + $0xc] sm:$0xf] %vm3698_vm15, %v14025_v47  ;;  %v14095_v48 = vmov 0 }
 0x223   : > { %v3207_v58 = vmin.f32 %v3175_v52, 6.0  ;;  %v3176_v56 = vmax.f32 %v3144_v53, 0.0  ;;  %v14096_v48 = vsel %vm11341_vm2, 4294967295, %v14095_v48  ;;  %3711 = vst.msk [vmem:[#allocation5 + $0x158] sm:$0xf] %vm3698_vm15, %v14025_v47 }
 0x224   : > { %v3205_v57 = vmin.f32 %v3173_v54, 6.0  ;;  %v3174_v59 = vmax.f32 %v3142_v55, 0.0  ;;  %14097 = vst [vmem:[#allocation34_spill] sm:$0xff] %v14096_v48  ;;  %3712 = vst.msk [vmem:[#allocation5 + $0x15c] sm:$0xf] %vm3698_vm15, %v14025_v47 }
 0x225   : > { %v3239_v60 = vmul.f32 %v3207_v58, %v3111_v43  ;;  %v3208_v61 = vmin.f32 %v3176_v56, 6.0  ;;  %3713 = vst.msk [vmem:[#allocation5 + $0x160] sm:$0xf] %vm3698_vm15, %v14025_v47  ;;  %v14098_v58 = vmov 0  ;;  %v3721_v56 = vld [vmem:[#allocation5 + $0x18] sm:$0x8] }
 0x226   : > { %v3237_v62 = vmul.f32 %v3205_v57, %v3109_v46  ;;  %v3206_v2 = vmin.f32 %v3174_v59, 6.0  ;;  %v14099_v58 = vsel %vm11354_vm6, 4294967295, %v14098_v58  ;;  %v3722_v59 = vsel %vm11354_vm6, 0, %v3721_v56  ;;  %v3739_v47 = vld [vmem:[#allocation5 + $0x90] sm:$0x8] }
 0x227   : > { %v3271_v3 = vmul.f32 0.16666667, %v3239_v60  ;;  %v3240_v63 = vmul.f32 %v3208_v61, %v3112_v49  ;;  %v3706_v49 = vld [vmem:[#allocation5 + $0x10] sm:$0x1]  ;;  %14100 = vst [vmem:[#allocation35_spill] sm:$0xff] %v14099_v58 }
 0x228   : > { %v3269_v1 = vmul.f32 0.16666667, %v3237_v62  ;;  %v3238_v4 = vmul.f32 %v3206_v2, %v3110_v51  ;;  %v3707_v50 = vsel %vm11341_vm2, 0, %v3706_v49  ;;  %v3724_v60 = vld [vmem:[#allocation5 + $0x2c] sm:$0x8] }
 0x229   : > { %3304 = vst.msk [vmem:[#allocation4 + $0x50] sm:$0xff] %vm3293_vm14, %v3271_v3  ;;  %v3272_v5 = vmul.f32 0.16666667, %v3240_v63  ;;  %3708 = vst [vmem:[#allocation5 + $0x10] sm:$0x1] %v3707_v50  ;;  %v3725_v62 = vsel %vm11354_vm6, 0, %v3724_v60 }
 0x22a   : > { %3302 = vst.msk [vmem:[#allocation4 + $0x40] sm:$0xff] %vm3293_vm14, %v3269_v1  ;;  %v3270_v6 = vmul.f32 0.16666667, %v3238_v4  ;;  %v3769_v61 = vld [vmem:[#allocation5 + $0x24] sm:$0x1] }
 0x22b   : > { %3305 = vst.msk [vmem:[#allocation4 + $0x58] sm:$0xff] %vm3293_vm14, %v3272_v5  ;;  %3723 = vst [vmem:[#allocation5 + $0x18] sm:$0x8] %v3722_v59  ;;  %v3770_v2 = vsel %vm11341_vm2, 0, %v3769_v61  ;;  %v3772_v3 = vld [vmem:[#allocation5 + $0x38] sm:$0x1] }
 0x22c   : > { %3303 = vst.msk [vmem:[#allocation4 + $0x48] sm:$0xff] %vm3293_vm14, %v3270_v6  ;;  %3726 = vst [vmem:[#allocation5 + $0x2c] sm:$0x8] %v3725_v62  ;;  %v3773_v63 = vsel %vm11341_vm2, 0, %v3772_v3 }
 0x22d   : > { %3771 = vst [vmem:[#allocation5 + $0x24] sm:$0x1] %v3770_v2  ;;  %3774 = vst [vmem:[#allocation5 + $0x38] sm:$0x1] %v3773_v63 }
 0x230   : > { %v3336_v11 = vld [vmem:[#allocation4 + $0x50] sm:$0xff] }
 0x231   : > { %v3334_v8 = vld [vmem:[#allocation4 + $0x40] sm:$0xff] }
 0x232   : > { %v3337_v7 = vld [vmem:[#allocation4 + $0x58] sm:$0xff] }
 0x233   : > { %v3335_v9 = vld [vmem:[#allocation4 + $0x48] sm:$0xff]  ;;  %v3363_v12 = vpack.c.bf16 %v3337_v7, %v3336_v11 }
 0x234   : > { %v3362_v10 = vpack.c.bf16 %v3335_v9, %v3334_v8 }
 0x236   : > { %10046 = vmatprep.mubr.msk.bf16.mxu1 %vm3293_vm14, %v3362_v10 }
 0x237   : > { %10047 = vmatmul.mubr.msk.bf16.gmra.mrb[8].mxu1 %vm3293_vm14, %v3363_v12 }
 0x23a   : > { %v10018_v13 = vpop.f32.mrb[12].mxu0 }
 0x23b   : > { %v3076_v14 = vmul.f32 %v10018_v13, %v11271_v17  ;;  %v2976_v15 = vpop.f32.mrb[13].mxu0 }
 0x23c   : > { %v3074_v16 = vmul.f32 %v11271_v17, %v2976_v15  ;;  %v10019_v18 = vpop.f32.mrb[14].mxu0 }
 0x23d   : > { %v3115_v20 = vadd.f32 %v11274_v19, %v3076_v14  ;;  %v3077_v21 = vmul.f32 %v10019_v18, %v11271_v17  ;;  %v2979_v22 = vpop.f32.mrb[15].mxu0 }
 0x23e   : > { %v3113_v23 = vadd.f32 %v11274_v19, %v3074_v16  ;;  %v3075_v24 = vmul.f32 %v11271_v17, %v2979_v22 }
 0x23f   : > { %v3147_v25 = vadd.f32 3.0, %v3115_v20  ;;  %v3116_v26 = vadd.f32 %v11274_v19, %v3077_v21 }
 0x240   : > { %v3145_v27 = vadd.f32 3.0, %v3113_v23  ;;  %v3114_v28 = vadd.f32 %v11274_v19, %v3075_v24 }
 0x241   : > { %v3179_v29 = vmax.f32 %v3147_v25, 0.0  ;;  %v3148_v30 = vadd.f32 3.0, %v3116_v26 }
 0x242   : > { %v3177_v31 = vmax.f32 %v3145_v27, 0.0  ;;  %v3146_v32 = vadd.f32 3.0, %v3114_v28 }
 0x243   : > { %v3211_v33 = vmin.f32 %v3179_v29, 6.0  ;;  %v3180_v34 = vmax.f32 %v3148_v30, 0.0 }
 0x244   : > { %v3209_v35 = vmin.f32 %v3177_v31, 6.0  ;;  %v3178_v36 = vmax.f32 %v3146_v32, 0.0 }
 0x245   : > { %v3243_v37 = vmul.f32 %v3211_v33, %v3115_v20  ;;  %v3212_v38 = vmin.f32 %v3180_v34, 6.0  ;;  %v3727_v33 = vld [vmem:[#allocation5 + $0x40] sm:$0x8] }
 0x246   : > { %v3241_v39 = vmul.f32 %v3209_v35, %v3113_v23  ;;  %v3210_v40 = vmin.f32 %v3178_v36, 6.0 }
 0x247   : > { %v3275_v41 = vmul.f32 0.16666667, %v3243_v37  ;;  %v3244_v42 = vmul.f32 %v3212_v38, %v3116_v26  ;;  %v3728_v38 = vsel %vm11354_vm6, 0, %v3727_v33  ;;  %v3733_v33 = vld [vmem:[#allocation5 + $0x68] sm:$0x8] }
 0x248   : > { %v3273_v43 = vmul.f32 0.16666667, %v3241_v39  ;;  %v3242_v44 = vmul.f32 %v3210_v40, %v3114_v28  ;;  %3729 = vst [vmem:[#allocation5 + $0x40] sm:$0x8] %v3728_v38 }
 0x249   : > { %3308 = vst.msk [vmem:[#allocation4 + $0x70] sm:$0xff] %vm3293_vm14, %v3275_v41  ;;  %v3276_v45 = vmul.f32 0.16666667, %v3244_v42 }
 0x24a   : > { %3306 = vst.msk [vmem:[#allocation4 + $0x60] sm:$0xff] %vm3293_vm14, %v3273_v43  ;;  %v3274_v46 = vmul.f32 0.16666667, %v3242_v44 }
 0x24b   : > { %3309 = vst.msk [vmem:[#allocation4 + $0x78] sm:$0xff] %vm3293_vm14, %v3276_v45 }
 0x24c   : > { %3307 = vst.msk [vmem:[#allocation4 + $0x68] sm:$0xff] %vm3293_vm14, %v3274_v46 }
 0x250   : > { %v3340_v55 = vld [vmem:[#allocation4 + $0x70] sm:$0xff] }
 0x251   : > { %v3338_v52 = vld [vmem:[#allocation4 + $0x60] sm:$0xff] }
 0x252   : > { %v3341_v51 = vld [vmem:[#allocation4 + $0x78] sm:$0xff] }
 0x253   : > { %v3339_v53 = vld [vmem:[#allocation4 + $0x68] sm:$0xff]  ;;  %v3365_v57 = vpack.c.bf16 %v3341_v51, %v3340_v55 }
 0x254   : > { %v3364_v54 = vpack.c.bf16 %v3339_v53, %v3338_v52  ;;  %v3775_v55 = vld [vmem:[#allocation5 + $0x4c] sm:$0x1] }
 0x255   : > { %v3776_v59 = vsel %vm11341_vm2, 0, %v3775_v55 }
 0x256   : > { %10050 = vmatprep.mubr.msk.bf16.mxu1 %vm3293_vm14, %v3364_v54  ;;  %3777 = vst [vmem:[#allocation5 + $0x4c] sm:$0x1] %v3776_v59 }
 0x257   : > { %10051 = vmatmul.mubr.msk.bf16.gmra.mrb[12].mxu1 %vm3293_vm14, %v3365_v57 }
 0x25a   : > { %v10022_v1 = vpop.f32.mrb[16].mxu0 }
 0x25b   : > { %v3080_v4 = vmul.f32 %v10022_v1, %v11271_v17  ;;  %v2992_v5 = vpop.f32.mrb[17].mxu0 }
 0x25c   : > { %v3078_v6 = vmul.f32 %v11271_v17, %v2992_v5  ;;  %v10023_v7 = vpop.f32.mrb[18].mxu0 }
 0x25d   : > { %v3119_v8 = vadd.f32 %v11274_v19, %v3080_v4  ;;  %v3081_v9 = vmul.f32 %v10023_v7, %v11271_v17  ;;  %v2995_v10 = vpop.f32.mrb[19].mxu0 }
 0x25e   : > { %v3117_v11 = vadd.f32 %v11274_v19, %v3078_v6  ;;  %v3079_v12 = vmul.f32 %v11271_v17, %v2995_v10 }
 0x25f   : > { %v3151_v13 = vadd.f32 3.0, %v3119_v8  ;;  %v3120_v14 = vadd.f32 %v11274_v19, %v3081_v9 }
 0x260   : > { %v3149_v15 = vadd.f32 3.0, %v3117_v11  ;;  %v3118_v16 = vadd.f32 %v11274_v19, %v3079_v12 }
 0x261   : > { %v3183_v18 = vmax.f32 %v3151_v13, 0.0  ;;  %v3152_v20 = vadd.f32 3.0, %v3120_v14 }
 0x262   : > { %v3181_v21 = vmax.f32 %v3149_v15, 0.0  ;;  %v3150_v22 = vadd.f32 3.0, %v3118_v16 }
 0x263   : > { %v3215_v23 = vmin.f32 %v3183_v18, 6.0  ;;  %v3184_v24 = vmax.f32 %v3152_v20, 0.0 }
 0x264   : > { %v3213_v25 = vmin.f32 %v3181_v21, 6.0  ;;  %v3182_v26 = vmax.f32 %v3150_v22, 0.0  ;;  %v3778_v21 = vld [vmem:[#allocation5 + $0x60] sm:$0x1] }
 0x265   : > { %v3247_v27 = vmul.f32 %v3215_v23, %v3119_v8  ;;  %v3216_v28 = vmin.f32 %v3184_v24, 6.0  ;;  %v3779_v22 = vsel %vm11341_vm2, 0, %v3778_v21  ;;  %v3730_v23 = vld [vmem:[#allocation5 + $0x54] sm:$0x8] }
 0x266   : > { %v3245_v29 = vmul.f32 %v3213_v25, %v3117_v11  ;;  %v3214_v30 = vmin.f32 %v3182_v26, 6.0  ;;  %3780 = vst [vmem:[#allocation5 + $0x60] sm:$0x1] %v3779_v22  ;;  %v3731_v24 = vsel %vm11354_vm6, 0, %v3730_v23 }
 0x267   : > { %v3279_v31 = vmul.f32 0.16666667, %v3247_v27  ;;  %v3248_v32 = vmul.f32 %v3216_v28, %v3120_v14  ;;  %3732 = vst [vmem:[#allocation5 + $0x54] sm:$0x8] %v3731_v24 }
 0x268   : > { %v3277_v34 = vmul.f32 0.16666667, %v3245_v29  ;;  %v3246_v35 = vmul.f32 %v3214_v30, %v3118_v16 }
 0x269   : > { %3312 = vst.msk [vmem:[#allocation4 + $0x90] sm:$0xff] %vm3293_vm14, %v3279_v31  ;;  %v3280_v36 = vmul.f32 0.16666667, %v3248_v32  ;;  %v6464_v31 = vld [vmem:[%s10498_s19] sm:$0xf] }
 0x26a   : > { %3310 = vst.msk [vmem:[#allocation4 + $0x80] sm:$0xff] %vm3293_vm14, %v3277_v34  ;;  %v3278_v37 = vmul.f32 0.16666667, %v3246_v35  ;;  %10181 = vmatprep.subr.msk.bf16.mxu1 %vm3423_vm13, %v6464_v31  ;;  %v6514_v32 = vsel %vm3423_vm13, %v6464_v31, 0  ;;  %v3734_v35 = vsel %vm11354_vm6, 0, %v3733_v33 }
 0x26b   : > { %3313 = vst.msk [vmem:[#allocation4 + $0x98] sm:$0xff] %vm3293_vm14, %v3280_v36  ;;  %10071 = vmatpush3.bf16.msra.mxu1 %v6514_v32  ;;  %3735 = vst [vmem:[#allocation5 + $0x68] sm:$0x8] %v3734_v35 }
 0x26c   : > { %3311 = vst.msk [vmem:[#allocation4 + $0x88] sm:$0xff] %vm3293_vm14, %v3278_v37 }
 0x270   : > { %v3344_v43 = vld [vmem:[#allocation4 + $0x90] sm:$0xff] }
 0x271   : > { %v3342_v40 = vld [vmem:[#allocation4 + $0x80] sm:$0xff] }
 0x272   : > { %v3345_v39 = vld [vmem:[#allocation4 + $0x98] sm:$0xff] }
 0x273   : > { %v3343_v41 = vld [vmem:[#allocation4 + $0x88] sm:$0xff]  ;;  %v3367_v44 = vpack.c.bf16 %v3345_v39, %v3344_v43  ;;  %v4075_v43 = vlaneseq }
 0x274   : > { %v3366_v42 = vpack.c.bf16 %v3343_v41, %v3342_v40 }
 0x276   : > { %10054 = vmatprep.mubr.msk.bf16.mxu1 %vm3293_vm14, %v3366_v42 }
 0x277   : > { %10055 = vmatmul.mubr.msk.bf16.gmra.mrb[16].mxu1 %vm3293_vm14, %v3367_v44 }
 0x27a   : > { %v10026_v45 = vpop.f32.mrb[20].mxu0 }
 0x27b   : > { %v3084_v46 = vmul.f32 %v10026_v45, %v11271_v17  ;;  %v3008_v49 = vpop.f32.mrb[21].mxu0 }
 0x27c   : > { %v3082_v50 = vmul.f32 %v11271_v17, %v3008_v49  ;;  %v10027_v51 = vpop.f32.mrb[22].mxu0 }
 0x27d   : > { %v3123_v52 = vadd.f32 %v11274_v19, %v3084_v46  ;;  %v3085_v53 = vmul.f32 %v10027_v51, %v11271_v17  ;;  %v3011_v54 = vpop.f32.mrb[23].mxu0 }
 0x27e   : > { %v3121_v56 = vadd.f32 %v11274_v19, %v3082_v50  ;;  %v3083_v57 = vmul.f32 %v11271_v17, %v3011_v54  ;;  %v11417_v54 = vshrl.u32 %v4075_v43, 7 }
 0x27f   : > { %v3155_v60 = vadd.f32 3.0, %v3123_v52  ;;  %v3124_v61 = vadd.f32 %v11274_v19, %v3085_v53 }
 0x280   : > { %v3153_v62 = vadd.f32 3.0, %v3121_v56  ;;  %v3122_v2 = vadd.f32 %v11274_v19, %v3083_v57 }
 0x281   : > { %v3187_v3 = vmax.f32 %v3155_v60, 0.0  ;;  %v3156_v63 = vadd.f32 3.0, %v3124_v61 }
 0x282   : > { %v3185_v1 = vmax.f32 %v3153_v62, 0.0  ;;  %v3154_v4 = vadd.f32 3.0, %v3122_v2 }
 0x283   : > { %v3219_v5 = vmin.f32 %v3187_v3, 6.0  ;;  %v3188_v6 = vmax.f32 %v3156_v63, 0.0  ;;  %v11420_v3 = vsub.s32 1, %v11417_v54 }
 0x284   : > { %v3217_v7 = vmin.f32 %v3185_v1, 6.0  ;;  %v3186_v8 = vmax.f32 %v3154_v4, 0.0  ;;  %v11423_v4 = vld [vmem:[%s14079_s3] sm:$0xff] }
 0x285   : > { %v3251_v9 = vmul.f32 %v3219_v5, %v3123_v52  ;;  %v3220_v10 = vmin.f32 %v3188_v6, 6.0  ;;  %14101 = vst [vmem:[#allocation36_spill] sm:$0xff] %v11420_v3 }
 0x286   : > { %v3249_v11 = vmul.f32 %v3217_v7, %v3121_v56  ;;  %v3218_v12 = vmin.f32 %v3186_v8, 6.0  ;;  %v9889_v7 = vld [vmem:[#allocation5 + $0x8] sm:$0xff]  }
 0x287   : > { %v3283_v13 = vmul.f32 0.16666667, %v3251_v9  ;;  %v3252_v14 = vmul.f32 %v3220_v10, %v3124_v61 }
 0x288   : > { %v3281_v15 = vmul.f32 0.16666667, %v3249_v11  ;;  %v3250_v16 = vmul.f32 %v3218_v12, %v3122_v2  ;;  %v11428_v11 = vrot.slane %v11423_v4, %v11420_v3 }
 0x289   : > { %3316 = vst.msk [vmem:[#allocation4 + $0xb0] sm:$0xff] %vm3293_vm14, %v3283_v13  ;;  %v3284_v18 = vmul.f32 0.16666667, %v3252_v14  ;;  %v11432_v13 = vsub.s32 2, %v11417_v54  ;;  %v9732_v14 = vunpack.c.l.bf16 %v9889_v7 }
 0x28a   : > { %3314 = vst.msk [vmem:[#allocation4 + $0xa0] sm:$0xff] %vm3293_vm14, %v3281_v15  ;;  %v3282_v20 = vmul.f32 0.16666667, %v3250_v16  ;;  %v9733_v15 = vunpack.c.h.bf16 %v9889_v7  ;;  %v11437_v16 = vsub.s32 0, %v11417_v54 }
 0x28b   : > { %3317 = vst.msk [vmem:[#allocation4 + $0xb8] sm:$0xff] %vm3293_vm14, %v3284_v18  ;;  %14102 = vst [vmem:[#allocation37_spill] sm:$0xff] %v11432_v13  ;;  %v4388_v18 = vld [vmem:[#allocation5 + $0x10] sm:$0x1]  ;;  %v11441_v21 = vrot.slane %v11423_v4, %v11432_v13  ;;  %v4179_v22 = vmul.f32 %v9732_v14, %v11428_v11 }
 0x28c   : > { %3315 = vst.msk [vmem:[#allocation4 + $0xa8] sm:$0xff] %vm3293_vm14, %v3282_v20  ;;  %14103 = vst [vmem:[#allocation38_spill] sm:$0xff] %v11437_v16  ;;  %v3979_v20 = vld [vmem:[#allocation5 + $0x4] sm:$0x8]  ;;  %v4180_v23 = vmul.f32 %v9733_v15, %v11428_v11  ;;  %v4404_v24 = vunpack.c.l.bf16 %v4388_v18  ;;  %v11478_v18 = vsub.s32 5, %v11417_v54 }
 0x28d   : > { %v4425_v31 = vmul.f32 %v9733_v15, %v11441_v21 }
 0x28e   : > { %14106 = vst [vmem:[#allocation41_spill] sm:$0xff] %v11478_v18 }
 0x290   : > { %v3348_v29 = vld [vmem:[#allocation4 + $0xb0] sm:$0xff] }
 0x291   : > { %v3346_v26 = vld [vmem:[#allocation4 + $0xa0] sm:$0xff] }
 0x292   : > { %v3349_v25 = vld [vmem:[#allocation4 + $0xb8] sm:$0xff] }
 0x293   : > { %v3347_v27 = vld [vmem:[#allocation4 + $0xa8] sm:$0xff]  ;;  %v3369_v30 = vpack.c.bf16 %v3349_v25, %v3348_v29  ;;  %v11447_v25 = vrot.slane %v11423_v4, %v11437_v16  ;;  %v4245_v29 = vrot.slane %v4180_v23, 1 }
 0x294   : > { %v3368_v28 = vpack.c.bf16 %v3347_v27, %v3346_v26  ;;  %v4027_v26 = vunpack.c.l.bf16 %v3979_v20 }
 0x296   : > { %10058 = vmatprep.mubr.msk.bf16.mxu1 %vm3293_vm14, %v3368_v28  ;;  %v4244_v28 = vrot.slane %v4179_v22, 1 }
 0x297   : > { %10059 = vmatmul.mubr.msk.bf16.gmra.mrb[20].mxu1 %vm3293_vm14, %v3369_v30  ;;  %v4424_v30 = vmul.f32 %v9732_v14, %v11441_v21 }
 0x298   : > { %v4246_v43 = vsel %vm4243_vm7, %v4244_v28, %v4245_v29 }
 0x29a   : > { %v10030_v34 = vpop.f32.mrb[24].mxu0 }
 0x29b   : > { %v3088_v36 = vmul.f32 %v10030_v34, %v11271_v17  ;;  %v3024_v37 = vpop.f32.mrb[25].mxu0  ;;  %v4426_v34 = vmul.f32 %v11441_v21, %v4404_v24 }
 0x29c   : > { %v3086_v38 = vmul.f32 %v11271_v17, %v3024_v37  ;;  %v10031_v39 = vpop.f32.mrb[26].mxu0  ;;  %v4079_v37 = vmul.f32 %v11447_v25, %v4027_v26 }
 0x29d   : > { %v3127_v40 = vadd.f32 %v11274_v19, %v3088_v36  ;;  %v3089_v41 = vmul.f32 %v10031_v39, %v11271_v17  ;;  %v3027_v42 = vpop.f32.mrb[27].mxu0 }
 0x29e   : > { %v3125_v44 = vadd.f32 %v11274_v19, %v3086_v38  ;;  %v3087_v45 = vmul.f32 %v11271_v17, %v3027_v42  ;;  %v3781_v38 = vld [vmem:[#allocation5 + $0x74] sm:$0x1] }
 0x29f   : > { %v3159_v46 = vadd.f32 3.0, %v3127_v40  ;;  %v3128_v49 = vadd.f32 %v11274_v19, %v3089_v41  ;;  %v4081_v41 = vmul.f32 %v9733_v15, %v11447_v25  ;;  %v3782_v42 = vsel %vm11341_vm2, 0, %v3781_v38  ;;  %v5104_v15 = vld [vmem:[#allocation5 + $0x24] sm:$0x1] }
 0x2a0   : > { %v3157_v50 = vadd.f32 3.0, %v3125_v44  ;;  %v3126_v51 = vadd.f32 %v11274_v19, %v3087_v45  ;;  %v4521_v45 = vrot.slane %v4425_v31, 2  ;;  %3783 = vst [vmem:[#allocation5 + $0x74] sm:$0x1] %v3782_v42 }
 0x2a1   : > { %v3191_v52 = vmax.f32 %v3159_v46, 0.0  ;;  %v3160_v53 = vadd.f32 3.0, %v3128_v49 }
 0x2a2   : > { %v3189_v55 = vmax.f32 %v3157_v50, 0.0  ;;  %v3158_v56 = vadd.f32 3.0, %v3126_v51 }
 0x2a3   : > { %v3223_v57 = vmin.f32 %v3191_v52, 6.0  ;;  %v3192_v59 = vmax.f32 %v3160_v53, 0.0  ;;  %v4340_v52 = vadd.f32 %v4244_v28, %v4079_v37 }
 0x2a4   : > { %v3221_v60 = vmin.f32 %v3189_v55, 6.0  ;;  %v3190_v61 = vmax.f32 %v3158_v56, 0.0 }
 0x2a5   : > { %v3255_v62 = vmul.f32 %v3223_v57, %v3127_v40  ;;  %v3224_v2 = vmin.f32 %v3192_v59, 6.0  ;;  %v4080_v40 = vmul.f32 %v9732_v14, %v11447_v25  ;;  %v4342_v57 = vadd.f32 %v4245_v29, %v4081_v41 }
 0x2a6   : > { %v3253_v63 = vmul.f32 %v3221_v60, %v3125_v44  ;;  %v3222_v1 = vmin.f32 %v3190_v61, 6.0  ;;  %v4520_v44 = vrot.slane %v4424_v30, 2  ;;  %v11463_v59 = vsub.s32 3, %v11417_v54  ;;  %v3784_v60 = vld [vmem:[#allocation5 + $0x88] sm:$0x1] }
 0x2a7   : > { %v3287_v5 = vmul.f32 0.16666667, %v3255_v62  ;;  %v3256_v6 = vmul.f32 %v3224_v2, %v3128_v49  ;;  %v4523_v49 = vrot.slane %v4426_v34, 2  ;;  %v4341_v56 = vadd.f32 %v4246_v43, %v4080_v40  ;;  %v5413_v30 = vld [vmem:[#allocation5 + $0x2c] sm:$0x8] }
 0x2a8   : > { %v3285_v8 = vmul.f32 0.16666667, %v3253_v63  ;;  %v3254_v9 = vmul.f32 %v3222_v1, %v3126_v51  ;;  %14104 = vst [vmem:[#allocation39_spill] sm:$0xff] %v11463_v59  ;;  %v4522_v63 = vsel %vm2888_vm3, %v4520_v44, %v4521_v45  ;;  %v4696_v1 = vld [vmem:[#allocation5 + $0x18] sm:$0x8]  ;;  %v11485_v24 = vrot.slane %v11423_v4, %v11463_v59 }
 0x2a9   : > { %3320 = vst.msk [vmem:[#allocation4 + $0xd0] sm:$0xff] %vm3293_vm14, %v3287_v5  ;;  %v3288_v10 = vmul.f32 0.16666667, %v3256_v6  ;;  %v3785_v5 = vsel %vm11341_vm2, 0, %v3784_v60  ;;  %v4744_v23 = vunpack.c.l.bf16 %v4696_v1  ;;  %v4648_v28 = vadd.f32 %v4520_v44, %v4340_v52  ;;  %v5105_v40 = vld [vmem:[#allocation5 + $0x38] sm:$0x1] }
 0x2aa   : > { %3318 = vst.msk [vmem:[#allocation4 + $0xc0] sm:$0xff] %vm3293_vm14, %v3285_v8  ;;  %v3286_v12 = vmul.f32 0.16666667, %v3254_v9  ;;  %v4524_v8 = vsel %vm2888_vm3, %v4521_v45, %v4523_v49  ;;  %v11474_v9 = vsub.s32 4, %v11417_v54  ;;  %3786 = vst [vmem:[#allocation5 + $0x88] sm:$0x1] %v3785_v5  ;;  %v11487_v29 = vadd.f32 %v4522_v63, %v4341_v56 }
 0x2ab   : > { %3321 = vst.msk [vmem:[#allocation4 + $0xd8] sm:$0xff] %vm3293_vm14, %v3288_v10  ;;  %v3736_v10 = vld [vmem:[#allocation5 + $0x7c] sm:$0x8]  ;;  %v5120_v34 = vunpack.c.l.bf16 %v5104_v15  ;;  %v4796_v43 = vmul.f32 %v11485_v24, %v4744_v23  ;;  %v5461_v44 = vunpack.c.l.bf16 %v5413_v30  ;;  %v4390_v45 = vld [vmem:[#allocation5 + $0x38] sm:$0x1]  ;;  %v11507_v1 = vsub.s32 7, %v11417_v54 }
 0x2ac   : > { %3319 = vst.msk [vmem:[#allocation4 + $0xc8] sm:$0xff] %vm3293_vm14, %v3286_v12  ;;  %14105 = vst [vmem:[#allocation40_spill] sm:$0xff] %v11474_v9  ;;  %v3737_v20 = vsel %vm11354_vm6, 0, %v3736_v10  ;;  %v11493_v38 = vrot.slane %v11423_v4, %v11474_v9  ;;  %v5822_v52 = vld [vmem:[#allocation5 + $0x4c] sm:$0x1] }
 0x2ad   : > { %3738 = vst [vmem:[#allocation5 + $0x7c] sm:$0x8] %v3737_v20  ;;  %v11501_v56 = vld [vmem:[%s14079_s3 + $0x8] ss:$0 sm:$0xff]  ;;  %v3982_v60 = vld [vmem:[#allocation5 + $0x18] sm:$0x8] }
 0x2ae   : > { %14108 = vst [vmem:[#allocation43_spill] sm:$0xff] %v11507_v1  ;;  %v4699_v5 = vld [vmem:[#allocation5 + $0x2c] sm:$0x8]  ;;  %v4702_v30 = vld [vmem:[#allocation5 + $0x40] sm:$0x8] }
 0x2b0   : > { %v3352_v36 = vld [vmem:[#allocation4 + $0xd0] sm:$0xff] }
 0x2b1   : > { %v3350_v32 = vld [vmem:[#allocation4 + $0xc0] sm:$0xff] }
 0x2b2   : > { %v3353_v27 = vld [vmem:[#allocation4 + $0xd8] sm:$0xff] }
 0x2b3   : > { %v3351_v33 = vld [vmem:[#allocation4 + $0xc8] sm:$0xff]  ;;  %v3371_v39 = vpack.c.bf16 %v3353_v27, %v3352_v36  ;;  %v4389_v36 = vld [vmem:[#allocation5 + $0x24] sm:$0x1] }
 0x2b4   : > { %v3370_v35 = vpack.c.bf16 %v3351_v33, %v3350_v32  ;;  %v11489_v33 = vadd.f32 %v4524_v8, %v4342_v57  ;;  %v11504_v57 = vsub.s32 6, %v11417_v54 }
 0x2b6   : > { %10062 = vmatprep.mubr.msk.bf16.mxu1 %vm3293_vm14, %v3370_v35  ;;  %v5821_v35 = vld [vmem:[#allocation5 + $0x38] sm:$0x1]  ;;  %14107 = vst [vmem:[#allocation42_spill] sm:$0xff] %v11504_v57  ;;  %v11522_v23 = vrot.slane %v11423_v4, %v11504_v57 }
 0x2b7   : > { %v10034_v46 = vpop.f32.mrb[28].mxu0  ;;  %10063 = vmatmul.mubr.msk.bf16.gmra.mrb[24].mxu1 %vm3293_vm14, %v3371_v39  ;;  %v11497_v39 = vrot.slane %v11423_v4, %v11478_v18  ;;  %v5109_v18 = vld [vmem:[#allocation5 + $0x88] sm:$0x1] }
 0x2b8   : > { %v3092_v50 = vmul.f32 %v10034_v46, %v11271_v17  ;;  %v3040_v51 = vpop.f32.mrb[29].mxu0 }
 0x2b9   : > { %v3090_v53 = vmul.f32 %v11271_v17, %v3040_v51  ;;  %v10035_v55 = vpop.f32.mrb[30].mxu0  ;;  %v4405_v51 = vunpack.c.l.bf16 %v4389_v36  ;;  %v11510_v10 = vmul.f32 %v11497_v39, %v5120_v34  ;;  %v11535_v34 = vrot.slane %v11423_v4, %v11507_v1  ;;  %v11549_v4 = vld [vmem:[%s10478_s29] ss:$0 sm:$0xff] }
 0x2ba   : > { %v3131_v61 = vadd.f32 %v11274_v19, %v3092_v50  ;;  %v3093_v62 = vmul.f32 %v10035_v55, %v11271_v17  ;;  %v3043_v2 = vpop.f32.mrb[31].mxu0  ;;  %v5837_v50 = vunpack.c.l.bf16 %v5821_v35 }
 0x2bb   : > { %v3129_v6 = vadd.f32 %v11274_v19, %v3090_v53  ;;  %v3091_v7 = vmul.f32 %v11271_v17, %v3043_v2  ;;  %v11517_v54 = vmul.f32 %v11441_v21, %v4405_v51 }
 0x2bc   : > { %v3163_v12 = vadd.f32 3.0, %v3131_v61  ;;  %v3132_v14 = vadd.f32 %v11274_v19, %v3093_v62  ;;  %v5121_v62 = vunpack.c.l.bf16 %v5105_v40  ;;  %v11514_v20 = vmul.f32 %v11501_v56, %v5837_v50 }
 0x2bd   : > { %v3161_v22 = vadd.f32 3.0, %v3129_v6  ;;  %v3130_v17 = vadd.f32 %v11274_v19, %v3091_v7  ;;  %v11543_v40 = vmul.f32 %v11522_v23, %v5461_v44  ;;  %v4750_v50 = vunpack.c.l.bf16 %v4702_v30  ;;  %v11579_v30 = vld [vmem:[#allocation5 + $0x40] sm:$0x8] }
 0x2be   : > { %v3195_v26 = vmax.f32 %v3163_v12, 0.0  ;;  %v3164_v27 = vadd.f32 3.0, %v3132_v14  ;;  %v3985_v12 = vld [vmem:[#allocation5 + $0x2c] sm:$0x8] }
 0x2bf   : > { %v3193_v31 = vmax.f32 %v3161_v22, 0.0  ;;  %v3162_v32 = vadd.f32 3.0, %v3130_v17  ;;  %v5416_v22 = vld [vmem:[#allocation5 + $0x40] sm:$0x8]  ;;  %v4033_v35 = vunpack.c.l.bf16 %v3985_v12 }
 0x2c0   : > { %v3227_v19 = vmin.f32 %v3195_v26, 6.0  ;;  %v3196_v37 = vmax.f32 %v3164_v27, 0.0  ;;  %v4747_v26 = vunpack.c.l.bf16 %v4699_v5  ;;  %v11525_v27 = vmul.f32 %v11497_v39, %v5121_v62 }
 0x2c1   : > { %v3225_v41 = vmin.f32 %v3193_v31, 6.0  ;;  %v3194_v42 = vmax.f32 %v3162_v32, 0.0  ;;  %v11529_v31 = vld [vmem:[%s10473_s25] ss:$0 sm:$0xff]  ;;  %v11531_v32 = vadd.f32 %v4796_v43, %v4648_v28 }
 0x2c2   : > { %v3259_v46 = vmul.f32 %v3227_v19, %v3131_v61  ;;  %v3228_v49 = vmin.f32 %v3196_v37, 6.0  ;;  %v4406_v61 = vunpack.c.l.bf16 %v4390_v45  ;;  %v5823_v19 = vld [vmem:[#allocation5 + $0x60] sm:$0x1]  ;;  %v5825_v45 = vld [vmem:[#allocation5 + $0x88] sm:$0x1] }
 0x2c3   : > { %v3257_v53 = vmul.f32 %v3225_v41, %v3129_v6  ;;  %v3226_v55 = vmin.f32 %v3194_v42, 6.0  ;;  %v5838_v6 = vunpack.c.l.bf16 %v5822_v52  ;;  %v5464_v41 = vunpack.c.l.bf16 %v5416_v22  ;;  %v5106_v42 = vld [vmem:[#allocation5 + $0x4c] sm:$0x1] }
 0x2c4   : > { %v3291_v2 = vmul.f32 0.16666667, %v3259_v46  ;;  %v3260_v63 = vmul.f32 %v3228_v49, %v3132_v14  ;;  %v4030_v14 = vunpack.c.l.bf16 %v3982_v60  ;;  %v11538_v36 = vmul.f32 %v11441_v21, %v4406_v61  ;;  %v11561_v60 = vld [vmem:[#allocation5 + $0x4c] sm:$0x1] }
 0x2c5   : > { %v3289_v7 = vmul.f32 0.16666667, %v3257_v53  ;;  %v3258_v8 = vmul.f32 %v3226_v55, %v3130_v17  ;;  %v11546_v28 = vmul.f32 %v11501_v56, %v5838_v6  ;;  %v11558_v52 = vmul.f32 %v11485_v24, %v4747_v26 }
 0x2c6   : > { %3324 = vst.msk [vmem:[#allocation4 + $0xf0] sm:$0xff] %vm3293_vm14, %v3291_v2  ;;  %v3292_v15 = vmul.f32 0.16666667, %v3260_v63  ;;  %v11553_v46 = vmul.f32 %v11447_v25, %v4030_v14  ;;  %v5839_v55 = vunpack.c.l.bf16 %v5823_v19  ;;  %v11565_v63 = vmul.f32 %v11447_v25, %v4033_v35  ;;  %v5107_v19 = vld [vmem:[#allocation5 + $0x60] sm:$0x1] }
 0x2c7   : > { %3322 = vst.msk [vmem:[#allocation4 + $0xe0] sm:$0xff] %vm3293_vm14, %v3289_v7  ;;  %v3290_v17 = vmul.f32 0.16666667, %v3258_v8  ;;  %v5122_v61 = vunpack.c.l.bf16 %v5106_v42  ;;  %v5419_v7 = vld [vmem:[#allocation5 + $0x54] sm:$0x8]  ;;  %v11577_v26 = vmul.f32 %v11485_v24, %v4750_v50  ;;  %v4407_v35 = vunpack.c.l.bf16 %v11561_v60 }
 0x2c8   : > { %3325 = vst.msk [vmem:[#allocation4 + $0xf8] sm:$0xff] %vm3293_vm14, %v3292_v15  ;;  %v11571_v15 = vmul.f32 %v11522_v23, %v5464_v41  ;;  %v4392_v42 = vld [vmem:[#allocation5 + $0x60] sm:$0x1]  ;;  %v5108_v60 = vld [vmem:[#allocation5 + $0x74] sm:$0x1] }
 0x2c9   : > { %3323 = vst.msk [vmem:[#allocation4 + $0xe8] sm:$0xff] %vm3293_vm14, %v3290_v17  ;;  %v11588_v5 = vmul.f32 %v11497_v39, %v5122_v61  ;;  %v4408_v57 = vunpack.c.l.bf16 %v4392_v42  ;;  %v4708_v42 = vld [vmem:[#allocation5 + $0x68] sm:$0x8] }
 0x2ca   : > { %v10040_v43 = vpop.f32.mrb[0].mxu1 }
 0x2cb   : > { %v3597_v51 = vmul.f32 %v10040_v43, %v11529_v31  ;;  %v3461_v44 = vpop.f32.mrb[1].mxu1 }
 0x2cc   : > { %v3595_v62 = vmul.f32 %v11529_v31, %v3461_v44  ;;  %v10041_v2 = vpop.f32.mrb[2].mxu1  ;;  %v5467_v44 = vunpack.c.l.bf16 %v5419_v7 }
 0x2cd   : > { %v3636_v8 = vadd.f32 %v11549_v4, %v3597_v51  ;;  %v3598_v6 = vmul.f32 %v10041_v2, %v11529_v31  ;;  %v3464_v12 = vpop.f32.mrb[3].mxu1  ;;  %v11584_v2 = vmul.f32 %v11501_v56, %v5839_v55  ;;  %v3356_v49 = vld [vmem:[#allocation4 + $0xf0] sm:$0xff]  ;;  %v5123_v55 = vunpack.c.l.bf16 %v5107_v19 }
 0x2ce   : > { %v3634_v22 = vadd.f32 %v11549_v4, %v3595_v62  ;;  %v3596_v17 = vmul.f32 %v11529_v31, %v3464_v12  ;;  %v5824_v62 = vld [vmem:[#allocation5 + $0x74] sm:$0x1]  ;;  %v3354_v0 = vld [vmem:[#allocation4 + $0xe0] sm:$0xff] }
 0x2cf   : > { %v3668_v43 = vmax.f32 %v3636_v8, 0.0  ;;  %v3637_v51 = vadd.f32 %v11549_v4, %v3598_v6  ;;  %v3357_v41 = vld [vmem:[#allocation4 + $0xf8] sm:$0xff]  ;;  %v3740_v8 = vsel %vm11354_vm6, 0, %v3739_v47  ;;  %v4036_v47 = vunpack.c.l.bf16 %v11579_v30  ;;  %v4393_v19 = vld [vmem:[#allocation5 + $0x74] sm:$0x1] }
 0x2d0   : > { %v3666_v12 = vmax.f32 %v3634_v22, 0.0  ;;  %v3635_v50 = vadd.f32 %v11549_v4, %v3596_v17  ;;  %v3355_v14 = vld [vmem:[#allocation4 + $0xe8] sm:$0xff]  ;;  %3741 = vst [vmem:[#allocation5 + $0x90] sm:$0x8] %v3740_v8  ;;  %v3373_v1 = vpack.c.bf16 %v3357_v41, %v3356_v49  ;;  %v4705_v17 = vld [vmem:[#allocation5 + $0x54] sm:$0x8]  ;;  %v11598_v49 = vmul.f32 %v11522_v23, %v5467_v44 }
 0x2d1   : > { %v9443_v6 = vpack.c.bf16 %v3668_v43, %v3668_v43  ;;  %v3669_v53 = vmax.f32 %v3637_v51, 0.0  ;;  %v3372_v7 = vpack.c.bf16 %v3355_v14, %v3354_v0  ;;  %v5422_v43 = vld [vmem:[#allocation5 + $0x68] sm:$0x8]  ;;  %v5840_v51 = vunpack.c.l.bf16 %v5824_v62  ;;  %v3991_v0 = vld [vmem:[#allocation5 + $0x54] sm:$0x8] }
 0x2d2   : > { %v9441_v37 = vpack.c.bf16 %v3666_v12, %v3666_v12  ;;  %v3667_v22 = vmax.f32 %v3635_v50, 0.0  ;;  %v5124_v14 = vunpack.c.l.bf16 %v5108_v60  ;;  %v5425_v41 = vld [vmem:[#allocation5 + $0x7c] sm:$0x8]  ;;  %v5125_v50 = vunpack.c.l.bf16 %v5109_v18 }
 0x2d3   : > { %3947 = vst.msk [vmem:[#allocation5 + $0x30] sm:$0xf] %vm3698_vm15, %v9443_v6  ;;  %v9444_v61 = vpack.c.bf16 %v3669_v53, %v3669_v53  ;;  %10066 = vmatprep.mubr.msk.bf16.mxu1 %vm3293_vm14, %v3372_v7  ;;  %v5841_v53 = vunpack.c.l.bf16 %v5825_v45  ;;  %v11603_v62 = vmul.f32 %v11441_v21, %v4407_v35  ;;  %v4753_v60 = vunpack.c.l.bf16 %v4705_v17 }
 0x2d4   : > { %3945 = vst.msk [vmem:[#allocation5 + $0x1c] sm:$0xf] %vm3698_vm15, %v9441_v37  ;;  %v9442_v12 = vpack.c.bf16 %v3667_v22, %v3667_v22  ;;  %10067 = vmatmul.mubr.msk.bf16.gmra.mrb[28].mxu1 %vm3293_vm14, %v3373_v1  ;;  %v4409_v8 = vunpack.c.l.bf16 %v4393_v19  ;;  %v3997_v37 = vld [vmem:[#allocation5 + $0x7c] sm:$0x8]  ;;  %v11607_v1 = vmul.f32 %v11497_v39, %v5123_v55  ;;  %v5470_v44 = vunpack.c.l.bf16 %v5422_v43 }
 0x2d5   : > { %3948 = vst.msk [vmem:[#allocation5 + $0x34] sm:$0xf] %vm3698_vm15, %v9444_v61  ;;  %v4039_v6 = vunpack.c.l.bf16 %v3991_v0  ;;  %v11610_v45 = vmul.f32 %v11441_v21, %v4408_v57  ;;  %v11613_v18 = vmul.f32 %v11501_v56, %v5840_v51  ;;  %v4756_v7 = vunpack.c.l.bf16 %v4708_v42 }
 0x2d6   : > { %3946 = vst.msk [vmem:[#allocation5 + $0x20] sm:$0xf] %vm3698_vm15, %v9442_v12  ;;  %v11616_v35 = vmul.f32 %v11497_v39, %v5124_v14  ;;  %v5473_v22 = vunpack.c.l.bf16 %v5425_v41  ;;  %v11620_v61 = vmul.f32 %v11501_v56, %v5841_v53  ;;  %v11623_v55 = vmul.f32 %v11497_v39, %v5125_v50 }
 0x2d7   : > { %14109 = vst [vmem:[#allocation44_spill] sm:$0xff] %v11610_v45  ;;  %14110 = vst [vmem:[#allocation45_spill] sm:$0xff] %v11613_v18  ;;  %v4045_v43 = vunpack.c.l.bf16 %v3997_v37  ;;  %v11626_v57 = vmul.f32 %v11447_v25, %v4036_v47  ;;  %v11630_v0 = vmul.f32 %v11485_v24, %v4753_v60  ;;  %v11633_v14 = vmul.f32 %v11441_v21, %v4409_v8  ;;  %v11643_v47 = vld [vmem:[#allocation5 + $0x88] sm:$0x1] }
 0x2d8   : > { %14111 = vst [vmem:[#allocation46_spill] sm:$0xff] %v11616_v35  ;;  %14112 = vst [vmem:[#allocation47_spill] sm:$0xff] %v11620_v61  ;;  %v11637_v12 = vmul.f32 %v11522_v23, %v5470_v44  ;;  %v11640_v42 = vmul.f32 %v11447_v25, %v4039_v6  ;;  %v11647_v60 = vmul.f32 %v11485_v24, %v4756_v7 }
 0x2d9   : > { %14113 = vst [vmem:[#allocation48_spill] sm:$0xff] %v11623_v55  ;;  %14114 = vst [vmem:[#allocation49_spill] sm:$0xff] %v11633_v14  ;;  %v11651_v37 = vmul.f32 %v11522_v23, %v5473_v22  ;;  %v11656_v41 = vmul.f32 %v11447_v25, %v4045_v43 }
 0x2da   : > { %14115 = vst [vmem:[#allocation50_spill] sm:$0xff] %v11640_v42  ;;  %14116 = vst [vmem:[#allocation51_spill] sm:$0xff] %v11643_v47 }
 0x2db   : > { %v3983_v53 = vld [vmem:[#allocation5 + $0x1c] sm:$0xf]  ;;  %14117 = vst [vmem:[#allocation52_spill] sm:$0xff] %v11647_v60  ;;  %14118 = vst [vmem:[#allocation53_spill] sm:$0xff] %v11651_v37 }
 0x2dc   : > { %v4031_v44 = vunpack.c.l.bf16 %v3983_v53  ;;  %v9890_v19 = vld [vmem:[#allocation5 + $0x30] sm:$0xff]   ;;  %14119 = vst [vmem:[#allocation54_spill] sm:$0xff] %v11656_v41 }
 0x2dd   : > { %v11658_v30 = vunpack.c.l.bf16 %v9890_v19  ;;  %v11660_v50 = vunpack.c.h.bf16 %v9890_v19  ;;  %v3984_v7 = vld [vmem:[#allocation5 + $0x1c] sm:$0xff]  }
 0x2de   : > { %v4698_v17 = vld [vmem:[#allocation5 + $0x20] sm:$0xf]  ;;  %v4083_v53 = vmul.f32 %v11447_v25, %v4031_v44  ;;  %v4181_v9 = vmul.f32 %v11428_v11, %v4031_v44  ;;  %v11667_v6 = vmul.f32 %v11441_v21, %v4031_v44  ;;  %v4032_v51 = vunpack.c.h.bf16 %v3984_v7 }
 0x2df   : > { %v4745_v43 = vunpack.c.l.bf16 %v3984_v7  ;;  %v4746_v59 = vunpack.c.l.bf16 %v4698_v17  ;;  %v5514_v19 = vmul.f32 %v11658_v30, %v11522_v23  ;;  %v5515_v13 = vmul.f32 %v11660_v50, %v11522_v23 }
 0x2e0   : > { %v4247_v3 = vrot.slane %v4181_v9, 1  ;;  %v4084_v8 = vmul.f32 %v11447_v25, %v4032_v51  ;;  %v4182_v22 = vmul.f32 %v11428_v11, %v4032_v51  ;;  %v11676_v16 = vmul.f32 %v11441_v21, %v4032_v51 }
 0x2e1   : > { %v4797_v44 = vmul.f32 %v11485_v24, %v4745_v43  ;;  %v4798_v41 = vmul.f32 %v11485_v24, %v4746_v59  ;;  %v4896_v17 = vmul.f32 %v11493_v38, %v4745_v43  ;;  %v4897_v7 = vmul.f32 %v11493_v38, %v4746_v59 }
 0x2e2   : > { %v4248_v47 = vrot.slane %v4182_v22, 1  ;;  %v4526_v58 = vrot.slane %v11676_v16, 2  ;;  %v5140_v9 = vmul.f32 %v11497_v39, %v4745_v43  ;;  %v5141_v55 = vmul.f32 %v11497_v39, %v4746_v59 }
 0x2e3   : > { %v4845_v14 = vadd.f32 %v4797_v44, %v11487_v29  ;;  %v4846_v51 = vadd.f32 %v4798_v41, %v11489_v33  ;;  %v4960_v61 = vrot.slane %v4896_v17, 1  ;;  %v4961_v37 = vrot.slane %v4897_v7, 1 }
 0x2e4   : > { %v5236_v35 = vrot.slane %v5140_v9, 2  ;;  %v5237_v48 = vrot.slane %v5141_v55, 2  ;;  %v5613_v60 = vmul.f32 %v11658_v30, %v11535_v34  ;;  %v5614_v22 = vmul.f32 %v11660_v50, %v11535_v34 }
 0x2e5   : > { %v4962_v16 = vsel %vm4243_vm7, %v4960_v61, %v4961_v37  ;;  %v5056_v43 = vadd.f32 %v4960_v61, %v11531_v32  ;;  %v5058_v45 = vadd.f32 %v4961_v37, %v4846_v51  ;;  %v5857_v59 = vmul.f32 %v11658_v30, %v11501_v56 }
 0x2e6   : > { %v5057_v29 = vadd.f32 %v4962_v16, %v4845_v14  ;;  %v5238_v33 = vsel %vm2888_vm3, %v5236_v35, %v5237_v48  ;;  %v14120_v41 = vrot.slane %v11510_v10, 2  ;;  %v5677_v44 = vrot.slane %v5613_v60, 1 }
 0x2e7   : > { %v5364_v17 = vadd.f32 %v5236_v35, %v5056_v43  ;;  %v5678_v9 = vrot.slane %v5614_v22, 1  ;;  %v5858_v42 = vmul.f32 %v11660_v50, %v11501_v56  ;;  %v5953_v32 = vrot.slane %v5857_v59, 2 }
 0x2e8   : > { %v5240_v55 = vsel %vm2888_vm3, %v5237_v48, %v14120_v41  ;;  %v5365_v18 = vadd.f32 %v5238_v33, %v5057_v29  ;;  %v4249_v61 = vsel %vm4243_vm7, %v4247_v3, %v4248_v47  ;;  %v4343_v37 = vadd.f32 %v4247_v3, %v11553_v46 }
 0x2e9   : > { %v5366_v7 = vadd.f32 %v5240_v55, %v5058_v45  ;;  %v5561_v14 = vadd.f32 %v11543_v40, %v5364_v17  ;;  %v5679_v10 = vsel %vm4243_vm7, %v5677_v44, %v5678_v9  ;;  %v5954_v48 = vrot.slane %v5858_v42, 2 }
 0x2ea   : > { %v10044_v60 = vpop.f32.mrb[4].mxu1  ;;  %v5562_v35 = vadd.f32 %v5514_v19, %v5365_v18  ;;  %v4344_v45 = vadd.f32 %v4249_v61, %v4083_v53  ;;  %v4345_v22 = vadd.f32 %v4248_v47, %v4084_v8  ;;  %v4525_v16 = vrot.slane %v11667_v6, 2  ;;  %v11713_v53 = vld [vmem:[%s10488_s8] ss:$0 sm:$0xff] }
 0x2eb   : > { %v5563_v51 = vadd.f32 %v5515_v13, %v5366_v7  ;;  %v3601_v43 = vmul.f32 %v10044_v60, %v11529_v31  ;;  %v3477_v59 = vpop.f32.mrb[5].mxu1  ;;  %v5773_v29 = vadd.f32 %v5677_v44, %v5561_v14  ;;  %v5955_v3 = vsel %vm2888_vm3, %v5953_v32, %v5954_v48 }
 0x2ec   : > { %v3599_v13 = vmul.f32 %v11529_v31, %v3477_v59  ;;  %v10045_v40 = vpop.f32.mrb[6].mxu1  ;;  %v5774_v46 = vadd.f32 %v5679_v10, %v5562_v35  ;;  %v14121_v42 = vrot.slane %v11514_v20, 2  ;;  %v4527_v47 = vsel %vm2888_vm3, %v4525_v16, %v4526_v58  ;;  %v11721_v20 = vld [vmem:[%s10493_s14] ss:$0 sm:$0xff] }
 0x2ed   : > { %v5775_v33 = vadd.f32 %v5678_v9, %v5563_v51  ;;  %v3640_v8 = vadd.f32 %v11549_v4, %v3601_v43  ;;  %v3602_v6 = vmul.f32 %v10045_v40, %v11529_v31  ;;  %v3480_v19 = vpop.f32.mrb[7].mxu1  ;;  %v6081_v41 = vadd.f32 %v5953_v32, %v5773_v29 }
 0x2ee   : > { %v5957_v18 = vsel %vm2888_vm3, %v5954_v48, %v14121_v42  ;;  %v3638_v44 = vadd.f32 %v11549_v4, %v3599_v13  ;;  %v3600_v17 = vmul.f32 %v11529_v31, %v3480_v19  ;;  %v6082_v7 = vadd.f32 %v5955_v3, %v5774_v46 }
 0x2ef   : > { %v6083_v55 = vadd.f32 %v5957_v18, %v5775_v33  ;;  %v14122_v9 = vrot.slane %v11517_v54, 2  ;;  %v3672_v14 = vmax.f32 %v3640_v8, 0.0  ;;  %v3641_v51 = vadd.f32 %v11549_v4, %v3602_v6 }
 0x2f0   : > { %v6136_v10 = vmul.f32 %v11713_v53, %v6081_v41  ;;  %v3670_v48 = vmax.f32 %v3638_v44, 0.0  ;;  %v3639_v60 = vadd.f32 %v11549_v4, %v3600_v17  ;;  %v6137_v35 = vmul.f32 %v11713_v53, %v6082_v7 }
 0x2f1   : > { %v4529_v61 = vsel %vm2888_vm3, %v4526_v58, %v14122_v9  ;;  %v6138_v32 = vmul.f32 %v11713_v53, %v6083_v55  ;;  %v4651_v43 = vadd.f32 %v4525_v16, %v4343_v37  ;;  %v9447_v59 = vpack.c.bf16 %v3672_v14, %v3672_v14 }
 0x2f2   : > { %v3673_v29 = vmax.f32 %v3641_v51, 0.0  ;;  %v6191_v33 = vadd.f32 %v11721_v20, %v6136_v10  ;;  %v9445_v58 = vpack.c.bf16 %v3670_v48, %v3670_v48  ;;  %v3671_v3 = vmax.f32 %v3639_v60, 0.0 }
 0x2f3   : > { %v6193_v54 = vadd.f32 %v11721_v20, %v6138_v32  ;;  %v6192_v13 = vadd.f32 %v11721_v20, %v6137_v35  ;;  %v4652_v40 = vadd.f32 %v4527_v47, %v4344_v45  ;;  %3951 = vst.msk [vmem:[#allocation5 + $0x58] sm:$0xf] %vm3698_vm15, %v9447_v59  ;;  %v4653_v8 = vadd.f32 %v4529_v61, %v4345_v22 }
 0x2f4   : > { %v9448_v46 = vpack.c.bf16 %v3673_v29, %v3673_v29  ;;  %v6239_v42 = vmax.f32 %v6191_v33, 0.0  ;;  %3949 = vst.msk [vmem:[#allocation5 + $0x44] sm:$0xf] %vm3698_vm15, %v9445_v58  ;;  %v9446_v37 = vpack.c.bf16 %v3671_v3, %v3671_v3  ;;  %v4800_v6 = vmul.f32 %v11658_v30, %v11485_v24 }
 0x2f5   : > { %v6241_v18 = vmax.f32 %v6193_v54, 0.0  ;;  %v6240_v16 = vmax.f32 %v6192_v13, 0.0  ;;  %v4801_v19 = vmul.f32 %v11660_v50, %v11485_v24  ;;  %v4847_v47 = vadd.f32 %v11558_v52, %v4651_v43 }
 0x2f6   : > { %3952 = vst.msk [vmem:[#allocation5 + $0x5c] sm:$0xf] %vm3698_vm15, %v9448_v46  ;;  %v6336_v41 = vrot.slane %v6239_v42, 7  ;;  %v4898_v55 = vmul.f32 %v11658_v30, %v11493_v38  ;;  %3950 = vst.msk [vmem:[#allocation5 + $0x48] sm:$0xf] %vm3698_vm15, %v9446_v37  ;;  %v4848_v44 = vadd.f32 %v4800_v6, %v4652_v40  ;;  %v4899_v7 = vmul.f32 %v11660_v50, %v11493_v38 }
 0x2f7   : > { %v6339_v45 = vrot.slane %v6241_v18, 7  ;;  %v6337_v22 = vrot.slane %v6240_v16, 7  ;;  %v4849_v17 = vadd.f32 %v4801_v19, %v4653_v8  ;;  %v5143_v61 = vmul.f32 %v11658_v30, %v11497_v39 }
 0x2f8   : > { %v4963_v9 = vrot.slane %v4898_v55, 1  ;;  %v5144_v14 = vmul.f32 %v11660_v50, %v11497_v39  ;;  %v4086_v52 = vmul.f32 %v11658_v30, %v11447_v25  ;;  %v4964_v32 = vrot.slane %v4899_v7, 1 }
 0x2f9   : > { %v6338_v51 = vsel %vm6335_vm8, %v6336_v41, %v6337_v22  ;;  %v6340_v10 = vsel %vm6335_vm8, %v6337_v22, %v6339_v45  ;;  %v4087_v48 = vmul.f32 %v11660_v50, %v11447_v25  ;;  %v5241_v43 = vrot.slane %v5143_v61, 2 }
 0x2fa   : > { %v6448_v60 = vpack.c.bf16 %v6340_v10, %v6338_v51  ;;  %v5059_v35 = vadd.f32 %v4963_v9, %v4847_v47  ;;  %v5242_v59 = vrot.slane %v5144_v14, 2  ;;  %v4965_v29 = vsel %vm4243_vm7, %v4963_v9, %v4964_v32 }
 0x2fb   : > { %v5061_v33 = vadd.f32 %v4964_v32, %v4849_v17  ;;  %v4183_v54 = vmul.f32 %v11658_v30, %v11428_v11  ;;  %v4184_v58 = vmul.f32 %v11660_v50, %v11428_v11  ;;  %v5060_v3 = vadd.f32 %v4965_v29, %v4848_v44 }
 0x2fc   : > { %10072 = vmatprep.mubr.msk.bf16.mxu1 %vm3293_vm14, %v6448_v60  ;;  %v5243_v13 = vsel %vm2888_vm3, %v5241_v43, %v5242_v59  ;;  %v14123_v40 = vrot.slane %v11525_v27, 2  ;;  %v5367_v42 = vadd.f32 %v5241_v43, %v5059_v35  ;;  %v4430_v6 = vmul.f32 %v11658_v30, %v11441_v21 }
 0x2fd   : > { %v9891_v18 = vld [vmem:[#allocation5 + $0x58] sm:$0xff]   ;;  %v4250_v37 = vrot.slane %v4183_v54, 1  ;;  %v4251_v16 = vrot.slane %v4184_v58, 1  ;;  %v3990_v19 = vld [vmem:[#allocation5 + $0x44] sm:$0xff]   ;;  %v5368_v41 = vadd.f32 %v5243_v13, %v5060_v3  ;;  %v4431_v55 = vmul.f32 %v11660_v50, %v11441_v21 }
 0x2fe   : > { %v5245_v46 = vsel %vm2888_vm3, %v5242_v59, %v14123_v40  ;;  %v5418_v45 = vld [vmem:[#allocation5 + $0x44] sm:$0xff]   ;;  %v5564_v47 = vadd.f32 %v11571_v15, %v5367_v42  ;;  %v11772_v22 = vunpack.c.l.bf16 %v9891_v18  ;;  %v11774_v27 = vunpack.c.h.bf16 %v3990_v19 }
 0x2ff   : > { %v5369_v8 = vadd.f32 %v5245_v46, %v5061_v33  ;;  %v5465_v44 = vunpack.c.l.bf16 %v3990_v19  ;;  %v5466_v17 = vunpack.c.h.bf16 %v5418_v45  ;;  %v4252_v7 = vsel %vm4243_vm7, %v4250_v37, %v4251_v16  ;;  %v11788_v13 = vld [vmem:[#allocation5 + $0x44] sm:$0xff]  }
 0x300   : > { %v4346_v9 = vadd.f32 %v4250_v37, %v11565_v63  ;;  %v4347_v61 = vadd.f32 %v4252_v7, %v4086_v52  ;;  %v4348_v30 = vadd.f32 %v4251_v16, %v4087_v48  ;;  %v4530_v14 = vrot.slane %v4430_v6, 2 }
 0x301   : > { %v5517_v51 = vmul.f32 %v11522_v23, %v5465_v44  ;;  %v5518_v15 = vmul.f32 %v11522_v23, %v5466_v17  ;;  %v5615_v10 = vmul.f32 %v11535_v34, %v5465_v44  ;;  %v5616_v50 = vmul.f32 %v11535_v34, %v5466_v17 }
 0x302   : > { %v5860_v32 = vmul.f32 %v11501_v56, %v5465_v44  ;;  %v5861_v60 = vmul.f32 %v11501_v56, %v5466_v17  ;;  %v4531_v35 = vrot.slane %v4431_v55, 2  ;;  %v4654_v43 = vadd.f32 %v4530_v14, %v4346_v9 }
 0x303   : > { %v5565_v59 = vadd.f32 %v5517_v51, %v5368_v41  ;;  %v5566_v29 = vadd.f32 %v5518_v15, %v5369_v8  ;;  %v5680_v63 = vrot.slane %v5615_v10, 1  ;;  %v5681_v52 = vrot.slane %v5616_v50, 1 }
 0x304   : > { %v5958_v48 = vrot.slane %v5860_v32, 2  ;;  %v5959_v33 = vrot.slane %v5861_v60, 2  ;;  %v4532_v54 = vsel %vm2888_vm3, %v4530_v14, %v4531_v35  ;;  %v14124_v58 = vrot.slane %v11538_v36, 2 }
 0x305   : > { %v5682_v40 = vsel %vm4243_vm7, %v5680_v63, %v5681_v52  ;;  %v5776_v46 = vadd.f32 %v5680_v63, %v5564_v47  ;;  %v5778_v42 = vadd.f32 %v5681_v52, %v5566_v29  ;;  %v4655_v37 = vadd.f32 %v4532_v54, %v4347_v61 }
 0x306   : > { %v4534_v3 = vsel %vm2888_vm3, %v4531_v35, %v14124_v58  ;;  %v5777_v16 = vadd.f32 %v5682_v40, %v5565_v59  ;;  %v5960_v8 = vsel %vm2888_vm3, %v5958_v48, %v5959_v33  ;;  %v14125_v6 = vrot.slane %v11546_v28, 2 }
 0x307   : > { %v4656_v41 = vadd.f32 %v4534_v3, %v4348_v30  ;;  %v6084_v55 = vadd.f32 %v5958_v48, %v5776_v46  ;;  %v4751_v36 = vunpack.c.l.bf16 %v5418_v45  ;;  %v4752_v17 = vunpack.c.h.bf16 %v11788_v13 }
 0x308   : > { %v5962_v19 = vsel %vm2888_vm3, %v5959_v33, %v14125_v6  ;;  %v6085_v7 = vadd.f32 %v5960_v8, %v5777_v16  ;;  %v4850_v9 = vadd.f32 %v11577_v26, %v4654_v43  ;;  %v11797_v14 = vunpack.c.h.bf16 %v9891_v18 }
 0x309   : > { %v6086_v44 = vadd.f32 %v5962_v19, %v5778_v42  ;;  %v11801_v47 = vmul.f32 %v11772_v22, %v11522_v23  ;;  %v6139_v61 = vmul.f32 %v11713_v53, %v6084_v55  ;;  %v4803_v30 = vmul.f32 %v11485_v24, %v4751_v36 }
 0x30a   : > { %v4804_v51 = vmul.f32 %v11485_v24, %v4752_v17  ;;  %v6140_v45 = vmul.f32 %v11713_v53, %v6085_v7  ;;  %v4900_v15 = vmul.f32 %v11493_v38, %v4751_v36  ;;  %v4901_v26 = vmul.f32 %v11493_v38, %v4752_v17  ;;  %v10048_v10 = vpop.f32.mrb[8].mxu1 }
 0x30b   : > { %v6141_v28 = vmul.f32 %v11713_v53, %v6086_v44  ;;  %v5146_v18 = vmul.f32 %v11497_v39, %v4751_v36  ;;  %v6194_v50 = vadd.f32 %v11721_v20, %v6139_v61  ;;  %v4851_v60 = vadd.f32 %v4803_v30, %v4655_v37  ;;  %v3493_v59 = vpop.f32.mrb[9].mxu1 }
 0x30c   : > { %v4852_v35 = vadd.f32 %v4804_v51, %v4656_v41  ;;  %v3605_v43 = vmul.f32 %v10048_v10, %v11529_v31  ;;  %v6195_v29 = vadd.f32 %v11721_v20, %v6140_v45  ;;  %v4966_v63 = vrot.slane %v4900_v15, 1  ;;  %v10049_v33 = vpop.f32.mrb[10].mxu1 }
 0x30d   : > { %v6196_v32 = vadd.f32 %v11721_v20, %v6141_v28  ;;  %v4967_v52 = vrot.slane %v4901_v26, 1  ;;  %v3603_v48 = vmul.f32 %v11529_v31, %v3493_v59  ;;  %v6242_v54 = vmax.f32 %v6194_v50, 0.0  ;;  %v3496_v42 = vpop.f32.mrb[11].mxu1 }
 0x30e   : > { %v5147_v3 = vmul.f32 %v11497_v39, %v4752_v17  ;;  %v3644_v40 = vadd.f32 %v11549_v4, %v3605_v43  ;;  %v3606_v46 = vmul.f32 %v10049_v33, %v11529_v31  ;;  %v6243_v37 = vmax.f32 %v6195_v29, 0.0 }
 0x30f   : > { %v6244_v58 = vmax.f32 %v6196_v32, 0.0  ;;  %v4968_v16 = vsel %vm4243_vm7, %v4966_v63, %v4967_v52  ;;  %v3642_v8 = vadd.f32 %v11549_v4, %v3603_v48  ;;  %v3604_v6 = vmul.f32 %v11529_v31, %v3496_v42 }
 0x310   : > { %v6341_v19 = vrot.slane %v6242_v54, 7  ;;  %v3676_v55 = vmax.f32 %v3644_v40, 0.0  ;;  %v3645_v44 = vadd.f32 %v11549_v4, %v3606_v46  ;;  %v6342_v36 = vrot.slane %v6243_v37, 7 }
 0x311   : > { %v6344_v41 = vrot.slane %v6244_v58, 7  ;;  %v5062_v7 = vadd.f32 %v4966_v63, %v4850_v9  ;;  %v3674_v17 = vmax.f32 %v3642_v8, 0.0  ;;  %v3643_v61 = vadd.f32 %v11549_v4, %v3604_v6 }
 0x312   : > { %v5063_v28 = vadd.f32 %v4968_v16, %v4851_v60  ;;  %v5064_v30 = vadd.f32 %v4967_v52, %v4852_v35  ;;  %v9451_v51 = vpack.c.bf16 %v3676_v55, %v3676_v55  ;;  %v3677_v45 = vmax.f32 %v3645_v44, 0.0 }
 0x313   : > { %v6343_v15 = vsel %vm6335_vm8, %v6341_v19, %v6342_v36  ;;  %v6345_v26 = vsel %vm6335_vm8, %v6342_v36, %v6344_v41  ;;  %v9449_v10 = vpack.c.bf16 %v3674_v17, %v3674_v17  ;;  %v3675_v50 = vmax.f32 %v3643_v61, 0.0 }
 0x314   : > { %v6449_v32 = vpack.c.bf16 %v6345_v26, %v6343_v15  ;;  %v5246_v43 = vrot.slane %v5146_v18, 2  ;;  %3955 = vst.msk [vmem:[#allocation5 + $0x80] sm:$0xf] %vm3698_vm15, %v9451_v51  ;;  %v9452_v59 = vpack.c.bf16 %v3677_v45, %v3677_v45  ;;  %v5247_v29 = vrot.slane %v5147_v3, 2 }
 0x315   : > { %v5521_v9 = vmul.f32 %v11797_v14, %v11522_v23  ;;  %v5617_v60 = vmul.f32 %v11772_v22, %v11535_v34  ;;  %3953 = vst.msk [vmem:[#allocation5 + $0x6c] sm:$0xf] %vm3698_vm15, %v9449_v10  ;;  %v9450_v35 = vpack.c.bf16 %v3675_v50, %v3675_v50  ;;  %v5618_v52 = vmul.f32 %v11797_v14, %v11535_v34 }
 0x316   : > { %10073 = vmatmul.mubr.msk.bf16.vlgmr.msra.gmra.mrb[32].mxu1 %vm3293_vm14, %v6449_v32  ;;  %v5370_v63 = vadd.f32 %v5246_v43, %v5062_v7  ;;  %v5863_v18 = vmul.f32 %v11772_v22, %v11501_v56  ;;  %3956 = vst.msk [vmem:[#allocation5 + $0x84] sm:$0xf] %vm3698_vm15, %v9452_v59  ;;  %v5248_v48 = vsel %vm2888_vm3, %v5246_v43, %v5247_v29  ;;  %v14126_v33 = vrot.slane %v11588_v5, 2 }
 0x317   : > { %v5683_v58 = vrot.slane %v5617_v60, 1  ;;  %v5864_v3 = vmul.f32 %v11797_v14, %v11501_v56  ;;  %3954 = vst.msk [vmem:[#allocation5 + $0x70] sm:$0xf] %vm3698_vm15, %v9450_v35  ;;  %v5371_v40 = vadd.f32 %v5248_v48, %v5063_v28  ;;  %v5684_v37 = vrot.slane %v5618_v52, 1 }
 0x318   : > { %v5250_v54 = vsel %vm2888_vm3, %v5247_v29, %v14126_v33  ;;  %v5567_v42 = vadd.f32 %v11598_v49, %v5370_v63  ;;  %v5963_v16 = vrot.slane %v5863_v18, 2  ;;  %v4037_v6 = vunpack.c.l.bf16 %v11788_v13 }
 0x319   : > { %v5372_v46 = vadd.f32 %v5250_v54, %v5064_v30  ;;  %v5964_v8 = vrot.slane %v5864_v3, 2  ;;  %v4090_v5 = vmul.f32 %v11447_v25, %v11774_v27  ;;  %v5568_v19 = vadd.f32 %v11801_v47, %v5371_v40 }
 0x31a   : > { %v5685_v55 = vsel %vm4243_vm7, %v5683_v58, %v5684_v37  ;;  %v5779_v44 = vadd.f32 %v5683_v58, %v5567_v42  ;;  %v14127_v7 = vrot.slane %v11584_v2, 2  ;;  %v4089_v17 = vmul.f32 %v11447_v25, %v4037_v6 }
 0x31b   : > { %v5569_v41 = vadd.f32 %v5521_v9, %v5372_v46  ;;  %v5965_v36 = vsel %vm2888_vm3, %v5963_v16, %v5964_v8  ;;  %v4185_v61 = vmul.f32 %v11428_v11, %v4037_v6  ;;  %v5780_v13 = vadd.f32 %v5685_v55, %v5568_v19 }
 0x31c   : > { %v5967_v49 = vsel %vm2888_vm3, %v5964_v8, %v14127_v7  ;;  %v6087_v30 = vadd.f32 %v5963_v16, %v5779_v44  ;;  %v4186_v47 = vmul.f32 %v11428_v11, %v11774_v27  ;;  %v4433_v45 = vmul.f32 %v11441_v21, %v4037_v6 }
 0x31d   : > { %v5781_v28 = vadd.f32 %v5684_v37, %v5569_v41  ;;  %v4253_v51 = vrot.slane %v4185_v61, 1  ;;  %v4434_v15 = vmul.f32 %v11441_v21, %v11774_v27  ;;  %v4806_v2 = vmul.f32 %v11772_v22, %v11485_v24 }
 0x31e   : > { %v6088_v26 = vadd.f32 %v5965_v36, %v5780_v13  ;;  %v6142_v50 = vmul.f32 %v11713_v53, %v6087_v30  ;;  %v4254_v32 = vrot.slane %v4186_v47, 1  ;;  %v3996_v43 = vld [vmem:[#allocation5 + $0x70] sm:$0xf]  ;;  %v4535_v29 = vrot.slane %v4433_v45, 2 }
 0x31f   : > { %v6089_v10 = vadd.f32 %v5967_v49, %v5781_v28  ;;  %v4349_v59 = vadd.f32 %v4253_v51, %v11626_v57  ;;  %v4536_v9 = vrot.slane %v4434_v15, 2  ;;  %v4807_v60 = vmul.f32 %v11797_v14, %v11485_v24  ;;  %v5423_v13 = vld [vmem:[#allocation5 + $0x6c] sm:$0xff]  }
 0x320   : > { %v11868_v35 = vunpack.c.l.bf16 %v3996_v43  ;;  %v6143_v27 = vmul.f32 %v11713_v53, %v6088_v26  ;;  %v6197_v52 = vadd.f32 %v11721_v20, %v6142_v50  ;;  %v4255_v18 = vsel %vm4243_vm7, %v4253_v51, %v4254_v32 }
 0x321   : > { %v6144_v63 = vmul.f32 %v11713_v53, %v6089_v10  ;;  %v4351_v48 = vadd.f32 %v4254_v32, %v4090_v5  ;;  %v4537_v33 = vsel %vm2888_vm3, %v4535_v29, %v4536_v9  ;;  %v14128_v57 = vrot.slane %v11603_v62, 2 }
 0x322   : > { %v6198_v58 = vadd.f32 %v11721_v20, %v6143_v27  ;;  %v6245_v40 = vmax.f32 %v6197_v52, 0.0  ;;  %v4350_v46 = vadd.f32 %v4255_v18, %v4089_v17  ;;  %v4657_v42 = vadd.f32 %v4535_v29, %v4349_v59 }
 0x323   : > { %v4539_v54 = vsel %vm2888_vm3, %v4536_v9, %v14128_v57  ;;  %v6199_v3 = vadd.f32 %v11721_v20, %v6144_v63  ;;  %v4902_v16 = vmul.f32 %v11772_v22, %v11493_v38  ;;  %v4903_v8 = vmul.f32 %v11797_v14, %v11493_v38 }
 0x324   : > { %v4659_v37 = vadd.f32 %v4539_v54, %v4351_v48  ;;  %v6246_v6 = vmax.f32 %v6198_v58, 0.0  ;;  %v6346_v19 = vrot.slane %v6245_v40, 7  ;;  %v4658_v62 = vadd.f32 %v4537_v33, %v4350_v46 }
 0x325   : > { %v6247_v5 = vmax.f32 %v6199_v3, 0.0  ;;  %v4853_v41 = vadd.f32 %v11630_v0, %v4657_v42  ;;  %v4969_v44 = vrot.slane %v4902_v16, 1  ;;  %v4970_v36 = vrot.slane %v4903_v8, 1 }
 0x326   : > { %v4855_v55 = vadd.f32 %v4807_v60, %v4659_v37  ;;  %v6347_v7 = vrot.slane %v6246_v6, 7  ;;  %v4854_v17 = vadd.f32 %v4806_v2, %v4658_v62  ;;  %v5149_v61 = vmul.f32 %v11772_v22, %v11497_v39 }
 0x327   : > { %v6349_v49 = vrot.slane %v6247_v5, 7  ;;  %v4971_v28 = vsel %vm4243_vm7, %v4969_v44, %v4970_v36  ;;  %v5065_v30 = vadd.f32 %v4969_v44, %v4853_v41  ;;  %v5150_v51 = vmul.f32 %v11797_v14, %v11497_v39 }
 0x328   : > { %v5067_v47 = vadd.f32 %v4970_v36, %v4855_v55  ;;  %v6348_v45 = vsel %vm6335_vm8, %v6346_v19, %v6347_v7  ;;  %v5066_v15 = vadd.f32 %v4971_v28, %v4854_v17  ;;  %v5251_v26 = vrot.slane %v5149_v61, 2 }
 0x329   : > { %v6350_v0 = vsel %vm6335_vm8, %v6347_v7, %v6349_v49  ;;  %v5252_v50 = vrot.slane %v5150_v51, 2  ;;  %v5471_v2 = vunpack.c.l.bf16 %v5423_v13  ;;  %v5472_v32 = vunpack.c.h.bf16 %v5423_v13 }
 0x32a   : > { %v6450_v10 = vpack.c.bf16 %v6350_v0, %v6348_v45  ;;  %v5373_v43 = vadd.f32 %v5251_v26, %v5065_v30  ;;  %v11894_v59 = vmul.f32 %v11772_v22, %v11447_v25  ;;  %v11898_v29 = vmul.f32 %v11797_v14, %v11447_v25  ;;  %v10052_v48 = vpop.f32.mrb[12].mxu1 }
 0x32b   : > { %v11902_v9 = vmul.f32 %v11772_v22, %v11428_v11  ;;  %v5253_v60 = vsel %vm2888_vm3, %v5251_v26, %v5252_v50  ;;  %v14129_v27 = vrot.slane %v11607_v1, 2  ;;  %v5523_v52 = vmul.f32 %v11522_v23, %v5471_v2  ;;  %v3509_v40 = vpop.f32.mrb[13].mxu1 }
 0x32c   : > { %10076 = vmatprep.mubr.msk.bf16.mxu1 %vm3293_vm14, %v6450_v10  ;;  %v5524_v18 = vmul.f32 %v11522_v23, %v5472_v32  ;;  %v5374_v33 = vadd.f32 %v5253_v60, %v5066_v15  ;;  %v5570_v54 = vadd.f32 %v11637_v12, %v5373_v43  ;;  %v5619_v58 = vmul.f32 %v11535_v34, %v5471_v2  ;;  %v10053_v16 = vpop.f32.mrb[14].mxu1  ;;  %v14130_v15 = vld [vmem:[#allocation45_spill] sm:$0xff] }
 0x32d   : > { %v5255_v63 = vsel %vm2888_vm3, %v5252_v50, %v14129_v27  ;;  %v3609_v3 = vmul.f32 %v10052_v48, %v11529_v31  ;;  %v5620_v46 = vmul.f32 %v11535_v34, %v5472_v32  ;;  %v5866_v1 = vmul.f32 %v11501_v56, %v5471_v2  ;;  %v3512_v62 = vpop.f32.mrb[15].mxu1 }
 0x32e   : > { %v5375_v57 = vadd.f32 %v5255_v63, %v5067_v47  ;;  %v5867_v42 = vmul.f32 %v11501_v56, %v5472_v32  ;;  %v3607_v37 = vmul.f32 %v11529_v31, %v3509_v40  ;;  %v5571_v8 = vadd.f32 %v5523_v52, %v5374_v33  ;;  %v4709_v52 = vld [vmem:[#allocation5 + $0x6c] sm:$0xff]  }
 0x32f   : > { %v5686_v5 = vrot.slane %v5619_v58, 1  ;;  %v3648_v19 = vadd.f32 %v11549_v4, %v3609_v3  ;;  %v3610_v12 = vmul.f32 %v10053_v16, %v11529_v31  ;;  %v5687_v41 = vrot.slane %v5620_v46, 1  ;;  %v14132_v3 = vld [vmem:[#allocation50_spill] sm:$0xff] }
 0x330   : > { %v5572_v6 = vadd.f32 %v5524_v18, %v5375_v57  ;;  %v5968_v55 = vrot.slane %v5866_v1, 2  ;;  %v3646_v44 = vadd.f32 %v11549_v4, %v3607_v37  ;;  %v3608_v36 = vmul.f32 %v11529_v31, %v3512_v62 }
 0x331   : > { %v5782_v7 = vadd.f32 %v5686_v5, %v5570_v54  ;;  %v5969_v49 = vrot.slane %v5867_v42, 2  ;;  %v3680_v56 = vmax.f32 %v3648_v19, 0.0  ;;  %v3649_v17 = vadd.f32 %v11549_v4, %v3610_v12 }
 0x332   : > { %v5688_v61 = vsel %vm4243_vm7, %v5686_v5, %v5687_v41  ;;  %v5784_v13 = vadd.f32 %v5687_v41, %v5572_v6  ;;  %v3678_v28 = vmax.f32 %v3646_v44, 0.0  ;;  %v3647_v30 = vadd.f32 %v11549_v4, %v3608_v36 }
 0x333   : > { %v5783_v47 = vadd.f32 %v5688_v61, %v5571_v8  ;;  %v5970_v51 = vsel %vm2888_vm3, %v5968_v55, %v5969_v49  ;;  %v9455_v45 = vpack.c.bf16 %v3680_v56, %v3680_v56  ;;  %v3681_v0 = vmax.f32 %v3649_v17, 0.0 }
 0x334   : > { %v14131_v26 = vrot.slane %v14130_v15, 2  ;;  %v6090_v10 = vadd.f32 %v5968_v55, %v5782_v7  ;;  %v9453_v50 = vpack.c.bf16 %v3678_v28, %v3678_v28  ;;  %v3679_v2 = vmax.f32 %v3647_v30, 0.0  ;;  %v14133_v55 = vld [vmem:[#allocation44_spill] sm:$0xff] }
 0x335   : > { %v6091_v32 = vadd.f32 %v5970_v51, %v5783_v47  ;;  %3959 = vst.msk [vmem:[#allocation5 + $0xa8] sm:$0xf] %vm3698_vm15, %v9455_v45  ;;  %v9456_v60 = vpack.c.bf16 %v3681_v0, %v3681_v0  ;;  %v4188_v4 = vmul.f32 %v11797_v14, %v11428_v11  ;;  %v4256_v63 = vrot.slane %v11902_v9, 1  ;;  %v14135_v28 = vld [vmem:[#allocation52_spill] sm:$0xff]  ;;  %v9892_v47 = vld [vmem:[#allocation5 + $0x80] sm:$0xff]  }
 0x336   : > { %v5972_v31 = vsel %vm2888_vm3, %v5969_v49, %v14131_v26  ;;  %v6145_v27 = vmul.f32 %v11713_v53, %v6090_v10  ;;  %3957 = vst.msk [vmem:[#allocation5 + $0x94] sm:$0xf] %vm3698_vm15, %v9453_v50  ;;  %v9454_v18 = vpack.c.bf16 %v3679_v2, %v3679_v2  ;;  %v4436_v57 = vmul.f32 %v11772_v22, %v11441_v21  ;;  %v3787_v26 = vld [vmem:[#allocation5 + $0x9c] sm:$0x1] }
 0x337   : > { %v6092_v43 = vadd.f32 %v5972_v31, %v5784_v13  ;;  %v6146_v48 = vmul.f32 %v11713_v53, %v6091_v32  ;;  %3960 = vst.msk [vmem:[#allocation5 + $0xac] sm:$0xf] %vm3698_vm15, %v9456_v60  ;;  %v4257_v58 = vrot.slane %v4188_v4, 1  ;;  %v4352_v40 = vadd.f32 %v4256_v63, %v14132_v3 }
 0x338   : > { %v6200_v54 = vadd.f32 %v11721_v20, %v6145_v27  ;;  %v4437_v9 = vmul.f32 %v11797_v14, %v11441_v21  ;;  %3958 = vst.msk [vmem:[#allocation5 + $0x98] sm:$0xf] %vm3698_vm15, %v9454_v18  ;;  %v4540_v42 = vrot.slane %v4436_v57, 2  ;;  %v4757_v37 = vunpack.c.l.bf16 %v4709_v52 }
 0x339   : > { %v6147_v33 = vmul.f32 %v11713_v53, %v6092_v43  ;;  %v6201_v46 = vadd.f32 %v11721_v20, %v6146_v48  ;;  %v4258_v22 = vsel %vm4243_vm7, %v4256_v63, %v4257_v58  ;;  %v4354_v8 = vadd.f32 %v4257_v58, %v11898_v29  ;;  %v3994_v43 = vld [vmem:[#allocation5 + $0x68] sm:$0x8] }
 0x33a   : > { %v6248_v16 = vmax.f32 %v6200_v54, 0.0  ;;  %v4541_v6 = vrot.slane %v4437_v9, 2  ;;  %v4353_v12 = vadd.f32 %v4258_v22, %v11894_v59  ;;  %v4660_v62 = vadd.f32 %v4540_v42, %v4352_v40 }
 0x33b   : > { %v6202_v1 = vadd.f32 %v11721_v20, %v6147_v33  ;;  %v6249_v5 = vmax.f32 %v6201_v46, 0.0  ;;  %v14134_v44 = vrot.slane %v14133_v55, 2  ;;  %v4758_v7 = vunpack.c.h.bf16 %v4709_v52 }
 0x33c   : > { %v6351_v14 = vrot.slane %v6248_v16, 7  ;;  %v4542_v41 = vsel %vm2888_vm3, %v4540_v42, %v4541_v6  ;;  %v4809_v29 = vmul.f32 %v11485_v24, %v4757_v37  ;;  %v4856_v30 = vadd.f32 %v14135_v28, %v4660_v62  ;;  %v14137_v16 = vld [vmem:[#allocation46_spill] sm:$0xff]  ;;  %v14139_v62 = vld [vmem:[#allocation53_spill] sm:$0xff] }
 0x33d   : > { %v6250_v19 = vmax.f32 %v6202_v1, 0.0  ;;  %v4544_v36 = vsel %vm2888_vm3, %v4541_v6, %v14134_v44  ;;  %v6352_v49 = vrot.slane %v6249_v5, 7  ;;  %v4661_v17 = vadd.f32 %v4542_v41, %v4353_v12  ;;  %v11987_v41 = vld [vmem:[%s14079_s3 + $0x8] ss:$0 sm:$0xff] }
 0x33e   : > { %v4662_v61 = vadd.f32 %v4544_v36, %v4354_v8  ;;  %v4810_v13 = vmul.f32 %v11485_v24, %v4758_v7  ;;  %v4904_v59 = vmul.f32 %v11493_v38, %v4757_v37  ;;  %v4905_v0 = vmul.f32 %v11493_v38, %v4758_v7 }
 0x33f   : > { %v6354_v56 = vrot.slane %v6250_v19, 7  ;;  %v6353_v51 = vsel %vm6335_vm8, %v6351_v14, %v6352_v49  ;;  %v5152_v15 = vmul.f32 %v11497_v39, %v4757_v37  ;;  %v4002_v31 = vld [vmem:[#allocation5 + $0x98] sm:$0xf]  ;;  %v4857_v50 = vadd.f32 %v4809_v29, %v4661_v17 }
 0x340   : > { %v4858_v2 = vadd.f32 %v4810_v13, %v4662_v61  ;;  %v4972_v32 = vrot.slane %v4904_v59, 1  ;;  %v11962_v60 = vunpack.c.l.bf16 %v4002_v31  ;;  %v4973_v27 = vrot.slane %v4905_v0, 1 }
 0x341   : > { %v6355_v45 = vsel %vm6335_vm8, %v6352_v49, %v6354_v56  ;;  %v5153_v4 = vmul.f32 %v11497_v39, %v4758_v7  ;;  %v5256_v63 = vrot.slane %v5152_v15, 2  ;;  %v11966_v18 = vunpack.c.l.bf16 %v9892_v47  ;;  %v9899_v56 = vld [vmem:[#allocation5 + $0x80] sm:$0xff]   ;;  %v4711_v15 = vld [vmem:[#allocation5 + $0x7c] sm:$0x8] }
 0x342   : > { %v6451_v10 = vpack.c.bf16 %v6355_v45, %v6353_v51  ;;  %v5068_v52 = vadd.f32 %v4972_v32, %v4856_v30  ;;  %v11968_v48 = vunpack.c.h.bf16 %v9892_v47  ;;  %v3788_v57 = vsel %vm11341_vm2, 0, %v3787_v26 }
 0x343   : > { %v4974_v54 = vsel %vm4243_vm7, %v4972_v32, %v4973_v27  ;;  %v5070_v58 = vadd.f32 %v4973_v27, %v4858_v2  ;;  %v5257_v3 = vrot.slane %v5153_v4, 2  ;;  %3789 = vst [vmem:[#allocation5 + $0x9c] sm:$0x1] %v3788_v57  ;;  %v4042_v40 = vunpack.c.l.bf16 %v3994_v43 }
 0x344   : > { %10077 = vmatmul.mubr.msk.bf16.gmra.mrb[36].mxu1 %vm3293_vm14, %v6451_v10  ;;  %v5069_v9 = vadd.f32 %v4974_v54, %v4857_v50  ;;  %v5376_v46 = vadd.f32 %v5256_v63, %v5068_v52  ;;  %v5526_v1 = vmul.f32 %v11966_v18, %v11522_v23  ;;  %v5527_v42 = vmul.f32 %v11968_v48, %v11522_v23  ;;  %v14140_v10 = vld [vmem:[#allocation47_spill] sm:$0xff] }
 0x345   : > { %v5258_v37 = vsel %vm2888_vm3, %v5256_v63, %v5257_v3  ;;  %v14138_v22 = vrot.slane %v14137_v16, 2  ;;  %v5621_v6 = vmul.f32 %v11966_v18, %v11535_v34  ;;  %v5622_v5 = vmul.f32 %v11968_v48, %v11535_v34 }
 0x346   : > { %v5377_v19 = vadd.f32 %v5258_v37, %v5069_v9  ;;  %v5573_v14 = vadd.f32 %v14139_v62, %v5376_v46  ;;  %v5869_v55 = vmul.f32 %v11987_v41, %v11966_v18  ;;  %v5870_v7 = vmul.f32 %v11987_v41, %v11968_v48  ;;  %v12022_v46 = vld [vmem:[%s10473_s25] ss:$0 sm:$0xff] }
 0x347   : > { %v5260_v8 = vsel %vm2888_vm3, %v5257_v3, %v14138_v22  ;;  %v5689_v44 = vrot.slane %v5621_v6, 1  ;;  %v5690_v36 = vrot.slane %v5622_v5, 1  ;;  %v11994_v49 = vmul.f32 %v11447_v25, %v4042_v40  ;;  %v14142_v37 = vld [vmem:[#allocation49_spill] sm:$0xff] }
 0x348   : > { %v5378_v12 = vadd.f32 %v5260_v8, %v5070_v58  ;;  %v5574_v17 = vadd.f32 %v5526_v1, %v5377_v19  ;;  %v5973_v29 = vrot.slane %v5869_v55, 2  ;;  %v4096_v13 = vmul.f32 %v11447_v25, %v11868_v35 }
 0x349   : > { %v5691_v28 = vsel %vm4243_vm7, %v5689_v44, %v5690_v36  ;;  %v5785_v30 = vadd.f32 %v5689_v44, %v5573_v14  ;;  %v5974_v59 = vrot.slane %v5870_v7, 2  ;;  %v12001_v47 = vmul.f32 %v11428_v11, %v11868_v35  ;;  %v12038_v14 = vld [vmem:[%s10478_s29] ss:$0 sm:$0xff] }
 0x34a   : > { %v5575_v61 = vadd.f32 %v5527_v42, %v5378_v12  ;;  %v5786_v51 = vadd.f32 %v5691_v28, %v5574_v17  ;;  %v12005_v0 = vmul.f32 %v11441_v21, %v11868_v35  ;;  %v9772_v26 = vunpack.c.l.bf16 %v9899_v56  ;;  %v10056_v57 = vpop.f32.mrb[16].mxu1 }
 0x34b   : > { %v5975_v31 = vsel %vm2888_vm3, %v5973_v29, %v5974_v59  ;;  %v14141_v50 = vrot.slane %v14140_v10, 2  ;;  %v6093_v32 = vadd.f32 %v5973_v29, %v5785_v30  ;;  %v4260_v43 = vrot.slane %v12001_v47, 1  ;;  %v3525_v42 = vpop.f32.mrb[17].mxu1 }
 0x34c   : > { %v5787_v45 = vadd.f32 %v5690_v36, %v5575_v61  ;;  %v6094_v27 = vadd.f32 %v5975_v31, %v5786_v51  ;;  %v4546_v63 = vrot.slane %v12005_v0, 2  ;;  %v9773_v52 = vunpack.c.h.bf16 %v9899_v56  ;;  %v10057_v5 = vpop.f32.mrb[18].mxu1 }
 0x34d   : > { %v5977_v2 = vsel %vm2888_vm3, %v5974_v59, %v14141_v50  ;;  %v6148_v35 = vmul.f32 %v11713_v53, %v6093_v32  ;;  %v4357_v54 = vadd.f32 %v4260_v43, %v4096_v13  ;;  %v4759_v58 = vunpack.c.l.bf16 %v4711_v15  ;;  %v3528_v36 = vpop.f32.mrb[19].mxu1 }
 0x34e   : > { %v6095_v4 = vadd.f32 %v5977_v2, %v5787_v45  ;;  %v12017_v3 = vmul.f32 %v9772_v26, %v11485_v24  ;;  %v6149_v40 = vmul.f32 %v11713_v53, %v6094_v27  ;;  %v3613_v1 = vmul.f32 %v12022_v46, %v10056_v57  ;;  %v5429_v57 = vld [vmem:[#allocation5 + $0x94] sm:$0xff]  }
 0x34f   : > { %v14143_v16 = vrot.slane %v14142_v37, 2  ;;  %v6203_v8 = vadd.f32 %v11721_v20, %v6148_v35  ;;  %v3611_v6 = vmul.f32 %v12022_v46, %v3525_v42  ;;  %v12033_v12 = vmul.f32 %v11485_v24, %v4759_v58  ;;  %v5428_v35 = vld [vmem:[#allocation5 + $0x90] sm:$0x8] }
 0x350   : > { %v6150_v9 = vmul.f32 %v11713_v53, %v6095_v4  ;;  %v6204_v53 = vadd.f32 %v11721_v20, %v6149_v40  ;;  %v3652_v55 = vadd.f32 %v12038_v14, %v3613_v1  ;;  %v3614_v44 = vmul.f32 %v12022_v46, %v10057_v5  ;;  %v5826_v1 = vld [vmem:[#allocation5 + $0x9c] sm:$0x1] }
 0x351   : > { %v4549_v22 = vsel %vm2888_vm3, %v4546_v63, %v14143_v16  ;;  %v6251_v7 = vmax.f32 %v6203_v8, 0.0  ;;  %v3650_v56 = vadd.f32 %v12038_v14, %v3611_v6  ;;  %v3612_v17 = vmul.f32 %v12022_v46, %v3528_v36 }
 0x352   : > { %v4665_v19 = vadd.f32 %v4549_v22, %v4357_v54  ;;  %v6205_v62 = vadd.f32 %v11721_v20, %v6150_v9  ;;  %v4813_v61 = vmul.f32 %v9773_v52, %v11485_v24  ;;  %v6252_v29 = vmax.f32 %v6204_v53, 0.0 }
 0x353   : > { %v3684_v28 = vmax.f32 %v3652_v55, 0.0  ;;  %v3653_v30 = vadd.f32 %v12038_v14, %v3614_v44  ;;  %v6356_v20 = vrot.slane %v6251_v7, 7  ;;  %v3682_v59 = vmax.f32 %v3650_v56, 0.0 }
 0x354   : > { %v6253_v13 = vmax.f32 %v6205_v62, 0.0  ;;  %v3651_v51 = vadd.f32 %v12038_v14, %v3612_v17  ;;  %v4861_v45 = vadd.f32 %v4813_v61, %v4665_v19  ;;  %v6357_v15 = vrot.slane %v6252_v29, 7 }
 0x355   : > { %v9459_v10 = vpack.c.bf16 %v3684_v28, %v3684_v28  ;;  %v3685_v50 = vmax.f32 %v3653_v30, 0.0  ;;  %v9457_v2 = vpack.c.bf16 %v3682_v59, %v3682_v59  ;;  %v12048_v27 = vmul.f32 %v9772_v26, %v11493_v38  ;;  %v3790_v28 = vld [vmem:[#allocation5 + $0xb0] sm:$0x1] }
 0x356   : > { %v6359_v31 = vrot.slane %v6253_v13, 7  ;;  %v3683_v32 = vmax.f32 %v3651_v51, 0.0  ;;  %v4907_v4 = vmul.f32 %v9773_v52, %v11493_v38  ;;  %v6358_v54 = vsel %vm6335_vm8, %v6356_v20, %v6357_v15  ;;  %v3742_v13 = vld [vmem:[#allocation5 + $0xa4] sm:$0x8]  ;;  %v14144_v20 = vld [vmem:[#allocation48_spill] sm:$0xff] }
 0x357   : > { %3963 = vst.msk [vmem:[#allocation5 + $0xd0] sm:$0xf] %vm3698_vm15, %v9459_v10  ;;  %v9460_v40 = vpack.c.bf16 %v3685_v50, %v3685_v50  ;;  %v12055_v9 = vmul.f32 %v9772_v26, %v11497_v39  ;;  %3961 = vst.msk [vmem:[#allocation5 + $0xbc] sm:$0xf] %vm3698_vm15, %v9457_v2  ;;  %v4975_v16 = vrot.slane %v12048_v27, 1  ;;  %v5156_v8 = vmul.f32 %v9773_v52, %v11497_v39 }
 0x358   : > { %v6360_v58 = vsel %vm6335_vm8, %v6357_v15, %v6359_v31  ;;  %v9458_v37 = vpack.c.bf16 %v3683_v32, %v3683_v32  ;;  %v4976_v22 = vrot.slane %v4907_v4, 1  ;;  %v5476_v5 = vunpack.c.l.bf16 %v5428_v35 }
 0x359   : > { %v6452_v42 = vpack.c.bf16 %v6360_v58, %v6358_v54  ;;  %3964 = vst.msk [vmem:[#allocation5 + $0xd4] sm:$0xf] %vm3698_vm15, %v9460_v40  ;;  %v5261_v6 = vrot.slane %v12055_v9, 2  ;;  %v5477_v19 = vunpack.c.l.bf16 %v5429_v57  ;;  %v5478_v62 = vunpack.c.h.bf16 %v5429_v57 }
 0x35a   : > { %3962 = vst.msk [vmem:[#allocation5 + $0xc0] sm:$0xf] %vm3698_vm15, %v9458_v37  ;;  %v12067_v26 = vsel %vm4243_vm7, %v4975_v16, %v4976_v22  ;;  %v5073_v53 = vadd.f32 %v4976_v22, %v4861_v45  ;;  %v5842_v55 = vunpack.c.l.bf16 %v5826_v1  ;;  %v5262_v44 = vrot.slane %v5156_v8, 2 }
 0x35b   : > { %10080 = vmatprep.mubr.msk.bf16.mxu1 %vm3293_vm14, %v6452_v42  ;;  %v12070_v36 = vmul.f32 %v11522_v23, %v5476_v5  ;;  %v12073_v52 = vmul.f32 %v11522_v23, %v5477_v19  ;;  %v12076_v7 = vmul.f32 %v11535_v34, %v5477_v19  ;;  %v5530_v56 = vmul.f32 %v11522_v23, %v5478_v62 }
 0x35c   : > { %v5624_v17 = vmul.f32 %v11535_v34, %v5478_v62  ;;  %v12081_v61 = vmul.f32 %v11987_v41, %v5477_v19  ;;  %v5873_v29 = vmul.f32 %v11987_v41, %v5478_v62  ;;  %v12087_v30 = vsel %vm2888_vm3, %v5261_v6, %v5262_v44 }
 0x35d   : > { %v14145_v59 = vrot.slane %v14144_v20, 2  ;;  %v5692_v45 = vrot.slane %v12076_v7, 1  ;;  %v5874_v15 = vmul.f32 %v11987_v41, %v5842_v55  ;;  %v3743_v35 = vsel %vm11354_vm6, 0, %v3742_v13 }
 0x35e   : > { %v5693_v10 = vrot.slane %v5624_v17, 1  ;;  %v5978_v50 = vrot.slane %v12081_v61, 2  ;;  %v5979_v2 = vrot.slane %v5873_v29, 2  ;;  %v3791_v57 = vsel %vm11341_vm2, 0, %v3790_v28  ;;  %3744 = vst [vmem:[#allocation5 + $0xa4] sm:$0x8] %v3743_v35 }
 0x35f   : > { %v5265_v51 = vsel %vm2888_vm3, %v5262_v44, %v14145_v59  ;;  %v5981_v32 = vrot.slane %v5874_v15, 2  ;;  %v4098_v54 = vmul.f32 %v11966_v18, %v11447_v25  ;;  %3792 = vst [vmem:[#allocation5 + $0xb0] sm:$0x1] %v3791_v57  ;;  %v4099_v42 = vmul.f32 %v11968_v48, %v11447_v25  ;;  %v14147_v29 = vld [vmem:[#allocation51_spill] sm:$0xff] }
 0x360   : > { %v5381_v31 = vadd.f32 %v5265_v51, %v5073_v53  ;;  %v12104_v40 = vsel %vm4243_vm7, %v5692_v45, %v5693_v10  ;;  %v12109_v1 = vsel %vm2888_vm3, %v5978_v50, %v5979_v2  ;;  %v4191_v8 = vmul.f32 %v11966_v18, %v11428_v11 }
 0x361   : > { %v4008_v37 = vld [vmem:[#allocation5 + $0x6c] ss:$84 sps:$4 sm:$0xff]   ;;  %v5982_v22 = vsel %vm2888_vm3, %v5979_v2, %v5981_v32  ;;  %v4192_v5 = vmul.f32 %v11968_v48, %v11428_v11  ;;  %v4442_v19 = vmul.f32 %v11966_v18, %v11441_v21  ;;  %v4443_v44 = vmul.f32 %v11968_v48, %v11441_v21 }
 0x362   : > { %v5578_v58 = vadd.f32 %v5530_v56, %v5381_v31  ;;  %v12120_v53 = vunpack.c.h.bf16 %v4008_v37  ;;  %v4043_v62 = vunpack.c.l.bf16 %v4008_v37  ;;  %v4262_v56 = vrot.slane %v4191_v8, 1  ;;  %v4714_v31 = vld [vmem:[#allocation5 + $0x90] sm:$0x8]  ;;  %v14149_v2 = vld [vmem:[#allocation54_spill] sm:$0xff]  ;;  %v12133_v37 = vld [vmem:[%s10488_s8] ss:$0 sm:$0xff] }
 0x363   : > { %v4263_v17 = vrot.slane %v4192_v5, 1  ;;  %v14148_v13 = vunpack.c.l.bf16 %v14147_v29  ;;  %v4550_v20 = vrot.slane %v4442_v19, 2  ;;  %v4551_v35 = vrot.slane %v4443_v44, 2  ;;  %v4715_v19 = vld [vmem:[#allocation5 + $0x94] sm:$0xff]  }
 0x364   : > { %v5790_v55 = vadd.f32 %v5693_v10, %v5578_v58  ;;  %v4095_v59 = vmul.f32 %v11447_v25, %v4043_v62  ;;  %v4189_v51 = vmul.f32 %v11428_v11, %v4043_v62  ;;  %v4439_v18 = vmul.f32 %v11441_v21, %v4043_v62 }
 0x365   : > { %v4444_v28 = vmul.f32 %v11441_v21, %v14148_v13  ;;  %v4264_v10 = vsel %vm4243_vm7, %v4262_v56, %v4263_v17  ;;  %v4358_v48 = vadd.f32 %v4262_v56, %v14149_v2  ;;  %v4360_v32 = vadd.f32 %v4263_v17, %v4099_v42  ;;  %v12145_v17 = vld [vmem:[%s10493_s14] ss:$0 sm:$0xff] }
 0x366   : > { %v6098_v15 = vadd.f32 %v5982_v22, %v5790_v55  ;;  %v4259_v57 = vrot.slane %v4189_v51, 1  ;;  %v4545_v58 = vrot.slane %v4439_v18, 2  ;;  %v4359_v5 = vadd.f32 %v4264_v10, %v4098_v54  ;;  %v5110_v10 = vld [vmem:[#allocation5 + $0x9c] sm:$0x1] }
 0x367   : > { %v4552_v29 = vsel %vm2888_vm3, %v4550_v20, %v4551_v35  ;;  %v4553_v62 = vrot.slane %v4444_v28, 2  ;;  %v4666_v22 = vadd.f32 %v4550_v20, %v4358_v48  ;;  %v4762_v55 = vunpack.c.l.bf16 %v4714_v31 }
 0x368   : > { %v6153_v8 = vmul.f32 %v12133_v37, %v6098_v15  ;;  %v4261_v56 = vsel %vm4243_vm7, %v4259_v57, %v4260_v43  ;;  %v4355_v42 = vadd.f32 %v4259_v57, %v11994_v49  ;;  %v4547_v44 = vsel %vm2888_vm3, %v4545_v58, %v4546_v63 }
 0x369   : > { %v4356_v13 = vadd.f32 %v4261_v56, %v4095_v59  ;;  %v4554_v51 = vsel %vm2888_vm3, %v4551_v35, %v4553_v62  ;;  %v4667_v28 = vadd.f32 %v4552_v29, %v4359_v5  ;;  %v4763_v20 = vunpack.c.l.bf16 %v4715_v19  ;;  %v9893_v56 = vld [vmem:[#allocation5 + $0xa8] sm:$0xff]  }
 0x36a   : > { %v6208_v54 = vadd.f32 %v12145_v17, %v6153_v8  ;;  %v4663_v18 = vadd.f32 %v4545_v58, %v4355_v42  ;;  %v4668_v47 = vadd.f32 %v4554_v51, %v4360_v32  ;;  %v4764_v31 = vunpack.c.h.bf16 %v4715_v19  ;;  %v5431_v51 = vld [vmem:[#allocation5 + $0xa4] sm:$0x8] }
 0x36b   : > { %v4664_v43 = vadd.f32 %v4547_v44, %v4356_v13  ;;  %v4814_v49 = vmul.f32 %v11485_v24, %v4762_v55  ;;  %v4815_v0 = vmul.f32 %v11485_v24, %v4763_v20  ;;  %v4908_v63 = vmul.f32 %v11493_v38, %v4763_v20  ;;  %v10060_v55 = vpop.f32.mrb[20].mxu1 }
 0x36c   : > { %v6256_v15 = vmax.f32 %v6208_v54, 0.0  ;;  %v4859_v2 = vadd.f32 %v12033_v12, %v4663_v18  ;;  %v4816_v59 = vmul.f32 %v11485_v24, %v4764_v31  ;;  %v4909_v35 = vmul.f32 %v11493_v38, %v4764_v31  ;;  %v3541_v13 = vpop.f32.mrb[21].mxu1 }
 0x36d   : > { %v4860_v57 = vadd.f32 %v12017_v3, %v4664_v43  ;;  %v4862_v32 = vadd.f32 %v4814_v49, %v4666_v22  ;;  %v4863_v58 = vadd.f32 %v4815_v0, %v4667_v28  ;;  %v4978_v8 = vrot.slane %v4908_v63, 1  ;;  %v10061_v28 = vpop.f32.mrb[22].mxu1 }
 0x36e   : > { %v12153_v48 = vrot.slane %v6256_v15, 7  ;;  %v5071_v5 = vadd.f32 %v4975_v16, %v4859_v2  ;;  %v4864_v19 = vadd.f32 %v4816_v59, %v4668_v47  ;;  %v4979_v29 = vrot.slane %v4909_v35, 1  ;;  %v3544_v43 = vpop.f32.mrb[23].mxu1  ;;  %v5827_v35 = vld [vmem:[#allocation5 + $0xb0] sm:$0x1] }
 0x36f   : > { %v5126_v62 = vunpack.c.l.bf16 %v5110_v10  ;;  %v5072_v12 = vadd.f32 %v12067_v26, %v4860_v57  ;;  %v5074_v42 = vadd.f32 %v4978_v8, %v4862_v32  ;;  %v5158_v44 = vmul.f32 %v11497_v39, %v4763_v20 }
 0x370   : > { %v5159_v54 = vmul.f32 %v11497_v39, %v4764_v31  ;;  %v5379_v3 = vadd.f32 %v5261_v6, %v5071_v5  ;;  %v4980_v22 = vsel %vm4243_vm7, %v4978_v8, %v4979_v29  ;;  %v5076_v27 = vadd.f32 %v4979_v29, %v4864_v19 }
 0x371   : > { %v5160_v16 = vmul.f32 %v11497_v39, %v5126_v62  ;;  %v5380_v18 = vadd.f32 %v12087_v30, %v5072_v12  ;;  %v5075_v15 = vadd.f32 %v4980_v22, %v4863_v58  ;;  %v5266_v26 = vrot.slane %v5158_v44, 2 }
 0x372   : > { %v5267_v47 = vrot.slane %v5159_v54, 2  ;;  %v5576_v20 = vadd.f32 %v12070_v36, %v5379_v3  ;;  %v12169_v49 = vunpack.c.l.bf16 %v9893_v56  ;;  %v12171_v9 = vunpack.c.h.bf16 %v9893_v56 }
 0x373   : > { %v5269_v31 = vrot.slane %v5160_v16, 2  ;;  %v5577_v6 = vadd.f32 %v12073_v52, %v5380_v18  ;;  %v5382_v63 = vadd.f32 %v5266_v26, %v5074_v42  ;;  %v5479_v10 = vunpack.c.l.bf16 %v5431_v51 }
 0x374   : > { %v5268_v0 = vsel %vm2888_vm3, %v5266_v26, %v5267_v47  ;;  %v5788_v30 = vadd.f32 %v5692_v45, %v5576_v20  ;;  %v5532_v36 = vmul.f32 %v12169_v49, %v11522_v23  ;;  %v5533_v52 = vmul.f32 %v12171_v9, %v11522_v23 }
 0x375   : > { %v5270_v2 = vsel %vm2888_vm3, %v5267_v47, %v5269_v31  ;;  %v5383_v59 = vadd.f32 %v5268_v0, %v5075_v15  ;;  %v5789_v57 = vadd.f32 %v12104_v40, %v5577_v6  ;;  %v5531_v58 = vmul.f32 %v11522_v23, %v5479_v10 }
 0x376   : > { %v5384_v32 = vadd.f32 %v5270_v2, %v5076_v27  ;;  %v6096_v8 = vadd.f32 %v5978_v50, %v5788_v30  ;;  %v5625_v45 = vmul.f32 %v12169_v49, %v11535_v34  ;;  %v5626_v5 = vmul.f32 %v12171_v9, %v11535_v34 }
 0x377   : > { %v5580_v7 = vadd.f32 %v5532_v36, %v5383_v59  ;;  %v6097_v19 = vadd.f32 %v12109_v1, %v5789_v57  ;;  %v5579_v29 = vadd.f32 %v5531_v58, %v5382_v63  ;;  %v5843_v62 = vunpack.c.l.bf16 %v5827_v35 }
 0x378   : > { %v5581_v40 = vadd.f32 %v5533_v52, %v5384_v32  ;;  %v6151_v56 = vmul.f32 %v12133_v37, %v6096_v8  ;;  %v5695_v12 = vrot.slane %v5625_v45, 1  ;;  %v5696_v42 = vrot.slane %v5626_v5, 1  ;;  %v3745_v45 = vld [vmem:[#allocation5 + $0xb8] sm:$0x8] }
 0x379   : > { %v5875_v61 = vmul.f32 %v11987_v41, %v12169_v49  ;;  %v6152_v50 = vmul.f32 %v12133_v37, %v6097_v19  ;;  %v5876_v44 = vmul.f32 %v11987_v41, %v12171_v9  ;;  %v5877_v54 = vmul.f32 %v11987_v41, %v5843_v62 }
 0x37a   : > { %v3617_v3 = vmul.f32 %v12022_v46, %v10060_v55  ;;  %v6206_v1 = vadd.f32 %v12145_v17, %v6151_v56  ;;  %v5697_v22 = vsel %vm4243_vm7, %v5695_v12, %v5696_v42  ;;  %v5791_v27 = vadd.f32 %v5695_v12, %v5579_v29 }
 0x37b   : > { %v5793_v16 = vadd.f32 %v5696_v42, %v5581_v40  ;;  %v6207_v51 = vadd.f32 %v12145_v17, %v6152_v50  ;;  %v5792_v18 = vadd.f32 %v5697_v22, %v5580_v7  ;;  %v5983_v15 = vrot.slane %v5875_v61, 2  ;;  %v3793_v40 = vld [vmem:[#allocation5 + $0xc4] sm:$0x1]  ;;  %v4000_v61 = vld [vmem:[#allocation5 + $0x90] sm:$0x8] }
 0x37c   : > { %v5984_v26 = vrot.slane %v5876_v44, 2  ;;  %v6254_v47 = vmax.f32 %v6206_v1, 0.0  ;;  %v5986_v20 = vrot.slane %v5877_v54, 2  ;;  %v3656_v31 = vadd.f32 %v12038_v14, %v3617_v3  ;;  %v4395_v54 = vld [vmem:[#allocation5 + $0x9c] sm:$0x1] }
 0x37d   : > { %v3615_v6 = vmul.f32 %v12022_v46, %v3541_v13  ;;  %v6255_v0 = vmax.f32 %v6207_v51, 0.0  ;;  %v6099_v63 = vadd.f32 %v5983_v15, %v5791_v27  ;;  %v3618_v10 = vmul.f32 %v12022_v46, %v10061_v28 }
 0x37e   : > { %v5985_v55 = vsel %vm2888_vm3, %v5983_v15, %v5984_v26  ;;  %v6361_v30 = vrot.slane %v6254_v47, 7  ;;  %v5987_v2 = vsel %vm2888_vm3, %v5984_v26, %v5986_v20  ;;  %v3688_v36 = vmax.f32 %v3656_v31, 0.0  ;;  %v9900_v26 = vld [vmem:[#allocation5 + $0xa8] sm:$0xff]  }
 0x37f   : > { %v6100_v59 = vadd.f32 %v5985_v55, %v5792_v18  ;;  %v6362_v35 = vrot.slane %v6255_v0, 7  ;;  %v6101_v57 = vadd.f32 %v5987_v2, %v5793_v16  ;;  %v6154_v32 = vmul.f32 %v12133_v37, %v6099_v63  ;;  %v4717_v0 = vld [vmem:[#allocation5 + $0xa4] sm:$0x8] }
 0x380   : > { %v3654_v58 = vadd.f32 %v12038_v14, %v3615_v6  ;;  %v9463_v13 = vpack.c.bf16 %v3688_v36, %v3688_v36  ;;  %v3657_v8 = vadd.f32 %v12038_v14, %v3618_v10  ;;  %v3616_v7 = vmul.f32 %v12022_v46, %v3544_v43 }
 0x381   : > { %v6155_v52 = vmul.f32 %v12133_v37, %v6100_v59  ;;  %v6363_v28 = vsel %vm6335_vm8, %v6361_v30, %v6362_v35  ;;  %v6365_v5 = vsel %vm6335_vm8, %v6362_v35, %v12153_v48  ;;  %v6156_v19 = vmul.f32 %v12133_v37, %v6101_v57 }
 0x382   : > { %v6209_v29 = vadd.f32 %v12145_v17, %v6154_v32  ;;  %v6453_v62 = vpack.c.bf16 %v6365_v5, %v6363_v28  ;;  %3967 = vst.msk [vmem:[#allocation5 + $0xf8] sm:$0xf] %vm3698_vm15, %v9463_v13  ;;  %v3686_v12 = vmax.f32 %v3654_v58, 0.0  ;;  %v3689_v42 = vmax.f32 %v3657_v8, 0.0  ;;  %v5111_v13 = vld [vmem:[#allocation5 + $0xb0] sm:$0x1] }
 0x383   : > { %v6210_v56 = vadd.f32 %v12145_v17, %v6155_v52  ;;  %v6211_v43 = vadd.f32 %v12145_v17, %v6156_v19  ;;  %v3655_v44 = vadd.f32 %v12038_v14, %v3616_v7  ;;  %v3746_v48 = vsel %vm11354_vm6, 0, %v3745_v45 }
 0x384   : > { %v6257_v50 = vmax.f32 %v6209_v29, 0.0  ;;  %10081 = vmatmul.mubr.msk.bf16.gmra.mrb[40].mxu1 %vm3293_vm14, %v6453_v62  ;;  %v9461_v1 = vpack.c.bf16 %v3686_v12, %v3686_v12  ;;  %v9464_v22 = vpack.c.bf16 %v3689_v42, %v3689_v42  ;;  %3747 = vst [vmem:[#allocation5 + $0xb8] sm:$0x8] %v3746_v48  ;;  %v3794_v27 = vsel %vm11341_vm2, 0, %v3793_v40  ;;  %v5435_v62 = vld [vmem:[#allocation5 + $0xbc] sm:$0xff]  }
 0x385   : > { %v6258_v3 = vmax.f32 %v6210_v56, 0.0  ;;  %v6259_v16 = vmax.f32 %v6211_v43, 0.0  ;;  %v3687_v18 = vmax.f32 %v3655_v44, 0.0  ;;  %3795 = vst [vmem:[#allocation5 + $0xc4] sm:$0x1] %v3794_v27  ;;  %v4048_v15 = vunpack.c.l.bf16 %v4000_v61 }
 0x386   : > { %v6366_v51 = vrot.slane %v6257_v50, 7  ;;  %3965 = vst.msk [vmem:[#allocation5 + $0xe4] sm:$0xf] %vm3698_vm15, %v9461_v1  ;;  %3968 = vst.msk [vmem:[#allocation5 + $0xfc] sm:$0xf] %vm3698_vm15, %v9464_v22  ;;  %v4102_v20 = vmul.f32 %v11447_v25, %v11962_v60  ;;  %v12232_v31 = vmul.f32 %v11428_v11, %v11962_v60  ;;  %v4411_v6 = vunpack.c.l.bf16 %v4395_v54 }
 0x387   : > { %v6367_v47 = vrot.slane %v6258_v3, 7  ;;  %v6369_v55 = vrot.slane %v6259_v16, 7  ;;  %v9462_v63 = vpack.c.bf16 %v3687_v18, %v3687_v18  ;;  %v12235_v10 = vmul.f32 %v11447_v25, %v4048_v15 }
 0x388   : > { %v12239_v30 = vmul.f32 %v11441_v21, %v11962_v60  ;;  %v4266_v59 = vrot.slane %v12232_v31, 1  ;;  %v4447_v36 = vmul.f32 %v11441_v21, %v4411_v6  ;;  %v9776_v35 = vunpack.c.l.bf16 %v9900_v26  ;;  %v4396_v31 = vld [vmem:[#allocation5 + $0xb0] sm:$0x1] }
 0x389   : > { %v6368_v2 = vsel %vm6335_vm8, %v6366_v51, %v6367_v47  ;;  %v6370_v57 = vsel %vm6335_vm8, %v6367_v47, %v6369_v55  ;;  %3966 = vst.msk [vmem:[#allocation5 + $0xe8] sm:$0xf] %vm3698_vm15, %v9462_v63  ;;  %v9777_v58 = vunpack.c.h.bf16 %v9900_v26  ;;  %v4765_v52 = vunpack.c.l.bf16 %v4717_v0 }
 0x38a   : > { %v4556_v32 = vrot.slane %v12239_v30, 2  ;;  %v6454_v8 = vpack.c.bf16 %v6370_v57, %v6368_v2  ;;  %v4363_v60 = vadd.f32 %v4266_v59, %v4102_v20  ;;  %v4558_v7 = vrot.slane %v4447_v36, 2  ;;  %v12271_v27 = vpop.f32.mrb[24].mxu1 }
 0x38b   : > { %v12250_v45 = vmul.f32 %v9776_v35, %v11485_v24  ;;  %v12253_v28 = vmul.f32 %v11485_v24, %v4765_v52  ;;  %v4819_v5 = vmul.f32 %v9777_v58, %v11485_v24  ;;  %v12257_v19 = vmul.f32 %v9776_v35, %v11493_v38  ;;  %v5434_v40 = vld [vmem:[#allocation5 + $0xb8] sm:$0x8]  ;;  %v12281_v47 = vpop.f32.mrb[25].mxu1 }
 0x38c   : > { %v4911_v29 = vmul.f32 %v9777_v58, %v11493_v38  ;;  %10084 = vmatprep.mubr.msk.bf16.mxu1 %vm3293_vm14, %v6454_v8  ;;  %v4559_v56 = vsel %vm2888_vm3, %v4556_v32, %v4558_v7  ;;  %v5127_v12 = vunpack.c.l.bf16 %v5111_v13  ;;  %v12265_v42 = vmul.f32 %v9776_v35, %v11497_v39  ;;  %v5828_v26 = vld [vmem:[#allocation5 + $0xc4] sm:$0x1]  ;;  %v12294_v2 = vpop.f32.mrb[26].mxu1 }
 0x38d   : > { %v5162_v61 = vmul.f32 %v9777_v58, %v11497_v39  ;;  %v4671_v43 = vadd.f32 %v4559_v56, %v4363_v60  ;;  %v4981_v50 = vrot.slane %v12257_v19, 1  ;;  %v5482_v48 = vunpack.c.l.bf16 %v5434_v40  ;;  %v12299_v52 = vpop.f32.mrb[27].mxu1 }
 0x38e   : > { %v4982_v44 = vrot.slane %v4911_v29, 1  ;;  %v5163_v54 = vmul.f32 %v11497_v39, %v5127_v12  ;;  %v5271_v3 = vrot.slane %v12265_v42, 2  ;;  %v5483_v22 = vunpack.c.l.bf16 %v5435_v62 }
 0x38f   : > { %v5272_v1 = vrot.slane %v5162_v61, 2  ;;  %v4867_v16 = vadd.f32 %v4819_v5, %v4671_v43  ;;  %v5484_v18 = vunpack.c.h.bf16 %v5435_v62  ;;  %v12279_v15 = vmul.f32 %v11522_v23, %v5482_v48  ;;  %v3748_v5 = vld [vmem:[#allocation5 + $0xcc] sm:$0x8] }
 0x390   : > { %v12276_v51 = vsel %vm4243_vm7, %v4981_v50, %v4982_v44  ;;  %v4014_v20 = vld [vmem:[#allocation5 + $0x94] ss:$84 sps:$4 sm:$0xff]   ;;  %v5274_v0 = vrot.slane %v5163_v54, 2  ;;  %v12289_v55 = vmul.f32 %v11522_v23, %v5483_v22  ;;  %v12292_v63 = vmul.f32 %v11535_v34, %v5483_v22 }
 0x391   : > { %v12286_v6 = vsel %vm2888_vm3, %v5271_v3, %v5272_v1  ;;  %v12296_v36 = vunpack.c.h.bf16 %v4014_v20  ;;  %v4049_v35 = vunpack.c.l.bf16 %v4014_v20  ;;  %v5079_v57 = vadd.f32 %v4982_v44, %v4867_v16 }
 0x392   : > { %v5536_v58 = vmul.f32 %v11522_v23, %v5484_v18  ;;  %v5275_v13 = vsel %vm2888_vm3, %v5272_v1, %v5274_v0  ;;  %v5628_v8 = vmul.f32 %v11535_v34, %v5484_v18  ;;  %v5698_v60 = vrot.slane %v12292_v63, 1 }
 0x393   : > { %v5844_v7 = vunpack.c.l.bf16 %v5828_v26  ;;  %v4101_v29 = vmul.f32 %v11447_v25, %v4049_v35  ;;  %v4193_v40 = vmul.f32 %v11428_v11, %v4049_v35  ;;  %v4445_v62 = vmul.f32 %v11441_v21, %v4049_v35  ;;  %v3796_v26 = vld [vmem:[#allocation5 + $0xd8] sm:$0x1] }
 0x394   : > { %v5387_v56 = vadd.f32 %v5275_v13, %v5079_v57  ;;  %v5699_v12 = vrot.slane %v5628_v8, 1  ;;  %v12308_v61 = vmul.f32 %v11987_v41, %v5483_v22  ;;  %v5879_v43 = vmul.f32 %v11987_v41, %v5484_v18  ;;  %v4003_v18 = vld [vmem:[#allocation5 + $0xa4] sm:$0x8] }
 0x395   : > { %v5880_v44 = vmul.f32 %v11987_v41, %v5844_v7  ;;  %v4265_v48 = vrot.slane %v4193_v40, 1  ;;  %v4555_v54 = vrot.slane %v4445_v62, 2  ;;  %v3749_v16 = vsel %vm11354_vm6, 0, %v3748_v5 }
 0x396   : > { %v5584_v1 = vadd.f32 %v5536_v58, %v5387_v56  ;;  %v12317_v20 = vsel %vm4243_vm7, %v5698_v60, %v5699_v12  ;;  %v5988_v0 = vrot.slane %v12308_v61, 2  ;;  %v5989_v22 = vrot.slane %v5879_v43, 2  ;;  %3750 = vst [vmem:[#allocation5 + $0xcc] sm:$0x8] %v3749_v16 }
 0x397   : > { %v5991_v35 = vrot.slane %v5880_v44, 2  ;;  %v4267_v57 = vsel %vm4243_vm7, %v4265_v48, %v4266_v59  ;;  %v4361_v58 = vadd.f32 %v4265_v48, %v12235_v10  ;;  %v4557_v13 = vsel %vm2888_vm3, %v4555_v54, %v4556_v32 }
 0x398   : > { %v5796_v8 = vadd.f32 %v5699_v12, %v5584_v1  ;;  %v4362_v7 = vadd.f32 %v4267_v57, %v4101_v29  ;;  %v5990_v5 = vsel %vm2888_vm3, %v5988_v0, %v5989_v22  ;;  %v3797_v62 = vsel %vm11341_vm2, 0, %v3796_v26 }
 0x399   : > { %v5992_v40 = vsel %vm2888_vm3, %v5989_v22, %v5991_v35  ;;  %v4669_v56 = vadd.f32 %v4555_v54, %v4361_v58  ;;  %3798 = vst [vmem:[#allocation5 + $0xd8] sm:$0x1] %v3797_v62  ;;  %v4051_v10 = vunpack.c.l.bf16 %v4003_v18  ;;  %v4104_v30 = vmul.f32 %v12169_v49, %v11447_v25  ;;  %v4721_v62 = vld [vmem:[#allocation5 + $0xbc] sm:$0xff]  }
 0x39a   : > { %v6104_v59 = vadd.f32 %v5992_v40, %v5796_v8  ;;  %v4670_v32 = vadd.f32 %v4557_v13, %v4362_v7  ;;  %v4105_v29 = vmul.f32 %v12171_v9, %v11447_v25  ;;  %v4195_v12 = vmul.f32 %v12169_v49, %v11428_v11  ;;  %v4720_v13 = vld [vmem:[#allocation5 + $0xb8] sm:$0x8] }
 0x39b   : > { %v4196_v43 = vmul.f32 %v12171_v9, %v11428_v11  ;;  %v4865_v44 = vadd.f32 %v12253_v28, %v4669_v56  ;;  %v4103_v54 = vmul.f32 %v11447_v25, %v4051_v10  ;;  %v4412_v1 = vunpack.c.l.bf16 %v4396_v31 }
 0x39c   : > { %v6159_v48 = vmul.f32 %v12133_v37, %v6104_v59  ;;  %v4866_v16 = vadd.f32 %v12250_v45, %v4670_v32  ;;  %v4268_v26 = vrot.slane %v4195_v12, 1  ;;  %v4448_v35 = vmul.f32 %v12169_v49, %v11441_v21 }
 0x39d   : > { %v4269_v22 = vrot.slane %v4196_v43, 1  ;;  %v5077_v18 = vadd.f32 %v4981_v50, %v4865_v44  ;;  %v4449_v28 = vmul.f32 %v12171_v9, %v11441_v21  ;;  %v4450_v58 = vmul.f32 %v11441_v21, %v4412_v1 }
 0x39e   : > { %v6214_v57 = vadd.f32 %v12145_v17, %v6159_v48  ;;  %v5078_v8 = vadd.f32 %v12276_v51, %v4866_v16  ;;  %v4364_v7 = vadd.f32 %v4268_v26, %v4103_v54  ;;  %v4560_v31 = vrot.slane %v4448_v35, 2 }
 0x39f   : > { %v4270_v45 = vsel %vm4243_vm7, %v4268_v26, %v4269_v22  ;;  %v4366_v40 = vadd.f32 %v4269_v22, %v4105_v29  ;;  %v5385_v49 = vadd.f32 %v5271_v3, %v5077_v18  ;;  %v4561_v59 = vrot.slane %v4449_v28, 2  ;;  %v9894_v22 = vld [vmem:[#allocation5 + $0xd0] sm:$0xff]  }
 0x3a0   : > { %v6262_v19 = vmax.f32 %v6214_v57, 0.0  ;;  %v4365_v50 = vadd.f32 %v4270_v45, %v4104_v30  ;;  %v5386_v56 = vadd.f32 %v12286_v6, %v5078_v8  ;;  %v4563_v9 = vrot.slane %v4450_v58, 2  ;;  %v5112_v30 = vld [vmem:[#allocation5 + $0xc4] sm:$0x1] }
 0x3a1   : > { %v4768_v10 = vunpack.c.l.bf16 %v4720_v13  ;;  %v5582_v32 = vadd.f32 %v12279_v15, %v5385_v49  ;;  %v4672_v51 = vadd.f32 %v4560_v31, %v4364_v7  ;;  %v4769_v43 = vunpack.c.l.bf16 %v4721_v62 }
 0x3a2   : > { %v12359_v12 = vrot.slane %v6262_v19, 7  ;;  %v5583_v29 = vadd.f32 %v12289_v55, %v5386_v56  ;;  %v4562_v44 = vsel %vm2888_vm3, %v4560_v31, %v4561_v59  ;;  %v4564_v42 = vsel %vm2888_vm3, %v4561_v59, %v4563_v9 }
 0x3a3   : > { %v4770_v3 = vunpack.c.h.bf16 %v4721_v62  ;;  %v5794_v6 = vadd.f32 %v5698_v60, %v5582_v32  ;;  %v4673_v48 = vadd.f32 %v4562_v44, %v4365_v50  ;;  %v4674_v54 = vadd.f32 %v4564_v42, %v4366_v40 }
 0x3a4   : > { %v4820_v1 = vmul.f32 %v11485_v24, %v4768_v10  ;;  %v5795_v15 = vadd.f32 %v12317_v20, %v5583_v29  ;;  %v4821_v16 = vmul.f32 %v11485_v24, %v4769_v43  ;;  %v4912_v55 = vmul.f32 %v11493_v38, %v4769_v43 }
 0x3a5   : > { %v4822_v26 = vmul.f32 %v11485_v24, %v4770_v3  ;;  %v6102_v35 = vadd.f32 %v5988_v0, %v5794_v6  ;;  %v4913_v63 = vmul.f32 %v11493_v38, %v4770_v3  ;;  %v5128_v60 = vunpack.c.l.bf16 %v5112_v30  ;;  %v5437_v0 = vld [vmem:[#allocation5 + $0xcc] sm:$0x8] }
 0x3a6   : > { %v4868_v18 = vadd.f32 %v4820_v1, %v4672_v51  ;;  %v6103_v57 = vadd.f32 %v5990_v5, %v5795_v15  ;;  %v4869_v28 = vadd.f32 %v4821_v16, %v4673_v48  ;;  %v4984_v13 = vrot.slane %v4912_v55, 1  ;;  %v5829_v48 = vld [vmem:[#allocation5 + $0xd8] sm:$0x1] }
 0x3a7   : > { %v4870_v58 = vadd.f32 %v4822_v26, %v4674_v54  ;;  %v6157_v20 = vmul.f32 %v12133_v37, %v6102_v35  ;;  %v4985_v8 = vrot.slane %v4913_v63, 1  ;;  %v5164_v45 = vmul.f32 %v11497_v39, %v4769_v43  ;;  %v12386_v44 = vpop.f32.mrb[28].mxu1 }
 0x3a8   : > { %v5165_v7 = vmul.f32 %v11497_v39, %v4770_v3  ;;  %v6158_v40 = vmul.f32 %v12133_v37, %v6103_v57  ;;  %v5080_v62 = vadd.f32 %v4984_v13, %v4868_v18  ;;  %v5166_v61 = vmul.f32 %v11497_v39, %v5128_v60  ;;  %v12392_v54 = vpop.f32.mrb[29].mxu1 }
 0x3a9   : > { %v12379_v49 = vunpack.c.l.bf16 %v9894_v22  ;;  %v6212_v5 = vadd.f32 %v12145_v17, %v6157_v20  ;;  %v4986_v19 = vsel %vm4243_vm7, %v4984_v13, %v4985_v8  ;;  %v5082_v50 = vadd.f32 %v4985_v8, %v4870_v58  ;;  %v12395_v55 = vpop.f32.mrb[30].mxu1 }
 0x3aa   : > { %v5276_v31 = vrot.slane %v5164_v45, 2  ;;  %v6213_v56 = vadd.f32 %v12145_v17, %v6158_v40  ;;  %v5081_v59 = vadd.f32 %v4986_v19, %v4869_v28  ;;  %v5277_v9 = vrot.slane %v5165_v7, 2  ;;  %v12403_v60 = vpop.f32.mrb[31].mxu1 }
 0x3ab   : > { %v5279_v10 = vrot.slane %v5166_v61, 2  ;;  %v6260_v32 = vmax.f32 %v6212_v5, 0.0  ;;  %v12384_v43 = vunpack.c.h.bf16 %v9894_v22  ;;  %v5485_v29 = vunpack.c.l.bf16 %v5437_v0 }
 0x3ac   : > { %v5388_v51 = vadd.f32 %v5276_v31, %v5080_v62  ;;  %v6261_v42 = vmax.f32 %v6213_v56, 0.0  ;;  %v5278_v3 = vsel %vm2888_vm3, %v5276_v31, %v5277_v9  ;;  %v5538_v6 = vmul.f32 %v12379_v49, %v11522_v23 }
 0x3ad   : > { %v5280_v30 = vsel %vm2888_vm3, %v5277_v9, %v5279_v10  ;;  %v6371_v1 = vrot.slane %v6260_v32, 7  ;;  %v5389_v15 = vadd.f32 %v5278_v3, %v5081_v59  ;;  %v5537_v26 = vmul.f32 %v11522_v23, %v5485_v29  ;;  %v3751_v29 = vld [vmem:[#allocation5 + $0xe0] sm:$0x8] }
 0x3ae   : > { %v5390_v16 = vadd.f32 %v5280_v30, %v5082_v50  ;;  %v6372_v22 = vrot.slane %v6261_v42, 7  ;;  %v5539_v35 = vmul.f32 %v12384_v43, %v11522_v23  ;;  %v5629_v18 = vmul.f32 %v12379_v49, %v11535_v34 }
 0x3af   : > { %v5630_v63 = vmul.f32 %v12384_v43, %v11535_v34  ;;  %v5585_v57 = vadd.f32 %v5537_v26, %v5388_v51  ;;  %v5586_v28 = vadd.f32 %v5538_v6, %v5389_v15  ;;  %v5845_v58 = vunpack.c.l.bf16 %v5829_v48  ;;  %v3799_v15 = vld [vmem:[#allocation5 + $0xec] sm:$0x1] }
 0x3b0   : > { %v5881_v13 = vmul.f32 %v11987_v41, %v12379_v49  ;;  %v6373_v20 = vsel %vm6335_vm8, %v6371_v1, %v6372_v22  ;;  %v6375_v8 = vsel %vm6335_vm8, %v6372_v22, %v12359_v12  ;;  %v5587_v45 = vadd.f32 %v5539_v35, %v5390_v16 }
 0x3b1   : > { %v5701_v7 = vrot.slane %v5629_v18, 1  ;;  %v6455_v40 = vpack.c.bf16 %v6375_v8, %v6373_v20  ;;  %v5702_v62 = vrot.slane %v5630_v63, 1  ;;  %v5882_v61 = vmul.f32 %v11987_v41, %v12384_v43  ;;  %v4006_v18 = vld [vmem:[#allocation5 + $0xb8] sm:$0x8] }
 0x3b2   : > { %v5883_v0 = vmul.f32 %v11987_v41, %v5845_v58  ;;  %v5993_v19 = vrot.slane %v5881_v13, 2  ;;  %v3621_v50 = vmul.f32 %v12022_v46, %v12271_v27  ;;  %v3619_v31 = vmul.f32 %v12022_v46, %v12281_v47 }
 0x3b3   : > { %v5797_v5 = vadd.f32 %v5701_v7, %v5585_v57  ;;  %10085 = vmatmul.mubr.msk.bf16.gmra.mrb[44].mxu1 %vm3293_vm14, %v6455_v40  ;;  %v5703_v12 = vsel %vm4243_vm7, %v5701_v7, %v5702_v62  ;;  %v5799_v56 = vadd.f32 %v5702_v62, %v5587_v45  ;;  %v5994_v59 = vrot.slane %v5882_v61, 2  ;;  %v4397_v7 = vld [vmem:[#allocation5 + $0xc4] sm:$0x1]  ;;  %v9901_v40 = vld [vmem:[#allocation5 + $0xd0] sm:$0xff]  }
 0x3b4   : > { %v5996_v9 = vrot.slane %v5883_v0, 2  ;;  %v5798_v10 = vadd.f32 %v5703_v12, %v5586_v28  ;;  %v3660_v51 = vadd.f32 %v12038_v14, %v3621_v50  ;;  %v3658_v41 = vadd.f32 %v12038_v14, %v3619_v31 }
 0x3b5   : > { %v6105_v32 = vadd.f32 %v5993_v19, %v5797_v5  ;;  %v5995_v42 = vsel %vm2888_vm3, %v5993_v19, %v5994_v59  ;;  %v3622_v47 = vmul.f32 %v12022_v46, %v12294_v2  ;;  %v3620_v3 = vmul.f32 %v12022_v46, %v12299_v52  ;;  %v4723_v19 = vld [vmem:[#allocation5 + $0xcc] sm:$0x8] }
 0x3b6   : > { %v5997_v27 = vsel %vm2888_vm3, %v5994_v59, %v5996_v9  ;;  %v6106_v30 = vadd.f32 %v5995_v42, %v5798_v10  ;;  %v3692_v1 = vmax.f32 %v3660_v51, 0.0  ;;  %v3690_v16 = vmax.f32 %v3658_v41, 0.0 }
 0x3b7   : > { %v6107_v6 = vadd.f32 %v5997_v27, %v5799_v56  ;;  %v6160_v48 = vmul.f32 %v12133_v37, %v6105_v32  ;;  %v3661_v26 = vadd.f32 %v12038_v14, %v3622_v47  ;;  %v3659_v22 = vadd.f32 %v12038_v14, %v3620_v3 }
 0x3b8   : > { %v3752_v35 = vsel %vm11354_vm6, 0, %v3751_v29  ;;  %v6161_v2 = vmul.f32 %v12133_v37, %v6106_v30  ;;  %v9467_v52 = vpack.c.bf16 %v3692_v1, %v3692_v1  ;;  %v9465_v57 = vpack.c.bf16 %v3690_v16, %v3690_v16 }
 0x3b9   : > { %v6162_v63 = vmul.f32 %v12133_v37, %v6107_v6  ;;  %v6215_v46 = vadd.f32 %v12145_v17, %v6160_v48  ;;  %3753 = vst [vmem:[#allocation5 + $0xe0] sm:$0x8] %v3752_v35  ;;  %v3693_v28 = vmax.f32 %v3661_v26, 0.0  ;;  %v3691_v58 = vmax.f32 %v3659_v22, 0.0  ;;  %v5113_v6 = vld [vmem:[#allocation5 + $0xd8] sm:$0x1] }
 0x3ba   : > { %v3800_v13 = vsel %vm11341_vm2, 0, %v3799_v15  ;;  %v6216_v14 = vadd.f32 %v12145_v17, %v6161_v2  ;;  %3971 = vst.msk [vmem:[#allocation5 + $0x120] sm:$0xf] %vm3698_vm15, %v9467_v52  ;;  %v4054_v45 = vunpack.c.l.bf16 %v4006_v18  ;;  %3969 = vst.msk [vmem:[#allocation5 + $0x10c] sm:$0xf] %vm3698_vm15, %v9465_v57  ;;  %v4108_v0 = vmul.f32 %v11447_v25, %v12120_v53  ;;  %v5441_v26 = vld [vmem:[#allocation5 + $0xe4] sm:$0xff]  }
 0x3bb   : > { %v6217_v20 = vadd.f32 %v12145_v17, %v6162_v63  ;;  %v6263_v8 = vmax.f32 %v6215_v46, 0.0  ;;  %3801 = vst [vmem:[#allocation5 + $0xec] sm:$0x1] %v3800_v13  ;;  %v9468_v62 = vpack.c.bf16 %v3693_v28, %v3693_v28  ;;  %v9466_v61 = vpack.c.bf16 %v3691_v58, %v3691_v58 }
 0x3bc   : > { %v12445_v5 = vmul.f32 %v11428_v11, %v12120_v53  ;;  %v6264_v50 = vmax.f32 %v6216_v14, 0.0  ;;  %v12448_v56 = vmul.f32 %v11447_v25, %v4054_v45  ;;  %v4413_v9 = vunpack.c.l.bf16 %v4397_v7 }
 0x3bd   : > { %v6265_v31 = vmax.f32 %v6217_v20, 0.0  ;;  %v6376_v12 = vrot.slane %v6263_v8, 7  ;;  %3972 = vst.msk [vmem:[#allocation5 + $0x124] sm:$0xf] %vm3698_vm15, %v9468_v62  ;;  %3970 = vst.msk [vmem:[#allocation5 + $0x110] sm:$0xf] %vm3698_vm15, %v9466_v61  ;;  %v12455_v10 = vmul.f32 %v11441_v21, %v12120_v53  ;;  %v9780_v32 = vunpack.c.l.bf16 %v9901_v40 }
 0x3be   : > { %v4272_v59 = vrot.slane %v12445_v5, 1  ;;  %v6377_v51 = vrot.slane %v6264_v50, 7  ;;  %v9781_v29 = vunpack.c.h.bf16 %v9901_v40  ;;  %v4771_v42 = vunpack.c.l.bf16 %v4723_v19 }
 0x3bf   : > { %v6379_v41 = vrot.slane %v6265_v31, 7  ;;  %v4453_v47 = vmul.f32 %v11441_v21, %v4413_v9  ;;  %v4566_v3 = vrot.slane %v12455_v10, 2  ;;  %v12462_v30 = vmul.f32 %v9780_v32, %v11485_v24 }
 0x3c0   : > { %v4369_v27 = vadd.f32 %v4272_v59, %v4108_v0  ;;  %v5440_v48 = vld [vmem:[#allocation5 + $0xe0] sm:$0x8]  ;;  %v6378_v53 = vsel %vm6335_vm8, %v6376_v12, %v6377_v51  ;;  %v12467_v15 = vmul.f32 %v11485_v24, %v4771_v42  ;;  %v4825_v16 = vmul.f32 %v9781_v29, %v11485_v24 }
 0x3c1   : > { %v6380_v1 = vsel %vm6335_vm8, %v6377_v51, %v6379_v41  ;;  %v4568_v35 = vrot.slane %v4453_v47, 2  ;;  %v12471_v18 = vmul.f32 %v9780_v32, %v11493_v38  ;;  %v4915_v2 = vmul.f32 %v9781_v29, %v11493_v38 }
 0x3c2   : > { %v6456_v22 = vpack.c.bf16 %v6380_v1, %v6378_v53  ;;  %v5129_v63 = vunpack.c.l.bf16 %v5113_v6  ;;  %v12475_v46 = vmul.f32 %v9780_v32, %v11497_v39  ;;  %v5168_v52 = vmul.f32 %v9781_v29, %v11497_v39  ;;  %v5830_v10 = vld [vmem:[#allocation5 + $0xec] sm:$0x1] }
 0x3c3   : > { %v5488_v57 = vunpack.c.l.bf16 %v5440_v48  ;;  %v4569_v28 = vsel %vm2888_vm3, %v4566_v3, %v4568_v35  ;;  %v4987_v58 = vrot.slane %v12471_v18, 1  ;;  %v4988_v13 = vrot.slane %v4915_v2, 1  ;;  %v12510_v35 = vld [vmem:[%s14079_s3 + $0x8] ss:$0 sm:$0xff] }
 0x3c4   : > { %10088 = vmatprep.mubr.msk.bf16.mxu1 %vm3293_vm14, %v6456_v22  ;;  %v5489_v14 = vunpack.c.l.bf16 %v5441_v26  ;;  %v4020_v20 = vld [vmem:[#allocation5 + $0xbc] ss:$84 sps:$4 sm:$0xff]   ;;  %v4677_v8 = vadd.f32 %v4569_v28, %v4369_v27  ;;  %v5169_v45 = vmul.f32 %v11497_v39, %v5129_v63  ;;  %v5281_v7 = vrot.slane %v12475_v46, 2 }
 0x3c5   : > { %v5282_v40 = vrot.slane %v5168_v52, 2  ;;  %v12483_v62 = vunpack.c.h.bf16 %v4020_v20  ;;  %v4055_v61 = vunpack.c.l.bf16 %v4020_v20  ;;  %v4989_v0 = vsel %vm4243_vm7, %v4987_v58, %v4988_v13  ;;  %v3754_v52 = vld [vmem:[#allocation5 + $0xf4] sm:$0x8] }
 0x3c6   : > { %v5490_v19 = vunpack.c.h.bf16 %v5441_v26  ;;  %v4873_v50 = vadd.f32 %v4825_v16, %v4677_v8  ;;  %v5284_v12 = vrot.slane %v5169_v45, 2  ;;  %v12494_v9 = vmul.f32 %v11522_v23, %v5488_v57  ;;  %v3802_v8 = vld [vmem:[#allocation5 + $0x100] sm:$0x1] }
 0x3c7   : > { %v12491_v31 = vsel %vm2888_vm3, %v5281_v7, %v5282_v40  ;;  %v4107_v32 = vmul.f32 %v11447_v25, %v4055_v61  ;;  %v4197_v51 = vmul.f32 %v11428_v11, %v4055_v61  ;;  %v4451_v41 = vmul.f32 %v11441_v21, %v4055_v61 }
 0x3c8   : > { %v12500_v29 = vmul.f32 %v11522_v23, %v5489_v14  ;;  %v5085_v42 = vadd.f32 %v4988_v13, %v4873_v50  ;;  %v5285_v27 = vsel %vm2888_vm3, %v5282_v40, %v5284_v12  ;;  %v5542_v47 = vmul.f32 %v11522_v23, %v5490_v19  ;;  %v4009_v50 = vld [vmem:[#allocation5 + $0xcc] sm:$0x8] }
 0x3c9   : > { %v12505_v6 = vmul.f32 %v11535_v34, %v5489_v14  ;;  %v4271_v48 = vrot.slane %v4197_v51, 1  ;;  %v4565_v53 = vrot.slane %v4451_v41, 2  ;;  %v5632_v1 = vmul.f32 %v11535_v34, %v5490_v19 }
 0x3ca   : > { %v5846_v16 = vunpack.c.l.bf16 %v5830_v10  ;;  %v5393_v26 = vadd.f32 %v5285_v27, %v5085_v42  ;;  %v12513_v2 = vmul.f32 %v12510_v35, %v5489_v14  ;;  %v5885_v63 = vmul.f32 %v12510_v35, %v5490_v19 }
 0x3cb   : > { %v5704_v22 = vrot.slane %v12505_v6, 1  ;;  %v4273_v57 = vsel %vm4243_vm7, %v4271_v48, %v4272_v59  ;;  %v4367_v28 = vadd.f32 %v4271_v48, %v12448_v56  ;;  %v4567_v13 = vsel %vm2888_vm3, %v4565_v53, %v4566_v3 }
 0x3cc   : > { %v5705_v20 = vrot.slane %v5632_v1, 1  ;;  %v4368_v45 = vadd.f32 %v4273_v57, %v4107_v32  ;;  %v5590_v40 = vadd.f32 %v5542_v47, %v5393_v26  ;;  %v5886_v61 = vmul.f32 %v12510_v35, %v5846_v16  ;;  %v4398_v47 = vld [vmem:[#allocation5 + $0xd8] sm:$0x1] }
 0x3cd   : > { %v5998_v14 = vrot.slane %v12513_v2, 2  ;;  %v4675_v12 = vadd.f32 %v4565_v53, %v4367_v28  ;;  %v5999_v10 = vrot.slane %v5885_v63, 2  ;;  %v3755_v5 = vsel %vm11354_vm6, 0, %v3754_v52 }
 0x3ce   : > { %v5706_v19 = vsel %vm4243_vm7, %v5704_v22, %v5705_v20  ;;  %v4676_v59 = vadd.f32 %v4567_v13, %v4368_v45  ;;  %v5802_v56 = vadd.f32 %v5705_v20, %v5590_v40  ;;  %v6001_v51 = vrot.slane %v5886_v61, 2  ;;  %3756 = vst [vmem:[#allocation5 + $0xf4] sm:$0x8] %v3755_v5  ;;  %v4726_v40 = vld [vmem:[#allocation5 + $0xe0] sm:$0x8] }
 0x3cf   : > { %v3803_v3 = vsel %vm11341_vm2, 0, %v3802_v8  ;;  %v4871_v32 = vadd.f32 %v12467_v15, %v4675_v12  ;;  %v6000_v41 = vsel %vm2888_vm3, %v5998_v14, %v5999_v10  ;;  %v4057_v42 = vunpack.c.l.bf16 %v4009_v50  ;;  %v4727_v50 = vld [vmem:[#allocation5 + $0xe4] sm:$0xff]  }
 0x3d0   : > { %3804 = vst [vmem:[#allocation5 + $0x100] sm:$0x1] %v3803_v3  ;;  %v4110_v27 = vmul.f32 %v12379_v49, %v11447_v25  ;;  %v4872_v6 = vadd.f32 %v12462_v30, %v4676_v59  ;;  %v6002_v48 = vsel %vm2888_vm3, %v5999_v10, %v6001_v51  ;;  %v4111_v53 = vmul.f32 %v12384_v43, %v11447_v25 }
 0x3d1   : > { %v4199_v1 = vmul.f32 %v12379_v49, %v11428_v11  ;;  %v5083_v15 = vadd.f32 %v4987_v58, %v4871_v32  ;;  %v6110_v16 = vadd.f32 %v6002_v48, %v5802_v56  ;;  %v4109_v26 = vmul.f32 %v11447_v25, %v4057_v42  ;;  %v5114_v32 = vld [vmem:[#allocation5 + $0xec] sm:$0x1] }
 0x3d2   : > { %v4200_v2 = vmul.f32 %v12384_v43, %v11428_v11  ;;  %v5084_v63 = vadd.f32 %v4989_v0, %v4872_v6  ;;  %v4414_v30 = vunpack.c.l.bf16 %v4398_v47  ;;  %v4454_v57 = vmul.f32 %v12379_v49, %v11441_v21 }
 0x3d3   : > { %v4274_v52 = vrot.slane %v4199_v1, 1  ;;  %v5391_v28 = vadd.f32 %v5281_v7, %v5083_v15  ;;  %v6165_v13 = vmul.f32 %v12133_v37, %v6110_v16  ;;  %v4455_v18 = vmul.f32 %v12384_v43, %v11441_v21  ;;  %v12561_v1 = vld [vmem:[%s10488_s8] ss:$0 sm:$0xff] }
 0x3d4   : > { %v4275_v20 = vrot.slane %v4200_v2, 1  ;;  %v5392_v58 = vadd.f32 %v12491_v31, %v5084_v63  ;;  %v4456_v45 = vmul.f32 %v11441_v21, %v4414_v30  ;;  %v4570_v0 = vrot.slane %v4454_v57, 2  ;;  %v12569_v30 = vld [vmem:[%s10493_s14] ss:$0 sm:$0xff] }
 0x3d5   : > { %v4370_v8 = vadd.f32 %v4274_v52, %v4109_v26  ;;  %v5588_v61 = vadd.f32 %v12494_v9, %v5391_v28  ;;  %v6220_v49 = vadd.f32 %v12145_v17, %v6165_v13  ;;  %v4571_v10 = vrot.slane %v4455_v18, 2 }
 0x3d6   : > { %v4276_v46 = vsel %vm4243_vm7, %v4274_v52, %v4275_v20  ;;  %v4372_v7 = vadd.f32 %v4275_v20, %v4111_v53  ;;  %v5589_v37 = vadd.f32 %v12500_v29, %v5392_v58  ;;  %v4573_v43 = vrot.slane %v4456_v45, 2  ;;  %v9895_v52 = vld [vmem:[#allocation5 + $0xf8] sm:$0xff]  }
 0x3d7   : > { %v4371_v12 = vadd.f32 %v4276_v46, %v4110_v27  ;;  %v5800_v5 = vadd.f32 %v5704_v22, %v5588_v61  ;;  %v6268_v31 = vmax.f32 %v6220_v49, 0.0  ;;  %v4678_v59 = vadd.f32 %v4570_v0, %v4370_v8 }
 0x3d8   : > { %v4774_v56 = vunpack.c.l.bf16 %v4726_v40  ;;  %v5801_v51 = vadd.f32 %v5706_v19, %v5589_v37  ;;  %v4572_v3 = vsel %vm2888_vm3, %v4570_v0, %v4571_v10  ;;  %v4574_v9 = vsel %vm2888_vm3, %v4571_v10, %v4573_v43 }
 0x3d9   : > { %v4775_v17 = vunpack.c.l.bf16 %v4727_v50  ;;  %v6108_v42 = vadd.f32 %v5998_v14, %v5800_v5  ;;  %v6384_v47 = vrot.slane %v6268_v31, 7  ;;  %v4679_v6 = vadd.f32 %v4572_v3, %v4371_v12 }
 0x3da   : > { %v4680_v29 = vadd.f32 %v4574_v9, %v4372_v7  ;;  %v6109_v27 = vadd.f32 %v6000_v41, %v5801_v51  ;;  %v4776_v48 = vunpack.c.h.bf16 %v4727_v50  ;;  %v4826_v22 = vmul.f32 %v11485_v24, %v4774_v56  ;;  %v5443_v50 = vld [vmem:[#allocation5 + $0xf4] sm:$0x8] }
 0x3db   : > { %v4827_v53 = vmul.f32 %v11485_v24, %v4775_v17  ;;  %v6163_v19 = vmul.f32 %v12561_v1, %v6108_v42  ;;  %v4916_v15 = vmul.f32 %v11493_v38, %v4775_v17  ;;  %v5130_v16 = vunpack.c.l.bf16 %v5114_v32 }
 0x3dc   : > { %v5170_v26 = vmul.f32 %v11497_v39, %v4775_v17  ;;  %v6164_v14 = vmul.f32 %v12561_v1, %v6109_v27  ;;  %v4828_v2 = vmul.f32 %v11485_v24, %v4776_v48  ;;  %v4874_v63 = vadd.f32 %v4826_v22, %v4678_v59 }
 0x3dd   : > { %v4875_v41 = vadd.f32 %v4827_v53, %v4679_v6  ;;  %v6218_v57 = vadd.f32 %v12569_v30, %v6163_v19  ;;  %v4917_v28 = vmul.f32 %v11493_v38, %v4776_v48  ;;  %v4990_v13 = vrot.slane %v4916_v15, 1  ;;  %v5831_v6 = vld [vmem:[#allocation5 + $0x100] sm:$0x1] }
 0x3de   : > { %v5171_v20 = vmul.f32 %v11497_v39, %v4776_v48  ;;  %v6219_v18 = vadd.f32 %v12569_v30, %v6164_v14  ;;  %v4876_v58 = vadd.f32 %v4828_v2, %v4680_v29  ;;  %v5172_v8 = vmul.f32 %v11497_v39, %v5130_v16 }
 0x3df   : > { %v5286_v45 = vrot.slane %v5170_v26, 2  ;;  %v6266_v0 = vmax.f32 %v6218_v57, 0.0  ;;  %v4991_v40 = vrot.slane %v4917_v28, 1  ;;  %v5086_v61 = vadd.f32 %v4990_v13, %v4874_v63  ;;  %v10284_v57 = vld [vmem:[%s10473_s25] ss:$0 sm:$0xff] }
 0x3e0   : > { %v5287_v49 = vrot.slane %v5171_v20, 2  ;;  %v6267_v46 = vmax.f32 %v6219_v18, 0.0  ;;  %v5289_v7 = vrot.slane %v5172_v8, 2  ;;  %v12576_v37 = vunpack.c.l.bf16 %v9895_v52 }
 0x3e1   : > { %v12578_v12 = vunpack.c.h.bf16 %v9895_v52  ;;  %v6381_v10 = vrot.slane %v6266_v0, 7  ;;  %v4992_v43 = vsel %vm4243_vm7, %v4990_v13, %v4991_v40  ;;  %v5088_v5 = vadd.f32 %v4991_v40, %v4876_v58 }
 0x3e2   : > { %v5288_v31 = vsel %vm2888_vm3, %v5286_v45, %v5287_v49  ;;  %v6382_v59 = vrot.slane %v6267_v46, 7  ;;  %v5087_v56 = vadd.f32 %v4992_v43, %v4875_v41  ;;  %v5290_v51 = vsel %vm2888_vm3, %v5287_v49, %v5289_v7  ;;  %v10285_v46 = vld [vmem:[%s10478_s29] ss:$0 sm:$0xff] }
 0x3e3   : > { %v5394_v3 = vadd.f32 %v5286_v45, %v5086_v61  ;;  %v5396_v9 = vadd.f32 %v5290_v51, %v5088_v5  ;;  %v5491_v17 = vunpack.c.l.bf16 %v5443_v50  ;;  %v5544_v32 = vmul.f32 %v12576_v37, %v11522_v23 }
 0x3e4   : > { %v5545_v42 = vmul.f32 %v12578_v12, %v11522_v23  ;;  %v6383_v29 = vsel %vm6335_vm8, %v6381_v10, %v6382_v59  ;;  %v6385_v27 = vsel %vm6335_vm8, %v6382_v59, %v6384_v47  ;;  %v5395_v48 = vadd.f32 %v5288_v31, %v5087_v56  ;;  %v3757_v31 = vld [vmem:[#allocation5 + $0x108] sm:$0x8] }
 0x3e5   : > { %v5633_v22 = vmul.f32 %v12576_v37, %v11535_v34  ;;  %v6457_v53 = vpack.c.bf16 %v6385_v27, %v6383_v29  ;;  %v5543_v19 = vmul.f32 %v11522_v23, %v5491_v17  ;;  %v5634_v16 = vmul.f32 %v12578_v12, %v11535_v34 }
 0x3e6   : > { %v5593_v15 = vadd.f32 %v5545_v42, %v5396_v9  ;;  %v5592_v26 = vadd.f32 %v5544_v32, %v5395_v48  ;;  %v5847_v2 = vunpack.c.l.bf16 %v5831_v6  ;;  %v5887_v63 = vmul.f32 %v12510_v35, %v12576_v37  ;;  %v3805_v32 = vld [vmem:[#allocation5 + $0x114] sm:$0x1]  ;;  %v4012_v42 = vld [vmem:[#allocation5 + $0xe0] sm:$0x8] }
 0x3e7   : > { %v5707_v14 = vrot.slane %v5633_v22, 1  ;;  %10089 = vmatmul.mubr.msk.bf16.gmra.mrb[48].mxu1 %vm3293_vm14, %v6457_v53  ;;  %v5591_v47 = vadd.f32 %v5543_v19, %v5394_v3  ;;  %v5708_v41 = vrot.slane %v5634_v16, 1  ;;  %v5888_v52 = vmul.f32 %v12510_v35, %v12578_v12 }
 0x3e8   : > { %v3625_v28 = vmul.f32 %v10284_v57, %v12386_v44  ;;  %v5889_v13 = vmul.f32 %v12510_v35, %v5847_v2  ;;  %v6003_v20 = vrot.slane %v5887_v63, 2  ;;  %v3623_v18 = vmul.f32 %v10284_v57, %v12392_v54  ;;  %v9902_v63 = vld [vmem:[#allocation5 + $0xf8] sm:$0xff]  }
 0x3e9   : > { %v3626_v58 = vmul.f32 %v10284_v57, %v12395_v55  ;;  %v5709_v8 = vsel %vm4243_vm7, %v5707_v14, %v5708_v41  ;;  %v5803_v45 = vadd.f32 %v5707_v14, %v5591_v47  ;;  %v5805_v0 = vadd.f32 %v5708_v41, %v5593_v15  ;;  %v4399_v15 = vld [vmem:[#allocation5 + $0xec] sm:$0x1] }
 0x3ea   : > { %v6004_v40 = vrot.slane %v5888_v52, 2  ;;  %v5804_v61 = vadd.f32 %v5709_v8, %v5592_v26  ;;  %v6006_v49 = vrot.slane %v5889_v13, 2  ;;  %v3664_v7 = vadd.f32 %v10285_v46, %v3625_v28 }
 0x3eb   : > { %v3662_v50 = vadd.f32 %v10285_v46, %v3623_v18  ;;  %v6111_v44 = vadd.f32 %v6003_v20, %v5803_v45  ;;  %v3665_v43 = vadd.f32 %v10285_v46, %v3626_v58  ;;  %v3624_v5 = vmul.f32 %v10284_v57, %v12403_v60  ;;  %v4729_v58 = vld [vmem:[#allocation5 + $0xf4] sm:$0x8] }
 0x3ec   : > { %v6005_v10 = vsel %vm2888_vm3, %v6003_v20, %v6004_v40  ;;  %v6007_v54 = vsel %vm2888_vm3, %v6004_v40, %v6006_v49  ;;  %v3696_v59 = vmax.f32 %v3664_v7, 0.0  ;;  %v3758_v60 = vsel %vm11354_vm6, 0, %v3757_v31 }
 0x3ed   : > { %v6112_v55 = vadd.f32 %v6005_v10, %v5804_v61  ;;  %v3694_v56 = vmax.f32 %v3662_v50, 0.0  ;;  %v6113_v51 = vadd.f32 %v6007_v54, %v5805_v0  ;;  %v6166_v3 = vmul.f32 %v12561_v1, %v6111_v44  ;;  %3759 = vst [vmem:[#allocation5 + $0x108] sm:$0x8] %v3758_v60  ;;  %v5115_v50 = vld [vmem:[#allocation5 + $0x100] sm:$0x1] }
 0x3ee   : > { %v3697_v9 = vmax.f32 %v3665_v43, 0.0  ;;  %v3663_v17 = vadd.f32 %v10285_v46, %v3624_v5  ;;  %v9471_v29 = vpack.c.bf16 %v3696_v59, %v3696_v59  ;;  %v3806_v26 = vsel %vm11341_vm2, 0, %v3805_v32 }
 0x3ef   : > { %v6167_v6 = vmul.f32 %v12561_v1, %v6112_v55  ;;  %v9469_v27 = vpack.c.bf16 %v3694_v56, %v3694_v56  ;;  %v6168_v48 = vmul.f32 %v12561_v1, %v6113_v51  ;;  %v6221_v22 = vadd.f32 %v12569_v30, %v6166_v3  ;;  %3807 = vst [vmem:[#allocation5 + $0x114] sm:$0x1] %v3806_v26 }
 0x3f0   : > { %v9472_v53 = vpack.c.bf16 %v3697_v9, %v3697_v9  ;;  %v3695_v19 = vmax.f32 %v3663_v17, 0.0  ;;  %3975 = vst.msk [vmem:[#allocation5 + $0x148] sm:$0xf] %vm3698_vm15, %v9471_v29  ;;  %v4060_v14 = vunpack.c.l.bf16 %v4012_v42  ;;  %v4114_v2 = vmul.f32 %v11447_v25, %v12296_v36  ;;  %v5447_v17 = vld [vmem:[#allocation5 + $0x10c] sm:$0xff]  }
 0x3f1   : > { %v6222_v16 = vadd.f32 %v12569_v30, %v6167_v6  ;;  %3973 = vst.msk [vmem:[#allocation5 + $0x134] sm:$0xf] %vm3698_vm15, %v9469_v27  ;;  %v6223_v47 = vadd.f32 %v12569_v30, %v6168_v48  ;;  %v6269_v41 = vmax.f32 %v6221_v22, 0.0  ;;  %v12626_v57 = vmul.f32 %v11428_v11, %v12296_v36 }
 0x3f2   : > { %3976 = vst.msk [vmem:[#allocation5 + $0x14c] sm:$0xf] %vm3698_vm15, %v9472_v53  ;;  %v9470_v52 = vpack.c.bf16 %v3695_v19, %v3695_v19  ;;  %v12629_v13 = vmul.f32 %v11447_v25, %v4060_v14  ;;  %v4415_v20 = vunpack.c.l.bf16 %v4399_v15  ;;  %v12633_v18 = vmul.f32 %v11441_v21, %v12296_v36  ;;  %v12663_v53 = vpop.f32.mrb[32].mxu1 }
 0x3f3   : > { %v6270_v28 = vmax.f32 %v6222_v16, 0.0  ;;  %v6271_v8 = vmax.f32 %v6223_v47, 0.0  ;;  %v6386_v45 = vrot.slane %v6269_v41, 7  ;;  %v4278_v0 = vrot.slane %v12626_v57, 1 }
 0x3f4   : > { %3974 = vst.msk [vmem:[#allocation5 + $0x138] sm:$0xf] %vm3698_vm15, %v9470_v52  ;;  %v9784_v40 = vunpack.c.l.bf16 %v9902_v63  ;;  %v4459_v49 = vmul.f32 %v11441_v21, %v4415_v20  ;;  %v4576_v46 = vrot.slane %v12633_v18, 2  ;;  %v9785_v7 = vunpack.c.h.bf16 %v9902_v63  ;;  %v5446_v9 = vld [vmem:[#allocation5 + $0x108] sm:$0x8] }
 0x3f5   : > { %v6387_v61 = vrot.slane %v6270_v28, 7  ;;  %v6389_v10 = vrot.slane %v6271_v8, 7  ;;  %v4375_v36 = vadd.f32 %v4278_v0, %v4114_v2  ;;  %v4777_v44 = vunpack.c.l.bf16 %v4729_v58  ;;  %v12667_v2 = vpop.f32.mrb[33].mxu1  ;;  %v6867_v20 = vld [vmem:[%s10513_s6] sm:$0xf] }
 0x3f6   : > { %v12642_v43 = vmul.f32 %v9784_v40, %v11485_v24  ;;  %v4578_v31 = vrot.slane %v4459_v49, 2  ;;  %v4831_v54 = vmul.f32 %v9785_v7, %v11485_v24  ;;  %v12647_v55 = vmul.f32 %v9784_v40, %v11493_v38  ;;  %v12674_v28 = vpop.f32.mrb[34].mxu1  ;;  %10182 = vmatprep.subr.msk.bf16.mxu0 %vm3423_vm13, %v6867_v20 }
 0x3f7   : > { %v6388_v5 = vsel %vm6335_vm8, %v6386_v45, %v6387_v61  ;;  %v6390_v59 = vsel %vm6335_vm8, %v6387_v61, %v6389_v10  ;;  %v12651_v56 = vmul.f32 %v11485_v24, %v4777_v44  ;;  %v4919_v51 = vmul.f32 %v9785_v7, %v11493_v38  ;;  %v12683_v61 = vpop.f32.mrb[35].mxu1 }
 0x3f8   : > { %v5131_v3 = vunpack.c.l.bf16 %v5115_v50  ;;  %v6458_v32 = vpack.c.bf16 %v6390_v59, %v6388_v5  ;;  %v4579_v42 = vsel %vm2888_vm3, %v4576_v46, %v4578_v31  ;;  %v4993_v6 = vrot.slane %v12647_v55, 1 }
 0x3f9   : > { %v12659_v29 = vmul.f32 %v9784_v40, %v11497_v39  ;;  %v4683_v27 = vadd.f32 %v4579_v42, %v4375_v36  ;;  %v4994_v60 = vrot.slane %v4919_v51, 1  ;;  %v5174_v48 = vmul.f32 %v9785_v7, %v11497_v39  ;;  %v5832_v36 = vld [vmem:[#allocation5 + $0x114] sm:$0x1] }
 0x3fa   : > { %v5175_v22 = vmul.f32 %v11497_v39, %v5131_v3  ;;  %10092 = vmatprep.mubr.msk.bf16.mxu1 %vm3293_vm14, %v6458_v32  ;;  %v5494_v16 = vunpack.c.l.bf16 %v5446_v9  ;;  %v5495_v26 = vunpack.c.l.bf16 %v5447_v17  ;;  %v5496_v14 = vunpack.c.h.bf16 %v5447_v17 }
 0x3fb   : > { %v4026_v19 = vld [vmem:[#allocation5 + $0xe4] ss:$84 sps:$4 sm:$0xff]   ;;  %v5291_v15 = vrot.slane %v12659_v29, 2  ;;  %v4879_v41 = vadd.f32 %v4831_v54, %v4683_v27  ;;  %v4995_v52 = vsel %vm4243_vm7, %v4993_v6, %v4994_v60  ;;  %v5292_v58 = vrot.slane %v5174_v48, 2  ;;  %v3808_v48 = vld [vmem:[#allocation5 + $0x128] sm:$0x1] }
 0x3fc   : > { %v12669_v63 = vunpack.c.h.bf16 %v4026_v19  ;;  %v4061_v47 = vunpack.c.l.bf16 %v4026_v19  ;;  %v5294_v8 = vrot.slane %v5175_v22, 2  ;;  %v12678_v45 = vmul.f32 %v11522_v23, %v5494_v16 }
 0x3fd   : > { %v12681_v40 = vmul.f32 %v11522_v23, %v5495_v26  ;;  %v5091_v10 = vadd.f32 %v4994_v60, %v4879_v41  ;;  %v5293_v44 = vsel %vm2888_vm3, %v5291_v15, %v5292_v58  ;;  %v5548_v31 = vmul.f32 %v11522_v23, %v5496_v14  ;;  %v3760_v60 = vld [vmem:[#allocation5 + $0x11c] sm:$0x8] }
 0x3fe   : > { %v4113_v49 = vmul.f32 %v11447_v25, %v4061_v47  ;;  %v4201_v7 = vmul.f32 %v11428_v11, %v4061_v47  ;;  %v4457_v50 = vmul.f32 %v11441_v21, %v4061_v47  ;;  %v5295_v5 = vsel %vm2888_vm3, %v5292_v58, %v5294_v8 }
 0x3ff   : > { %v12695_v54 = vmul.f32 %v11535_v34, %v5495_v26  ;;  %v5399_v3 = vadd.f32 %v5295_v5, %v5091_v10  ;;  %v5636_v9 = vmul.f32 %v11535_v34, %v5496_v14  ;;  %v5848_v32 = vunpack.c.l.bf16 %v5832_v36 }
 0x400   : > { %v4277_v59 = vrot.slane %v4201_v7, 1  ;;  %v4575_v51 = vrot.slane %v4457_v50, 2  ;;  %v12700_v42 = vmul.f32 %v12510_v35, %v5495_v26  ;;  %v5891_v27 = vmul.f32 %v12510_v35, %v5496_v14  ;;  %v4015_v14 = vld [vmem:[#allocation5 + $0xf4] sm:$0x8] }
 0x401   : > { %v5710_v17 = vrot.slane %v12695_v54, 1  ;;  %v5596_v47 = vadd.f32 %v5548_v31, %v5399_v3  ;;  %v5711_v20 = vrot.slane %v5636_v9, 1  ;;  %v5892_v26 = vmul.f32 %v12510_v35, %v5848_v32  ;;  %v4400_v31 = vld [vmem:[#allocation5 + $0x100] sm:$0x1] }
 0x402   : > { %v4279_v22 = vsel %vm4243_vm7, %v4277_v59, %v4278_v0  ;;  %v4373_v19 = vadd.f32 %v4277_v59, %v12629_v13  ;;  %v4577_v16 = vsel %vm2888_vm3, %v4575_v51, %v4576_v46  ;;  %v6008_v58 = vrot.slane %v12700_v42, 2 }
 0x403   : > { %v4374_v41 = vadd.f32 %v4279_v22, %v4113_v49  ;;  %v6009_v7 = vrot.slane %v5891_v27, 2  ;;  %v3761_v57 = vsel %vm11354_vm6, 0, %v3760_v60  ;;  %v3809_v13 = vsel %vm11341_vm2, 0, %v3808_v48 }
 0x404   : > { %v4681_v8 = vadd.f32 %v4575_v51, %v4373_v19  ;;  %v5712_v18 = vsel %vm4243_vm7, %v5710_v17, %v5711_v20  ;;  %v5808_v46 = vadd.f32 %v5711_v20, %v5596_v47  ;;  %v6011_v50 = vrot.slane %v5892_v26, 2  ;;  %3762 = vst [vmem:[#allocation5 + $0x11c] sm:$0x8] %v3761_v57  ;;  %3810 = vst [vmem:[#allocation5 + $0x128] sm:$0x1] %v3809_v13 }
 0x405   : > { %v4682_v0 = vadd.f32 %v4577_v16, %v4374_v41  ;;  %v6010_v10 = vsel %vm2888_vm3, %v6008_v58, %v6009_v7  ;;  %v4063_v36 = vunpack.c.l.bf16 %v4015_v14  ;;  %v4116_v5 = vmul.f32 %v12576_v37, %v11447_v25 }
 0x406   : > { %v4877_v49 = vadd.f32 %v12651_v56, %v4681_v8  ;;  %v6012_v59 = vsel %vm2888_vm3, %v6009_v7, %v6011_v50  ;;  %v4117_v51 = vmul.f32 %v12578_v12, %v11447_v25  ;;  %v4203_v3 = vmul.f32 %v12576_v37, %v11428_v11 }
 0x407   : > { %v4878_v54 = vadd.f32 %v12642_v43, %v4682_v0  ;;  %v6116_v9 = vadd.f32 %v6012_v59, %v5808_v46  ;;  %v4115_v32 = vmul.f32 %v11447_v25, %v4063_v36  ;;  %v4204_v42 = vmul.f32 %v12578_v12, %v11428_v11 }
 0x408   : > { %v5089_v56 = vadd.f32 %v4993_v6, %v4877_v49  ;;  %v4280_v60 = vrot.slane %v4203_v3, 1  ;;  %v4416_v43 = vunpack.c.l.bf16 %v4400_v31  ;;  %v4460_v48 = vmul.f32 %v12576_v37, %v11441_v21  ;;  %v5116_v31 = vld [vmem:[#allocation5 + $0x114] sm:$0x1] }
 0x409   : > { %v5090_v27 = vadd.f32 %v4995_v52, %v4878_v54  ;;  %v6171_v19 = vmul.f32 %v12561_v1, %v6116_v9  ;;  %v4281_v16 = vrot.slane %v4204_v42, 1  ;;  %v4461_v55 = vmul.f32 %v12578_v12, %v11441_v21  ;;  %v4732_v52 = vld [vmem:[#allocation5 + $0x108] sm:$0x8] }
 0x40a   : > { %v5397_v22 = vadd.f32 %v5291_v15, %v5089_v56  ;;  %v4376_v47 = vadd.f32 %v4280_v60, %v4115_v32  ;;  %v4462_v41 = vmul.f32 %v11441_v21, %v4416_v43  ;;  %v4580_v20 = vrot.slane %v4460_v48, 2  ;;  %v4733_v15 = vld [vmem:[#allocation5 + $0x10c] sm:$0xff]   ;;  %v9896_v48 = vld [vmem:[#allocation5 + $0x120] sm:$0xff]  }
 0x40b   : > { %v5398_v6 = vadd.f32 %v5293_v44, %v5090_v27  ;;  %v6226_v14 = vadd.f32 %v12569_v30, %v6171_v19  ;;  %v4282_v37 = vsel %vm4243_vm7, %v4280_v60, %v4281_v16  ;;  %v4378_v29 = vadd.f32 %v4281_v16, %v4117_v51 }
 0x40c   : > { %v5594_v26 = vadd.f32 %v12678_v45, %v5397_v22  ;;  %v4377_v7 = vadd.f32 %v4282_v37, %v4116_v5  ;;  %v4581_v57 = vrot.slane %v4461_v55, 2  ;;  %v4583_v13 = vrot.slane %v4462_v41, 2 }
 0x40d   : > { %v5595_v8 = vadd.f32 %v12681_v40, %v5398_v6  ;;  %v6274_v44 = vmax.f32 %v6226_v14, 0.0  ;;  %v4684_v0 = vadd.f32 %v4580_v20, %v4376_v47  ;;  %v4780_v46 = vunpack.c.l.bf16 %v4732_v52 }
 0x40e   : > { %v5806_v12 = vadd.f32 %v5710_v17, %v5594_v26  ;;  %v4582_v49 = vsel %vm2888_vm3, %v4580_v20, %v4581_v57  ;;  %v4584_v45 = vsel %vm2888_vm3, %v4581_v57, %v4583_v13  ;;  %v4781_v36 = vunpack.c.l.bf16 %v4733_v15 }
 0x40f   : > { %v5807_v50 = vadd.f32 %v5712_v18, %v5595_v8  ;;  %v6394_v59 = vrot.slane %v6274_v44, 7  ;;  %v4685_v51 = vadd.f32 %v4582_v49, %v4377_v7  ;;  %v4686_v3 = vadd.f32 %v4584_v45, %v4378_v29 }
 0x410   : > { %v6114_v54 = vadd.f32 %v6008_v58, %v5806_v12  ;;  %v4782_v40 = vunpack.c.h.bf16 %v4733_v15  ;;  %v4832_v5 = vmul.f32 %v11485_v24, %v4780_v46  ;;  %v4833_v17 = vmul.f32 %v11485_v24, %v4781_v36  ;;  %v5449_v15 = vld [vmem:[#allocation5 + $0x11c] sm:$0x8] }
 0x411   : > { %v6115_v56 = vadd.f32 %v6010_v10, %v5807_v50  ;;  %v4920_v18 = vmul.f32 %v11493_v38, %v4781_v36  ;;  %v5132_v32 = vunpack.c.l.bf16 %v5116_v31  ;;  %v5176_v42 = vmul.f32 %v11497_v39, %v4781_v36 }
 0x412   : > { %v6169_v9 = vmul.f32 %v12561_v1, %v6114_v54  ;;  %v4834_v58 = vmul.f32 %v11485_v24, %v4782_v40  ;;  %v4880_v60 = vadd.f32 %v4832_v5, %v4684_v0  ;;  %v4881_v43 = vadd.f32 %v4833_v17, %v4685_v51 }
 0x413   : > { %v6170_v27 = vmul.f32 %v12561_v1, %v6115_v56  ;;  %v4921_v22 = vmul.f32 %v11493_v38, %v4782_v40  ;;  %v4996_v19 = vrot.slane %v4920_v18, 1  ;;  %v5177_v16 = vmul.f32 %v11497_v39, %v4782_v40  ;;  %v5833_v40 = vld [vmem:[#allocation5 + $0x128] sm:$0x1] }
 0x414   : > { %v6224_v10 = vadd.f32 %v12569_v30, %v6169_v9  ;;  %v4882_v6 = vadd.f32 %v4834_v58, %v4686_v3  ;;  %v5178_v47 = vmul.f32 %v11497_v39, %v5132_v32  ;;  %v5296_v41 = vrot.slane %v5176_v42, 2  ;;  %v3763_v42 = vld [vmem:[#allocation5 + $0x130] sm:$0x8] }
 0x415   : > { %v6225_v55 = vadd.f32 %v12569_v30, %v6170_v27  ;;  %v4997_v52 = vrot.slane %v4921_v22, 1  ;;  %v5092_v26 = vadd.f32 %v4996_v19, %v4880_v60  ;;  %v5297_v14 = vrot.slane %v5177_v16, 2 }
 0x416   : > { %v6272_v20 = vmax.f32 %v6224_v10, 0.0  ;;  %v5299_v29 = vrot.slane %v5178_v47, 2  ;;  %v12758_v8 = vunpack.c.l.bf16 %v9896_v48  ;;  %v12760_v7 = vunpack.c.h.bf16 %v9896_v48  ;;  %v3811_v48 = vld [vmem:[#allocation5 + $0x13c] sm:$0x1]  ;;  %v4018_v10 = vld [vmem:[#allocation5 + $0x108] sm:$0x8] }
 0x417   : > { %v6273_v37 = vmax.f32 %v6225_v55, 0.0  ;;  %v12762_v57 = vpop.f32.mrb[36].mxu1  ;;  %v4998_v12 = vsel %vm4243_vm7, %v4996_v19, %v4997_v52  ;;  %v5094_v44 = vadd.f32 %v4997_v52, %v4882_v6  ;;  %v5298_v0 = vsel %vm2888_vm3, %v5296_v41, %v5297_v14 }
 0x418   : > { %v6391_v13 = vrot.slane %v6272_v20, 7  ;;  %v12766_v46 = vpop.f32.mrb[37].mxu1  ;;  %v5093_v49 = vadd.f32 %v4998_v12, %v4881_v43  ;;  %v5300_v45 = vsel %vm2888_vm3, %v5297_v14, %v5299_v29  ;;  %v5400_v36 = vadd.f32 %v5296_v41, %v5092_v26  ;;  %v12791_v20 = vld [vmem:[#allocation5 + $0x10c] ss:$40 sps:$4 sm:$0xff]  }
 0x419   : > { %v6392_v50 = vrot.slane %v6273_v37, 7  ;;  %v12769_v31 = vpop.f32.mrb[38].mxu1  ;;  %v5402_v54 = vadd.f32 %v5300_v45, %v5094_v44  ;;  %v5497_v51 = vunpack.c.l.bf16 %v5449_v15  ;;  %v5550_v3 = vmul.f32 %v12758_v8, %v11522_v23  ;;  %v4401_v45 = vld [vmem:[#allocation5 + $0x114] sm:$0x1] }
 0x41a   : > { %v5551_v56 = vmul.f32 %v12760_v7, %v11522_v23  ;;  %v12775_v5 = vpop.f32.mrb[39].mxu1  ;;  %v5401_v18 = vadd.f32 %v5298_v0, %v5093_v49  ;;  %v5637_v32 = vmul.f32 %v12758_v8, %v11535_v34  ;;  %v5638_v43 = vmul.f32 %v12760_v7, %v11535_v34 }
 0x41b   : > { %v6393_v17 = vsel %vm6335_vm8, %v6391_v13, %v6392_v50  ;;  %v6395_v9 = vsel %vm6335_vm8, %v6392_v50, %v6394_v59  ;;  %v5549_v58 = vmul.f32 %v11522_v23, %v5497_v51  ;;  %v5849_v16 = vunpack.c.l.bf16 %v5833_v40 }
 0x41c   : > { %v6459_v27 = vpack.c.bf16 %v6395_v9, %v6393_v17  ;;  %v5599_v60 = vadd.f32 %v5551_v56, %v5402_v54  ;;  %v5598_v22 = vadd.f32 %v5550_v3, %v5401_v18  ;;  %v5713_v19 = vrot.slane %v5637_v32, 1 }
 0x41d   : > { %v5893_v59 = vmul.f32 %v12510_v35, %v12758_v8  ;;  %v5597_v55 = vadd.f32 %v5549_v58, %v5400_v36  ;;  %v5714_v6 = vrot.slane %v5638_v43, 1  ;;  %v5894_v47 = vmul.f32 %v12510_v35, %v12760_v7 }
 0x41e   : > { %10093 = vmatmul.mubr.msk.bf16.gmra.mrb[52].mxu1 %vm3293_vm14, %v6459_v27  ;;  %v3764_v41 = vsel %vm11354_vm6, 0, %v3763_v42  ;;  %v5895_v52 = vmul.f32 %v12510_v35, %v5849_v16  ;;  %v3812_v14 = vsel %vm11341_vm2, 0, %v3811_v48  ;;  %v4066_v37 = vunpack.c.l.bf16 %v4018_v10 }
 0x41f   : > { %v6013_v26 = vrot.slane %v5893_v59, 2  ;;  %3765 = vst [vmem:[#allocation5 + $0x130] sm:$0x8] %v3764_v41  ;;  %v5715_v29 = vsel %vm4243_vm7, %v5713_v19, %v5714_v6  ;;  %v5809_v15 = vadd.f32 %v5713_v19, %v5597_v55  ;;  %v5811_v13 = vadd.f32 %v5714_v6, %v5599_v60  ;;  %3813 = vst [vmem:[#allocation5 + $0x13c] sm:$0x1] %v3812_v14  ;;  %v9903_v59 = vld [vmem:[#allocation5 + $0x120] sm:$0xff]  }
 0x420   : > { %v6014_v12 = vrot.slane %v5894_v47, 2  ;;  %v5810_v44 = vadd.f32 %v5715_v29, %v5598_v22  ;;  %v6016_v0 = vrot.slane %v5895_v52, 2  ;;  %v4067_v50 = vunpack.c.l.bf16 %v12791_v20 }
 0x421   : > { %v4118_v49 = vmul.f32 %v11447_v25, %v4066_v37  ;;  %v6117_v54 = vadd.f32 %v6013_v26, %v5809_v15  ;;  %v4120_v51 = vmul.f32 %v11447_v25, %v12483_v62  ;;  %v4206_v3 = vmul.f32 %v11428_v11, %v12483_v62 }
 0x422   : > { %v6015_v36 = vsel %vm2888_vm3, %v6013_v26, %v6014_v12  ;;  %v6017_v56 = vsel %vm2888_vm3, %v6014_v12, %v6016_v0  ;;  %v4119_v17 = vmul.f32 %v11447_v25, %v4067_v50  ;;  %v4205_v9 = vmul.f32 %v11428_v11, %v4067_v50 }
 0x423   : > { %v6118_v40 = vadd.f32 %v6015_v36, %v5810_v44  ;;  %v6119_v18 = vadd.f32 %v6017_v56, %v5811_v13  ;;  %v6172_v32 = vmul.f32 %v12561_v1, %v6117_v54  ;;  %v4284_v42 = vrot.slane %v4206_v3, 1  ;;  %v5117_v3 = vld [vmem:[#allocation5 + $0x128] sm:$0x1] }
 0x424   : > { %v4417_v27 = vunpack.c.l.bf16 %v4401_v45  ;;  %v4283_v60 = vrot.slane %v4205_v9, 1  ;;  %v4463_v43 = vmul.f32 %v11441_v21, %v4067_v50  ;;  %v4464_v48 = vmul.f32 %v11441_v21, %v12483_v62  ;;  %v4735_v62 = vld [vmem:[#allocation5 + $0x11c] sm:$0x8] }
 0x425   : > { %v6173_v58 = vmul.f32 %v12561_v1, %v6118_v40  ;;  %v6174_v10 = vmul.f32 %v12561_v1, %v6119_v18  ;;  %v6227_v22 = vadd.f32 %v12569_v30, %v6172_v32  ;;  %v4381_v19 = vadd.f32 %v4284_v42, %v4120_v51 }
 0x426   : > { %v4465_v16 = vmul.f32 %v11441_v21, %v4417_v27  ;;  %v4285_v6 = vsel %vm4243_vm7, %v4283_v60, %v4284_v42  ;;  %v4379_v47 = vadd.f32 %v4283_v60, %v4118_v49  ;;  %v4585_v41 = vrot.slane %v4463_v43, 2 }
 0x427   : > { %v6228_v55 = vadd.f32 %v12569_v30, %v6173_v58  ;;  %v6229_v52 = vadd.f32 %v12569_v30, %v6174_v10  ;;  %v6275_v26 = vmax.f32 %v6227_v22, 0.0  ;;  %v4380_v14 = vadd.f32 %v4285_v6, %v4119_v17  ;;  %v5452_v58 = vld [vmem:[#allocation5 + $0x130] sm:$0x8]  ;;  %v5453_v22 = vld [vmem:[#allocation5 + $0x134] sm:$0xff]  }
 0x428   : > { %v4586_v37 = vrot.slane %v4464_v48, 2  ;;  %v4588_v15 = vrot.slane %v4465_v16, 2  ;;  %v4687_v13 = vadd.f32 %v4585_v41, %v4379_v47  ;;  %v9788_v12 = vunpack.c.l.bf16 %v9903_v59 }
 0x429   : > { %v6276_v29 = vmax.f32 %v6228_v55, 0.0  ;;  %v6277_v44 = vmax.f32 %v6229_v52, 0.0  ;;  %v6396_v0 = vrot.slane %v6275_v26, 7  ;;  %v9789_v45 = vunpack.c.h.bf16 %v9903_v59 }
 0x42a   : > { %v4587_v50 = vsel %vm2888_vm3, %v4585_v41, %v4586_v37  ;;  %v4589_v54 = vsel %vm2888_vm3, %v4586_v37, %v4588_v15  ;;  %v4783_v51 = vunpack.c.l.bf16 %v4735_v62  ;;  %v4836_v17 = vmul.f32 %v9788_v12, %v11485_v24 }
 0x42b   : > { %v6397_v36 = vrot.slane %v6276_v29, 7  ;;  %v4688_v49 = vadd.f32 %v4587_v50, %v4380_v14  ;;  %v6399_v56 = vrot.slane %v6277_v44, 7  ;;  %v4689_v40 = vadd.f32 %v4589_v54, %v4381_v19  ;;  %v5834_v29 = vld [vmem:[#allocation5 + $0x13c] sm:$0x1] }
 0x42c   : > { %v4837_v9 = vmul.f32 %v9789_v45, %v11485_v24  ;;  %v4835_v32 = vmul.f32 %v11485_v24, %v4783_v51  ;;  %v4922_v42 = vmul.f32 %v9788_v12, %v11493_v38  ;;  %v4923_v27 = vmul.f32 %v9789_v45, %v11493_v38 }
 0x42d   : > { %v6398_v18 = vsel %vm6335_vm8, %v6396_v0, %v6397_v36  ;;  %v6400_v60 = vsel %vm6335_vm8, %v6397_v36, %v6399_v56  ;;  %v4884_v43 = vadd.f32 %v4836_v17, %v4688_v49  ;;  %v5133_v10 = vunpack.c.l.bf16 %v5117_v3 }
 0x42e   : > { %v4885_v48 = vadd.f32 %v4837_v9, %v4689_v40  ;;  %v6460_v19 = vpack.c.bf16 %v6400_v60, %v6398_v18  ;;  %v4883_v16 = vadd.f32 %v4835_v32, %v4687_v13  ;;  %v4999_v59 = vrot.slane %v4922_v42, 1  ;;  %v3766_v18 = vld [vmem:[#allocation5 + $0x144] sm:$0x8]  ;;  %v3814_v60 = vld [vmem:[#allocation5 + $0x150] sm:$0x1] }
 0x42f   : > { %v5000_v55 = vrot.slane %v4923_v27, 1  ;;  %v5179_v6 = vmul.f32 %v9788_v12, %v11497_v39  ;;  %v5180_v47 = vmul.f32 %v9789_v45, %v11497_v39  ;;  %v5181_v41 = vmul.f32 %v11497_v39, %v5133_v10 }
 0x430   : > { %v5500_v52 = vunpack.c.l.bf16 %v5452_v58  ;;  %10096 = vmatprep.mubr.msk.bf16.mxu1 %vm3293_vm14, %v6460_v19  ;;  %v5095_v14 = vadd.f32 %v4999_v59, %v4883_v16  ;;  %v5501_v62 = vunpack.c.l.bf16 %v5453_v22  ;;  %v5502_v50 = vunpack.c.h.bf16 %v5453_v22  ;;  %v4021_v19 = vld [vmem:[#allocation5 + $0x11c] sm:$0x8] }
 0x431   : > { %v5001_v26 = vsel %vm4243_vm7, %v4999_v59, %v5000_v55  ;;  %v5097_v37 = vadd.f32 %v5000_v55, %v4885_v48  ;;  %v5301_v44 = vrot.slane %v5179_v6, 2  ;;  %v5302_v13 = vrot.slane %v5180_v47, 2 }
 0x432   : > { %v5096_v15 = vadd.f32 %v5001_v26, %v4884_v43  ;;  %v5304_v0 = vrot.slane %v5181_v41, 2  ;;  %v5552_v12 = vmul.f32 %v11522_v23, %v5500_v52  ;;  %v5553_v45 = vmul.f32 %v11522_v23, %v5501_v62 }
 0x433   : > { %v5639_v36 = vmul.f32 %v11535_v34, %v5501_v62  ;;  %v5303_v54 = vsel %vm2888_vm3, %v5301_v44, %v5302_v13  ;;  %v5403_v51 = vadd.f32 %v5301_v44, %v5095_v14  ;;  %v5850_v3 = vunpack.c.l.bf16 %v5834_v29  ;;  %v4402_v29 = vld [vmem:[#allocation5 + $0x128] sm:$0x1] }
 0x434   : > { %v5305_v49 = vsel %vm2888_vm3, %v5302_v13, %v5304_v0  ;;  %v5404_v56 = vadd.f32 %v5303_v54, %v5096_v15  ;;  %v5554_v17 = vmul.f32 %v11522_v23, %v5502_v50  ;;  %v5640_v9 = vmul.f32 %v11535_v34, %v5502_v50 }
 0x435   : > { %v5405_v40 = vadd.f32 %v5305_v49, %v5097_v37  ;;  %v5600_v32 = vadd.f32 %v5552_v12, %v5403_v51  ;;  %v5716_v42 = vrot.slane %v5639_v36, 1  ;;  %v5896_v27 = vmul.f32 %v12510_v35, %v5501_v62 }
 0x436   : > { %v5897_v58 = vmul.f32 %v12510_v35, %v5502_v50  ;;  %v5601_v43 = vadd.f32 %v5553_v45, %v5404_v56  ;;  %v5717_v10 = vrot.slane %v5640_v9, 1  ;;  %v5898_v22 = vmul.f32 %v12510_v35, %v5850_v3 }
 0x437   : > { %v5602_v48 = vadd.f32 %v5554_v17, %v5405_v40  ;;  %v5812_v16 = vadd.f32 %v5716_v42, %v5600_v32  ;;  %v6018_v59 = vrot.slane %v5896_v27, 2  ;;  %v3767_v6 = vsel %vm11354_vm6, 0, %v3766_v18 }
 0x438   : > { %v6019_v55 = vrot.slane %v5897_v58, 2  ;;  %v5718_v47 = vsel %vm4243_vm7, %v5716_v42, %v5717_v10  ;;  %v6021_v52 = vrot.slane %v5898_v22, 2  ;;  %3768 = vst [vmem:[#allocation5 + $0x144] sm:$0x8] %v3767_v6  ;;  %v3815_v26 = vsel %vm11341_vm2, 0, %v3814_v60 }
 0x439   : > { %v5814_v41 = vadd.f32 %v5717_v10, %v5602_v48  ;;  %v5813_v14 = vadd.f32 %v5718_v47, %v5601_v43  ;;  %v6120_v62 = vadd.f32 %v6018_v59, %v5812_v16  ;;  %3816 = vst [vmem:[#allocation5 + $0x150] sm:$0x1] %v3815_v26  ;;  %v4069_v35 = vunpack.c.l.bf16 %v4021_v19  ;;  %v4738_v43 = vld [vmem:[#allocation5 + $0x130] sm:$0x8]  ;;  %v4739_v48 = vld [vmem:[#allocation5 + $0x134] sm:$0xff]  }
 0x43a   : > { %v6020_v37 = vsel %vm2888_vm3, %v6018_v59, %v6019_v55  ;;  %v6022_v15 = vsel %vm2888_vm3, %v6019_v55, %v6021_v52  ;;  %v4122_v4 = vmul.f32 %v12758_v8, %v11447_v25  ;;  %v4123_v44 = vmul.f32 %v12760_v7, %v11447_v25 }
 0x43b   : > { %v4207_v13 = vmul.f32 %v12758_v8, %v11428_v11  ;;  %v6121_v0 = vadd.f32 %v6020_v37, %v5813_v14  ;;  %v6122_v50 = vadd.f32 %v6022_v15, %v5814_v41  ;;  %v6175_v12 = vmul.f32 %v12561_v1, %v6120_v62 }
 0x43c   : > { %v4121_v45 = vmul.f32 %v11447_v25, %v4069_v35  ;;  %v4208_v36 = vmul.f32 %v12760_v7, %v11428_v11  ;;  %v4418_v49 = vunpack.c.l.bf16 %v4402_v29  ;;  %v4466_v51 = vmul.f32 %v12758_v8, %v11441_v21 }
 0x43d   : > { %v4286_v54 = vrot.slane %v4207_v13, 1  ;;  %v6176_v3 = vmul.f32 %v12561_v1, %v6121_v0  ;;  %v6177_v56 = vmul.f32 %v12561_v1, %v6122_v50  ;;  %v6230_v40 = vadd.f32 %v12569_v30, %v6175_v12  ;;  %v9912_v12 = vld [vmem:[#allocation5 + $0x148] sm:$0xff]  }
 0x43e   : > { %v4467_v17 = vmul.f32 %v12760_v7, %v11441_v21  ;;  %v4287_v9 = vrot.slane %v4208_v36, 1  ;;  %v4468_v32 = vmul.f32 %v11441_v21, %v4418_v49  ;;  %v4590_v42 = vrot.slane %v4466_v51, 2 }
 0x43f   : > { %v4382_v18 = vadd.f32 %v4286_v54, %v4121_v45  ;;  %v6231_v27 = vadd.f32 %v12569_v30, %v6176_v3  ;;  %v6232_v58 = vadd.f32 %v12569_v30, %v6177_v56  ;;  %v6278_v60 = vmax.f32 %v6230_v40, 0.0  ;;  %v5118_v30 = vld [vmem:[#allocation5 + $0x13c] sm:$0x1] }
 0x440   : > { %v4591_v8 = vrot.slane %v4467_v17, 2  ;;  %v4288_v1 = vsel %vm4243_vm7, %v4286_v54, %v4287_v9  ;;  %v4384_v10 = vadd.f32 %v4287_v9, %v4123_v44  ;;  %v4593_v22 = vrot.slane %v4468_v32, 2  ;;  %v5455_v17 = vld [vmem:[#allocation5 + $0x144] sm:$0x8] }
 0x441   : > { %v4690_v19 = vadd.f32 %v4590_v42, %v4382_v18  ;;  %v6279_v16 = vmax.f32 %v6231_v27, 0.0  ;;  %v6280_v7 = vmax.f32 %v6232_v58, 0.0  ;;  %v6401_v59 = vrot.slane %v6278_v60, 7 }
 0x442   : > { %v4383_v55 = vadd.f32 %v4288_v1, %v4122_v4  ;;  %v4592_v6 = vsel %vm2888_vm3, %v4590_v42, %v4591_v8  ;;  %v4594_v47 = vsel %vm2888_vm3, %v4591_v8, %v4593_v22  ;;  %v4786_v41 = vunpack.c.l.bf16 %v4738_v43  ;;  %v5835_v22 = vld [vmem:[#allocation5 + $0x150] sm:$0x1] }
 0x443   : > { %v4787_v52 = vunpack.c.l.bf16 %v4739_v48  ;;  %v6402_v26 = vrot.slane %v6279_v16, 7  ;;  %v6404_v14 = vrot.slane %v6280_v7, 7  ;;  %v4692_v62 = vadd.f32 %v4594_v47, %v4384_v10 }
 0x444   : > { %v4691_v37 = vadd.f32 %v4592_v6, %v4383_v55  ;;  %v4788_v35 = vunpack.c.h.bf16 %v4739_v48  ;;  %v4838_v29 = vmul.f32 %v11485_v24, %v4786_v41  ;;  %v5134_v0 = vunpack.c.l.bf16 %v5118_v30 }
 0x445   : > { %v4839_v15 = vmul.f32 %v11485_v24, %v4787_v52  ;;  %v4924_v44 = vmul.f32 %v11493_v38, %v4787_v52  ;;  %v6403_v4 = vsel %vm6335_vm8, %v6401_v59, %v6402_v26  ;;  %v6405_v13 = vsel %vm6335_vm8, %v6402_v26, %v6404_v14 }
 0x446   : > { %v5182_v50 = vmul.f32 %v11497_v39, %v4787_v52  ;;  %v6461_v45 = vpack.c.bf16 %v6405_v13, %v6403_v4  ;;  %v4840_v36 = vmul.f32 %v11485_v24, %v4788_v35  ;;  %v4886_v54 = vadd.f32 %v4838_v29, %v4690_v19  ;;  %v3714_v52 = vld [vmem:[#allocation5 + $0x164] sm:$0x1]  ;;  %v4024_v4 = vld [vmem:[#allocation5 + $0x130] sm:$0x8] }
 0x447   : > { %v4887_v49 = vadd.f32 %v4839_v15, %v4691_v37  ;;  %v4925_v51 = vmul.f32 %v11493_v38, %v4788_v35  ;;  %v5002_v3 = vrot.slane %v4924_v44, 1  ;;  %v5183_v56 = vmul.f32 %v11497_v39, %v4788_v35  ;;  %v12900_v37 = vld [vmem:[%s14079_s3 + $0x8] ss:$0 sm:$0xff] }
 0x448   : > { %v5184_v40 = vmul.f32 %v11497_v39, %v5134_v0  ;;  %10097 = vmatmul.mubr.msk.bf16.gmra.mrb[56].mxu1 %vm3293_vm14, %v6461_v45  ;;  %v4888_v9 = vadd.f32 %v4840_v36, %v4692_v62  ;;  %v5306_v18 = vrot.slane %v5182_v50, 2  ;;  %v12883_v32 = vunpack.c.l.bf16 %v9912_v12 }
 0x449   : > { %v12885_v42 = vunpack.c.h.bf16 %v9912_v12  ;;  %v5003_v27 = vrot.slane %v4925_v51, 1  ;;  %v5098_v58 = vadd.f32 %v5002_v3, %v4886_v54  ;;  %v5307_v60 = vrot.slane %v5183_v56, 2 }
 0x44a   : > { %v5309_v8 = vrot.slane %v5184_v40, 2  ;;  %v5503_v43 = vunpack.c.l.bf16 %v5455_v17  ;;  %v5556_v48 = vmul.f32 %v12883_v32, %v11522_v23  ;;  %v5641_v10 = vmul.f32 %v12883_v32, %v11535_v34 }
 0x44b   : > { %v5557_v1 = vmul.f32 %v12885_v42, %v11522_v23  ;;  %v5004_v19 = vsel %vm4243_vm7, %v5002_v3, %v5003_v27  ;;  %v5100_v16 = vadd.f32 %v5003_v27, %v4888_v9  ;;  %v5308_v7 = vsel %vm2888_vm3, %v5306_v18, %v5307_v60  ;;  %v4403_v27 = vld [vmem:[#allocation5 + $0x13c] sm:$0x1] }
 0x44c   : > { %v5310_v59 = vsel %vm2888_vm3, %v5307_v60, %v5309_v8  ;;  %v5099_v55 = vadd.f32 %v5004_v19, %v4887_v49  ;;  %v5406_v6 = vadd.f32 %v5306_v18, %v5098_v58  ;;  %v5555_v47 = vmul.f32 %v11522_v23, %v5503_v43 }
 0x44d   : > { %v5642_v41 = vmul.f32 %v12885_v42, %v11535_v34  ;;  %v5408_v30 = vadd.f32 %v5310_v59, %v5100_v16  ;;  %v5719_v26 = vrot.slane %v5641_v10, 1  ;;  %v5851_v14 = vunpack.c.l.bf16 %v5835_v22 }
 0x44e   : > { %v5899_v62 = vmul.f32 %v12900_v37, %v12883_v32  ;;  %v5407_v35 = vadd.f32 %v5308_v7, %v5099_v55  ;;  %v5603_v29 = vadd.f32 %v5555_v47, %v5406_v6  ;;  %v5900_v44 = vmul.f32 %v12900_v37, %v12885_v42  ;;  %v12930_v6 = vld [vmem:[%s10493_s14] ss:$0 sm:$0xff] }
 0x44f   : > { %v5720_v15 = vrot.slane %v5642_v41, 1  ;;  %v5605_v13 = vadd.f32 %v5557_v1, %v5408_v30  ;;  %v5901_v0 = vmul.f32 %v12900_v37, %v5851_v14  ;;  %v3715_v12 = vsel %vm11341_vm2, 0, %v3714_v52 }
 0x450   : > { %v6023_v50 = vrot.slane %v5899_v62, 2  ;;  %v5604_v45 = vadd.f32 %v5556_v48, %v5407_v35  ;;  %v5815_v54 = vadd.f32 %v5719_v26, %v5603_v29  ;;  %v6024_v49 = vrot.slane %v5900_v44, 2  ;;  %3716 = vst [vmem:[#allocation5 + $0x164] sm:$0x1] %v3715_v12 }
 0x451   : > { %v5721_v36 = vsel %vm4243_vm7, %v5719_v26, %v5720_v15  ;;  %v5817_v51 = vadd.f32 %v5720_v15, %v5605_v13  ;;  %v6026_v3 = vrot.slane %v5901_v0, 2  ;;  %v4072_v56 = vunpack.c.l.bf16 %v4024_v4  ;;  %v4741_v15 = vld [vmem:[#allocation5 + $0x144] sm:$0x8] }
 0x452   : > { %v4073_v40 = vunpack.c.h.bf16 %v12791_v20  ;;  %v5816_v17 = vadd.f32 %v5721_v36, %v5604_v45  ;;  %v6025_v9 = vsel %vm2888_vm3, %v6023_v50, %v6024_v49  ;;  %v6123_v18 = vadd.f32 %v6023_v50, %v5815_v54  ;;  %v12919_v20 = vld [vmem:[%s10488_s8] ss:$0 sm:$0xff] }
 0x453   : > { %v4126_v33 = vmul.f32 %v11447_v25, %v12669_v63  ;;  %v6027_v58 = vsel %vm2888_vm3, %v6024_v49, %v6026_v3  ;;  %v4124_v60 = vmul.f32 %v11447_v25, %v4072_v56  ;;  %v4210_v22 = vmul.f32 %v11428_v11, %v12669_v63 }
 0x454   : > { %v4125_v8 = vmul.f32 %v11447_v25, %v4073_v40  ;;  %v4209_v43 = vmul.f32 %v11428_v11, %v4073_v40  ;;  %v6124_v48 = vadd.f32 %v6025_v9, %v5816_v17  ;;  %v6125_v1 = vadd.f32 %v6027_v58, %v5817_v51  ;;  %v5119_v17 = vld [vmem:[#allocation5 + $0x150] sm:$0x1] }
 0x455   : > { %v6178_v10 = vmul.f32 %v12919_v20, %v6123_v18  ;;  %v4419_v16 = vunpack.c.l.bf16 %v4403_v27  ;;  %v4469_v7 = vmul.f32 %v11441_v21, %v4073_v40  ;;  %v4470_v59 = vmul.f32 %v11441_v21, %v12669_v63 }
 0x456   : > { %v4289_v19 = vrot.slane %v4209_v43, 1  ;;  %v6179_v25 = vmul.f32 %v12919_v20, %v6124_v48  ;;  %v6180_v55 = vmul.f32 %v12919_v20, %v6125_v1  ;;  %v4290_v41 = vrot.slane %v4210_v22, 1  ;;  %v5458_v48 = vld [vmem:[#allocation5 + $0x158] sm:$0x8] }
 0x457   : > { %v6233_v47 = vadd.f32 %v12930_v6, %v6178_v10  ;;  %v4471_v30 = vmul.f32 %v11441_v21, %v4419_v16  ;;  %v4595_v11 = vrot.slane %v4469_v7, 2  ;;  %v4596_v26 = vrot.slane %v4470_v59, 2  ;;  %v12934_v14 = vpop.f32.mrb[40].mxu1  ;;  %v5459_v16 = vld [vmem:[#allocation5 + $0x15c] sm:$0xff]  }
 0x458   : > { %v4385_v52 = vadd.f32 %v4289_v19, %v4124_v60  ;;  %v6234_v62 = vadd.f32 %v12930_v6, %v6179_v25  ;;  %v6235_v63 = vadd.f32 %v12930_v6, %v6180_v55  ;;  %v4291_v29 = vsel %vm4243_vm7, %v4289_v19, %v4290_v41  ;;  %v12939_v44 = vpop.f32.mrb[41].mxu1 }
 0x459   : > { %v6281_v35 = vmax.f32 %v6233_v47, 0.0  ;;  %v4386_v4 = vadd.f32 %v4291_v29, %v4125_v8  ;;  %v4387_v13 = vadd.f32 %v4290_v41, %v4126_v33  ;;  %v4597_v0 = vsel %vm2888_vm3, %v4595_v11, %v4596_v26  ;;  %v12942_v21 = vpop.f32.mrb[42].mxu1 }
 0x45a   : > { %v4598_v50 = vrot.slane %v4471_v30, 2  ;;  %v6282_v12 = vmax.f32 %v6234_v62, 0.0  ;;  %v6283_v45 = vmax.f32 %v6235_v63, 0.0  ;;  %v4693_v54 = vadd.f32 %v4595_v11, %v4385_v52  ;;  %v12944_v49 = vpop.f32.mrb[43].mxu1  ;;  %v5836_v62 = vld [vmem:[#allocation5 + $0x164] sm:$0x1] }
 0x45b   : > { %v6406_v36 = vrot.slane %v6281_v35, 7  ;;  %v4694_v3 = vadd.f32 %v4597_v0, %v4386_v4  ;;  %v4789_v56 = vunpack.c.l.bf16 %v4741_v15  ;;  %v4842_v40 = vmul.f32 %v12883_v32, %v11485_v24 }
 0x45c   : > { %v4599_v51 = vsel %vm2888_vm3, %v4596_v26, %v4598_v50  ;;  %v6407_v9 = vrot.slane %v6282_v12, 7  ;;  %v6409_v18 = vrot.slane %v6283_v45, 7  ;;  %v4843_v27 = vmul.f32 %v12885_v42, %v11485_v24 }
 0x45d   : > { %v4695_v33 = vadd.f32 %v4599_v51, %v4387_v13  ;;  %v4841_v58 = vmul.f32 %v11485_v24, %v4789_v56  ;;  %v4890_v60 = vadd.f32 %v4842_v40, %v4694_v3  ;;  %v4926_v8 = vmul.f32 %v12883_v32, %v11493_v38  ;;  %v12973_v3 = vld [vmem:[%s10503_s24] ss:$0 sm:$0xff] }
 0x45e   : > { %v4927_v43 = vmul.f32 %v12885_v42, %v11493_v38  ;;  %v6408_v1 = vsel %vm6335_vm8, %v6406_v36, %v6407_v9  ;;  %v6410_v10 = vsel %vm6335_vm8, %v6407_v9, %v6409_v18  ;;  %v5135_v19 = vunpack.c.l.bf16 %v5119_v17 }
 0x45f   : > { %v4891_v22 = vadd.f32 %v4843_v27, %v4695_v33  ;;  %v6462_v7 = vpack.c.bf16 %v6410_v10, %v6408_v1  ;;  %v4889_v59 = vadd.f32 %v4841_v58, %v4693_v54  ;;  %v5005_v25 = vrot.slane %v4926_v8, 1 }
 0x460   : > { %v5006_v55 = vrot.slane %v4927_v43, 1  ;;  %v5185_v24 = vmul.f32 %v12883_v32, %v11497_v39  ;;  %v5186_v47 = vmul.f32 %v12885_v42, %v11497_v39  ;;  %v5187_v38 = vmul.f32 %v11497_v39, %v5135_v19 }
 0x461   : > { %v5506_v41 = vunpack.c.l.bf16 %v5458_v48  ;;  %10100 = vmatprep.mubr.msk.bf16.mxu1 %vm3293_vm14, %v6462_v7  ;;  %v5101_v30 = vadd.f32 %v5005_v25, %v4889_v59  ;;  %v5507_v26 = vunpack.c.l.bf16 %v5459_v16  ;;  %v5508_v32 = vunpack.c.h.bf16 %v5459_v16 }
 0x462   : > { %v5007_v52 = vsel %vm4243_vm7, %v5005_v25, %v5006_v55  ;;  %v5103_v11 = vadd.f32 %v5006_v55, %v4891_v22  ;;  %v5311_v35 = vrot.slane %v5185_v24, 2  ;;  %v5312_v29 = vrot.slane %v5186_v47, 2 }
 0x463   : > { %v5102_v63 = vadd.f32 %v5007_v52, %v4890_v60  ;;  %v5314_v15 = vrot.slane %v5187_v38, 2  ;;  %v5558_v4 = vmul.f32 %v11522_v23, %v5506_v41  ;;  %v5559_v42 = vmul.f32 %v11522_v23, %v5507_v26  ;;  %v12979_v60 = vld [vmem:[%s10508_s30] ss:$0 sm:$0xff]  ;;  %v10289_v38 = vld [vmem:[#allocation4 + $0x10] sm:$0xff] }
 0x464   : > { %v5643_v39 = vmul.f32 %v11535_v34, %v5507_v26  ;;  %v5313_v13 = vsel %vm2888_vm3, %v5311_v35, %v5312_v29  ;;  %v5409_v50 = vadd.f32 %v5311_v35, %v5101_v30  ;;  %v5852_v12 = vunpack.c.l.bf16 %v5836_v62  ;;  %v10290_v52 = vld [vmem:[#allocation4] sm:$0xff] }
 0x465   : > { %v5315_v0 = vsel %vm2888_vm3, %v5312_v29, %v5314_v15  ;;  %v5410_v45 = vadd.f32 %v5313_v13, %v5102_v63  ;;  %v5560_v54 = vmul.f32 %v11522_v23, %v5508_v32  ;;  %v5644_v51 = vmul.f32 %v11535_v34, %v5508_v32  ;;  %v10291_v62 = vld [vmem:[%s10513_s6] sm:$0xf]  ;;  %v10292_v15 = vld [vmem:[#allocation4 + $0x18] sm:$0xff] }
 0x466   : > { %v5411_v36 = vadd.f32 %v5315_v0, %v5103_v11  ;;  %v5606_v56 = vadd.f32 %v5558_v4, %v5409_v50  ;;  %v5722_v40 = vrot.slane %v5643_v39, 1  ;;  %v5902_v17 = vmul.f32 %v12900_v37, %v5507_v26  ;;  %v10293_v4 = vld [vmem:[#allocation4 + $0x8] sm:$0xff] }
 0x467   : > { %v5903_v9 = vmul.f32 %v12900_v37, %v5508_v32  ;;  %v5607_v18 = vadd.f32 %v5559_v42, %v5410_v45  ;;  %v5723_v27 = vrot.slane %v5644_v51, 1  ;;  %v5904_v58 = vmul.f32 %v12900_v37, %v5852_v12  ;;  %v10294_v51 = vld [vmem:[#allocation4 + $0x30] sm:$0xff] }
 0x468   : > { %v5608_v33 = vadd.f32 %v5560_v54, %v5411_v36  ;;  %v5818_v8 = vadd.f32 %v5722_v40, %v5606_v56  ;;  %v6028_v43 = vrot.slane %v5902_v17, 2  ;;  %v6686_v34 = vmul.f32 %v12663_v53, %v12973_v3 }
 0x469   : > { %v6029_v23 = vrot.slane %v5903_v9, 2  ;;  %v5724_v48 = vsel %vm4243_vm7, %v5722_v40, %v5723_v27  ;;  %v6031_v10 = vrot.slane %v5904_v58, 2  ;;  %v6684_v22 = vmul.f32 %v12973_v3, %v12667_v2  ;;  %v10295_v40 = vld [vmem:[#allocation4 + $0x20] sm:$0xff]  ;;  %v10296_v9 = vld [vmem:[#allocation4 + $0x38] sm:$0xff] }
 0x46a   : > { %v5820_v1 = vadd.f32 %v5723_v27, %v5608_v33  ;;  %v5819_v19 = vadd.f32 %v5724_v48, %v5607_v18  ;;  %v6126_v37 = vadd.f32 %v6028_v43, %v5818_v8  ;;  %v6725_v7 = vadd.f32 %v12979_v60, %v6686_v34  ;;  %v10298_v34 = vld [vmem:[#allocation4 + $0x50] sm:$0xff] }
 0x46b   : > { %v6030_v16 = vsel %vm2888_vm3, %v6028_v43, %v6029_v23  ;;  %v6032_v59 = vsel %vm2888_vm3, %v6029_v23, %v6031_v10  ;;  %v6723_v25 = vadd.f32 %v12979_v60, %v6684_v22  ;;  %v6687_v53 = vmul.f32 %v12674_v28, %v12973_v3  ;;  %v10297_v43 = vld [vmem:[#allocation4 + $0x28] sm:$0xff] }
 0x46c   : > { %v6685_v55 = vmul.f32 %v12973_v3, %v12683_v61  ;;  %v6127_v24 = vadd.f32 %v6030_v16, %v5819_v19  ;;  %v6128_v47 = vadd.f32 %v6032_v59, %v5820_v1  ;;  %v6181_v2 = vmul.f32 %v12919_v20, %v6126_v37 }
 0x46d   : > { %v6757_v41 = vadd.f32 %v10289_v38, %v6725_v7  ;;  %v6755_v30 = vadd.f32 %v10290_v52, %v6723_v25  ;;  %v6726_v11 = vadd.f32 %v12979_v60, %v6687_v53  ;;  %v6917_v63 = vsel %vm3423_vm13, %v10291_v62, 0  ;;  %v10299_v25 = vld [vmem:[#allocation4 + $0x40] sm:$0xff]  ;;  %v10300_v53 = vld [vmem:[#allocation4 + $0x58] sm:$0xff] }
 0x46e   : > { %v6724_v26 = vadd.f32 %v12979_v60, %v6685_v55  ;;  %v6182_v28 = vmul.f32 %v12919_v20, %v6127_v24  ;;  %v6183_v35 = vmul.f32 %v12919_v20, %v6128_v47  ;;  %v6236_v61 = vadd.f32 %v12930_v6, %v6181_v2  ;;  %10105 = vmatpush3.bf16.msra.mxu0 %v6917_v63  ;;  %v10301_v2 = vld [vmem:[#allocation4 + $0x48] sm:$0xff] }
 0x46f   : > { %6789 = vst.msk [vmem:[#allocation6 + $0x10] sm:$0xff] %vm3293_vm14, %v6757_v41  ;;  %v6690_v29 = vmul.f32 %v12762_v57, %v12973_v3  ;;  %6787 = vst.msk [vmem:[#allocation6] sm:$0xff] %vm3293_vm14, %v6755_v30  ;;  %v6758_v32 = vadd.f32 %v10292_v15, %v6726_v11  ;;  %v6688_v39 = vmul.f32 %v12973_v3, %v12766_v46  ;;  %vm7919_vm15 = vcmask 322563  }
 0x470   : > { %v6756_v42 = vadd.f32 %v10293_v4, %v6724_v26  ;;  %v6691_v20 = vmul.f32 %v12769_v31, %v12973_v3  ;;  %v6237_v13 = vadd.f32 %v12930_v6, %v6182_v28  ;;  %v6238_v0 = vadd.f32 %v12930_v6, %v6183_v35  ;;  %vm13434_vm2 = vmand %vm7919_vm15, %vm3719_vm5 }
 0x471   : > { %v6284_v50 = vmax.f32 %v6236_v61, 0.0  ;;  %v6729_v12 = vadd.f32 %v12979_v60, %v6690_v29  ;;  %6790 = vst.msk [vmem:[#allocation6 + $0x18] sm:$0xff] %vm3293_vm14, %v6758_v32  ;;  %v6727_v57 = vadd.f32 %v12979_v60, %v6688_v39  ;;  %v6689_v46 = vmul.f32 %v12973_v3, %v12775_v5 }
 0x472   : > { %6788 = vst.msk [vmem:[#allocation6 + $0x8] sm:$0xff] %vm3293_vm14, %v6756_v42  ;;  %v6730_v45 = vadd.f32 %v12979_v60, %v6691_v20  ;;  %v6694_v31 = vmul.f32 %v12934_v14, %v12973_v3  ;;  %v6285_v36 = vmax.f32 %v6237_v13, 0.0  ;;  %v6286_v54 = vmax.f32 %v6238_v0, 0.0 }
 0x473   : > { %v6411_v6 = vrot.slane %v6284_v50, 7  ;;  %v6761_v56 = vadd.f32 %v10294_v51, %v6729_v12  ;;  %v6759_v17 = vadd.f32 %v10295_v40, %v6727_v57  ;;  %v6728_v33 = vadd.f32 %v12979_v60, %v6689_v46  ;;  %v10302_v46 = vld [vmem:[#allocation4 + $0x70] sm:$0xff] }
 0x474   : > { %v6762_v18 = vadd.f32 %v10296_v9, %v6730_v45  ;;  %v6733_v27 = vadd.f32 %v12979_v60, %v6694_v31  ;;  %v6412_v58 = vrot.slane %v6285_v36, 7  ;;  %v6414_v8 = vrot.slane %v6286_v54, 7  ;;  %v10303_v54 = vld [vmem:[#allocation4 + $0x60] sm:$0xff] }
 0x475   : > { %6793 = vst.msk [vmem:[#allocation6 + $0x30] sm:$0xff] %vm3293_vm14, %v6761_v56  ;;  %v6692_v5 = vmul.f32 %v12973_v3, %v12939_v44  ;;  %v6695_v14 = vmul.f32 %v12942_v21, %v12973_v3  ;;  %6791 = vst.msk [vmem:[#allocation6 + $0x20] sm:$0xff] %vm3293_vm14, %v6759_v17  ;;  %v6760_v23 = vadd.f32 %v10297_v43, %v6728_v33  ;;  %v10304_v56 = vld [vmem:[#allocation4 + $0x78] sm:$0xff]  ;;  %v10305_v17 = vld [vmem:[#allocation4 + $0x68] sm:$0xff] }
 0x476   : > { %6794 = vst.msk [vmem:[#allocation6 + $0x38] sm:$0xff] %vm3293_vm14, %v6762_v18  ;;  %v6765_v48 = vadd.f32 %v10298_v34, %v6733_v27  ;;  %v6693_v1 = vmul.f32 %v12973_v3, %v12944_v49  ;;  %v6413_v10 = vsel %vm6335_vm8, %v6411_v6, %v6412_v58  ;;  %v6415_v22 = vsel %vm6335_vm8, %v6412_v58, %v6414_v8  ;;  %v6819_v37 = vld [vmem:[#allocation6] sm:$0xff]  ;;  %v6821_v47 = vld [vmem:[#allocation6 + $0x10] sm:$0xff] }
 0x477   : > { %v6731_v44 = vadd.f32 %v12979_v60, %v6692_v5  ;;  %v6734_v19 = vadd.f32 %v12979_v60, %v6695_v14  ;;  %v6463_v21 = vpack.c.bf16 %v6415_v22, %v6413_v10  ;;  %6792 = vst.msk [vmem:[#allocation6 + $0x28] sm:$0xff] %vm3293_vm14, %v6760_v23 }
 0x478   : > { %6797 = vst.msk [vmem:[#allocation6 + $0x50] sm:$0xff] %vm3293_vm14, %v6765_v48  ;;  %v6732_v16 = vadd.f32 %v12979_v60, %v6693_v1  ;;  %v6822_v59 = vld [vmem:[#allocation6 + $0x18] sm:$0xff] }
 0x479   : > { %v6820_v7 = vld [vmem:[#allocation6 + $0x8] sm:$0xff]  ;;  %v6763_v49 = vadd.f32 %v10299_v25, %v6731_v44  ;;  %v6766_v55 = vadd.f32 %v10300_v53, %v6734_v19  ;;  %10101 = vmatmul.mubr.msk.bf16.gmra.mrb[60].mxu1 %vm3293_vm14, %v6463_v21  ;;  %v6852_v41 = vpack.c.bf16 %v6822_v59, %v6821_v47 }
 0x47a   : > { %v6851_v24 = vpack.c.bf16 %v6820_v7, %v6819_v37  ;;  %v6764_v38 = vadd.f32 %v10301_v2, %v6732_v16  ;;  %v10306_v21 = vld [vmem:[#allocation4 + $0x90] sm:$0xff]  ;;  %v10307_v7 = vld [vmem:[#allocation4 + $0x80] sm:$0xff] }
 0x47b   : > { %6795 = vst.msk [vmem:[#allocation6 + $0x40] sm:$0xff] %vm3293_vm14, %v6763_v49  ;;  %6798 = vst.msk [vmem:[#allocation6 + $0x58] sm:$0xff] %vm3293_vm14, %v6766_v55  ;;  %v10308_v49 = vld [vmem:[#allocation4 + $0x98] sm:$0xff]  ;;  %v10309_v55 = vld [vmem:[#allocation4 + $0x88] sm:$0xff] }
 0x47c   : > { %10106 = vmatprep.mubr.msk.bf16.mxu0 %vm3293_vm14, %v6851_v24  ;;  %6796 = vst.msk [vmem:[#allocation6 + $0x48] sm:$0xff] %vm3293_vm14, %v6764_v38  ;;  %v6823_v52 = vld [vmem:[#allocation6 + $0x20] sm:$0xff]  ;;  %v6825_v62 = vld [vmem:[#allocation6 + $0x30] sm:$0xff] }
 0x47d   : > { %10107 = vmatmul.mubr.msk.bf16.vlgmr.msra.gmra.mrb[32].mxu0 %vm3293_vm14, %v6852_v41  ;;  %v6826_v26 = vld [vmem:[#allocation6 + $0x38] sm:$0xff] }
 0x47e   : > { %v6824_v30 = vld [vmem:[#allocation6 + $0x28] sm:$0xff]  ;;  %v6854_v63 = vpack.c.bf16 %v6826_v26, %v6825_v62 }
 0x47f   : > { %v6853_v11 = vpack.c.bf16 %v6824_v30, %v6823_v52  ;;  %v6829_v20 = vld [vmem:[#allocation6 + $0x50] sm:$0xff] }
 0x481   : > { %10110 = vmatprep.mubr.msk.bf16.mxu0 %vm3293_vm14, %v6853_v11  ;;  %v14150_v11 = vmov 0.0  }
 0x482   : > { %v6827_v28 = vld [vmem:[#allocation6 + $0x40] sm:$0xff]  ;;  %v6830_v15 = vld [vmem:[#allocation6 + $0x58] sm:$0xff]  ;;  %7191 = vst.msk [vmem:[#allocation7] sm:$0xff] %vm7190_vm9, %v14150_v11  ;;  %7192 = vst.msk [vmem:[#allocation7 + $0x8] sm:$0xff] %vm7190_vm9, %v14150_v11 }
 0x483   : > { %v6828_v35 = vld [vmem:[#allocation6 + $0x48] sm:$0xff]  ;;  %v6856_v12 = vpack.c.bf16 %v6830_v15, %v6829_v20  ;;  %7193 = vst.msk [vmem:[#allocation7 + $0x10] sm:$0xff] %vm7190_vm9, %v14150_v11 }
 0x484   : > { %v6855_v61 = vpack.c.bf16 %v6828_v35, %v6827_v28  ;;  %7205 = vst.msk [vmem:[#allocation7 + $0x87] sm:$0x1] %vm7194_vm10, %v14150_v11  ;;  %7202 = vst.msk [vmem:[#allocation7 + $0x27] sm:$0x1] %vm7194_vm10, %v14150_v11 }
 0x485   : > { %10111 = vmatmul.mubr.msk.bf16.gmra.mrb[36].mxu0 %vm3293_vm14, %v6854_v63  ;;  %7203 = vst.msk [vmem:[#allocation7 + $0x47] sm:$0x1] %vm7194_vm10, %v14150_v11  ;;  %7204 = vst.msk [vmem:[#allocation7 + $0x67] sm:$0x1] %vm7194_vm10, %v14150_v11 }
 0x486   : > { %10114 = vmatprep.mubr.msk.bf16.mxu0 %vm3293_vm14, %v6855_v61  ;;  %v10086_v29 = vpop.f32.mrb[44].mxu1  ;;  %7206 = vst.msk [vmem:[#allocation7 + $0xa7] sm:$0x1] %vm7194_vm10, %v14150_v11  ;;  %7207 = vst.msk [vmem:[#allocation7 + $0xc7] sm:$0x1] %vm7194_vm10, %v14150_v11 }
 0x487   : > { %v6698_v32 = vmul.f32 %v10086_v29, %v12973_v3  ;;  %v6598_v4 = vpop.f32.mrb[45].mxu1  ;;  %7208 = vst.msk [vmem:[#allocation7 + $0xe7] sm:$0x1] %vm7194_vm10, %v14150_v11  ;;  %7209 = vst.msk [vmem:[#allocation7 + $0x107] sm:$0x1] %vm7194_vm10, %v14150_v11 }
 0x488   : > { %v6696_v42 = vmul.f32 %v12973_v3, %v6598_v4  ;;  %v10087_v39 = vpop.f32.mrb[46].mxu1  ;;  %7210 = vst.msk [vmem:[#allocation7 + $0x127] sm:$0x1] %vm7194_vm10, %v14150_v11  ;;  %7211 = vst.msk [vmem:[#allocation7 + $0x147] sm:$0x1] %vm7194_vm10, %v14150_v11 }
 0x489   : > { %v6737_v13 = vadd.f32 %v12979_v60, %v6698_v32  ;;  %v6699_v0 = vmul.f32 %v10087_v39, %v12973_v3  ;;  %v6601_v50 = vpop.f32.mrb[47].mxu1  ;;  %7212 = vst.msk [vmem:[#allocation7 + $0x167] sm:$0x1] %vm7194_vm10, %v14150_v11  ;;  %7213 = vst.msk [vmem:[#allocation7 + $0x187] sm:$0x1] %vm7194_vm10, %v14150_v11 }
 0x48a   : > { %v6735_v57 = vadd.f32 %v12979_v60, %v6696_v42  ;;  %v6697_v45 = vmul.f32 %v12973_v3, %v6601_v50  ;;  %7214 = vst.msk [vmem:[#allocation7 + $0x1a7] sm:$0x1] %vm7194_vm10, %v14150_v11  ;;  %7215 = vst.msk [vmem:[#allocation7 + $0x1c7] sm:$0x1] %vm7194_vm10, %v14150_v11  ;;  %v10310_v42 = vld [vmem:[#allocation4 + $0xb0] sm:$0xff] }
 0x48b   : > { %v6769_v31 = vadd.f32 %v10302_v46, %v6737_v13  ;;  %v6738_v36 = vadd.f32 %v12979_v60, %v6699_v0  ;;  %7216 = vst.msk [vmem:[#allocation7 + $0x1e7] sm:$0x1] %vm7194_vm10, %v14150_v11  ;;  %7217 = vst.msk [vmem:[#allocation7 + $0x207] sm:$0x1] %vm7194_vm10, %v14150_v11  ;;  %v10311_v13 = vld [vmem:[#allocation4 + $0xa0] sm:$0xff] }
 0x48c   : > { %v6767_v6 = vadd.f32 %v10303_v54, %v6735_v57  ;;  %v6736_v51 = vadd.f32 %v12979_v60, %v6697_v45  ;;  %v10313_v45 = vld [vmem:[#allocation4 + $0xa8] sm:$0xff] }
 0x48d   : > { %10115 = vmatmul.mubr.msk.bf16.gmra.mrb[40].mxu0 %vm3293_vm14, %v6856_v12  ;;  %6801 = vst.msk [vmem:[#allocation6 + $0x70] sm:$0xff] %vm3293_vm14, %v6769_v31  ;;  %v6770_v40 = vadd.f32 %v10304_v56, %v6738_v36  ;;  %v10312_v12 = vld [vmem:[#allocation4 + $0xb8] sm:$0xff] }
 0x48e   : > { %6799 = vst.msk [vmem:[#allocation6 + $0x60] sm:$0xff] %vm3293_vm14, %v6767_v6  ;;  %v6768_v9 = vadd.f32 %v10305_v17, %v6736_v51 }
 0x48f   : > { %6802 = vst.msk [vmem:[#allocation6 + $0x78] sm:$0xff] %vm3293_vm14, %v6770_v40 }
 0x490   : > { %6800 = vst.msk [vmem:[#allocation6 + $0x68] sm:$0xff] %vm3293_vm14, %v6768_v9 }
 0x494   : > { %v6833_v8 = vld [vmem:[#allocation6 + $0x70] sm:$0xff] }
 0x495   : > { %v6831_v33 = vld [vmem:[#allocation6 + $0x60] sm:$0xff] }
 0x496   : > { %v6834_v18 = vld [vmem:[#allocation6 + $0x78] sm:$0xff] }
 0x497   : > { %v6832_v27 = vld [vmem:[#allocation6 + $0x68] sm:$0xff]  ;;  %v6858_v5 = vpack.c.bf16 %v6834_v18, %v6833_v8 }
 0x498   : > { %v6857_v58 = vpack.c.bf16 %v6832_v27, %v6831_v33 }
 0x49a   : > { %10118 = vmatprep.mubr.msk.bf16.mxu0 %vm3293_vm14, %v6857_v58 }
 0x49b   : > { %10119 = vmatmul.mubr.msk.bf16.gmra.mrb[44].mxu0 %vm3293_vm14, %v6858_v5 }
 0x4ba   : > { %v10090_v14 = vpop.f32.mrb[48].mxu1 }
 0x4bb   : > { %v6702_v43 = vmul.f32 %v10090_v14, %v12973_v3  ;;  %v6614_v23 = vpop.f32.mrb[49].mxu1 }
 0x4bc   : > { %v6700_v34 = vmul.f32 %v12973_v3, %v6614_v23  ;;  %v10091_v48 = vpop.f32.mrb[50].mxu1 }
 0x4bd   : > { %v6741_v1 = vadd.f32 %v12979_v60, %v6702_v43  ;;  %v6703_v10 = vmul.f32 %v10091_v48, %v12973_v3  ;;  %v6617_v22 = vpop.f32.mrb[51].mxu1  ;;  %v10314_v43 = vld [vmem:[#allocation4 + $0xd0] sm:$0xff]  ;;  %v10315_v48 = vld [vmem:[#allocation4 + $0xc0] sm:$0xff] }
 0x4be   : > { %v6739_v44 = vadd.f32 %v12979_v60, %v6700_v34  ;;  %v6701_v19 = vmul.f32 %v12973_v3, %v6617_v22  ;;  %v10316_v22 = vld [vmem:[#allocation4 + $0xd8] sm:$0xff] }
 0x4bf   : > { %v6773_v16 = vadd.f32 %v10306_v21, %v6741_v1  ;;  %v6742_v37 = vadd.f32 %v12979_v60, %v6703_v10 }
 0x4c0   : > { %v6771_v59 = vadd.f32 %v10307_v7, %v6739_v44  ;;  %v6740_v25 = vadd.f32 %v12979_v60, %v6701_v19  ;;  %v10317_v19 = vld [vmem:[#allocation4 + $0xc8] sm:$0xff] }
 0x4c1   : > { %6805 = vst.msk [vmem:[#allocation6 + $0x90] sm:$0xff] %vm3293_vm14, %v6773_v16  ;;  %v6774_v53 = vadd.f32 %v10308_v49, %v6742_v37  ;;  %v10270_v16 = vld [vmem:[%s14151_s5] sm:$0xff]  }
 0x4c2   : > { %6803 = vst.msk [vmem:[#allocation6 + $0x80] sm:$0xff] %vm3293_vm14, %v6771_v59  ;;  %v6772_v24 = vadd.f32 %v10309_v55, %v6740_v25  ;;  %10138 = vmatprep.subr.bf16.mxu1 %v10270_v16  ;;  %v10271_v25 = vld [vmem:[%s14151_s5 + $0x8] sm:$0xff]  }
 0x4c3   : > { %6806 = vst.msk [vmem:[#allocation6 + $0x98] sm:$0xff] %vm3293_vm14, %v6774_v53  ;;  %10139 = vmatpush3.bf16.msra.mxu1 %v10270_v16 }
 0x4c4   : > { %6804 = vst.msk [vmem:[#allocation6 + $0x88] sm:$0xff] %vm3293_vm14, %v6772_v24  ;;  %10140 = vmatprep.subr.bf16.mxu1 %v10271_v25 }
 0x4c7   : > { %10141 = vmatpush3.bf16.msra.mxu1 %v10271_v25 }
 0x4c8   : > { %v6837_v52 = vld [vmem:[#allocation6 + $0x90] sm:$0xff] }
 0x4c9   : > { %v6835_v2 = vld [vmem:[#allocation6 + $0x80] sm:$0xff] }
 0x4ca   : > { %v6838_v47 = vld [vmem:[#allocation6 + $0x98] sm:$0xff] }
 0x4cb   : > { %v6836_v38 = vld [vmem:[#allocation6 + $0x88] sm:$0xff]  ;;  %v6860_v30 = vpack.c.bf16 %v6838_v47, %v6837_v52 }
 0x4cc   : > { %v6859_v41 = vpack.c.bf16 %v6836_v38, %v6835_v2  ;;  %v13147_v38 = vld [vmem:[%s14152_s26] ss:$0 sm:$0xff]  ;;  %s14173_s26 = sld [smem:[#allocation24_spill]] }
 0x4ce   : > { %10122 = vmatprep.mubr.msk.bf16.mxu0 %vm3293_vm14, %v6859_v41 }
 0x4cf   : > { %10123 = vmatmul.mubr.msk.bf16.gmra.mrb[48].mxu0 %vm3293_vm14, %v6860_v30  ;;  %v13151_v30 = vld [vmem:[%s14153_s2] sm:$0xff] }
 0x4f1   : > { %v10094_v26 = vpop.f32.mrb[52].mxu1 }
 0x4f2   : > { %v6706_v62 = vmul.f32 %v10094_v26, %v12973_v3  ;;  %v6630_v63 = vpop.f32.mrb[53].mxu1 }
 0x4f3   : > { %v6704_v28 = vmul.f32 %v12973_v3, %v6630_v63  ;;  %v10095_v35 = vpop.f32.mrb[54].mxu1 }
 0x4f4   : > { %v6745_v61 = vadd.f32 %v12979_v60, %v6706_v62  ;;  %v6707_v29 = vmul.f32 %v10095_v35, %v12973_v3  ;;  %v6633_v15 = vpop.f32.mrb[55].mxu1 }
 0x4f5   : > { %v6743_v32 = vadd.f32 %v12979_v60, %v6704_v28  ;;  %v6705_v4 = vmul.f32 %v12973_v3, %v6633_v15  ;;  %v13156_v28 = vld [vmem:[%s14154_s11] ss:$0 sm:$0xff]  ;;  %s14174_s11 = sld [smem:[#allocation25_spill]] }
 0x4f6   : > { %v6777_v39 = vadd.f32 %v10310_v42, %v6745_v61  ;;  %v6746_v20 = vadd.f32 %v12979_v60, %v6707_v29 }
 0x4f7   : > { %v6775_v0 = vadd.f32 %v10311_v13, %v6743_v32  ;;  %v6744_v50 = vadd.f32 %v12979_v60, %v6705_v4  ;;  %v10318_v32 = vld [vmem:[#allocation4 + $0xf0] sm:$0xff]  ;;  %v14155_v13 = vld [vmem:[#allocation38_spill] sm:$0xff] }
 0x4f8   : > { %6809 = vst.msk [vmem:[#allocation6 + $0xb0] sm:$0xff] %vm3293_vm14, %v6777_v39  ;;  %v6778_v57 = vadd.f32 %v10312_v12, %v6746_v20 }
 0x4f9   : > { %6807 = vst.msk [vmem:[#allocation6 + $0xa0] sm:$0xff] %vm3293_vm14, %v6775_v0  ;;  %v6776_v46 = vadd.f32 %v10313_v45, %v6744_v50  ;;  %v13165_v0 = vrot.slane %v13151_v30, %v14155_v13  ;;  %v10319_v50 = vld [vmem:[#allocation4 + $0xe0] sm:$0xff] }
 0x4fa   : > { %6810 = vst.msk [vmem:[#allocation6 + $0xb8] sm:$0xff] %vm3293_vm14, %v6778_v57 }
 0x4fb   : > { %6808 = vst.msk [vmem:[#allocation6 + $0xa8] sm:$0xff] %vm3293_vm14, %v6776_v46 }
 0x4ff   : > { %v6841_v51 = vld [vmem:[#allocation6 + $0xb0] sm:$0xff] }
 0x500   : > { %v6839_v36 = vld [vmem:[#allocation6 + $0xa0] sm:$0xff] }
 0x501   : > { %v6842_v31 = vld [vmem:[#allocation6 + $0xb8] sm:$0xff] }
 0x502   : > { %v6840_v54 = vld [vmem:[#allocation6 + $0xa8] sm:$0xff]  ;;  %v6862_v56 = vpack.c.bf16 %v6842_v31, %v6841_v51  ;;  %v10320_v31 = vld [vmem:[#allocation4 + $0xf8] sm:$0xff] }
 0x503   : > { %v6861_v6 = vpack.c.bf16 %v6840_v54, %v6839_v36  ;;  %v14156_v51 = vld [vmem:[#allocation36_spill] sm:$0xff] }
 0x505   : > { %10126 = vmatprep.mubr.msk.bf16.mxu0 %vm3293_vm14, %v6861_v6 }
 0x506   : > { %10127 = vmatmul.mubr.msk.bf16.gmra.mrb[52].mxu0 %vm3293_vm14, %v6862_v56  ;;  %v13175_v56 = vrot.slane %v13151_v30, %v14156_v51 }
 0x51b   : > { %v10098_v40 = vpop.f32.mrb[56].mxu1 }
 0x51c   : > { %v6710_v17 = vmul.f32 %v10098_v40, %v12973_v3  ;;  %v6646_v9 = vpop.f32.mrb[57].mxu1 }
 0x51d   : > { %v6708_v18 = vmul.f32 %v12973_v3, %v6646_v9  ;;  %v10099_v33 = vpop.f32.mrb[58].mxu1 }
 0x51e   : > { %v6749_v27 = vadd.f32 %v12979_v60, %v6710_v17  ;;  %v6711_v58 = vmul.f32 %v10099_v33, %v12973_v3  ;;  %v6649_v8 = vpop.f32.mrb[59].mxu1  ;;  %v7305_v33 = vld [vmem:[#allocation7 + $0x8] ss:$2 sm:$0xff] }
 0x51f   : > { %v6747_v5 = vadd.f32 %v12979_v60, %v6708_v18  ;;  %v6709_v14 = vmul.f32 %v12973_v3, %v6649_v8  ;;  %v7269_v18 = vld [vmem:[#allocation7 + $0x7] ss:$2 sm:$0xff] }
 0x520   : > { %v6781_v23 = vadd.f32 %v10314_v43, %v6749_v27  ;;  %v6750_v34 = vadd.f32 %v12979_v60, %v6711_v58  ;;  %v7288_v43 = vmul.f32 %v13165_v0, %v7269_v18 }
 0x521   : > { %v6779_v1 = vadd.f32 %v10315_v48, %v6747_v5  ;;  %v6748_v10 = vadd.f32 %v12979_v60, %v6709_v14 }
 0x522   : > { %6813 = vst.msk [vmem:[#allocation6 + $0xd0] sm:$0xff] %vm3293_vm14, %v6781_v23  ;;  %v6782_v44 = vadd.f32 %v10316_v22, %v6750_v34  ;;  %v7324_v23 = vmul.f32 %v13175_v56, %v7305_v33  ;;  %v14157_v34 = vld [vmem:[#allocation37_spill] sm:$0xff]  ;;  %v7341_v22 = vld [vmem:[#allocation7 + $0x9] ss:$2 sm:$0xff]  ;;  %v14161_v33 = vld [vmem:[#allocation42_spill] sm:$0xff] }
 0x523   : > { %6811 = vst.msk [vmem:[#allocation6 + $0xc0] sm:$0xff] %vm3293_vm14, %v6779_v1  ;;  %v6780_v21 = vadd.f32 %v10317_v19, %v6748_v10  ;;  %v13188_v48 = vrot.slane %v13151_v30, %v14157_v34 }
 0x524   : > { %6814 = vst.msk [vmem:[#allocation6 + $0xd8] sm:$0xff] %vm3293_vm14, %v6782_v44  ;;  %v7332_v25 = vadd.f32 %v7324_v23, %v7288_v43 }
 0x525   : > { %6812 = vst.msk [vmem:[#allocation6 + $0xc8] sm:$0xff] %vm3293_vm14, %v6780_v21 }
 0x529   : > { %v6845_v53 = vld [vmem:[#allocation6 + $0xd0] sm:$0xff] }
 0x52a   : > { %v6843_v7 = vld [vmem:[#allocation6 + $0xc0] sm:$0xff] }
 0x52b   : > { %v6846_v37 = vld [vmem:[#allocation6 + $0xd8] sm:$0xff] }
 0x52c   : > { %v6844_v59 = vld [vmem:[#allocation6 + $0xc8] sm:$0xff]  ;;  %v6864_v55 = vpack.c.bf16 %v6846_v37, %v6845_v53 }
 0x52d   : > { %v6863_v49 = vpack.c.bf16 %v6844_v59, %v6843_v7 }
 0x52f   : > { %10130 = vmatprep.mubr.msk.bf16.mxu0 %vm3293_vm14, %v6863_v49  ;;  %v7360_v49 = vmul.f32 %v13188_v48, %v7341_v22 }
 0x530   : > { %10131 = vmatmul.mubr.msk.bf16.gmra.mrb[56].mxu0 %vm3293_vm14, %v6864_v55 }
 0x54c   : > { %v10102_v24 = vpop.f32.mrb[60].mxu1 }
 0x54d   : > { %v6714_v47 = vmul.f32 %v10102_v24, %v12973_v3  ;;  %v6662_v2 = vpop.f32.mrb[61].mxu1 }
 0x54e   : > { %v6712_v41 = vmul.f32 %v12973_v3, %v6662_v2  ;;  %v10103_v52 = vpop.f32.mrb[62].mxu1 }
 0x54f   : > { %v6753_v11 = vadd.f32 %v12979_v60, %v6714_v47  ;;  %v6715_v26 = vmul.f32 %v10103_v52, %v12973_v3  ;;  %v6665_v62 = vpop.f32.mrb[63].mxu1 }
 0x550   : > { %v10108_v63 = vpop.f32.mrb[32].mxu0  ;;  %v6751_v35 = vadd.f32 %v12979_v60, %v6712_v41  ;;  %v6713_v61 = vmul.f32 %v12973_v3, %v6665_v62 }
 0x551   : > { %v7089_v29 = vmul.f32 %v10108_v63, %v13147_v38  ;;  %v6953_v15 = vpop.f32.mrb[33].mxu0  ;;  %v6785_v4 = vadd.f32 %v10318_v32, %v6753_v11  ;;  %v6754_v42 = vadd.f32 %v12979_v60, %v6715_v26  ;;  %v14158_v11 = vld [vmem:[#allocation39_spill] sm:$0xff] }
 0x552   : > { %v7087_v39 = vmul.f32 %v13147_v38, %v6953_v15  ;;  %v10109_v20 = vpop.f32.mrb[34].mxu0  ;;  %v6783_v12 = vadd.f32 %v10319_v50, %v6751_v35  ;;  %v6752_v57 = vadd.f32 %v12979_v60, %v6713_v61  ;;  %v10321_v60 = vld [vmem:[#allocation4 + $0xe8] sm:$0xff]  ;;  %v13203_v26 = vrot.slane %v13151_v30, %v14158_v11 }
 0x553   : > { %v7128_v3 = vadd.f32 %v13156_v28, %v7089_v29  ;;  %v7090_v45 = vmul.f32 %v10109_v20, %v13147_v38  ;;  %v6956_v46 = vpop.f32.mrb[35].mxu0  ;;  %6817 = vst.msk [vmem:[#allocation6 + $0xf0] sm:$0xff] %vm3293_vm14, %v6785_v4  ;;  %v6786_v36 = vadd.f32 %v10320_v31, %v6754_v42  ;;  %v7368_v42 = vadd.f32 %v7360_v49, %v7332_v25 }
 0x554   : > { %v7126_v54 = vadd.f32 %v13156_v28, %v7087_v39  ;;  %v7088_v6 = vmul.f32 %v13147_v38, %v6956_v46  ;;  %6815 = vst.msk [vmem:[#allocation6 + $0xe0] sm:$0xff] %vm3293_vm14, %v6783_v12  ;;  %v6784_v40 = vadd.f32 %v10321_v60, %v6752_v57  ;;  %v14159_v39 = vld [vmem:[#allocation40_spill] sm:$0xff] }
 0x555   : > { %v7160_v17 = vmax.f32 %v7128_v3, 0.0  ;;  %v7129_v9 = vadd.f32 %v13156_v28, %v7090_v45  ;;  %6818 = vst.msk [vmem:[#allocation6 + $0xf8] sm:$0xff] %vm3293_vm14, %v6786_v36  ;;  %v13209_v20 = vrot.slane %v13151_v30, %v14159_v39 }
 0x556   : > { %v7158_v27 = vmax.f32 %v7126_v54, 0.0  ;;  %v7127_v58 = vadd.f32 %v13156_v28, %v7088_v6  ;;  %6816 = vst.msk [vmem:[#allocation6 + $0xe8] sm:$0xff] %vm3293_vm14, %v6784_v40  ;;  %v14160_v6 = vld [vmem:[#allocation41_spill] sm:$0xff] }
 0x557   : > { %7236 = vst.msk [vmem:[#allocation7 + $0x48] sm:$0xff] %vm7190_vm9, %v7160_v17  ;;  %v7161_v8 = vmax.f32 %v7129_v9, 0.0  ;;  %v13222_v60 = vrot.slane %v13151_v30, %v14160_v6 }
 0x558   : > { %7234 = vst.msk [vmem:[#allocation7 + $0x28] sm:$0xff] %vm7190_vm9, %v7158_v27  ;;  %v7159_v5 = vmax.f32 %v7127_v58, 0.0  ;;  %v10112_v14 = vpop.f32.mrb[36].mxu0  ;;  %v13228_v27 = vrot.slane %v13151_v30, %v14161_v33 }
 0x559   : > { %7237 = vst.msk [vmem:[#allocation7 + $0x50] sm:$0xff] %vm7190_vm9, %v7161_v8  ;;  %v7093_v1 = vmul.f32 %v10112_v14, %v13147_v38  ;;  %v6969_v10 = vpop.f32.mrb[37].mxu0 }
 0x55a   : > { %7235 = vst.msk [vmem:[#allocation7 + $0x30] sm:$0xff] %vm7190_vm9, %v7159_v5  ;;  %v7091_v44 = vmul.f32 %v13147_v38, %v6969_v10  ;;  %v10113_v19 = vpop.f32.mrb[38].mxu0  ;;  %v6849_v63 = vld [vmem:[#allocation6 + $0xf0] sm:$0xff] }
 0x55b   : > { %v7132_v21 = vadd.f32 %v13156_v28, %v7093_v1  ;;  %v7094_v16 = vmul.f32 %v10113_v19, %v13147_v38  ;;  %v6972_v37 = vpop.f32.mrb[39].mxu0  ;;  %v6847_v47 = vld [vmem:[#allocation6 + $0xe0] sm:$0xff] }
 0x55c   : > { %v7130_v7 = vadd.f32 %v13156_v28, %v7091_v44  ;;  %v7092_v59 = vmul.f32 %v13147_v38, %v6972_v37  ;;  %v6850_v53 = vld [vmem:[#allocation6 + $0xf8] sm:$0xff]  ;;  %v14162_v44 = vld [vmem:[#allocation43_spill] sm:$0xff] }
 0x55d   : > { %v7164_v55 = vmax.f32 %v7132_v21, 0.0  ;;  %v7133_v24 = vadd.f32 %v13156_v28, %v7094_v16  ;;  %v6848_v2 = vld [vmem:[#allocation6 + $0xe8] sm:$0xff]  ;;  %v6866_v61 = vpack.c.bf16 %v6850_v53, %v6849_v63  ;;  %v13236_v19 = vrot.slane %v13151_v30, %v14162_v44 }
 0x55e   : > { %v7162_v41 = vmax.f32 %v7130_v7, 0.0  ;;  %v7131_v52 = vadd.f32 %v13156_v28, %v7092_v59  ;;  %v6865_v62 = vpack.c.bf16 %v6848_v2, %v6847_v47 }
 0x55f   : > { %7240 = vst.msk [vmem:[#allocation7 + $0x88] sm:$0xff] %vm7190_vm9, %v7164_v55  ;;  %v7165_v35 = vmax.f32 %v7133_v24, 0.0 }
 0x560   : > { %7238 = vst.msk [vmem:[#allocation7 + $0x68] sm:$0xff] %vm7190_vm9, %v7162_v41  ;;  %v7163_v29 = vmax.f32 %v7131_v52, 0.0  ;;  %v10116_v15 = vpop.f32.mrb[40].mxu0  ;;  %v7271_v32 = vld [vmem:[#allocation7 + $0x47] ss:$2 sm:$0xff]  ;;  %10134 = vmatprep.mubr.msk.bf16.mxu0 %vm3293_vm14, %v6865_v62 }
 0x561   : > { %v7307_v4 = vld [vmem:[#allocation7 + $0x48] ss:$2 sm:$0xff]  ;;  %7241 = vst.msk [vmem:[#allocation7 + $0x90] sm:$0xff] %vm7190_vm9, %v7165_v35  ;;  %v7097_v50 = vmul.f32 %v10116_v15, %v13147_v38  ;;  %v6985_v12 = vpop.f32.mrb[41].mxu0  ;;  %v7289_v57 = vmul.f32 %v13165_v0, %v7271_v32  ;;  %v7377_v45 = vld [vmem:[#allocation7 + $0x27] ss:$2 sm:$0xff]  ;;  %10135 = vmatmul.mubr.msk.bf16.gmra.mrb[60].mxu0 %vm3293_vm14, %v6866_v61 }
 0x562   : > { %v7325_v3 = vmul.f32 %v13175_v56, %v7307_v4  ;;  %7239 = vst.msk [vmem:[#allocation7 + $0x70] sm:$0xff] %vm7190_vm9, %v7163_v29  ;;  %v7095_v46 = vmul.f32 %v13147_v38, %v6985_v12  ;;  %v10117_v31 = vpop.f32.mrb[42].mxu0  ;;  %v7396_v36 = vmul.f32 %v13203_v26, %v7377_v45  ;;  %v7413_v54 = vld [vmem:[#allocation7 + $0x28] ss:$2 sm:$0xff]  ;;  %v7449_v18 = vld [vmem:[#allocation7 + $0x29] ss:$2 sm:$0xff] }
 0x563   : > { %v7136_v40 = vadd.f32 %v13156_v28, %v7097_v50  ;;  %v7098_v17 = vmul.f32 %v10117_v31, %v13147_v38  ;;  %v6988_v9 = vpop.f32.mrb[43].mxu0  ;;  %v7432_v14 = vmul.f32 %v13209_v20, %v7413_v54  ;;  %v7343_v10 = vld [vmem:[#allocation7 + $0x49] ss:$2 sm:$0xff]  ;;  %v7468_v7 = vmul.f32 %v13222_v60, %v7449_v18  ;;  %v7522_v25 = vld [vmem:[#allocation7 + $0x48] ss:$2 sm:$0xff] }
 0x564   : > { %v7134_v58 = vadd.f32 %v13156_v28, %v7095_v46  ;;  %v7096_v8 = vmul.f32 %v13147_v38, %v6988_v9  ;;  %v7404_v5 = vadd.f32 %v7396_v36, %v7368_v42  ;;  %v7333_v1 = vadd.f32 %v7325_v3, %v7289_v57  ;;  %v7486_v22 = vld [vmem:[#allocation7 + $0x47] ss:$2 sm:$0xff]  ;;  %v13251_v15 = vld [vmem:[%s14153_s2 + $0x8] ss:$0 sm:$0xff] }
 0x565   : > { %v7168_v43 = vmax.f32 %v7136_v40, 0.0  ;;  %v7137_v23 = vadd.f32 %v13156_v28, %v7098_v17  ;;  %v7361_v55 = vmul.f32 %v13188_v48, %v7343_v10  ;;  %v7505_v30 = vmul.f32 %v13228_v27, %v7486_v22  ;;  %v7558_v4 = vld [vmem:[#allocation7 + $0x49] ss:$2 sm:$0xff] }
 0x566   : > { %v7166_v21 = vmax.f32 %v7134_v58, 0.0  ;;  %v7135_v16 = vadd.f32 %v13156_v28, %v7096_v8  ;;  %v7440_v37 = vadd.f32 %v7432_v14, %v7404_v5  ;;  %v7541_v35 = vmul.f32 %v13236_v19, %v7522_v25  ;;  %v13259_v5 = vld [vmem:[%s14163_s16] ss:$0 sm:$0xff]  ;;  %s14175_s16 = sld [smem:[#allocation26_spill]] }
 0x567   : > { %7244 = vst.msk [vmem:[#allocation7 + $0xc8] sm:$0xff] %vm7190_vm9, %v7168_v43  ;;  %v7169_v59 = vmax.f32 %v7137_v23, 0.0  ;;  %v7369_v52 = vadd.f32 %v7361_v55, %v7333_v1  ;;  %v7577_v31 = vmul.f32 %v13251_v15, %v7558_v4  ;;  %vm7906_vm14 = vcmask 319488  }
 0x568   : > { %v7273_v49 = vld [vmem:[#allocation7 + $0x87] ss:$2 sm:$0xff]  ;;  %v7309_v53 = vld [vmem:[#allocation7 + $0x88] ss:$2 sm:$0xff]  ;;  %7242 = vst.msk [vmem:[#allocation7 + $0xa8] sm:$0xff] %vm7190_vm9, %v7166_v21  ;;  %v7476_v24 = vadd.f32 %v7468_v7, %v7440_v37  ;;  %v7167_v47 = vmax.f32 %v7135_v16, 0.0  ;;  %vm13427_vm0 = vmand %vm7906_vm14, %vm3704_vm1 }
 0x569   : > { %7245 = vst.msk [vmem:[#allocation7 + $0xd0] sm:$0xff] %vm7190_vm9, %v7169_v59  ;;  %v7379_v2 = vld [vmem:[#allocation7 + $0x67] ss:$2 sm:$0xff]  ;;  %v7415_v41 = vld [vmem:[#allocation7 + $0x68] ss:$2 sm:$0xff]  ;;  %v7290_v61 = vmul.f32 %v13165_v0, %v7273_v49  ;;  %v7326_v29 = vmul.f32 %v13175_v56, %v7309_v53  ;;  %vm8806_vm1 = vcmask 326656  }
 0x56a   : > { %v7397_v62 = vmul.f32 %v13203_v26, %v7379_v2  ;;  %v7513_v63 = vadd.f32 %v7505_v30, %v7476_v24  ;;  %7243 = vst.msk [vmem:[#allocation7 + $0xb0] sm:$0xff] %vm7190_vm9, %v7167_v47  ;;  %v7451_v32 = vld [vmem:[#allocation7 + $0x69] ss:$2 sm:$0xff]  ;;  %v7433_v50 = vmul.f32 %v13209_v20, %v7415_v41  ;;  %v7524_v36 = vld [vmem:[#allocation7 + $0x88] ss:$2 sm:$0xff] }
 0x56b   : > { %v7488_v57 = vld [vmem:[#allocation7 + $0x87] ss:$2 sm:$0xff]  ;;  %v7469_v46 = vmul.f32 %v13222_v60, %v7451_v32  ;;  %v7334_v40 = vadd.f32 %v7326_v29, %v7290_v61  ;;  %v7542_v1 = vmul.f32 %v13236_v19, %v7524_v36  ;;  %v13271_v2 = vld [vmem:[%s14164_s7] ss:$0 sm:$0xff]  ;;  %s14176_s7 = sld [smem:[#allocation27_spill]] }
 0x56c   : > { %v7405_v42 = vadd.f32 %v7397_v62, %v7369_v52  ;;  %v7549_v12 = vadd.f32 %v7541_v35, %v7513_v63  ;;  %v7345_v3 = vld [vmem:[#allocation7 + $0x89] ss:$2 sm:$0xff]  ;;  %v7506_v9 = vmul.f32 %v13228_v27, %v7488_v57 }
 0x56d   : > { %v7560_v18 = vld [vmem:[#allocation7 + $0x89] ss:$2 sm:$0xff]  ;;  %v7362_v43 = vmul.f32 %v13188_v48, %v7345_v3 }
 0x56e   : > { %v7441_v45 = vadd.f32 %v7433_v50, %v7405_v42  ;;  %v10120_v54 = vpop.f32.mrb[44].mxu0  ;;  %v7585_v58 = vadd.f32 %v7577_v31, %v7549_v12  ;;  %v7578_v37 = vmul.f32 %v13251_v15, %v7560_v18 }
 0x56f   : > { %v7101_v8 = vmul.f32 %v10120_v54, %v13147_v38  ;;  %v7001_v14 = vpop.f32.mrb[45].mxu0  ;;  %v7370_v25 = vadd.f32 %v7362_v43, %v7334_v40 }
 0x570   : > { %v7477_v17 = vadd.f32 %v7469_v46, %v7441_v45  ;;  %v7099_v22 = vmul.f32 %v13147_v38, %v7001_v14  ;;  %v10121_v21 = vpop.f32.mrb[46].mxu0  ;;  %v7600_v55 = vmul.f32 %v13259_v5, %v7585_v58  ;;  %v7275_v4 = vld [vmem:[#allocation7 + $0xc7] ss:$2 sm:$0xff]  ;;  %v7311_v42 = vld [vmem:[#allocation7 + $0xc8] ss:$2 sm:$0xff] }
 0x571   : > { %v7140_v10 = vadd.f32 %v13156_v28, %v7101_v8  ;;  %v7381_v16 = vld [vmem:[#allocation7 + $0xa7] ss:$2 sm:$0xff]  ;;  %v7102_v7 = vmul.f32 %v10121_v21, %v13147_v38  ;;  %v7004_v59 = vpop.f32.mrb[47].mxu0  ;;  %v7417_v47 = vld [vmem:[#allocation7 + $0xa8] ss:$2 sm:$0xff]  ;;  %v7291_v31 = vmul.f32 %v13165_v0, %v7275_v4  ;;  %v7327_v36 = vmul.f32 %v13175_v56, %v7311_v42 }
 0x572   : > { %v7514_v23 = vadd.f32 %v7506_v9, %v7477_v17  ;;  %v7398_v49 = vmul.f32 %v13203_v26, %v7381_v16  ;;  %v7138_v30 = vadd.f32 %v13156_v28, %v7099_v22  ;;  %v7100_v52 = vmul.f32 %v13147_v38, %v7004_v59  ;;  %v7453_v57 = vld [vmem:[#allocation7 + $0xa9] ss:$2 sm:$0xff] }
 0x573   : > { %v7172_v24 = vmax.f32 %v7140_v10, 0.0  ;;  %v7141_v41 = vadd.f32 %v13156_v28, %v7102_v7  ;;  %v7434_v32 = vmul.f32 %v13209_v20, %v7417_v47  ;;  %v7615_v12 = vadd.f32 %v13271_v2, %v7600_v55  ;;  %v7490_v9 = vld [vmem:[#allocation7 + $0xc7] ss:$2 sm:$0xff] }
 0x574   : > { %v7550_v53 = vadd.f32 %v7542_v1, %v7514_v23  ;;  %v7406_v62 = vadd.f32 %v7398_v49, %v7370_v25  ;;  %v7170_v35 = vmax.f32 %v7138_v30, 0.0  ;;  %v7139_v29 = vadd.f32 %v13156_v28, %v7100_v52  ;;  %v7347_v58 = vld [vmem:[#allocation7 + $0xc9] ss:$2 sm:$0xff]  ;;  %v7526_v23 = vld [vmem:[#allocation7 + $0xc8] ss:$2 sm:$0xff] }
 0x575   : > { %7248 = vst.msk [vmem:[#allocation7 + $0x108] sm:$0xff] %vm7190_vm9, %v7172_v24  ;;  %v7173_v61 = vmax.f32 %v7141_v41, 0.0  ;;  %v7470_v54 = vmul.f32 %v13222_v60, %v7453_v57  ;;  %v7623_v40 = vmax.f32 %v7615_v12, 0.0  ;;  %v7335_v14 = vadd.f32 %v7327_v36, %v7291_v31  ;;  %v7562_v25 = vld [vmem:[#allocation7 + $0xc9] ss:$2 sm:$0xff] }
 0x576   : > { %v7586_v63 = vadd.f32 %v7578_v37, %v7550_v53  ;;  %7246 = vst.msk [vmem:[#allocation7 + $0xe8] sm:$0xff] %vm7190_vm9, %v7170_v35  ;;  %v7171_v3 = vmax.f32 %v7139_v29, 0.0  ;;  %v7442_v45 = vadd.f32 %v7434_v32, %v7406_v62  ;;  %v7507_v43 = vmul.f32 %v13228_v27, %v7490_v9 }
 0x577   : > { %7249 = vst.msk [vmem:[#allocation7 + $0x110] sm:$0xff] %vm7190_vm9, %v7173_v61  ;;  %v7363_v1 = vmul.f32 %v13188_v48, %v7347_v58  ;;  %v7543_v7 = vmul.f32 %v13236_v19, %v7526_v23  ;;  %v7579_v41 = vmul.f32 %v13251_v15, %v7562_v25 }
 0x578   : > { %v7601_v50 = vmul.f32 %v13259_v5, %v7586_v63  ;;  %7247 = vst.msk [vmem:[#allocation7 + $0xf0] sm:$0xff] %vm7190_vm9, %v7171_v3  ;;  %v7478_v18 = vadd.f32 %v7470_v54, %v7442_v45 }
 0x579   : > { %v7371_v16 = vadd.f32 %v7363_v1, %v7335_v14 }
 0x57a   : > { %v7616_v46 = vadd.f32 %v13271_v2, %v7601_v50  ;;  %v7515_v10 = vadd.f32 %v7507_v43, %v7478_v18 }
 0x57c   : > { %v7624_v17 = vmax.f32 %v7616_v46, 0.0  ;;  %v7551_v55 = vadd.f32 %v7543_v7, %v7515_v10 }
 0x57e   : > { %v7631_v8 = vpack.c.bf16 %v7624_v17, %v7623_v40  ;;  %v7492_v24 = vld [vmem:[#allocation7 + $0x107] ss:$2 sm:$0xff]  ;;  %v7528_v52 = vld [vmem:[#allocation7 + $0x108] ss:$2 sm:$0xff]  ;;  %v7587_v35 = vadd.f32 %v7579_v41, %v7551_v55 }
 0x57f   : > { %v7383_v22 = vld [vmem:[#allocation7 + $0xe7] ss:$2 sm:$0xff]  ;;  %v7419_v21 = vld [vmem:[#allocation7 + $0xe8] ss:$2 sm:$0xff]  ;;  %v7508_v63 = vmul.f32 %v13228_v27, %v7492_v24  ;;  %v7544_v32 = vmul.f32 %v13236_v19, %v7528_v52 }
 0x580   : > { %10142 = vmatprep.mubr.msk.bf16.mxu1 %vm7190_vm9, %v7631_v8  ;;  %v7399_v37 = vmul.f32 %v13203_v26, %v7383_v22  ;;  %v7455_v59 = vld [vmem:[#allocation7 + $0xe9] ss:$2 sm:$0xff]  ;;  %v7435_v53 = vmul.f32 %v13209_v20, %v7419_v21  ;;  %v7602_v50 = vmul.f32 %v13259_v5, %v7587_v35 }
 0x581   : > { %v7471_v47 = vmul.f32 %v13222_v60, %v7455_v59  ;;  %v7564_v61 = vld [vmem:[#allocation7 + $0x109] ss:$2 sm:$0xff]  ;;  %v7313_v59 = vld [vmem:[#allocation7 + $0x108] ss:$2 sm:$0xff] }
 0x582   : > { %v7407_v49 = vadd.f32 %v7399_v37, %v7371_v16  ;;  %v7580_v42 = vmul.f32 %v13251_v15, %v7564_v61  ;;  %v7617_v3 = vadd.f32 %v13271_v2, %v7602_v50  ;;  %v7277_v7 = vld [vmem:[#allocation7 + $0x107] ss:$2 sm:$0xff] }
 0x583   : > { %v7292_v25 = vmul.f32 %v13165_v0, %v7277_v7 }
 0x584   : > { %v7443_v30 = vadd.f32 %v7435_v53, %v7407_v49  ;;  %v7625_v46 = vmax.f32 %v7617_v3, 0.0  ;;  %v7328_v49 = vmul.f32 %v13175_v56, %v7313_v59  ;;  %v7349_v53 = vld [vmem:[#allocation7 + $0x109] ss:$2 sm:$0xff] }
 0x586   : > { %v7479_v62 = vadd.f32 %v7471_v47, %v7443_v30  ;;  %v7336_v24 = vadd.f32 %v7328_v49, %v7292_v25  ;;  %v7364_v47 = vmul.f32 %v13188_v48, %v7349_v53 }
 0x588   : > { %v7516_v29 = vadd.f32 %v7508_v63, %v7479_v62  ;;  %v7372_v61 = vadd.f32 %v7364_v47, %v7336_v24 }
 0x58a   : > { %v7552_v4 = vadd.f32 %v7544_v32, %v7516_v29 }
 0x58c   : > { %v7588_v12 = vadd.f32 %v7580_v42, %v7552_v4 }
 0x58e   : > { %v7603_v57 = vmul.f32 %v13259_v5, %v7588_v12 }
 0x590   : > { %v7618_v45 = vadd.f32 %v13271_v2, %v7603_v57 }
 0x592   : > { %v7626_v31 = vmax.f32 %v7618_v45, 0.0 }
 0x594   : > { %v7632_v36 = vpack.c.bf16 %v7626_v31, %v7625_v46 }
 0x596   : > { %10143 = vmatmul.mubr.msk.bf16.vlgmr.msra.gmra.mrb[64].mxu1 %vm7190_vm9, %v7632_v36 }
 0x5a2   : > { %v10124_v54 = vpop.f32.mrb[48].mxu0 }
 0x5a3   : > { %v7105_v40 = vmul.f32 %v10124_v54, %v13147_v38  ;;  %v7017_v17 = vpop.f32.mrb[49].mxu0 }
 0x5a4   : > { %v7103_v9 = vmul.f32 %v13147_v38, %v7017_v17  ;;  %v10125_v18 = vpop.f32.mrb[50].mxu0 }
 0x5a5   : > { %v7144_v58 = vadd.f32 %v13156_v28, %v7105_v40  ;;  %v7106_v8 = vmul.f32 %v10125_v18, %v13147_v38  ;;  %v7020_v14 = vpop.f32.mrb[51].mxu0 }
 0x5a6   : > { %v7142_v43 = vadd.f32 %v13156_v28, %v7103_v9  ;;  %v7104_v23 = vmul.f32 %v13147_v38, %v7020_v14 }
 0x5a7   : > { %v7176_v1 = vmax.f32 %v7144_v58, 0.0  ;;  %v7145_v10 = vadd.f32 %v13156_v28, %v7106_v8 }
 0x5a8   : > { %v7174_v22 = vmax.f32 %v7142_v43, 0.0  ;;  %v7143_v21 = vadd.f32 %v13156_v28, %v7104_v23 }
 0x5a9   : > { %7252 = vst.msk [vmem:[#allocation7 + $0x148] sm:$0xff] %vm7190_vm9, %v7176_v1  ;;  %v7177_v16 = vmax.f32 %v7145_v10, 0.0 }
 0x5aa   : > { %7250 = vst.msk [vmem:[#allocation7 + $0x128] sm:$0xff] %vm7190_vm9, %v7174_v22  ;;  %v7175_v37 = vmax.f32 %v7143_v21, 0.0 }
 0x5ab   : > { %7253 = vst.msk [vmem:[#allocation7 + $0x150] sm:$0xff] %vm7190_vm9, %v7177_v16 }
 0x5ac   : > { %7251 = vst.msk [vmem:[#allocation7 + $0x130] sm:$0xff] %vm7190_vm9, %v7175_v37 }
 0x5b2   : > { %v7279_v36 = vld [vmem:[#allocation7 + $0x147] ss:$2 sm:$0xff]  ;;  %v7315_v17 = vld [vmem:[#allocation7 + $0x148] ss:$2 sm:$0xff] }
 0x5b3   : > { %v7385_v55 = vld [vmem:[#allocation7 + $0x127] ss:$2 sm:$0xff]  ;;  %v7421_v42 = vld [vmem:[#allocation7 + $0x128] ss:$2 sm:$0xff]  ;;  %v7293_v8 = vmul.f32 %v13165_v0, %v7279_v36  ;;  %v7329_v14 = vmul.f32 %v13175_v56, %v7315_v17 }
 0x5b4   : > { %v7400_v41 = vmul.f32 %v13203_v26, %v7385_v55  ;;  %v7436_v54 = vmul.f32 %v13209_v20, %v7421_v42  ;;  %v7457_v9 = vld [vmem:[#allocation7 + $0x129] ss:$2 sm:$0xff]  ;;  %v7530_v16 = vld [vmem:[#allocation7 + $0x148] ss:$2 sm:$0xff] }
 0x5b5   : > { %v7472_v43 = vmul.f32 %v13222_v60, %v7457_v9  ;;  %v7494_v23 = vld [vmem:[#allocation7 + $0x147] ss:$2 sm:$0xff]  ;;  %v7337_v22 = vadd.f32 %v7329_v14, %v7293_v8  ;;  %v7545_v55 = vmul.f32 %v13236_v19, %v7530_v16 }
 0x5b6   : > { %v7408_v57 = vadd.f32 %v7400_v41, %v7372_v61  ;;  %v7351_v10 = vld [vmem:[#allocation7 + $0x149] ss:$2 sm:$0xff]  ;;  %v7509_v21 = vmul.f32 %v13228_v27, %v7494_v23 }
 0x5b7   : > { %v7365_v37 = vmul.f32 %v13188_v48, %v7351_v10 }
 0x5b8   : > { %v7444_v58 = vadd.f32 %v7436_v54, %v7408_v57 }
 0x5b9   : > { %v7373_v49 = vadd.f32 %v7365_v37, %v7337_v22 }
 0x5ba   : > { %v7480_v1 = vadd.f32 %v7472_v43, %v7444_v58 }
 0x5bc   : > { %v7517_v7 = vadd.f32 %v7509_v21, %v7480_v1 }
 0x5d9   : > { %v10128_v30 = vpop.f32.mrb[52].mxu0 }
 0x5da   : > { %v7109_v52 = vmul.f32 %v10128_v30, %v13147_v38  ;;  %v7033_v62 = vpop.f32.mrb[53].mxu0  ;;  %v7566_v30 = vld [vmem:[#allocation7 + $0x149] ss:$2 sm:$0xff] }
 0x5db   : > { %v7107_v63 = vmul.f32 %v13147_v38, %v7033_v62  ;;  %v10129_v35 = vpop.f32.mrb[54].mxu0  ;;  %v7581_v61 = vmul.f32 %v13251_v15, %v7566_v30 }
 0x5dc   : > { %v7148_v29 = vadd.f32 %v13156_v28, %v7109_v52  ;;  %v7110_v32 = vmul.f32 %v10129_v35, %v13147_v38  ;;  %v7036_v4 = vpop.f32.mrb[55].mxu0  ;;  %v7553_v52 = vadd.f32 %v7545_v55, %v7517_v7 }
 0x5dd   : > { %v7146_v50 = vadd.f32 %v13156_v28, %v7107_v63  ;;  %v7108_v12 = vmul.f32 %v13147_v38, %v7036_v4 }
 0x5de   : > { %v7180_v3 = vmax.f32 %v7148_v29, 0.0  ;;  %v7149_v45 = vadd.f32 %v13156_v28, %v7110_v32  ;;  %v7589_v42 = vadd.f32 %v7581_v61, %v7553_v52 }
 0x5df   : > { %v7178_v46 = vmax.f32 %v7146_v50, 0.0  ;;  %v7147_v31 = vadd.f32 %v13156_v28, %v7108_v12 }
 0x5e0   : > { %7256 = vst.msk [vmem:[#allocation7 + $0x188] sm:$0xff] %vm7190_vm9, %v7180_v3  ;;  %v7181_v40 = vmax.f32 %v7149_v45, 0.0  ;;  %v10272_v3 = vld [vmem:[%s14165_s10] sm:$0xff]   ;;  %s14177_s10 = sld [smem:[#allocation28_spill]] }
 0x5e1   : > { %7254 = vst.msk [vmem:[#allocation7 + $0x168] sm:$0xff] %vm7190_vm9, %v7178_v46  ;;  %v7179_v18 = vmax.f32 %v7147_v31, 0.0  ;;  %v7604_v31 = vmul.f32 %v13259_v5, %v7589_v42  ;;  %10150 = vmatprep.subr.bf16.mxu0 %v10272_v3 }
 0x5e2   : > { %7257 = vst.msk [vmem:[#allocation7 + $0x190] sm:$0xff] %vm7190_vm9, %v7181_v40  ;;  %10151 = vmatpush3.bf16.msra.mxu0 %v10272_v3 }
 0x5e3   : > { %7255 = vst.msk [vmem:[#allocation7 + $0x170] sm:$0xff] %vm7190_vm9, %v7179_v18  ;;  %v7619_v40 = vadd.f32 %v13271_v2, %v7604_v31 }
 0x5e5   : > { %v7627_v9 = vmax.f32 %v7619_v40, 0.0 }
 0x5e9   : > { %v7496_v62 = vld [vmem:[#allocation7 + $0x187] ss:$2 sm:$0xff]  ;;  %v7532_v29 = vld [vmem:[#allocation7 + $0x188] ss:$2 sm:$0xff] }
 0x5ea   : > { %v7387_v59 = vld [vmem:[#allocation7 + $0x167] ss:$2 sm:$0xff]  ;;  %v7423_v25 = vld [vmem:[#allocation7 + $0x168] ss:$2 sm:$0xff]  ;;  %v7510_v4 = vmul.f32 %v13228_v27, %v7496_v62  ;;  %v7546_v57 = vmul.f32 %v13236_v19, %v7532_v29 }
 0x5eb   : > { %v7401_v53 = vmul.f32 %v13203_v26, %v7387_v59  ;;  %v7459_v24 = vld [vmem:[#allocation7 + $0x169] ss:$2 sm:$0xff]  ;;  %v7437_v41 = vmul.f32 %v13209_v20, %v7423_v25  ;;  %v7317_v30 = vld [vmem:[#allocation7 + $0x188] ss:$2 sm:$0xff] }
 0x5ec   : > { %v7473_v35 = vmul.f32 %v13222_v60, %v7459_v24  ;;  %v7568_v50 = vld [vmem:[#allocation7 + $0x189] ss:$2 sm:$0xff] }
 0x5ed   : > { %v7409_v47 = vadd.f32 %v7401_v53, %v7373_v49  ;;  %v7582_v46 = vmul.f32 %v13251_v15, %v7568_v50  ;;  %v7281_v24 = vld [vmem:[#allocation7 + $0x187] ss:$2 sm:$0xff] }
 0x5ee   : > { %v7353_v52 = vld [vmem:[#allocation7 + $0x189] ss:$2 sm:$0xff] }
 0x5ef   : > { %v7445_v63 = vadd.f32 %v7437_v41, %v7409_v47  ;;  %v7294_v47 = vmul.f32 %v13165_v0, %v7281_v24  ;;  %v7330_v41 = vmul.f32 %v13175_v56, %v7317_v30  ;;  %v7366_v61 = vmul.f32 %v13188_v48, %v7353_v52 }
 0x5f1   : > { %v7481_v32 = vadd.f32 %v7473_v35, %v7445_v63  ;;  %v7338_v63 = vadd.f32 %v7330_v41, %v7294_v47 }
 0x5f3   : > { %v7518_v12 = vadd.f32 %v7510_v4, %v7481_v32 }
 0x5f5   : > { %v7554_v45 = vadd.f32 %v7546_v57, %v7518_v12  ;;  %v7374_v12 = vadd.f32 %v7366_v61, %v7338_v63 }
 0x5f7   : > { %v7590_v36 = vadd.f32 %v7582_v46, %v7554_v45 }
 0x5f9   : > { %v7605_v54 = vmul.f32 %v13259_v5, %v7590_v36 }
 0x5fb   : > { %v7620_v17 = vadd.f32 %v13271_v2, %v7605_v54 }
 0x5fd   : > { %v7628_v18 = vmax.f32 %v7620_v17, 0.0 }
 0x5ff   : > { %v7633_v58 = vpack.c.bf16 %v7628_v18, %v7627_v9 }
 0x601   : > { %10146 = vmatprep.mubr.msk.bf16.mxu1 %vm7190_vm9, %v7633_v58 }
 0x603   : > { %v10132_v8 = vpop.f32.mrb[56].mxu0 }
 0x604   : > { %v7113_v14 = vmul.f32 %v10132_v8, %v13147_v38  ;;  %v7049_v43 = vpop.f32.mrb[57].mxu0 }
 0x605   : > { %v7111_v23 = vmul.f32 %v13147_v38, %v7049_v43  ;;  %v10133_v1 = vpop.f32.mrb[58].mxu0 }
 0x606   : > { %v7152_v10 = vadd.f32 %v13156_v28, %v7113_v14  ;;  %v7114_v22 = vmul.f32 %v10133_v1, %v13147_v38  ;;  %v7052_v21 = vpop.f32.mrb[59].mxu0 }
 0x607   : > { %v7150_v16 = vadd.f32 %v13156_v28, %v7111_v23  ;;  %v7112_v37 = vmul.f32 %v13147_v38, %v7052_v21 }
 0x608   : > { %v7184_v7 = vmax.f32 %v7152_v10, 0.0  ;;  %v7153_v59 = vadd.f32 %v13156_v28, %v7114_v22 }
 0x609   : > { %v7182_v25 = vmax.f32 %v7150_v16, 0.0  ;;  %v7151_v49 = vadd.f32 %v13156_v28, %v7112_v37 }
 0x60a   : > { %7260 = vst.msk [vmem:[#allocation7 + $0x1c8] sm:$0xff] %vm7190_vm9, %v7184_v7  ;;  %v7185_v53 = vmax.f32 %v7153_v59, 0.0 }
 0x60b   : > { %7258 = vst.msk [vmem:[#allocation7 + $0x1a8] sm:$0xff] %vm7190_vm9, %v7182_v25  ;;  %v7183_v55 = vmax.f32 %v7151_v49, 0.0 }
 0x60c   : > { %7261 = vst.msk [vmem:[#allocation7 + $0x1d0] sm:$0xff] %vm7190_vm9, %v7185_v53 }
 0x60d   : > { %7259 = vst.msk [vmem:[#allocation7 + $0x1b0] sm:$0xff] %vm7190_vm9, %v7183_v55 }
 0x613   : > { %v7283_v58 = vld [vmem:[#allocation7 + $0x1c7] ss:$2 sm:$0xff]  ;;  %v7319_v43 = vld [vmem:[#allocation7 + $0x1c8] ss:$2 sm:$0xff] }
 0x614   : > { %v7389_v62 = vld [vmem:[#allocation7 + $0x1a7] ss:$2 sm:$0xff]  ;;  %v7425_v46 = vld [vmem:[#allocation7 + $0x1a8] ss:$2 sm:$0xff] }
 0x615   : > { %v7402_v29 = vmul.f32 %v13203_v26, %v7389_v62  ;;  %v7438_v8 = vmul.f32 %v13209_v20, %v7425_v46  ;;  %v7461_v23 = vld [vmem:[#allocation7 + $0x1a9] ss:$2 sm:$0xff]  ;;  %v7534_v25 = vld [vmem:[#allocation7 + $0x1c8] ss:$2 sm:$0xff] }
 0x616   : > { %v7474_v22 = vmul.f32 %v13222_v60, %v7461_v23  ;;  %v7498_v21 = vld [vmem:[#allocation7 + $0x1c7] ss:$2 sm:$0xff] }
 0x617   : > { %v7410_v54 = vadd.f32 %v7402_v29, %v7374_v12  ;;  %v7355_v37 = vld [vmem:[#allocation7 + $0x1c9] ss:$2 sm:$0xff]  ;;  %v7511_v59 = vmul.f32 %v13228_v27, %v7498_v21 }
 0x618   : > { %v7367_v49 = vmul.f32 %v13188_v48, %v7355_v37  ;;  %v7570_v41 = vld [vmem:[#allocation7 + $0x1c9] ss:$2 sm:$0xff] }
 0x619   : > { %v7446_v10 = vadd.f32 %v7438_v8, %v7410_v54  ;;  %v7583_v48 = vmul.f32 %v13251_v15, %v7570_v41 }
 0x61b   : > { %v7482_v16 = vadd.f32 %v7474_v22, %v7446_v10 }
 0x61d   : > { %v7519_v53 = vadd.f32 %v7511_v59, %v7482_v16  ;;  %v7908_v59 = vld [vmem:[#allocation9 + $0xc] sm:$0x1] }
 0x634   : > { %v10136_v35 = vpop.f32.mrb[60].mxu0 }
 0x635   : > { %v7117_v32 = vmul.f32 %v10136_v35, %v13147_v38  ;;  %v7065_v4 = vpop.f32.mrb[61].mxu0 }
 0x636   : > { %v7115_v42 = vmul.f32 %v13147_v38, %v7065_v4  ;;  %v10137_v50 = vpop.f32.mrb[62].mxu0 }
 0x637   : > { %v7156_v57 = vadd.f32 %v13156_v28, %v7117_v32  ;;  %v7118_v3 = vmul.f32 %v10137_v50, %v13147_v38  ;;  %v7068_v45 = vpop.f32.mrb[63].mxu0 }
 0x638   : > { %v7154_v31 = vadd.f32 %v13156_v28, %v7115_v42  ;;  %v7116_v36 = vmul.f32 %v13147_v38, %v7068_v45  ;;  %v7295_v38 = vmul.f32 %v13165_v0, %v7283_v58  ;;  %v7547_v0 = vmul.f32 %v13236_v19, %v7534_v25  ;;  %v7921_v25 = vld [vmem:[#allocation9 + $0x14] sm:$0x8] }
 0x639   : > { %v7188_v40 = vmax.f32 %v7156_v57, 0.0  ;;  %v7157_v17 = vadd.f32 %v13156_v28, %v7118_v3 }
 0x63a   : > { %v7186_v9 = vmax.f32 %v7154_v31, 0.0  ;;  %v7155_v18 = vadd.f32 %v13156_v28, %v7116_v36  ;;  %v7331_v28 = vmul.f32 %v13175_v56, %v7319_v43  ;;  %v7555_v63 = vadd.f32 %v7547_v0, %v7519_v53  ;;  %v7924_v53 = vld [vmem:[#allocation9 + $0x24] sm:$0x8]  ;;  %v7948_v0 = vld [vmem:[#allocation9 + $0x2c] sm:$0x1] }
 0x63b   : > { %7264 = vst.msk [vmem:[#allocation7 + $0x208] sm:$0xff] %vm7190_vm9, %v7188_v40  ;;  %v7189_v14 = vmax.f32 %v7157_v17, 0.0  ;;  %v13399_v17 = vld [vmem:[%s14166_s18] ss:$0 sm:$0xff]  ;;  %v7925_v41 = vsel %vm13434_vm2, 0, %v7924_v53  ;;  %s949_s18 = sand.u32 1, %s10385_s23  }
 0x63c   : > { %7262 = vst.msk [vmem:[#allocation7 + $0x1e8] sm:$0xff] %vm7190_vm9, %v7186_v9  ;;  %v7187_v1 = vmax.f32 %v7155_v18, 0.0  ;;  %v7339_v7 = vadd.f32 %v7331_v28, %v7295_v38  ;;  %v13402_v9 = vld [vmem:[%s14167_s1] ss:$0 sm:$0xff]  ;;  %7926 = vst [vmem:[#allocation9 + $0x24] sm:$0x8] %v7925_v41 }
 0x63d   : > { %7265 = vst.msk [vmem:[#allocation7 + $0x210] sm:$0xff] %vm7190_vm9, %v7189_v14  ;;  %s9293_s1 = sshll.u32 %s949_s18, 5 }
 0x63e   : > { %7263 = vst.msk [vmem:[#allocation7 + $0x1f0] sm:$0xff] %vm7190_vm9, %v7187_v1  ;;  %v7375_v30 = vadd.f32 %v7367_v49, %v7339_v7  ;;  %v14168_v7 = vmov 0  }
 0x63f   : > { %7904 = vst.msk [vmem:[#allocation9 + $0x4] sm:$0xf] %vm7902_vm12, %v14168_v7  ;;  %7905 = vst.msk [vmem:[#allocation9 + $0x8] sm:$0xf] %vm7902_vm12, %v14168_v7 }
 0x640   : > { %7913 = vst.msk [vmem:[#allocation9 + $0x94] sm:$0xf] %vm7902_vm12, %v14168_v7  ;;  %7914 = vst.msk [vmem:[#allocation9 + $0x98] sm:$0xf] %vm7902_vm12, %v14168_v7 }
 0x644   : > { %v7500_v35 = vld [vmem:[#allocation7 + $0x207] ss:$2 sm:$0xff]  ;;  %v7536_v32 = vld [vmem:[#allocation7 + $0x208] ss:$2 sm:$0xff] }
 0x645   : > { %v7391_v55 = vld [vmem:[#allocation7 + $0x1e7] ss:$2 sm:$0xff]  ;;  %v7427_v24 = vld [vmem:[#allocation7 + $0x1e8] ss:$2 sm:$0xff]  ;;  %v7512_v42 = vmul.f32 %v13228_v27, %v7500_v35  ;;  %v7548_v57 = vmul.f32 %v13236_v19, %v7536_v32  ;;  %v7949_v35 = vsel %vm13427_vm0, 0, %v7948_v0 }
 0x646   : > { %v7403_v47 = vmul.f32 %v13203_v26, %v7391_v55  ;;  %v7463_v56 = vld [vmem:[#allocation7 + $0x1e9] ss:$2 sm:$0xff]  ;;  %v7439_v62 = vmul.f32 %v13209_v20, %v7427_v24  ;;  %v7591_v26 = vadd.f32 %v7583_v48, %v7555_v63  ;;  %v7909_v24 = vsel %vm13427_vm0, 0, %v7908_v59  ;;  %v7951_v63 = vld [vmem:[#allocation9 + $0x3c] sm:$0x1] }
 0x647   : > { %v7475_v29 = vmul.f32 %v13222_v60, %v7463_v56  ;;  %v7572_v50 = vld [vmem:[#allocation7 + $0x209] ss:$2 sm:$0xff]  ;;  %7910 = vst [vmem:[#allocation9 + $0xc] sm:$0x1] %v7909_v24  ;;  %v7922_v56 = vsel %vm13434_vm2, 0, %v7921_v25 }
 0x648   : > { %v7411_v52 = vadd.f32 %v7403_v47, %v7375_v30  ;;  %v7584_v20 = vmul.f32 %v13251_v15, %v7572_v50  ;;  %v7606_v45 = vmul.f32 %v13259_v5, %v7591_v26  ;;  %v7927_v55 = vld [vmem:[#allocation9 + $0x34] sm:$0x8]  ;;  %v7945_v47 = vld [vmem:[#allocation9 + $0x1c] sm:$0x1]  ;;  %7923 = vst [vmem:[#allocation9 + $0x14] sm:$0x8] %v7922_v56 }
 0x649   : > { %7950 = vst [vmem:[#allocation9 + $0x2c] sm:$0x1] %v7949_v35  ;;  %v7987_v53 = vld [vmem:[#allocation9 + $0x4] sm:$0x8] }
 0x64a   : > { %v7447_v61 = vadd.f32 %v7439_v62, %v7411_v52  ;;  %v7621_v31 = vadd.f32 %v13271_v2, %v7606_v45  ;;  %v7928_v52 = vsel %vm13434_vm2, 0, %v7927_v55  ;;  %v7946_v62 = vsel %vm13427_vm0, 0, %v7945_v47 }
 0x64b   : > { %7929 = vst [vmem:[#allocation9 + $0x34] sm:$0x8] %v7928_v52  ;;  %7947 = vst [vmem:[#allocation9 + $0x1c] sm:$0x1] %v7946_v62 }
 0x64c   : > { %v7483_v4 = vadd.f32 %v7475_v29, %v7447_v61  ;;  %v7629_v27 = vmax.f32 %v7621_v31, 0.0  ;;  %v7952_v61 = vsel %vm13427_vm0, 0, %v7951_v63 }
 0x64d   : > { %7953 = vst [vmem:[#allocation9 + $0x3c] sm:$0x1] %v7952_v61 }
 0x64e   : > { %v7520_v12 = vadd.f32 %v7512_v42, %v7483_v4  ;;  %v8107_v7 = vld [vmem:[#allocation9 + $0xc] sm:$0x1] }
 0x64f   : > { %v7989_v47 = vld [vmem:[#allocation9 + $0x14] sm:$0x8]  ;;  %v8115_v52 = vunpack.c.l.bf16 %v8107_v7 }
 0x650   : > { %v7556_v3 = vadd.f32 %v7548_v57, %v7520_v12  ;;  %v8215_v0 = vld [vmem:[#allocation9 + $0x14] sm:$0x8]  ;;  %v8336_v56 = vld [vmem:[#allocation9 + $0x2c] sm:$0x1] }
 0x651   : > { %v8564_v63 = vld [vmem:[#allocation9 + $0x2c] sm:$0x1] }
 0x652   : > { %v7592_v46 = vadd.f32 %v7584_v20, %v7556_v3  ;;  %v8108_v59 = vld [vmem:[#allocation9 + $0x1c] sm:$0x1] }
 0x653   : > { %v8335_v55 = vld [vmem:[#allocation9 + $0x1c] sm:$0x1]  ;;  %v8116_v62 = vunpack.c.l.bf16 %v8108_v59 }
 0x654   : > { %v7607_v60 = vmul.f32 %v13259_v5, %v7592_v46  ;;  %v8565_v35 = vld [vmem:[#allocation9 + $0x3c] sm:$0x1] }
 0x656   : > { %v7622_v36 = vadd.f32 %v13271_v2, %v7607_v60 }
 0x658   : > { %v7630_v54 = vmax.f32 %v7622_v36, 0.0 }
 0x65a   : > { %v7634_v40 = vpack.c.bf16 %v7630_v54, %v7629_v27 }
 0x65c   : > { %10147 = vmatmul.mubr.msk.bf16.gmra.mrb[68].mxu1 %vm7190_vm9, %v7634_v40  ;;  %v13465_v40 = vld [vmem:[%s14173_s26] ss:$0 sm:$0xff]  ;;  %s13937_s26 = scalar_lea.vmem [#allocation10], %s9293_s1 }
 0x669   : > { %v10144_v19 = vpop.f32.mrb[64].mxu1 }
 0x66a   : > { %v7737_v15 = vmul.f32 %v10144_v19, %v13399_v17  ;;  %v7697_v18 = vpop.f32.mrb[65].mxu1  ;;  %v13468_v19 = vld [vmem:[%s14174_s11] ss:$0 sm:$0xff]  ;;  %s9473_s11 = sshll.u32 %s10626_s0, 9  ;;  %s13964_s0 = scalar_lea.sflag [#allocation11], %s949_s18 }
 0x66b   : > { %v7735_v5 = vmul.f32 %v13399_v17, %v7697_v18  ;;  %v10145_v58 = vpop.f32.mrb[66].mxu1 }
 0x66c   : > { %v7752_v8 = vadd.f32 %v13402_v9, %v7737_v15  ;;  %v7738_v2 = vmul.f32 %v10145_v58, %v13399_v17  ;;  %v7700_v14 = vpop.f32.mrb[67].mxu1 }
 0x66d   : > { %v7750_v43 = vadd.f32 %v13402_v9, %v7735_v5  ;;  %v7736_v23 = vmul.f32 %v13399_v17, %v7700_v14 }
 0x66e   : > { %7761 = vst.msk [vmem:[#allocation8 + $0x10] sm:$0xff] %vm7758_vm11, %v7752_v8  ;;  %v7753_v1 = vadd.f32 %v13402_v9, %v7738_v2 }
 0x66f   : > { %7759 = vst.msk [vmem:[#allocation8] sm:$0xff] %vm7758_vm11, %v7750_v43  ;;  %v7751_v10 = vadd.f32 %v13402_v9, %v7736_v23 }
 0x670   : > { %7762 = vst.msk [vmem:[#allocation8 + $0x18] sm:$0xff] %vm7758_vm11, %v7753_v1 }
 0x671   : > { %7760 = vst.msk [vmem:[#allocation8 + $0x8] sm:$0xff] %vm7758_vm11, %v7751_v10 }
 0x675   : > { %v7769_v16 = vld [vmem:[#allocation8 + $0x10] sm:$0xff] }
 0x676   : > { %v7767_v28 = vld [vmem:[#allocation8] sm:$0xff] }
 0x677   : > { %v7770_v38 = vld [vmem:[#allocation8 + $0x18] sm:$0xff] }
 0x678   : > { %v7768_v22 = vld [vmem:[#allocation8 + $0x8] sm:$0xff]  ;;  %v7776_v37 = vpack.c.bf16 %v7770_v38, %v7769_v16 }
 0x679   : > { %v7775_v21 = vpack.c.bf16 %v7768_v22, %v7767_v28 }
 0x67b   : > { %10152 = vmatprep.mubr.msk.bf16.mxu0 %vm7758_vm11, %v7775_v21  ;;  %v7985_v21 = vld [vmem:[%s14175_s16] sm:$0xff] }
 0x67c   : > { %10153 = vmatmul.mubr.msk.bf16.vlgmr.msra.gmra.mrb[64].mxu0 %vm7758_vm11, %v7776_v37  ;;  %v13482_v41 = vrot.slane %v7985_v21, %v14157_v34  ;;  %v13486_v61 = vrot.slane %v7985_v21, %v14160_v6  ;;  %v8005_v34 = vunpack.c.l.bf16 %v7989_v47  ;;  %v8446_v6 = vld [vmem:[#allocation9 + $0x34] sm:$0x8] }
 0x72f   : > { %v10148_v29 = vpop.f32.mrb[68].mxu1 }
 0x730   : > { %v7741_v48 = vmul.f32 %v10148_v29, %v13399_v17  ;;  %v7713_v32 = vpop.f32.mrb[69].mxu1  ;;  %v8003_v29 = vunpack.c.l.bf16 %v7987_v53 }
 0x731   : > { %v7739_v4 = vmul.f32 %v13399_v17, %v7713_v32  ;;  %v10149_v42 = vpop.f32.mrb[70].mxu1  ;;  %v8343_v32 = vunpack.c.l.bf16 %v8335_v55 }
 0x732   : > { %v7756_v26 = vadd.f32 %v13402_v9, %v7741_v48  ;;  %v7742_v50 = vmul.f32 %v10149_v42, %v13399_v17  ;;  %v7716_v12 = vpop.f32.mrb[71].mxu1  ;;  %v8217_v48 = vld [vmem:[#allocation9 + $0x24] sm:$0x8]  ;;  %v13490_v42 = vrot.slane %v7985_v21, %v14155_v13 }
 0x733   : > { %v7754_v57 = vadd.f32 %v13402_v9, %v7739_v4  ;;  %v7740_v3 = vmul.f32 %v13399_v17, %v7716_v12  ;;  %v8444_v4 = vld [vmem:[#allocation9 + $0x24] sm:$0x8]  ;;  %v13493_v12 = vrot.slane %v7985_v21, %v14156_v51  ;;  %v8233_v13 = vunpack.c.l.bf16 %v8217_v48 }
 0x734   : > { %7765 = vst.msk [vmem:[#allocation8 + $0x30] sm:$0xff] %vm7758_vm11, %v7756_v26  ;;  %v7757_v20 = vadd.f32 %v13402_v9, %v7742_v50  ;;  %v8231_v26 = vunpack.c.l.bf16 %v8215_v0  ;;  %v8344_v50 = vunpack.c.l.bf16 %v8336_v56  ;;  %v8023_v51 = vmul.f32 %v13490_v42, %v8003_v29 }
 0x735   : > { %7763 = vst.msk [vmem:[#allocation8 + $0x20] sm:$0xff] %vm7758_vm11, %v7754_v57  ;;  %v7755_v45 = vadd.f32 %v13402_v9, %v7740_v3  ;;  %v13496_v57 = vrot.slane %v7985_v21, %v14158_v11  ;;  %v8572_v3 = vunpack.c.l.bf16 %v8564_v63  ;;  %v8356_v11 = vmul.f32 %v13486_v61, %v8343_v32 }
 0x736   : > { %7766 = vst.msk [vmem:[#allocation8 + $0x38] sm:$0xff] %vm7758_vm11, %v7757_v20  ;;  %v8573_v20 = vunpack.c.l.bf16 %v8565_v35 }
 0x737   : > { %7764 = vst.msk [vmem:[#allocation8 + $0x28] sm:$0xff] %vm7758_vm11, %v7755_v45  ;;  %v13499_v45 = vld [vmem:[%s14175_s16 + $0x8] ss:$0 sm:$0xff] }
 0x73b   : > { %v7773_v27 = vld [vmem:[#allocation8 + $0x30] sm:$0xff] }
 0x73c   : > { %v7771_v60 = vld [vmem:[#allocation8 + $0x20] sm:$0xff] }
 0x73d   : > { %v7774_v46 = vld [vmem:[#allocation8 + $0x38] sm:$0xff] }
 0x73e   : > { %v7772_v31 = vld [vmem:[#allocation8 + $0x28] sm:$0xff]  ;;  %v7778_v54 = vpack.c.bf16 %v7774_v46, %v7773_v27  ;;  %v8128_v46 = vmul.f32 %v13482_v41, %v8115_v52  ;;  %v13508_v27 = vrot.slane %v7985_v21, %v14159_v39 }
 0x73f   : > { %v7777_v36 = vpack.c.bf16 %v7772_v31, %v7771_v60  ;;  %v8130_v60 = vmul.f32 %v13482_v41, %v8116_v62  ;;  %v8460_v31 = vunpack.c.l.bf16 %v8444_v4 }
 0x741   : > { %10156 = vmatprep.mubr.msk.bf16.mxu0 %vm7758_vm11, %v7777_v36  ;;  %v13504_v36 = vrot.slane %v7985_v21, %v14161_v33  ;;  %v13517_v33 = vmul.f32 %v13499_v45, %v8572_v3 }
 0x742   : > { %10157 = vmatmul.mubr.msk.bf16.gmra.mrb[68].mxu0 %vm7758_vm11, %v7778_v54 }
 0x743   : > { %v8617_v55 = vrot.slane %v13517_v33, 2 }
 0x74f   : > { %v10154_v17 = vpop.f32.mrb[64].mxu0 }
 0x750   : > { %v7873_v9 = vmul.f32 %v10154_v17, %v13465_v40  ;;  %v7833_v15 = vpop.f32.mrb[65].mxu0  ;;  %v8025_v17 = vmul.f32 %v13490_v42, %v8005_v34 }
 0x751   : > { %v7871_v18 = vmul.f32 %v13465_v40, %v7833_v15  ;;  %v10155_v5 = vpop.f32.mrb[66].mxu0  ;;  %v13514_v15 = vmul.f32 %v13486_v61, %v8344_v50 }
 0x752   : > { %v7888_v58 = vadd.f32 %v13468_v19, %v7873_v9  ;;  %v7874_v8 = vmul.f32 %v10155_v5, %v13465_v40  ;;  %v7836_v2 = vpop.f32.mrb[67].mxu0  ;;  %v8251_v9 = vmul.f32 %v13496_v57, %v8231_v26 }
 0x753   : > { %v7886_v14 = vadd.f32 %v13468_v19, %v7871_v18  ;;  %v7872_v43 = vmul.f32 %v13465_v40, %v7836_v2  ;;  %v8462_v18 = vunpack.c.l.bf16 %v8446_v6  ;;  %v8160_v2 = vrot.slane %v8128_v46, 2 }
 0x754   : > { %v7896_v23 = vmax.f32 %v7888_v58, 0.0  ;;  %v7889_v1 = vadd.f32 %v13468_v19, %v7874_v8  ;;  %v13520_v8 = vmul.f32 %v13499_v45, %v8573_v20  ;;  %v8391_v7 = vrot.slane %v13514_v15, 2 }
 0x755   : > { %v7894_v10 = vmax.f32 %v7886_v14, 0.0  ;;  %v7887_v38 = vadd.f32 %v13468_v19, %v7872_v43  ;;  %v8163_v14 = vrot.slane %v8130_v60, 2  ;;  %v13536_v59 = vmul.f32 %v13504_v36, %v8462_v18 }
 0x756   : > { %v7971_v28 = vpack.c.bf16 %v7896_v23, %v7896_v23  ;;  %v7897_v22 = vmax.f32 %v7889_v1, 0.0  ;;  %v8253_v23 = vmul.f32 %v13496_v57, %v8233_v13  ;;  %v13526_v1 = vmul.f32 %v13504_v36, %v8460_v31 }
 0x757   : > { %v7969_v16 = vpack.c.bf16 %v7894_v10, %v7894_v10  ;;  %v7895_v37 = vmax.f32 %v7887_v38, 0.0 }
 0x758   : > { %7979 = vst.msk [vmem:[#allocation9 + $0x38] sm:$0xf] %vm7902_vm12, %v7971_v28  ;;  %v7972_v25 = vpack.c.bf16 %v7897_v22, %v7897_v22  ;;  %v8388_v28 = vrot.slane %v8356_v11, 2  ;;  %v13531_v22 = vrot.slane %v7985_v21, %v14162_v44 }
 0x759   : > { %7977 = vst.msk [vmem:[#allocation9 + $0x18] sm:$0xf] %vm7902_vm12, %v7969_v16  ;;  %v7970_v24 = vpack.c.bf16 %v7895_v37, %v7895_v37 }
 0x75a   : > { %7980 = vst.msk [vmem:[#allocation9 + $0x48] sm:$0xf] %vm7902_vm12, %v7972_v25 }
 0x75b   : > { %7978 = vst.msk [vmem:[#allocation9 + $0x28] sm:$0xf] %vm7902_vm12, %v7970_v24  ;;  %v8620_v24 = vrot.slane %v13520_v8, 2 }
 0x760   : > { %v7988_v54 = vld [vmem:[#allocation9 + $0x8] ss:$16 sps:$4 sm:$0xff]  }
 0x761   : > { %v8004_v5 = vunpack.c.l.bf16 %v7988_v54  ;;  %v8232_v58 = vunpack.c.h.bf16 %v7988_v54 }
 0x762   : > { %v13522_v39 = vld [vmem:[#allocation9 + $0x18] ss:$16 sps:$4 sm:$0xff]  }
 0x763   : > { %v8218_v43 = vld [vmem:[#allocation9 + $0x28] ss:$16 sps:$4 sm:$0xff]   ;;  %v8006_v10 = vunpack.c.l.bf16 %v13522_v39  ;;  %v8059_v38 = vmul.f32 %v13493_v12, %v8004_v5  ;;  %v8127_v16 = vmul.f32 %v13482_v41, %v8004_v5  ;;  %v8024_v25 = vmul.f32 %v13490_v42, %v8004_v5 }
 0x764   : > { %v8234_v37 = vunpack.c.l.bf16 %v8218_v43  ;;  %v8252_v53 = vmul.f32 %v13496_v57, %v8232_v58  ;;  %v8287_v62 = vmul.f32 %v13508_v27, %v8232_v58  ;;  %v8445_v4 = vld [vmem:[#allocation9 + $0x28] sm:$0xf]  ;;  %v8355_v6 = vmul.f32 %v13486_v61, %v8232_v58 }
 0x765   : > { %v8060_v47 = vmul.f32 %v13493_v12, %v8006_v10  ;;  %v8075_v44 = vrot.slane %v8059_v38, 1  ;;  %v8129_v21 = vmul.f32 %v13482_v41, %v8006_v10  ;;  %v8159_v0 = vrot.slane %v8127_v16, 2 }
 0x766   : > { %v8026_v56 = vmul.f32 %v13490_v42, %v8006_v10  ;;  %v8254_v52 = vmul.f32 %v13496_v57, %v8234_v37  ;;  %v8288_v63 = vmul.f32 %v13508_v27, %v8234_v37  ;;  %v8303_v26 = vrot.slane %v8287_v62, 1 }
 0x767   : > { %v8076_v35 = vrot.slane %v8060_v47, 1  ;;  %v8091_v29 = vadd.f32 %v8075_v44, %v8023_v51  ;;  %v8092_v48 = vadd.f32 %v8075_v44, %v8024_v25  ;;  %v8161_v32 = vsel %vm2888_vm3, %v8159_v0, %v8160_v2 }
 0x768   : > { %v8162_v34 = vrot.slane %v8129_v21, 2  ;;  %v8304_v50 = vrot.slane %v8288_v63, 1  ;;  %v8357_v31 = vmul.f32 %v13486_v61, %v8234_v37  ;;  %v8387_v11 = vrot.slane %v8355_v6, 2  ;;  %v7933_v63 = vld [vmem:[#allocation9 + $0x54] sm:$0x8] }
 0x769   : > { %v8093_v3 = vadd.f32 %v8076_v35, %v8025_v17  ;;  %v8094_v20 = vadd.f32 %v8076_v35, %v8026_v56  ;;  %v8199_v46 = vadd.f32 %v8159_v0, %v8091_v29  ;;  %v8200_v60 = vadd.f32 %v8161_v32, %v8092_v48  ;;  %v7930_v56 = vld [vmem:[#allocation9 + $0x44] sm:$0x8]  ;;  %v7954_v32 = vld [vmem:[#allocation9 + $0x4c] sm:$0x1] }
 0x76a   : > { %v8164_v13 = vsel %vm2888_vm3, %v8162_v34, %v8163_v14  ;;  %v8461_v54 = vunpack.c.l.bf16 %v8445_v4  ;;  %v8389_v2 = vsel %vm2888_vm3, %v8387_v11, %v8388_v28  ;;  %v8390_v10 = vrot.slane %v8357_v31, 2 }
 0x76b   : > { %v8201_v51 = vadd.f32 %v8162_v34, %v8093_v3  ;;  %v8202_v15 = vadd.f32 %v8164_v13, %v8094_v20  ;;  %v8267_v18 = vadd.f32 %v8251_v9, %v8199_v46  ;;  %v8268_v5 = vadd.f32 %v8252_v53, %v8200_v60  ;;  %v13570_v60 = vld [vmem:[%s14176_s7] ss:$0 sm:$0xff]  ;;  %s8956_s7 = sshll.u32 %s13937_s26, 4  ;;  %s13954_s7 = int_to_ptr.vmem [resolvable:$true] %s8956_s7 }
 0x76c   : > { %v8463_v38 = vunpack.c.h.bf16 %v8218_v43  ;;  %v8481_v58 = vmul.f32 %v13504_v36, %v8461_v54  ;;  %v8392_v14 = vsel %vm2888_vm3, %v8390_v10, %v8391_v7  ;;  %v8516_v44 = vmul.f32 %v13531_v22, %v8461_v54  ;;  %s10331_s1 = scalar_lea.vmem %s13954_s7, 512 }
 0x76d   : > { %v8269_v17 = vadd.f32 %v8253_v23, %v8201_v51  ;;  %v8270_v16 = vadd.f32 %v8254_v52, %v8202_v15  ;;  %v8319_v25 = vadd.f32 %v8303_v26, %v8267_v18  ;;  %v8320_v47 = vadd.f32 %v8303_v26, %v8268_v5  ;;  %v13578_v15 = vld [vmem:[%s14177_s10] ss:$0 sm:$0xff]  ;;  %s13952_s10 = scalar_lea.hbm %s10603_s20, %s9473_s11  ;;  %p10332_p11 = scmp.ne.s32.totalorder %s13954_s7, %s10331_s1 }
 0x76e   : > { %v8483_v37 = vmul.f32 %v13504_v36, %v8463_v38  ;;  %v8517_v21 = vmul.f32 %v13531_v22, %v8463_v38  ;;  %v8532_v43 = vrot.slane %v8516_v44, 1  ;;  %v8584_v23 = vmul.f32 %v13499_v45, %v8461_v54  ;;  %s10437_s11 = smov [#allocation10]  }
 0x76f   : > { %v8321_v9 = vadd.f32 %v8304_v50, %v8269_v17  ;;  %v8322_v53 = vadd.f32 %v8304_v50, %v8270_v16  ;;  %v8427_v0 = vadd.f32 %v8387_v11, %v8319_v25  ;;  %v8428_v28 = vadd.f32 %v8389_v2, %v8320_v47  ;;  %p10333_p12 = pnand %p10332_p11, %p10643_p5  ;;  %s10335_s2 = sshll.u32 %s10437_s11, 4  ;;  %s10336_s2 = int_to_ptr.vmem [resolvable:$false] %s10335_s2 }
 0x770   : > { %v8533_v62 = vrot.slane %v8517_v21, 1  ;;  %v8586_v52 = vmul.f32 %v13499_v45, %v8463_v38  ;;  %v8616_v4 = vrot.slane %v8584_v23, 2  ;;  %v7931_v26 = vsel %vm13434_vm2, 0, %v7930_v56  ;;  %v10274_v56 = vld [vmem:[%s10588_s27 + $0x8] sm:$0xff]   ;;  %v10275_v23 = vld [vmem:[%s10588_s27 + $0x10] ss:$0 sps:$4 sm:$0xff]   ;;  %p10338_p0 = scmp.lt.s32.totalorder %s13954_s7, %s10336_s2 }
 0x771   : > { %v8429_v35 = vadd.f32 %v8390_v10, %v8321_v9  ;;  %v8430_v7 = vadd.f32 %v8392_v14, %v8322_v53  ;;  %v8496_v29 = vadd.f32 %v13526_v1, %v8427_v0  ;;  %v8497_v48 = vadd.f32 %v8481_v58, %v8428_v28  ;;  %7932 = vst [vmem:[#allocation9 + $0x44] sm:$0x8] %v7931_v26  ;;  %v10273_v28 = vld [vmem:[%s10588_s27] sm:$0xff]   ;;  %p10334_p13 = pneg %p10333_p12  ;;  %s10337_s3 = scalar_lea.vmem %s10336_s2, 1024 }
 0x772   : > { %v8619_v34 = vrot.slane %v8586_v52, 2  ;;  %v7934_v50 = vsel %vm13434_vm2, 0, %v7933_v63  ;;  %v8618_v1 = vsel %vm2888_vm3, %v8616_v4, %v8617_v55  ;;  %v7955_v13 = vsel %vm13427_vm0, 0, %v7954_v32  ;;  %10160 = vmatprep.subr.bf16.mxu0 %v10273_v28  ;;  %10174 = vmatprep.subr.bf16.mxu1 %v10273_v28  ;;  %v7963_v52 = vld [vmem:[#allocation9 + $0x7c] sm:$0x1]  ;;  %p10339_p1 = scmp.lt.s32.totalorder %s10337_s3, %s10331_s1 }
 0x773   : > { %v8498_v6 = vadd.f32 %v13536_v59, %v8429_v35  ;;  %v8499_v3 = vadd.f32 %v8483_v37, %v8430_v7  ;;  %v8548_v20 = vadd.f32 %v8532_v43, %v8496_v29  ;;  %v8549_v46 = vadd.f32 %v8532_v43, %v8497_v48  ;;  %7935 = vst [vmem:[#allocation9 + $0x54] sm:$0x8] %v7934_v50  ;;  %v7957_v43 = vld [vmem:[#allocation9 + $0x5c] sm:$0x1]  ;;  %v7939_v7 = vld [vmem:[#allocation9 + $0x74] sm:$0x8] }
 0x774   : > { %7956 = vst [vmem:[#allocation9 + $0x4c] sm:$0x1] %v7955_v13  ;;  %v8621_v59 = vsel %vm2888_vm3, %v8619_v34, %v8620_v24  ;;  %10161 = vmatpush3.bf16.msra.mxu0 %v10273_v28  ;;  %10177 = vmatpush3.bf16.msra.mxu1 %v10273_v28  ;;  %v8820_v63 = vsel %vm3423_vm13, %v10275_v23, 0  ;;  %v7964_v35 = vsel %vm13427_vm0, 0, %v7963_v52  ;;  %v7966_v29 = vld [vmem:[#allocation9 + $0x8c] sm:$0x1]  ;;  %p10340_p2 = por %p10339_p1, %p10338_p0 }
 0x775   : > { %v8550_v31 = vadd.f32 %v8533_v62, %v8498_v6  ;;  %v8551_v11 = vadd.f32 %v8533_v62, %v8499_v3  ;;  %v8656_v54 = vadd.f32 %v8616_v4, %v8548_v20  ;;  %v8657_v51 = vadd.f32 %v8618_v1, %v8549_v46  ;;  %10162 = vmatprep.subr.bf16.mxu0 %v10274_v56  ;;  %v7960_v32 = vld [vmem:[#allocation9 + $0x6c] sm:$0x1]  ;;  %v7915_v26 = vld [vmem:[#allocation9 + $0x9c] sm:$0x1]  ;;  %v7936_v50 = vld [vmem:[#allocation9 + $0x64] sm:$0x8] }
 0x776   : > { %v7958_v62 = vsel %vm13427_vm0, 0, %v7957_v43  ;;  %10175 = vmatprep.subr.bf16.mxu1 %v10274_v56  ;;  %7965 = vst [vmem:[#allocation9 + $0x7c] sm:$0x1] %v7964_v35  ;;  %v7940_v48 = vsel %vm13434_vm2, 0, %v7939_v7  ;;  %v7967_v4 = vsel %vm13427_vm0, 0, %v7966_v29  ;;  %v7916_v6 = vsel %vm13427_vm0, 0, %v7915_v26  ;;  %p10341_p3 = pnand %p10340_p2, %p10334_p13 }
 0x777   : > { %v8658_v18 = vadd.f32 %v8619_v34, %v8550_v31  ;;  %v8659_v33 = vadd.f32 %v8621_v59, %v8551_v11  ;;  %v8679_v55 = vmul.f32 %v13570_v60, %v8656_v54  ;;  %v8680_v5 = vmul.f32 %v13570_v60, %v8657_v51  ;;  %7959 = vst [vmem:[#allocation9 + $0x5c] sm:$0x1] %v7958_v62  ;;  %v7942_v20 = vld [vmem:[#allocation9 + $0x84] sm:$0x8]  ;;  %v7994_v1 = vld [vmem:[#allocation9 + $0x38] sm:$0xf] }
 0x778   : > { %10163 = vmatpush3.bf16.msra.mxu0 %v10274_v56  ;;  %10178 = vmatpush3.bf16.msra.mxu1 %v10274_v56  ;;  %7941 = vst [vmem:[#allocation9 + $0x74] sm:$0x8] %v7940_v48  ;;  %v7961_v34 = vsel %vm13427_vm0, 0, %v7960_v32  ;;  %7968 = vst [vmem:[#allocation9 + $0x8c] sm:$0x1] %v7967_v4  ;;  %v7937_v3 = vsel %vm13434_vm2, 0, %v7936_v50  ;;  %v8010_v13 = vunpack.c.l.bf16 %v7994_v1  ;;  %v8008_v31 = vunpack.c.h.bf16 %v13522_v39 }
 0x779   : > { %v8681_v2 = vmul.f32 %v13570_v60, %v8658_v18  ;;  %v8682_v10 = vmul.f32 %v13570_v60, %v8659_v33  ;;  %v8702_v38 = vadd.f32 %v13578_v15, %v8679_v55  ;;  %v8703_v58 = vadd.f32 %v13578_v15, %v8680_v5  ;;  %10183 = vmatprep.subr.msk.bf16.mxu0 %vm3423_vm13, %v10275_v23  ;;  %v7991_v11 = vld [vmem:[#allocation9 + $0x24] sm:$0x8]  ;;  %v7993_v54 = vld [vmem:[#allocation9 + $0x34] sm:$0x8]  ;;  %v8109_v51 = vld [vmem:[#allocation9 + $0x2c] sm:$0x1] }
 0x77a   : > { %10184 = vmatprep.subr.msk.bf16.mxu1 %vm3423_vm13, %v10275_v23  ;;  %7962 = vst [vmem:[#allocation9 + $0x6c] sm:$0x1] %v7961_v34  ;;  %7917 = vst [vmem:[#allocation9 + $0x9c] sm:$0x1] %v7916_v6  ;;  %v7943_v46 = vsel %vm13434_vm2, 0, %v7942_v20  ;;  %v8062_v49 = vmul.f32 %v13493_v12, %v8010_v13  ;;  %v8061_v18 = vmul.f32 %v13493_v12, %v8008_v31  ;;  %v8007_v33 = vunpack.c.l.bf16 %v7991_v11 }
 0x77b   : > { %v8704_v8 = vadd.f32 %v13578_v15, %v8681_v2  ;;  %v8705_v24 = vadd.f32 %v13578_v15, %v8682_v10  ;;  %v8718_v17 = vmax.f32 %v8702_v38, 0.0  ;;  %v8719_v16 = vmax.f32 %v8703_v58, 0.0  ;;  %7938 = vst [vmem:[#allocation9 + $0x64] sm:$0x8] %v7937_v3  ;;  %7944 = vst [vmem:[#allocation9 + $0x84] sm:$0x8] %v7943_v46 }
 0x77c   : > { %10165 = vmatpush3.bf16.msra.mxu0 %v8820_v63  ;;  %10179 = vmatpush3.bf16.msra.mxu1 %v8820_v63  ;;  %v8110_v59 = vld [vmem:[#allocation9 + $0x3c] sm:$0x1]  ;;  %v8009_v55 = vunpack.c.l.bf16 %v7993_v54  ;;  %v8117_v5 = vunpack.c.l.bf16 %v8109_v51  ;;  %v8078_v10 = vrot.slane %v8062_v49, 1  ;;  %v8131_v30 = vmul.f32 %v13482_v41, %v8008_v31  ;;  %v8338_v50 = vld [vmem:[#allocation9 + $0x4c] sm:$0x1] }
 0x77d   : > { %v8720_v25 = vmax.f32 %v8704_v8, 0.0  ;;  %v8721_v47 = vmax.f32 %v8705_v24, 0.0  ;;  %v8750_v14 = vrot.slane %v8718_v17, 7  ;;  %v8751_v37 = vrot.slane %v8719_v16, 7  ;;  %v8219_v16 = vld [vmem:[#allocation9 + $0x34] sm:$0x8] }
 0x77e   : > { %v8118_v2 = vunpack.c.l.bf16 %v8110_v59  ;;  %v8077_v38 = vrot.slane %v8061_v18, 1  ;;  %v8027_v58 = vmul.f32 %v13490_v42, %v8007_v33  ;;  %v8029_v39 = vmul.f32 %v13490_v42, %v8009_v55  ;;  %v8337_v48 = vld [vmem:[#allocation9 + $0x3c] sm:$0x1]  ;;  %v8448_v49 = vld [vmem:[#allocation9 + $0x44] sm:$0x8] }
 0x77f   : > { %v8753_v44 = vrot.slane %v8720_v25, 7  ;;  %v8754_v21 = vrot.slane %v8721_v47, 7  ;;  %v8752_v9 = vsel %vm6335_vm8, %v8750_v14, %v8751_v37  ;;  %v8132_v8 = vmul.f32 %v13482_v41, %v8117_v5  ;;  %v8221_v25 = vld [vmem:[#allocation9 + $0x44] sm:$0x8]  ;;  %v8220_v47 = vld [vmem:[#allocation9 + $0x38] sm:$0xf] }
 0x780   : > { %v8133_v24 = vmul.f32 %v13482_v41, %v8010_v13  ;;  %v8134_v17 = vmul.f32 %v13482_v41, %v8118_v2  ;;  %v8222_v14 = vld [vmem:[#allocation9 + $0x48] sm:$0xf]  ;;  %v8095_v37 = vadd.f32 %v8077_v38, %v8027_v58  ;;  %v8235_v28 = vunpack.c.l.bf16 %v8219_v16  ;;  %v8450_v18 = vld [vmem:[#allocation9 + $0x54] sm:$0x8]  ;;  %v8111_v16 = vld [vmem:[#allocation9 + $0x4c] sm:$0x1] }
 0x781   : > { %v8755_v53 = vsel %vm6335_vm8, %v8753_v44, %v8754_v21  ;;  %v8097_v44 = vadd.f32 %v8078_v10, %v8029_v39  ;;  %v8165_v21 = vrot.slane %v8131_v30, 2  ;;  %v8237_v56 = vunpack.c.l.bf16 %v8221_v25  ;;  %v8567_v30 = vld [vmem:[#allocation9 + $0x5c] sm:$0x1] }
 0x782   : > { %v8782_v0 = vpack.c.bf16 %v8755_v53, %v8752_v9  ;;  %v8166_v9 = vrot.slane %v8132_v8, 2  ;;  %v8168_v53 = vrot.slane %v8133_v24, 2  ;;  %v8030_v43 = vmul.f32 %v13490_v42, %v8010_v13 }
 0x783   : > { %v8236_v62 = vunpack.c.l.bf16 %v8220_v47  ;;  %v8028_v23 = vmul.f32 %v13490_v42, %v8008_v31  ;;  %v8238_v52 = vunpack.c.l.bf16 %v8222_v14  ;;  %v8203_v29 = vadd.f32 %v8165_v21, %v8095_v37  ;;  %v8112_v37 = vld [vmem:[#allocation9 + $0x5c] sm:$0x1] }
 0x784   : > { %10166 = vmatprep.mubr.msk.bf16.mxu0 %vm8806_vm1, %v8782_v0  ;;  %v8169_v0 = vrot.slane %v8134_v17, 2  ;;  %v8098_v35 = vadd.f32 %v8078_v10, %v8030_v43  ;;  %v8167_v7 = vsel %vm2888_vm3, %v8165_v21, %v8166_v9  ;;  %v8205_v4 = vadd.f32 %v8168_v53, %v8097_v44  ;;  %v8566_v10 = vld [vmem:[#allocation9 + $0x4c] sm:$0x1]  ;;  %v7995_v43 = vld [vmem:[#allocation9 + $0x44] sm:$0x8] }
 0x785   : > { %v8096_v63 = vadd.f32 %v8077_v38, %v8028_v23  ;;  %v8255_v34 = vmul.f32 %v13496_v57, %v8235_v28  ;;  %v8257_v26 = vmul.f32 %v13496_v57, %v8237_v56  ;;  %v8289_v6 = vmul.f32 %v13508_v27, %v8236_v62 }
 0x786   : > { %v8170_v32 = vsel %vm2888_vm3, %v8168_v53, %v8169_v0  ;;  %v8290_v3 = vmul.f32 %v13508_v27, %v8238_v52  ;;  %v8345_v20 = vunpack.c.l.bf16 %v8337_v48  ;;  %v8346_v13 = vunpack.c.l.bf16 %v8338_v50  ;;  %v8339_v53 = vld [vmem:[#allocation9 + $0x5c] sm:$0x1] }
 0x787   : > { %v8204_v46 = vadd.f32 %v8167_v7, %v8096_v63  ;;  %v8206_v1 = vadd.f32 %v8170_v32, %v8098_v35  ;;  %v8271_v31 = vadd.f32 %v8255_v34, %v8203_v29  ;;  %v8273_v11 = vadd.f32 %v8257_v26, %v8205_v4  ;;  %v8223_v29 = vld [vmem:[#allocation9 + $0x54] sm:$0x8]  ;;  %v8340_v34 = vld [vmem:[#allocation9 + $0x6c] sm:$0x1] }
 0x788   : > { %v8256_v54 = vmul.f32 %v13496_v57, %v8236_v62  ;;  %v8258_v51 = vmul.f32 %v13496_v57, %v8238_v52  ;;  %v8305_v59 = vrot.slane %v8289_v6, 1  ;;  %v8306_v33 = vrot.slane %v8290_v3, 1 }
 0x789   : > { %v8359_v55 = vmul.f32 %v13486_v61, %v8236_v62  ;;  %v8360_v5 = vmul.f32 %v13486_v61, %v8345_v20  ;;  %v8361_v2 = vmul.f32 %v13486_v61, %v8238_v52  ;;  %v8362_v39 = vmul.f32 %v13486_v61, %v8346_v13  ;;  %v7997_v62 = vld [vmem:[#allocation9 + $0x54] sm:$0x8] }
 0x78a   : > { %v8272_v38 = vadd.f32 %v8256_v54, %v8204_v46  ;;  %v8274_v58 = vadd.f32 %v8258_v51, %v8206_v1  ;;  %v8323_v8 = vadd.f32 %v8305_v59, %v8271_v31  ;;  %v8325_v24 = vadd.f32 %v8306_v33, %v8273_v11  ;;  %v8454_v31 = vld [vmem:[#allocation9 + $0x74] sm:$0x8] }
 0x78b   : > { %v8464_v17 = vunpack.c.l.bf16 %v8448_v49  ;;  %v8466_v25 = vunpack.c.l.bf16 %v8450_v18  ;;  %v8574_v47 = vunpack.c.l.bf16 %v8566_v10  ;;  %v8575_v14 = vunpack.c.l.bf16 %v8567_v30 }
 0x78c   : > { %v8393_v44 = vrot.slane %v8359_v55, 2  ;;  %v8394_v21 = vrot.slane %v8360_v5, 2  ;;  %v8396_v9 = vrot.slane %v8361_v2, 2  ;;  %v8324_v0 = vadd.f32 %v8305_v59, %v8272_v38  ;;  %v8225_v59 = vld [vmem:[#allocation9 + $0x64] sm:$0x8] }
 0x78d   : > { %v8326_v28 = vadd.f32 %v8306_v33, %v8274_v58  ;;  %v8397_v56 = vrot.slane %v8362_v39, 2  ;;  %v8119_v23 = vunpack.c.l.bf16 %v8111_v16  ;;  %v8484_v35 = vmul.f32 %v13504_v36, %v8464_v17  ;;  %v13672_v39 = vld [vmem:[#allocation9 + $0x64] sm:$0x8] }
 0x78e   : > { %v8431_v52 = vadd.f32 %v8393_v44, %v8323_v8  ;;  %v8433_v63 = vadd.f32 %v8396_v9, %v8325_v24  ;;  %v8120_v7 = vunpack.c.l.bf16 %v8112_v37  ;;  %v8486_v48 = vmul.f32 %v13504_v36, %v8466_v25 }
 0x78f   : > { %v13639_v32 = vmul.f32 %v13499_v45, %v8574_v47  ;;  %v13642_v4 = vmul.f32 %v13499_v45, %v8575_v14  ;;  %v8347_v26 = vunpack.c.l.bf16 %v8339_v53  ;;  %v8395_v50 = vsel %vm2888_vm3, %v8393_v44, %v8394_v21  ;;  %v8568_v14 = vld [vmem:[#allocation9 + $0x6c] sm:$0x1] }
 0x790   : > { %v8011_v6 = vunpack.c.l.bf16 %v7995_v43  ;;  %v8013_v3 = vunpack.c.l.bf16 %v7997_v62  ;;  %v8398_v20 = vsel %vm2888_vm3, %v8396_v9, %v8397_v56  ;;  %v13646_v46 = vadd.f32 %v8395_v50, %v8324_v0  ;;  %v8569_v0 = vld [vmem:[#allocation9 + $0x7c] sm:$0x1] }
 0x791   : > { %v13649_v1 = vmul.f32 %v13482_v41, %v8119_v23  ;;  %v8239_v13 = vunpack.c.l.bf16 %v8223_v29  ;;  %v13651_v11 = vadd.f32 %v8398_v20, %v8326_v28  ;;  %v13653_v54 = vadd.f32 %v8484_v35, %v8431_v52  ;;  %v8114_v28 = vld [vmem:[#allocation9 + $0x7c] sm:$0x1]  ;;  %v7999_v52 = vld [vmem:[#allocation9 + $0x64] sm:$0x8]  ;;  %v8570_v20 = vld [vmem:[#allocation9 + $0x8c] sm:$0x1] }
 0x792   : > { %v13656_v51 = vmul.f32 %v13482_v41, %v8120_v7  ;;  %v8348_v49 = vunpack.c.l.bf16 %v8340_v34  ;;  %v13658_v33 = vadd.f32 %v8486_v48, %v8433_v63  ;;  %v13663_v2 = vmul.f32 %v13486_v61, %v8347_v26  ;;  %v8113_v63 = vld [vmem:[#allocation9 + $0x6c] sm:$0x1]  ;;  %v8341_v34 = vld [vmem:[#allocation9 + $0x7c] sm:$0x1] }
 0x793   : > { %v13667_v38 = vmul.f32 %v13490_v42, %v8011_v6  ;;  %v13670_v58 = vmul.f32 %v13490_v42, %v8013_v3  ;;  %v8470_v8 = vunpack.c.l.bf16 %v8454_v31  ;;  %v8241_v25 = vunpack.c.l.bf16 %v8225_v59  ;;  %v8342_v26 = vld [vmem:[#allocation9 + $0x8c] sm:$0x1] }
 0x794   : > { %v13677_v47 = vmul.f32 %v13496_v57, %v8239_v13  ;;  %v13683_v53 = vmul.f32 %v13486_v61, %v8348_v49  ;;  %v8468_v23 = vunpack.c.l.bf16 %v13672_v39  ;;  %v8576_v48 = vunpack.c.l.bf16 %v8568_v14  ;;  %v8571_v13 = vld [vmem:[#allocation9 + $0x9c] sm:$0x1]  ;;  %v8001_v49 = vld [vmem:[#allocation9 + $0x74] sm:$0x8] }
 0x795   : > { %v13691_v29 = vmul.f32 %v13504_v36, %v8470_v8  ;;  %v8577_v3 = vunpack.c.l.bf16 %v8569_v0  ;;  %v8227_v8 = vld [vmem:[#allocation9 + $0x74] sm:$0x8]  ;;  %v8350_v14 = vunpack.c.l.bf16 %v8342_v26  ;;  %v8579_v0 = vunpack.c.l.bf16 %v8571_v13 }
 0x815   : > { %v10158_v18 = vpop.f32.mrb[68].mxu0 }
 0x816   : > { %v7877_v10 = vmul.f32 %v10158_v18, %v13465_v40  ;;  %v7849_v30 = vpop.f32.mrb[69].mxu0  ;;  %v8121_v18 = vunpack.c.l.bf16 %v8113_v63  ;;  %v8017_v63 = vunpack.c.l.bf16 %v8001_v49 }
 0x817   : > { %v7875_v24 = vmul.f32 %v13465_v40, %v7849_v30  ;;  %v10159_v17 = vpop.f32.mrb[70].mxu0 }
 0x818   : > { %v7892_v37 = vadd.f32 %v13468_v19, %v7877_v10  ;;  %v7878_v44 = vmul.f32 %v10159_v17, %v13465_v40  ;;  %v7852_v21 = vpop.f32.mrb[71].mxu0  ;;  %v8122_v10 = vunpack.c.l.bf16 %v8114_v28  ;;  %v8349_v17 = vunpack.c.l.bf16 %v8341_v34 }
 0x819   : > { %v7890_v56 = vadd.f32 %v13468_v19, %v7875_v24  ;;  %v7876_v43 = vmul.f32 %v13465_v40, %v7852_v21  ;;  %v13695_v40 = vmul.f32 %v13496_v57, %v8241_v25  ;;  %v8229_v24 = vld [vmem:[#allocation9 + $0x84] sm:$0x8]  ;;  %v8578_v21 = vunpack.c.l.bf16 %v8570_v20 }
 0x81a   : > { %v7900_v35 = vmax.f32 %v7892_v37, 0.0  ;;  %v7893_v7 = vadd.f32 %v13468_v19, %v7878_v44  ;;  %v8015_v37 = vunpack.c.l.bf16 %v7999_v52  ;;  %v8456_v25 = vld [vmem:[#allocation9 + $0x84] sm:$0x8]  ;;  %v8458_v44 = vld [vmem:[#allocation9 + $0x94] sm:$0x8]  ;;  %v13703_v28 = vmul.f32 %v13499_v45, %v8577_v3 }
 0x81b   : > { %v7898_v50 = vmax.f32 %v7890_v56, 0.0  ;;  %v7891_v6 = vadd.f32 %v13468_v19, %v7876_v43  ;;  %v13700_v43 = vmul.f32 %v13499_v45, %v8576_v48  ;;  %v13710_v52 = vmul.f32 %v13482_v41, %v8122_v10 }
 0x81c   : > { %v7975_v31 = vpack.c.bf16 %v7900_v35, %v7900_v35  ;;  %v7901_v59 = vmax.f32 %v7893_v7, 0.0  ;;  %v13707_v35 = vmul.f32 %v13482_v41, %v8121_v18  ;;  %v8243_v7 = vunpack.c.l.bf16 %v8227_v8 }
 0x81d   : > { %v7973_v30 = vpack.c.bf16 %v7898_v50, %v7898_v50  ;;  %v7899_v39 = vmax.f32 %v7891_v6, 0.0  ;;  %v8245_v34 = vunpack.c.l.bf16 %v8229_v24  ;;  %v13714_v26 = vmul.f32 %v13486_v61, %v8349_v17 }
 0x81e   : > { %7983 = vst.msk [vmem:[#allocation9 + $0x78] sm:$0xf] %vm7902_vm12, %v7975_v31  ;;  %v7976_v19 = vpack.c.bf16 %v7901_v59, %v7901_v59  ;;  %v13717_v48 = vmul.f32 %v13486_v61, %v8350_v14  ;;  %v8472_v50 = vunpack.c.l.bf16 %v8456_v25  ;;  %v8474_v6 = vunpack.c.l.bf16 %v8458_v44 }
 0x81f   : > { %7981 = vst.msk [vmem:[#allocation9 + $0x58] sm:$0xf] %vm7902_vm12, %v7973_v30  ;;  %v7974_v56 = vpack.c.bf16 %v7899_v39, %v7899_v39  ;;  %14178 = vst [vmem:[#allocation45_spill] sm:$0xff] %v13714_v26  ;;  %v13721_v20 = vmul.f32 %v13504_v36, %v8468_v23  ;;  %v13724_v13 = vmul.f32 %v13499_v45, %v8578_v21 }
 0x820   : > { %7984 = vst.msk [vmem:[#allocation9 + $0x88] sm:$0xf] %vm7902_vm12, %v7976_v19  ;;  %14179 = vst [vmem:[#allocation50_spill] sm:$0xff] %v13717_v48  ;;  %v13727_v31 = vmul.f32 %v13499_v45, %v8579_v0  ;;  %v13732_v18 = vmul.f32 %v13490_v42, %v8015_v37  ;;  %v13735_v10 = vmul.f32 %v13490_v42, %v8017_v63 }
 0x821   : > { %7982 = vst.msk [vmem:[#allocation9 + $0x68] sm:$0xf] %vm7902_vm12, %v7974_v56  ;;  %14180 = vst [vmem:[#allocation44_spill] sm:$0xff] %v13724_v13  ;;  %v13740_v39 = vmul.f32 %v13496_v57, %v8243_v7  ;;  %v13743_v8 = vmul.f32 %v13496_v57, %v8245_v34  ;;  %v13748_v37 = vmul.f32 %v13504_v36, %v8472_v50 }
 0x822   : > { %14181 = vst [vmem:[#allocation52_spill] sm:$0xff] %v13727_v31  ;;  %v13751_v25 = vmul.f32 %v13504_v36, %v8474_v6 }
 0x823   : > { %14182 = vst [vmem:[#allocation34_spill] sm:$0xff] %v13743_v8  ;;  %14183 = vst [vmem:[#allocation46_spill] sm:$0xff] %v13748_v37  ;;  %v14185_v8 = vrot.slane %v13639_v32, 2 }
 0x824   : > { %14184 = vst [vmem:[#allocation53_spill] sm:$0xff] %v13751_v25 }
 0x825   : > { %v8002_v24 = vld [vmem:[#allocation9 + $0x78] sm:$0xf] }
 0x826   : > { %v8228_v17 = vld [vmem:[#allocation9 + $0x78] sm:$0xf]  ;;  %v8018_v44 = vunpack.c.l.bf16 %v8002_v24 }
 0x827   : > { %v13753_v21 = vunpack.c.l.bf16 %v8228_v17  ;;  %v8449_v0 = vld [vmem:[#allocation9 + $0x48] ss:$16 sps:$4 sm:$0xff]  }
 0x828   : > { %v7996_v56 = vld [vmem:[#allocation9 + $0x48] ss:$16 sps:$4 sm:$0xff]   ;;  %v8465_v23 = vunpack.c.l.bf16 %v8449_v0  ;;  %v8014_v30 = vunpack.c.h.bf16 %v8449_v0  ;;  %v13760_v50 = vmul.f32 %v13490_v42, %v8018_v44  ;;  %v13763_v6 = vmul.f32 %v13493_v12, %v8018_v44 }
 0x829   : > { %v8230_v34 = vld [vmem:[#allocation9 + $0x88] sm:$0xf]  ;;  %v8012_v14 = vunpack.c.l.bf16 %v7996_v56  ;;  %v13757_v19 = vunpack.c.h.bf16 %v7996_v56  ;;  %v13766_v24 = vmul.f32 %v13482_v41, %v8018_v44 }
 0x82a   : > { %v13768_v17 = vunpack.c.l.bf16 %v8230_v34  ;;  %v8000_v63 = vld [vmem:[#allocation9 + $0x58] ss:$16 sps:$4 sm:$0xff]   ;;  %v8485_v59 = vmul.f32 %v13504_v36, %v8465_v23  ;;  %v8518_v0 = vmul.f32 %v13531_v22, %v8465_v23  ;;  %v8588_v3 = vmul.f32 %v13499_v45, %v8465_v23 }
 0x82b   : > { %v8016_v49 = vunpack.c.h.bf16 %v8000_v63  ;;  %v8467_v7 = vunpack.c.l.bf16 %v8000_v63  ;;  %v8032_v62 = vmul.f32 %v13490_v42, %v8012_v14  ;;  %v8034_v9 = vmul.f32 %v13490_v42, %v8014_v30 }
 0x82c   : > { %v8501_v5 = vadd.f32 %v8485_v59, %v13646_v46  ;;  %v8534_v23 = vrot.slane %v8518_v0, 1  ;;  %v8622_v13 = vrot.slane %v8588_v3, 2  ;;  %v8063_v25 = vmul.f32 %v13493_v12, %v8012_v14 }
 0x82d   : > { %v13777_v44 = vmul.f32 %v13490_v42, %v8016_v49  ;;  %v13780_v34 = vmul.f32 %v13493_v12, %v8016_v49  ;;  %v13783_v63 = vmul.f32 %v13482_v41, %v8016_v49  ;;  %v8487_v16 = vmul.f32 %v13504_v36, %v8467_v7 }
 0x82e   : > { %v8519_v56 = vmul.f32 %v13531_v22, %v8467_v7  ;;  %v8590_v55 = vmul.f32 %v13499_v45, %v8467_v7  ;;  %v8552_v49 = vadd.f32 %v8534_v23, %v13653_v54  ;;  %v8553_v48 = vadd.f32 %v8534_v23, %v8501_v5 }
 0x82f   : > { %v8503_v42 = vadd.f32 %v8487_v16, %v13651_v11  ;;  %v8624_v46 = vsel %vm2888_vm3, %v8622_v13, %v14185_v8  ;;  %v8064_v59 = vmul.f32 %v13493_v12, %v8014_v30  ;;  %v8079_v0 = vrot.slane %v8063_v25, 1 }
 0x830   : > { %v8535_v37 = vrot.slane %v8519_v56, 1  ;;  %v8625_v26 = vrot.slane %v8590_v55, 2  ;;  %v8135_v7 = vmul.f32 %v13482_v41, %v8012_v14  ;;  %v14186_v16 = vrot.slane %v13642_v4, 2  ;;  %v8226_v14 = vld [vmem:[#allocation9 + $0x68] ss:$16 sps:$4 sm:$0xff]  }
 0x831   : > { %v8660_v56 = vadd.f32 %v8622_v13, %v8552_v49  ;;  %v8661_v54 = vadd.f32 %v8624_v46, %v8553_v48  ;;  %v8080_v5 = vrot.slane %v8064_v59, 1  ;;  %v8099_v55 = vadd.f32 %v8079_v0, %v13667_v38 }
 0x832   : > { %v8554_v31 = vadd.f32 %v8535_v37, %v13658_v33  ;;  %v8555_v11 = vadd.f32 %v8535_v37, %v8503_v42  ;;  %v8627_v3 = vsel %vm2888_vm3, %v8625_v26, %v14186_v16  ;;  %v8100_v32 = vadd.f32 %v8079_v0, %v8032_v62 }
 0x833   : > { %v8683_v12 = vmul.f32 %v13570_v60, %v8660_v56  ;;  %v8137_v25 = vmul.f32 %v13482_v41, %v8014_v30  ;;  %v8684_v33 = vmul.f32 %v13570_v60, %v8661_v54  ;;  %v8101_v37 = vadd.f32 %v8080_v5, %v13670_v58 }
 0x834   : > { %v8662_v23 = vadd.f32 %v8625_v26, %v8554_v31  ;;  %v8663_v8 = vadd.f32 %v8627_v3, %v8555_v11  ;;  %v8102_v4 = vadd.f32 %v8080_v5, %v8034_v9  ;;  %v8171_v42 = vrot.slane %v8135_v7, 2 }
 0x835   : > { %v8706_v38 = vadd.f32 %v13578_v15, %v8683_v12  ;;  %v8174_v62 = vrot.slane %v8137_v25, 2  ;;  %v8707_v26 = vadd.f32 %v13578_v15, %v8684_v33  ;;  %v14187_v31 = vrot.slane %v13649_v1, 2 }
 0x836   : > { %v8685_v13 = vmul.f32 %v13570_v60, %v8662_v23  ;;  %v8686_v48 = vmul.f32 %v13570_v60, %v8663_v8  ;;  %v8207_v30 = vadd.f32 %v8171_v42, %v8099_v55  ;;  %v8242_v49 = vunpack.c.l.bf16 %v8226_v14 }
 0x837   : > { %v8173_v41 = vsel %vm2888_vm3, %v8171_v42, %v14187_v31  ;;  %v8722_v9 = vmax.f32 %v8706_v38, 0.0  ;;  %v14188_v59 = vrot.slane %v13656_v51, 2  ;;  %v8723_v7 = vmax.f32 %v8707_v26, 0.0  ;;  %v13824_v51 = vld [vmem:[#allocation9 + $0x68] ss:$48 sps:$4 sm:$0xff]  }
 0x838   : > { %v8708_v46 = vadd.f32 %v13578_v15, %v8685_v13  ;;  %v8709_v58 = vadd.f32 %v13578_v15, %v8686_v48  ;;  %v8208_v11 = vadd.f32 %v8173_v41, %v8100_v32  ;;  %v8209_v16 = vadd.f32 %v8174_v62, %v8101_v37 }
 0x839   : > { %v8176_v0 = vsel %vm2888_vm3, %v8174_v62, %v14188_v59  ;;  %v8756_v1 = vrot.slane %v8722_v9, 7  ;;  %v8260_v5 = vmul.f32 %v13496_v57, %v13757_v19  ;;  %v8757_v55 = vrot.slane %v8723_v7, 7 }
 0x83a   : > { %v8210_v3 = vadd.f32 %v8176_v0, %v8102_v4  ;;  %v8724_v56 = vmax.f32 %v8708_v46, 0.0  ;;  %v8725_v54 = vmax.f32 %v8709_v58, 0.0  ;;  %v8262_v23 = vmul.f32 %v13496_v57, %v8242_v49 }
 0x83b   : > { %v8275_v8 = vadd.f32 %v13677_v47, %v8207_v30  ;;  %v8277_v12 = vadd.f32 %v13695_v40, %v8209_v16  ;;  %v8276_v32 = vadd.f32 %v8260_v5, %v8208_v11  ;;  %v8291_v37 = vmul.f32 %v13508_v27, %v13757_v19 }
 0x83c   : > { %v8759_v25 = vrot.slane %v8724_v56, 7  ;;  %v8760_v33 = vrot.slane %v8725_v54, 7  ;;  %v8758_v4 = vsel %vm6335_vm8, %v8756_v1, %v8757_v55  ;;  %v8278_v42 = vadd.f32 %v8262_v23, %v8210_v3 }
 0x83d   : > { %v8292_v13 = vmul.f32 %v13508_v27, %v8242_v49  ;;  %v8363_v48 = vmul.f32 %v13486_v61, %v13757_v19  ;;  %v8307_v38 = vrot.slane %v8291_v37, 1  ;;  %v8365_v40 = vmul.f32 %v13486_v61, %v8242_v49 }
 0x83e   : > { %v8761_v47 = vsel %vm6335_vm8, %v8759_v25, %v8760_v33  ;;  %v8469_v62 = vunpack.c.l.bf16 %v13824_v51  ;;  %v8471_v30 = vunpack.c.h.bf16 %v8226_v14  ;;  %v14189_v7 = vrot.slane %v13663_v2, 2 }
 0x83f   : > { %v8783_v26 = vpack.c.bf16 %v8761_v47, %v8758_v4  ;;  %v8308_v31 = vrot.slane %v8292_v13, 1  ;;  %v8399_v41 = vrot.slane %v8363_v48, 2  ;;  %v8327_v46 = vadd.f32 %v8307_v38, %v8275_v8 }
 0x840   : > { %v8328_v58 = vadd.f32 %v8307_v38, %v8276_v32  ;;  %v8402_v9 = vrot.slane %v8365_v40, 2  ;;  %v8489_v59 = vmul.f32 %v13504_v36, %v8469_v62  ;;  %v8491_v49 = vmul.f32 %v13504_v36, %v8471_v30 }
 0x841   : > { %10167 = vmatmul.mubr.msk.bf16.vlgmr.msra.gmra.mrb[72].mxu0 %vm8806_vm1, %v8783_v26  ;;  %v8329_v0 = vadd.f32 %v8308_v31, %v8277_v12  ;;  %v8330_v19 = vadd.f32 %v8308_v31, %v8278_v42  ;;  %v8401_v11 = vsel %vm2888_vm3, %v8399_v41, %v14189_v7  ;;  %v14190_v16 = vrot.slane %v13683_v53, 2 }
 0x842   : > { %v8435_v14 = vadd.f32 %v8399_v41, %v8327_v46  ;;  %v8436_v56 = vadd.f32 %v8401_v11, %v8328_v58  ;;  %v8520_v54 = vmul.f32 %v13531_v22, %v8469_v62  ;;  %v8521_v55 = vmul.f32 %v13531_v22, %v8471_v30 }
 0x843   : > { %v8404_v3 = vsel %vm2888_vm3, %v8402_v9, %v14190_v16  ;;  %v8437_v1 = vadd.f32 %v8402_v9, %v8329_v0  ;;  %v8592_v23 = vmul.f32 %v13499_v45, %v8469_v62  ;;  %v8594_v25 = vmul.f32 %v13499_v45, %v8471_v30 }
 0x844   : > { %v8438_v5 = vadd.f32 %v8404_v3, %v8330_v19  ;;  %v8504_v2 = vadd.f32 %v13721_v20, %v8435_v14  ;;  %v8505_v8 = vadd.f32 %v8489_v59, %v8436_v56  ;;  %v8536_v12 = vrot.slane %v8520_v54, 1 }
 0x845   : > { %v8506_v53 = vadd.f32 %v13691_v29, %v8437_v1  ;;  %v8537_v32 = vrot.slane %v8521_v55, 1  ;;  %v8628_v37 = vrot.slane %v8592_v23, 2  ;;  %v8631_v13 = vrot.slane %v8594_v25, 2 }
 0x846   : > { %v8507_v33 = vadd.f32 %v8491_v49, %v8438_v5  ;;  %v8556_v4 = vadd.f32 %v8536_v12, %v8504_v2  ;;  %v8557_v42 = vadd.f32 %v8536_v12, %v8505_v8  ;;  %v14191_v48 = vrot.slane %v13780_v34, 1 }
 0x847   : > { %v8558_v38 = vadd.f32 %v8537_v32, %v8506_v53  ;;  %v14192_v20 = vrot.slane %v13700_v43, 2  ;;  %v14194_v26 = vrot.slane %v13703_v28, 2  ;;  %v14195_v46 = vrot.slane %v13763_v6, 1  ;;  %v8457_v53 = vld [vmem:[#allocation9 + $0x88] sm:$0xf] }
 0x848   : > { %v8103_v47 = vadd.f32 %v14191_v48, %v13732_v18  ;;  %v8559_v40 = vadd.f32 %v8537_v32, %v8507_v33  ;;  %v14193_v45 = vmov %v14191_v48  ;;  %v8664_v41 = vadd.f32 %v8628_v37, %v8556_v4 }
 0x849   : > { %v8630_v62 = vsel %vm2888_vm3, %v8628_v37, %v14192_v20  ;;  %v8104_v29 = vadd.f32 %v14193_v45, %v13777_v44  ;;  %v8633_v31 = vsel %vm2888_vm3, %v8631_v13, %v14194_v26  ;;  %v8105_v18 = vadd.f32 %v14195_v46, %v13735_v10 }
 0x84a   : > { %v8665_v30 = vadd.f32 %v8630_v62, %v8557_v42  ;;  %v8666_v58 = vadd.f32 %v8631_v13, %v8558_v38  ;;  %v8667_v9 = vadd.f32 %v8633_v31, %v8559_v40  ;;  %v14196_v43 = vmov %v14195_v46  ;;  %v14200_v46 = vld [vmem:[#allocation45_spill] sm:$0xff] }
 0x84b   : > { %v8106_v59 = vadd.f32 %v14196_v43, %v13760_v50  ;;  %v8177_v0 = vrot.slane %v13783_v63, 2  ;;  %v8687_v44 = vmul.f32 %v13570_v60, %v8664_v41  ;;  %v8180_v34 = vrot.slane %v13766_v24, 2 }
 0x84c   : > { %v8688_v28 = vmul.f32 %v13570_v60, %v8665_v30  ;;  %v8264_v19 = vmul.f32 %v13496_v57, %v13753_v21  ;;  %v8689_v7 = vmul.f32 %v13570_v60, %v8666_v58  ;;  %v8690_v10 = vmul.f32 %v13570_v60, %v8667_v9 }
 0x84d   : > { %v14197_v11 = vrot.slane %v13707_v35, 2  ;;  %v8211_v50 = vadd.f32 %v8177_v0, %v8103_v47  ;;  %v8710_v63 = vadd.f32 %v13578_v15, %v8687_v44  ;;  %v14198_v16 = vrot.slane %v13710_v52, 2  ;;  %v14199_v52 = vld [vmem:[#allocation34_spill] sm:$0xff] }
 0x84e   : > { %v8711_v49 = vadd.f32 %v13578_v15, %v8688_v28  ;;  %v8712_v14 = vadd.f32 %v13578_v15, %v8689_v7  ;;  %v8713_v56 = vadd.f32 %v13578_v15, %v8690_v10  ;;  %v8213_v54 = vadd.f32 %v8180_v34, %v8105_v18  ;;  %v14204_v7 = vld [vmem:[#allocation46_spill] sm:$0xff] }
 0x84f   : > { %v8179_v6 = vsel %vm2888_vm3, %v8177_v0, %v14197_v11  ;;  %v8182_v24 = vsel %vm2888_vm3, %v8180_v34, %v14198_v16  ;;  %v8726_v5 = vmax.f32 %v8710_v63, 0.0  ;;  %v8266_v55 = vmul.f32 %v13496_v57, %v13768_v17 }
 0x850   : > { %v8212_v3 = vadd.f32 %v8179_v6, %v8104_v29  ;;  %v8214_v1 = vadd.f32 %v8182_v24, %v8106_v59  ;;  %v8727_v35 = vmax.f32 %v8711_v49, 0.0  ;;  %v8279_v23 = vadd.f32 %v13740_v39, %v8211_v50  ;;  %v10322_v6 = vld [vmem:[%s14175_s16 + $0x8] ss:$0 sm:$0xff]  ;;  %v14205_v49 = vld [vmem:[#allocation53_spill] sm:$0xff] }
 0x851   : > { %v8728_v2 = vmax.f32 %v8712_v14, 0.0  ;;  %v8729_v8 = vmax.f32 %v8713_v56, 0.0  ;;  %v8281_v25 = vadd.f32 %v14199_v52, %v8213_v54  ;;  %v8762_v33 = vrot.slane %v8726_v5, 7 }
 0x852   : > { %v8280_v12 = vadd.f32 %v8264_v19, %v8212_v3  ;;  %v8763_v32 = vrot.slane %v8727_v35, 7  ;;  %v8282_v37 = vadd.f32 %v8266_v55, %v8214_v1  ;;  %v8293_v4 = vmul.f32 %v13508_v27, %v13753_v21  ;;  %v14206_v55 = vld [vmem:[#allocation44_spill] sm:$0xff] }
 0x853   : > { %v8765_v42 = vrot.slane %v8728_v2, 7  ;;  %v8766_v13 = vrot.slane %v8729_v8, 7  ;;  %v8294_v48 = vmul.f32 %v13508_v27, %v13768_v17  ;;  %v8367_v57 = vmul.f32 %v13486_v61, %v13753_v21  ;;  %v14208_v2 = vld [vmem:[#allocation52_spill] sm:$0xff] }
 0x854   : > { %v8764_v39 = vsel %vm6335_vm8, %v8762_v33, %v8763_v32  ;;  %v8309_v47 = vrot.slane %v8293_v4, 1  ;;  %v8369_v38 = vmul.f32 %v13486_v61, %v13768_v17  ;;  %v8473_v40 = vunpack.c.l.bf16 %v8457_v53  ;;  %v14202_v17 = vld [vmem:[#allocation50_spill] sm:$0xff] }
 0x855   : > { %v8767_v20 = vsel %vm6335_vm8, %v8765_v42, %v8766_v13  ;;  %v8310_v62 = vrot.slane %v8294_v48, 1  ;;  %v8405_v45 = vrot.slane %v8367_v57, 2  ;;  %v8475_v29 = vunpack.c.h.bf16 %v13824_v51 }
 0x856   : > { %v8784_v26 = vpack.c.bf16 %v8767_v20, %v8764_v39  ;;  %v8331_v31 = vadd.f32 %v8309_v47, %v8279_v23  ;;  %v8332_v41 = vadd.f32 %v8309_v47, %v8280_v12  ;;  %v8408_v27 = vrot.slane %v8369_v38, 2 }
 0x857   : > { %v8333_v30 = vadd.f32 %v8310_v62, %v8281_v25  ;;  %v8334_v21 = vadd.f32 %v8310_v62, %v8282_v37  ;;  %v14201_v18 = vrot.slane %v14200_v46, 2  ;;  %v8493_v61 = vmul.f32 %v13504_v36, %v8473_v40 }
 0x858   : > { %10170 = vmatprep.mubr.msk.bf16.mxu1 %vm8806_vm1, %v8784_v26  ;;  %v14203_v9 = vrot.slane %v14202_v17, 2  ;;  %v8439_v51 = vadd.f32 %v8405_v45, %v8331_v31  ;;  %v8495_v0 = vmul.f32 %v13504_v36, %v8475_v29  ;;  %v8522_v34 = vmul.f32 %v13531_v22, %v8473_v40 }
 0x859   : > { %v8407_v58 = vsel %vm2888_vm3, %v8405_v45, %v14201_v18  ;;  %v8441_v44 = vadd.f32 %v8408_v27, %v8333_v30  ;;  %v8523_v19 = vmul.f32 %v13531_v22, %v8475_v29  ;;  %v8596_v50 = vmul.f32 %v10322_v6, %v8473_v40  ;;  %v9434_v30 = vld [vmem:[%s10598_s12] ss:$0 sm:$0xff] }
 0x85a   : > { %v8410_v43 = vsel %vm2888_vm3, %v8408_v27, %v14203_v9  ;;  %v8440_v59 = vadd.f32 %v8407_v58, %v8332_v41  ;;  %v8508_v10 = vadd.f32 %v14204_v7, %v8439_v51  ;;  %v8598_v63 = vmul.f32 %v10322_v6, %v8475_v29  ;;  %v9433_v27 = vld [vmem:[%s14210_s4] ss:$0 sm:$0xff] }
 0x85b   : > { %v8442_v28 = vadd.f32 %v8410_v43, %v8334_v21  ;;  %v8510_v16 = vadd.f32 %v14205_v49, %v8441_v44  ;;  %v8538_v3 = vrot.slane %v8522_v34, 1  ;;  %v8539_v14 = vrot.slane %v8523_v19, 1 }
 0x85c   : > { %v8509_v11 = vadd.f32 %v8493_v61, %v8440_v59  ;;  %v8634_v56 = vrot.slane %v8596_v50, 2  ;;  %v8637_v54 = vrot.slane %v8598_v63, 2  ;;  %v14207_v23 = vrot.slane %v14206_v55, 2  ;;  %v10323_v59 = vld [vmem:[#allocation8 + $0x10] sm:$0xff]  ;;  %v10326_v50 = vld [vmem:[#allocation8 + $0x8] sm:$0xff] }
 0x85d   : > { %v8511_v24 = vadd.f32 %v8495_v0, %v8442_v28  ;;  %v8560_v36 = vadd.f32 %v8538_v3, %v8508_v10  ;;  %v8562_v5 = vadd.f32 %v8539_v14, %v8510_v16  ;;  %v14209_v8 = vrot.slane %v14208_v2, 2  ;;  %v10324_v28 = vld [vmem:[#allocation8] sm:$0xff]  ;;  %v10325_v10 = vld [vmem:[#allocation8 + $0x18] sm:$0xff] }
 0x85e   : > { %v8561_v1 = vadd.f32 %v8538_v3, %v8509_v11  ;;  %v8636_v22 = vsel %vm2888_vm3, %v8634_v56, %v14207_v23  ;;  %v10327_v23 = vld [vmem:[#allocation8 + $0x30] sm:$0xff] }
 0x85f   : > { %v8563_v35 = vadd.f32 %v8539_v14, %v8511_v24  ;;  %v8639_v12 = vsel %vm2888_vm3, %v8637_v54, %v14209_v8  ;;  %v8668_v52 = vadd.f32 %v8634_v56, %v8560_v36  ;;  %v8670_v53 = vadd.f32 %v8637_v54, %v8562_v5  ;;  %v10328_v8 = vld [vmem:[#allocation8 + $0x20] sm:$0xff] }
 0x860   : > { %v8669_v25 = vadd.f32 %v8636_v22, %v8561_v1  ;;  %vm8933_vm3 = vcmask 125952  }
 0x861   : > { %v8671_v33 = vadd.f32 %v8639_v12, %v8563_v35  ;;  %v8691_v32 = vmul.f32 %v13570_v60, %v8668_v52  ;;  %v8693_v4 = vmul.f32 %v13570_v60, %v8670_v53  ;;  %v10329_v53 = vld [vmem:[#allocation8 + $0x38] sm:$0xff] }
 0x862   : > { %v8692_v37 = vmul.f32 %v13570_v60, %v8669_v25 }
 0x863   : > { %v8694_v42 = vmul.f32 %v13570_v60, %v8671_v33  ;;  %v8714_v13 = vadd.f32 %v13578_v15, %v8691_v32  ;;  %v8716_v57 = vadd.f32 %v13578_v15, %v8693_v4 }
 0x864   : > { %v8715_v48 = vadd.f32 %v13578_v15, %v8692_v37  ;;  %v10330_v37 = vld [vmem:[#allocation8 + $0x28] sm:$0xff] }
 0x865   : > { %v8717_v39 = vadd.f32 %v13578_v15, %v8694_v42  ;;  %v8730_v47 = vmax.f32 %v8714_v13, 0.0  ;;  %v8732_v40 = vmax.f32 %v8716_v57, 0.0 }
 0x866   : > { %v8731_v38 = vmax.f32 %v8715_v48, 0.0 }
 0x867   : > { %v8733_v20 = vmax.f32 %v8717_v39, 0.0  ;;  %v8768_v62 = vrot.slane %v8730_v47, 7  ;;  %v8771_v29 = vrot.slane %v8732_v40, 7 }
 0x868   : > { %v8769_v45 = vrot.slane %v8731_v38, 7 }
 0x869   : > { %v8772_v60 = vrot.slane %v8733_v20, 7 }
 0x86a   : > { %v8770_v26 = vsel %vm6335_vm8, %v8768_v62, %v8769_v45 }
 0x86b   : > { %v8773_v31 = vsel %vm6335_vm8, %v8771_v29, %v8772_v60 }
 0x86c   : > { %v8785_v41 = vpack.c.bf16 %v8773_v31, %v8770_v26 }
 0x86e   : > { %10171 = vmatmul.mubr.msk.bf16.vlgmr.msra.gmra.mrb[72].mxu1 %vm8806_vm1, %v8785_v41 }
 0x914   : > { %v10168_v15 = vpop.f32.mrb[72].mxu0 }
 0x915   : > { %v8896_v21 = vmul.f32 %v10168_v15, %v9433_v27  ;;  %v8856_v46 = vpop.f32.mrb[73].mxu0 }
 0x916   : > { %v8894_v18 = vmul.f32 %v9433_v27, %v8856_v46  ;;  %v10169_v58 = vpop.f32.mrb[74].mxu0 }
 0x917   : > { %v8911_v61 = vadd.f32 %v9434_v30, %v8896_v21  ;;  %v8897_v17 = vmul.f32 %v10169_v58, %v9433_v27  ;;  %v8859_v9 = vpop.f32.mrb[75].mxu0 }
 0x918   : > { %v8909_v43 = vadd.f32 %v9434_v30, %v8894_v18  ;;  %v8895_v51 = vmul.f32 %v9433_v27, %v8859_v9 }
 0x919   : > { %v8919_v0 = vadd.f32 %v10323_v59, %v8911_v61  ;;  %v8912_v44 = vadd.f32 %v9434_v30, %v8897_v17 }
 0x91a   : > { %v8917_v34 = vadd.f32 %v10324_v28, %v8909_v43  ;;  %v8910_v19 = vadd.f32 %v9434_v30, %v8895_v51 }
 0x91b   : > { %v8927_v7 = vpack.c.bf16 %v8919_v0, %v8919_v0  ;;  %v8920_v11 = vadd.f32 %v10325_v10, %v8912_v44 }
 0x91c   : > { %v8925_v6 = vpack.c.bf16 %v8917_v34, %v8917_v34  ;;  %v8918_v63 = vadd.f32 %v10326_v50, %v8910_v19 }
 0x91d   : > { %8936 = vst.msk [vmem:[%s13937_s26 + $0x8] sm:$0xf] %vm8933_vm3, %v8927_v7  ;;  %v8928_v49 = vpack.c.bf16 %v8920_v11, %v8920_v11 }
 0x91e   : > { %8934 = vst.msk [vmem:[%s13937_s26] sm:$0xf] %vm8933_vm3, %v8925_v6  ;;  %v8926_v16 = vpack.c.bf16 %v8918_v63, %v8918_v63 }
 0x91f   : > { %8937 = vst.msk [vmem:[%s13937_s26 + $0xc] sm:$0xf] %vm8933_vm3, %v8928_v49 }
 0x920   : > { %8935 = vst.msk [vmem:[%s13937_s26 + $0x4] sm:$0xf] %vm8933_vm3, %v8926_v16 }
 0x941   : > { %v10172_v24 = vpop.f32.mrb[72].mxu1 }
 0x942   : > { %v8900_v3 = vmul.f32 %v10172_v24, %v9433_v27  ;;  %v8872_v14 = vpop.f32.mrb[73].mxu1 }
 0x943   : > { %v8898_v56 = vmul.f32 %v9433_v27, %v8872_v14  ;;  %v10173_v54 = vpop.f32.mrb[74].mxu1 }
 0x944   : > { %v8915_v36 = vadd.f32 %v9434_v30, %v8900_v3  ;;  %v8901_v1 = vmul.f32 %v10173_v54, %v9433_v27  ;;  %v8875_v5 = vpop.f32.mrb[75].mxu1 }
 0x945   : > { %v8913_v35 = vadd.f32 %v9434_v30, %v8898_v56  ;;  %v8899_v55 = vmul.f32 %v9433_v27, %v8875_v5 }
 0x946   : > { %v8923_v22 = vadd.f32 %v10327_v23, %v8915_v36  ;;  %v8916_v2 = vadd.f32 %v9434_v30, %v8901_v1 }
 0x947   : > { %v8921_v12 = vadd.f32 %v10328_v8, %v8913_v35  ;;  %v8914_v52 = vadd.f32 %v9434_v30, %v8899_v55 }
 0x948   : > { %v8931_v25 = vpack.c.bf16 %v8923_v22, %v8923_v22  ;;  %v8924_v33 = vadd.f32 %v10329_v53, %v8916_v2 }
 0x949   : > { %v8929_v32 = vpack.c.bf16 %v8921_v12, %v8921_v12  ;;  %v8922_v4 = vadd.f32 %v10330_v37, %v8914_v52 }
 0x94a   : > { %8940 = vst.msk [vmem:[%s13937_s26 + $0x18] sm:$0xf] %vm8933_vm3, %v8931_v25  ;;  %v8932_v42 = vpack.c.bf16 %v8924_v33, %v8924_v33 }
 0x94b   : > { %8938 = vst.msk [vmem:[%s13937_s26 + $0x10] sm:$0xf] %vm8933_vm3, %v8929_v32  ;;  %v8930_v13 = vpack.c.bf16 %v8922_v4, %v8922_v4 }
 0x94c   : > { %8941 = vst.msk [vmem:[%s13937_s26 + $0x1c] sm:$0xf] %vm8933_vm3, %v8932_v42 }
 0x94d   : > { %8939 = vst.msk [vmem:[%s13937_s26 + $0x14] sm:$0xf] %vm8933_vm3, %v8930_v13 }
 0x94e   : > { %10344 = shalt.err (!%p10341_p3)
}
 0x94f   : > { %s10345_s18 = scalar_lea.hbm %s13952_s10, 512  ;;  %s10349_s26 = scalar_lea.hbm %s10603_s20, 1024 }
 0x950   : > { %p10346_p4 = scmp.ne.s32.totalorder %s13952_s10, %s10345_s18  ;;  %p10350_p9 = scmp.lt.u32.totalorder %s13952_s10, %s10603_s20 }
 0x951   : > { %p10351_p10 = scmp.lt.u32.totalorder %s10349_s26, %s10345_s18  ;;  %p10353_p12 = scmp.lt.u32.totalorder %s10345_s18, %s13952_s10 }
 0x952   : > { %p10347_p7 = pnand %p10346_p4, %p10643_p5 }
 0x953   : > { %p10352_p11 = por %p10351_p10, %p10350_p9 }
 0x954   : > { %p10348_p8 = pneg %p10347_p7 }
 0x955   : > { %p10354_p0 = por %p10353_p12, %p10352_p11 }
 0x957   : > { %p10355_p13 = pnand %p10354_p0, %p10348_p8 }
 0x959   : > { %10358 = shalt.err (!%p10355_p13)
}
 0x95a   : > { %s10438_s3 = smov 64   ;;  %s10439_s2 = smov 4  }
 0x95b   : > { %10185 = dma.vmem_to_hbm [thread:$0]  (%p10643_p5), %s13954_s7, 512, %s13952_s10, %s13964_s0, %s10438_s3, %s10438_s3, %s10439_s2  }
 0x95c PF: > { %p10191_p1 = scmp.ge.s32.totalorder %s10393_s28, 2  ;;  %s8971_s11 = sand.u32 1, %s10381_s22  }
 0x95d   : > { %s8972_s18 = scalar_lea.sflag [#allocation11], %s8971_s11 }
 0x95e   : > { %p10188_p2 = pnand %p10191_p1, %p10647_p6 }
 0x960   : > { %10376 = dma.done.wait (!%p10188_p2), %s8972_s18, 512  }
 0x961   : > { %10378 = vsyncadd (!%p10188_p2), %s8972_s18, 4294966784  ;;  %s14212_s28 = sld [smem:[#allocation31_spill]]  ;;  %s14213_s26 = sld [smem:[#allocation30_spill]] }
 0x962   : > { %s14214_s4 = sld [smem:[#allocation32_spill]]  ;;  %s14215_s22 = smov %s10385_s23 }
 0x967   : > { %p73_p3 = scmp.ge.s32.totalorder %s14212_s28, 4   ;;  %s14216_s23 = smov %s14213_s26 }
 0x968   : > { %s14217_s26 = smov %s14214_s4 }
 0x969   :  { %75 = sbr.rel (!%p73_p3) target bundleno = 61 (0x3d), region = 582 }
 0x970   :  { %8977 = vsyncpa [#allocation11], 1 }
 0x971   :  { %8979 = vsyncpa [#allocation11 + $0x1], 1 }

</bundles_post_ra>
